<compile_context>
chip_gen: v6e
topology: v6e:2x2x1
jax: 0.10.0
libtpu: 0.0.40
codegen_flags: <defaults>
</compile_context>

<pallas_src>
import jax
import jax.numpy as jnp
from jax.experimental import pallas as pl
from jax.experimental.pallas import tpu as pltpu


def _round_up(x, m):
    return ((x + m - 1) // m) * m


def _const_spec(block_shape):
    """BlockSpec for a block whose index never changes (fetched once).

    Request single buffering so the block does not reserve a pointless second
    VMEM copy; fall back to the default spec if this jax version does not
    support pipeline_mode.
    """
    try:
        return pl.BlockSpec(block_shape, lambda i: (0, 0),
                            pipeline_mode=pl.Buffered(1))
    except (TypeError, ValueError, AttributeError):
        return pl.BlockSpec(block_shape, lambda i: (0, 0))


def _dqn_kernel(x_ref, w1_ref, s_ref, b1_ref, w2_ref, b2_ref, o_ref):
    # In-kernel cast of x to bf16 on the VPU (no wrapper-side pad/cast pass).
    x_bf16 = x_ref[...].astype(jnp.bfloat16)
    # Dequantise int8 weights to bf16 (exact: |int8| <= 127 < 256).
    w1_bf16 = w1_ref[...].astype(jnp.bfloat16)
    # fc1 on the MXU with f32 accumulation; per-output-column scale applied
    # after the dot (mathematically identical to scaling the weights).
    h = jnp.dot(x_bf16, w1_bf16, preferred_element_type=jnp.float32)
    h = jnp.maximum(h * s_ref[...] + b1_ref[...], 0.0)
    # fc2 (512 -> 1): VPU multiply + cross-lane reduce; keeps the 1-column
    # matmul off the MXU.
    o = jnp.sum(h * w2_ref[...], axis=-1, keepdims=True) + b2_ref[...]
    o_ref[...] = jnp.maximum(o, 0.0).astype(o_ref.dtype)


def dqn_forward(x, w1_i8, w1_scale, b1, w2_row, b2, *, b_tile=256):
    """Fused dqn forward.

    x:        (B, z_len) f32   -- cast to bf16 inside the kernel
    w1_i8:    (z_len, 512) int8 -- fc1 weight, pre-transposed, int8-quantised
    w1_scale: (1, 512)   f32    -- per-output-column dequant scale
    b1:       (1, 512)   f32
    w2_row:   (1, 512)   f32    -- fc2 weight in PyTorch (out, in) layout, out=1
    b2:       (1, 1)     f32
    returns   (B, 1)     f32
    """
    B, Z = x.shape
    Zw, H = w1_i8.shape
    out_len = b2.shape[1]
    assert Zw == Z, (Zw, Z)
    assert out_len == 1 and w2_row.shape == (out_len, H)
    assert w1_scale.shape == (1, H) and b1.shape == (1, H)
    # (8,128) rule: the batch tile is the sublane dim of the x block.
    assert b_tile % 8 == 0, "b_tile must be a multiple of 8 (sublane tiling)"

    bt = min(b_tile, _round_up(B, 8))
    Bp = _round_up(B, bt)
    xp = x if Bp == B else jnp.pad(x, ((0, Bp - B), (0, 0)))
    grid = (Bp // bt,)

    # Megacore (v7x): sharding the batch axis across the two TensorCores
    # duplicates the w1 DMA into each core's private VMEM. Only go parallel
    # once x traffic clearly dominates the weight load.
    x_bytes = Bp * Z * x.dtype.itemsize
    w1_bytes = Zw * H  # int8
    semantics = ("parallel",) if (grid[0] > 1 and x_bytes >= 4 * w1_bytes) \
        else ("arbitrary",)

    out = pl.pallas_call(
        _dqn_kernel,
        out_shape=jax.ShapeDtypeStruct((Bp, out_len), jnp.float32),
        grid=grid,
        in_specs=[
            pl.BlockSpec((bt, Z), lambda i: (i, 0)),  # x tile moves with batch
            _const_spec((Zw, H)),                     # w1 int8: fetched once
            _const_spec((1, H)),                      # dequant scale
            _const_spec((1, H)),                      # b1
            _const_spec((1, H)),                      # w2 row
            _const_spec((1, out_len)),                # b2
        ],
        out_specs=pl.BlockSpec((bt, out_len), lambda i: (i, 0)),
        compiler_params=pltpu.CompilerParams(
            dimension_semantics=semantics,
            # Actual footprint is a few MiB; 32 MiB is comfortably under
            # v7x's 64 MiB physical VMEM.
            vmem_limit_bytes=32 * 1024 * 1024,
        ),
    )(xp, w1_i8, w1_scale, b1, w2_row, b2)

    return out[:B]


def init_params(key, z_len, hidden, out_len):
    """Deterministic synthetic parameters (fc1 z_len->512, fc2 512->1).

    Note: in the reference PyTorch code `weights_initialize` is applied to the
    nn.Sequential wrappers (the isinstance check fails), so the xavier init is
    a no-op there; we use a deterministic scaled-normal init here.
    fc1 weight is stored transposed (in, out) and symmetrically int8-quantised
    per output column (scale kept in f32).
    """
    k1, k2 = jax.random.split(key)
    w1 = jax.random.normal(k1, (z_len, hidden), jnp.float32) / jnp.sqrt(z_len)
    w1_scale = jnp.max(jnp.abs(w1), axis=0, keepdims=True) / 127.0   # (1, H)
    w1_i8 = jnp.clip(jnp.round(w1 / w1_scale), -127, 127).astype(jnp.int8)
    b1 = jnp.full((1, hidden), 0.01, jnp.float32)
    w2_row = jax.random.normal(k2, (out_len, hidden), jnp.float32) / jnp.sqrt(hidden)
    b2 = jnp.full((1, out_len), 0.01, jnp.float32)
    return w1_i8, w1_scale, b1, w2_row, b2


def reference_forward(x, w1_i8, w1_scale, b1, w2_row, b2):
    """Pure-JAX reference with identical bf16/int8 rounding and f32 accumulation."""
    xb = x.astype(jnp.bfloat16)
    wb = w1_i8.astype(jnp.bfloat16)   # exact
    h = jnp.dot(xb, wb, preferred_element_type=jnp.float32) * w1_scale + b1
    h = jnp.maximum(h, 0.0)
    o = jnp.sum(h * w2_row, axis=-1, keepdims=True) + b2
    return jnp.maximum(o, 0.0)


if __name__ == "__main__":
    # Module-implied feature shapes: z_len = 2048 + 4, hidden = 512, output = 1.
    # Batch of 128 fills one MXU row tile and amortizes the ~1 MB int8 weight DMA.
    B = 128
    Z_LEN = 2048 + 4
    HIDDEN = 512
    OUT_LEN = 1

    key = jax.random.PRNGKey(0)
    kx, kp = jax.random.split(key)
    x = jax.random.normal(kx, (B, Z_LEN), jnp.float32)
    w1_i8, w1_scale, b1, w2, b2 = init_params(kp, Z_LEN, HIDDEN, OUT_LEN)

    fwd = jax.jit(dqn_forward)
    out = jax.block_until_ready(fwd(x, w1_i8, w1_scale, b1, w2, b2))

    ref = reference_forward(x, w1_i8, w1_scale, b1, w2, b2)
    assert out.shape == (B, OUT_LEN), out.shape
    assert jnp.allclose(out, ref, atol=2e-3, rtol=2e-3), (out[:4], ref[:4])

    print("KERNEL_OK")
</pallas_src>

<mosaic_0001>
module attributes {stable_mosaic.version = 11 : i64} {
  func.func @_dqn_kernel(%arg0: i32, %arg1: memref<128x2052xf32, #tpu.memory_space<vmem>>, %arg2: memref<2052x512xi8, #tpu.memory_space<vmem>>, %arg3: memref<1x512xf32, #tpu.memory_space<vmem>>, %arg4: memref<1x512xf32, #tpu.memory_space<vmem>>, %arg5: memref<1x512xf32, #tpu.memory_space<vmem>>, %arg6: memref<1x1xf32, #tpu.memory_space<vmem>>, %arg7: memref<128x1xf32, #tpu.memory_space<vmem>>) attributes {dimension_semantics = [#tpu.dimension_semantics<arbitrary>], iteration_bounds = array<i64: 1>, scalar_prefetch = 0 : i64, scratch_operands = 0 : i64, tpu.core_type = #tpu.core_type<tc>, window_params = [{transform_indices = @transform_0, window_bounds = array<i64: 128, 2052>}, {pipeline_mode = #tpu.pipeline_mode<synchronous>, transform_indices = @transform_1, window_bounds = array<i64: 2052, 512>}, {pipeline_mode = #tpu.pipeline_mode<synchronous>, transform_indices = @transform_2, window_bounds = array<i64: 1, 512>}, {pipeline_mode = #tpu.pipeline_mode<synchronous>, transform_indices = @transform_3, window_bounds = array<i64: 1, 512>}, {pipeline_mode = #tpu.pipeline_mode<synchronous>, transform_indices = @transform_4, window_bounds = array<i64: 1, 512>}, {pipeline_mode = #tpu.pipeline_mode<synchronous>, transform_indices = @transform_5, window_bounds = array<i64: 1, 1>}, {transform_indices = @transform_6, window_bounds = array<i64: 128, 1>}]} {
    %c0 = arith.constant 0 : index
    %c0_0 = arith.constant 0 : index
    %0 = vector.load %arg1[%c0, %c0_0] : memref<128x2052xf32, #tpu.memory_space<vmem>>, vector<128x2052xf32>
    %1 = arith.truncf %0 : vector<128x2052xf32> to vector<128x2052xbf16>
    %c0_1 = arith.constant 0 : index
    %c0_2 = arith.constant 0 : index
    %2 = vector.load %arg2[%c0_1, %c0_2] : memref<2052x512xi8, #tpu.memory_space<vmem>>, vector<2052x512xi8>
    %3 = arith.sitofp %2 : vector<2052x512xi8> to vector<2052x512xbf16>
    %cst = arith.constant dense<0.000000e+00> : vector<128x512xf32>
    %4 = tpu.matmul %1, %3, %cst {dimension_numbers = #tpu.dot_dimension_numbers<[1], [0], [0], [1], [0, 0, 1, 1], [], []>} : vector<128x2052xbf16>, vector<2052x512xbf16>, vector<128x512xf32> -> vector<128x512xf32>
    %c0_3 = arith.constant 0 : index
    %c0_4 = arith.constant 0 : index
    %5 = vector.load %arg3[%c0_3, %c0_4] : memref<1x512xf32, #tpu.memory_space<vmem>>, vector<1x512xf32>
    %6 = vector.broadcast %5 : vector<1x512xf32> to vector<128x512xf32>
    %7 = arith.mulf %4, %6 : vector<128x512xf32>
    %c0_5 = arith.constant 0 : index
    %c0_6 = arith.constant 0 : index
    %8 = vector.load %arg4[%c0_5, %c0_6] : memref<1x512xf32, #tpu.memory_space<vmem>>, vector<1x512xf32>
    %9 = vector.broadcast %8 : vector<1x512xf32> to vector<128x512xf32>
    %10 = arith.addf %7, %9 : vector<128x512xf32>
    %cst_7 = arith.constant 0.000000e+00 : f32
    %11 = vector.broadcast %cst_7 : f32 to vector<128x512xf32>
    %12 = arith.maximumf %10, %11 : vector<128x512xf32>
    %c0_8 = arith.constant 0 : index
    %c0_9 = arith.constant 0 : index
    %13 = vector.load %arg5[%c0_8, %c0_9] : memref<1x512xf32, #tpu.memory_space<vmem>>, vector<1x512xf32>
    %14 = vector.broadcast %13 : vector<1x512xf32> to vector<128x512xf32>
    %15 = arith.mulf %12, %14 : vector<128x512xf32>
    %cst_10 = arith.constant dense<0.000000e+00> : vector<128xf32>
    %16 = vector.multi_reduction <add>, %15, %cst_10 [1] : vector<128x512xf32> to vector<128xf32>
    %17 = vector.shape_cast %16 : vector<128xf32> to vector<128x1xf32>
    %c0_11 = arith.constant 0 : index
    %c0_12 = arith.constant 0 : index
    %18 = vector.load %arg6[%c0_11, %c0_12] : memref<1x1xf32, #tpu.memory_space<vmem>>, vector<1x1xf32>
    %19 = vector.broadcast %18 : vector<1x1xf32> to vector<128x1xf32>
    %20 = arith.addf %17, %19 : vector<128x1xf32>
    %cst_13 = arith.constant 0.000000e+00 : f32
    %21 = vector.broadcast %cst_13 : f32 to vector<128x1xf32>
    %22 = arith.maximumf %20, %21 : vector<128x1xf32>
    %c0_14 = arith.constant 0 : index
    %c0_15 = arith.constant 0 : index
    %23 = vector.load %arg7[%c0_14, %c0_15] : memref<128x1xf32, #tpu.memory_space<vmem>>, vector<128x1xf32>
    tpu.vector_store %arg7[%c0_14, %c0_15], %22 {strides = array<i32>} : memref<128x1xf32, #tpu.memory_space<vmem>>, vector<128x1xf32>,
    return
  }
  func.func @transform_0(%arg0: i32) -> (i32, i32) {
    %c0_i32 = arith.constant 0 : i32
    %c0_i32_0 = arith.constant 0 : i32
    return %arg0, %c0_i32 : i32, i32
  }
  func.func @transform_1(%arg0: i32) -> (i32, i32) {
    %c0_i32 = arith.constant 0 : i32
    %c0_i32_0 = arith.constant 0 : i32
    %c0_i32_1 = arith.constant 0 : i32
    return %c0_i32, %c0_i32_0 : i32, i32
  }
  func.func @transform_2(%arg0: i32) -> (i32, i32) {
    %c0_i32 = arith.constant 0 : i32
    %c0_i32_0 = arith.constant 0 : i32
    %c0_i32_1 = arith.constant 0 : i32
    return %c0_i32, %c0_i32_0 : i32, i32
  }
  func.func @transform_3(%arg0: i32) -> (i32, i32) {
    %c0_i32 = arith.constant 0 : i32
    %c0_i32_0 = arith.constant 0 : i32
    %c0_i32_1 = arith.constant 0 : i32
    return %c0_i32, %c0_i32_0 : i32, i32
  }
  func.func @transform_4(%arg0: i32) -> (i32, i32) {
    %c0_i32 = arith.constant 0 : i32
    %c0_i32_0 = arith.constant 0 : i32
    %c0_i32_1 = arith.constant 0 : i32
    return %c0_i32, %c0_i32_0 : i32, i32
  }
  func.func @transform_5(%arg0: i32) -> (i32, i32) {
    %c0_i32 = arith.constant 0 : i32
    %c0_i32_0 = arith.constant 0 : i32
    %c0_i32_1 = arith.constant 0 : i32
    return %c0_i32, %c0_i32_0 : i32, i32
  }
  func.func @transform_6(%arg0: i32) -> (i32, i32) {
    %c0_i32 = arith.constant 0 : i32
    %c0_i32_0 = arith.constant 0 : i32
    return %arg0, %c0_i32 : i32, i32
  }
}

</mosaic_0001>

<bundles_post_ra>
// kernel: dqn_forward.1
= control target key start
LH: loop header
LB: loop body
LE: loop exit
PB: predicated region body
PF: predicated region fallthrough
CT: control target
= control target key end

     0   :  { %vm3800_vm0 = vcmask 1041408   ;;  %vm3775_vm1 = vcmask 31744   ;;  %vm6288_vm2 = vcmask 7168   ;;  %s11415_s1 = inlined_call_operand.vmem [shape: s8[2052,512], index: 1, kind: input, shape index: {}]   ;;  %s11416_s0 = inlined_call_operand.vmem [shape: f32[128,2052], index: 0, kind: input, shape index: {}]   ;;  %s11417_s2 = inlined_call_operand.vmem [shape: f32[1,512], index: 2, kind: input, shape index: {}]   ;;  %s11418_s3 = inlined_call_operand.vmem [shape: f32[1,512], index: 3, kind: input, shape index: {}]   ;;  %s11419_s4 = inlined_call_operand.vmem [shape: f32[1,512], index: 4, kind: input, shape index: {}]   ;;  %s11420_s5 = inlined_call_operand.<no memory space> [shape: f32[1,1], index: 5, kind: input, shape index: {}]   ;;  %s11421_s6 = inlined_call_operand.vmem [shape: f32[128,1], index: 6, kind: output, shape index: {}]  }
   0x1   :  { %v7140_v0 = vld [vmem:[%s11415_s1 + $0x70] sm:$0xff]  ;;  %v7145_v1 = vld [vmem:[%s11415_s1 + $0x78] sm:$0xff]  ;;  %v446_v8 = vld [vmem:[%s11415_s1 + $0x60] sm:$0xff] }
   0x2   :  { %v7150_v2 = vld [vmem:[%s11415_s1 + $0x170] sm:$0xff]  ;;  %v719_v3 = vunpack.c.l.s8.bf16 %v7140_v0  ;;  %v11424_v4 = vunpack.c.h.s8.bf16 %v7140_v0  ;;  %v721_v5 = vunpack.c.l.s8.bf16 %v7145_v1  ;;  %v11425_v6 = vunpack.c.h.s8.bf16 %v7145_v1  ;;  %v7159_v7 = vld [vmem:[%s11415_s1 + $0x178] sm:$0xff]  ;;  %v447_v9 = vld [vmem:[%s11415_s1 + $0x68] sm:$0xff] }
   0x3   :  { %v783_v10 = vunpack.c.l.s8.bf16 %v7150_v2  ;;  %v11422_v11 = vunpack.c.h.s8.bf16 %v7150_v2  ;;  %v785_v12 = vunpack.c.l.s8.bf16 %v7159_v7  ;;  %v11423_v13 = vunpack.c.h.s8.bf16 %v7159_v7  ;;  %v478_v14 = vld [vmem:[%s11415_s1 + $0x160] sm:$0xff]  ;;  %v479_v15 = vld [vmem:[%s11415_s1 + $0x168] sm:$0xff]  ;;  %v444_v16 = vld [vmem:[%s11415_s1 + $0x50] sm:$0xff] }
   0x4   :  { %v6338_v17 = vcombine.high %v719_v3, %v721_v5  ;;  %v7184_v18 = vcombine.low %v11424_v4, %v11425_v6  ;;  %v6337_v19 = vcombine.low %v719_v3, %v721_v5  ;;  %v715_v20 = vunpack.c.l.s8.bf16 %v446_v8  ;;  %v445_v21 = vld [vmem:[%s11415_s1 + $0x58] sm:$0xff]  ;;  %v476_v22 = vld [vmem:[%s11415_s1 + $0x150] sm:$0xff]  ;;  %v442_v32 = vld [vmem:[%s11415_s1 + $0x40] sm:$0xff] }
   0x5   :  { %v477_v23 = vld [vmem:[%s11415_s1 + $0x158] sm:$0xff]  ;;  %v6402_v24 = vcombine.high %v783_v10, %v785_v12  ;;  %v7199_v25 = vcombine.low %v11422_v11, %v11423_v13  ;;  %v6401_v26 = vcombine.low %v783_v10, %v785_v12  ;;  %v717_v27 = vunpack.c.l.s8.bf16 %v447_v9  ;;  %v443_v33 = vld [vmem:[%s11415_s1 + $0x48] sm:$0xff]  ;;  %v474_v38 = vld [vmem:[%s11415_s1 + $0x140] sm:$0xff] }
   0x6   :  { %3813 = vmatprep.subr.bf16.mxu0 %v6338_v17  ;;  %v779_v28 = vunpack.c.l.s8.bf16 %v478_v14  ;;  %v781_v29 = vunpack.c.l.s8.bf16 %v479_v15  ;;  %v711_v30 = vunpack.c.l.s8.bf16 %v444_v16  ;;  %v713_v31 = vunpack.c.l.s8.bf16 %v445_v21  ;;  %v475_v39 = vld [vmem:[%s11415_s1 + $0x148] sm:$0xff]  ;;  %v440_v46 = vld [vmem:[%s11415_s1 + $0x30] sm:$0xff]  ;;  %v441_v47 = vld [vmem:[%s11415_s1 + $0x38] sm:$0xff] }
   0x7   :  { %3926 = vmatprep.subr.bf16.mxu1 %v6402_v24  ;;  %3814 = vmatpush1.bf16.msra.mxu0 %v6337_v19  ;;  %v6334_v34 = vcombine.high %v715_v20, %v717_v27  ;;  %v6333_v35 = vcombine.low %v715_v20, %v717_v27  ;;  %v775_v36 = vunpack.c.l.s8.bf16 %v476_v22  ;;  %v777_v37 = vunpack.c.l.s8.bf16 %v477_v23  ;;  %v472_v50 = vld [vmem:[%s11415_s1 + $0x130] sm:$0xff]  ;;  %v473_v51 = vld [vmem:[%s11415_s1 + $0x138] sm:$0xff]  ;;  %v438_v60 = vld [vmem:[%s11415_s1 + $0x20] sm:$0xff] }
   0x8   :  { %3927 = vmatpush1.bf16.msra.mxu1 %v6401_v26  ;;  %v6398_v40 = vcombine.high %v779_v28, %v781_v29  ;;  %v6397_v41 = vcombine.low %v779_v28, %v781_v29  ;;  %v6330_v42 = vcombine.high %v711_v30, %v713_v31  ;;  %v707_v44 = vunpack.c.l.s8.bf16 %v442_v32  ;;  %v439_v61 = vld [vmem:[%s11415_s1 + $0x28] sm:$0xff]  ;;  %v470_v62 = vld [vmem:[%s11415_s1 + $0x120] sm:$0xff]  ;;  %v436_v16 = vld [vmem:[%s11415_s1 + $0x10] sm:$0xff] }
   0x9   :  { %3815 = vmatprep.subr.bf16.mxu0 %v6334_v34  ;;  %v6394_v43 = vcombine.high %v775_v36, %v777_v37  ;;  %v709_v45 = vunpack.c.l.s8.bf16 %v443_v33  ;;  %v771_v48 = vunpack.c.l.s8.bf16 %v474_v38  ;;  %v773_v49 = vunpack.c.l.s8.bf16 %v475_v39  ;;  %v471_v63 = vld [vmem:[%s11415_s1 + $0x128] sm:$0xff]  ;;  %v437_v17 = vld [vmem:[%s11415_s1 + $0x18] sm:$0xff]  ;;  %v468_v19 = vld [vmem:[%s11415_s1 + $0x110] sm:$0xff] }
   0xa   :  { %3928 = vmatprep.subr.bf16.mxu1 %v6398_v40  ;;  %v6329_v52 = vcombine.low %v711_v30, %v713_v31  ;;  %v6393_v53 = vcombine.low %v775_v36, %v777_v37  ;;  %v703_v55 = vunpack.c.l.s8.bf16 %v440_v46  ;;  %v705_v56 = vunpack.c.l.s8.bf16 %v441_v47  ;;  %v469_v20 = vld [vmem:[%s11415_s1 + $0x118] sm:$0xff]  ;;  %v434_v30 = vld [vmem:[%s11415_s1] sm:$0xff]  ;;  %v435_v31 = vld [vmem:[%s11415_s1 + $0x8] sm:$0xff] }
   0xb   :  { %3816 = vmatpush1.bf16.msra.mxu0 %v6333_v35  ;;  %v6326_v54 = vcombine.high %v707_v44, %v709_v45  ;;  %v6390_v57 = vcombine.high %v771_v48, %v773_v49  ;;  %v767_v58 = vunpack.c.l.s8.bf16 %v472_v50  ;;  %v769_v59 = vunpack.c.l.s8.bf16 %v473_v51  ;;  %v466_v32 = vld [vmem:[%s11415_s1 + $0x100] sm:$0xff]  ;;  %v467_v33 = vld [vmem:[%s11415_s1 + $0x108] sm:$0xff] }
   0xc   :  { %3929 = vmatpush1.bf16.msra.mxu1 %v6397_v41  ;;  %3817 = vmatprep.subr.bf16.mxu0 %v6330_v42  ;;  %v6325_v3 = vcombine.low %v707_v44, %v709_v45  ;;  %v6389_v5 = vcombine.low %v771_v48, %v773_v49  ;;  %v6322_v8 = vcombine.high %v703_v55, %v705_v56  ;;  %v699_v9 = vunpack.c.l.s8.bf16 %v438_v60  ;;  %v464_v42 = vld [vmem:[%s11415_s1 + $0xf0] sm:$0xff]  ;;  %v497_v45 = vld [vmem:[%s11415_s1 + $0x1f8] sm:$0xff] }
   0xd   :  { %3930 = vmatprep.subr.bf16.mxu1 %v6394_v43  ;;  %v701_v10 = vunpack.c.l.s8.bf16 %v439_v61  ;;  %v6386_v12 = vcombine.high %v767_v58, %v769_v59  ;;  %v763_v14 = vunpack.c.l.s8.bf16 %v470_v62  ;;  %v765_v15 = vunpack.c.l.s8.bf16 %v471_v63  ;;  %v465_v43 = vld [vmem:[%s11415_s1 + $0xf8] sm:$0xff]  ;;  %v496_v44 = vld [vmem:[%s11415_s1 + $0x1f0] sm:$0xff]  ;;  %v46_v62 = vld [vmem:[%s11416_s0 + $0xa0] sm:$0xff] }
   0xe   :  { %v6321_v21 = vcombine.low %v703_v55, %v705_v56  ;;  %v6385_v22 = vcombine.low %v767_v58, %v769_v59  ;;  %v695_v24 = vunpack.c.l.s8.bf16 %v436_v16  ;;  %v697_v26 = vunpack.c.l.s8.bf16 %v437_v17  ;;  %v463_v55 = vld [vmem:[%s11415_s1 + $0xe8] sm:$0xff]  ;;  %v494_v56 = vld [vmem:[%s11415_s1 + $0x1e0] sm:$0xff]  ;;  %v44_v60 = vld [vmem:[%s11416_s0 + $0x90] sm:$0xff] }
   0xf   :  { %3818 = vmatpush1.bf16.msra.mxu0 %v6329_v52  ;;  %v6318_v23 = vcombine.high %v699_v9, %v701_v10  ;;  %v6382_v27 = vcombine.high %v763_v14, %v765_v15  ;;  %v759_v28 = vunpack.c.l.s8.bf16 %v468_v19  ;;  %v761_v29 = vunpack.c.l.s8.bf16 %v469_v20  ;;  %v27_v58 = vld [vmem:[%s11416_s0 + $0x8] sm:$0xff]  ;;  %v29_v61 = vld [vmem:[%s11416_s0 + $0x18] sm:$0xff]  ;;  %v492_v16 = vld [vmem:[%s11415_s1 + $0x1d0] sm:$0xff] }
  0x10   :  { %3931 = vmatpush1.bf16.msra.mxu1 %v6393_v53  ;;  %3819 = vmatprep.subr.bf16.mxu0 %v6326_v54  ;;  %v6317_v34 = vcombine.low %v699_v9, %v701_v10  ;;  %v6381_v35 = vcombine.low %v763_v14, %v765_v15  ;;  %v6314_v36 = vcombine.high %v695_v24, %v697_v26  ;;  %v691_v37 = vunpack.c.l.s8.bf16 %v434_v30  ;;  %v462_v54 = vld [vmem:[%s11415_s1 + $0xe0] sm:$0xff]  ;;  %v460_v14 = vld [vmem:[%s11415_s1 + $0xd0] sm:$0xff]  ;;  %v461_v15 = vld [vmem:[%s11415_s1 + $0xd8] sm:$0xff] }
  0x11   :  { %3932 = vmatprep.subr.bf16.mxu1 %v6390_v57  ;;  %v693_v38 = vunpack.c.l.s8.bf16 %v435_v31  ;;  %v6378_v39 = vcombine.high %v759_v28, %v761_v29  ;;  %v755_v40 = vunpack.c.l.s8.bf16 %v466_v32  ;;  %v757_v41 = vunpack.c.l.s8.bf16 %v467_v33  ;;  %v495_v57 = vld [vmem:[%s11415_s1 + $0x1e8] sm:$0xff]  ;;  %v493_v17 = vld [vmem:[%s11415_s1 + $0x1d8] sm:$0xff]  ;;  %v458_v30 = vld [vmem:[%s11415_s1 + $0xc0] sm:$0xff] }
  0x12   :  { %v6313_v46 = vcombine.low %v695_v24, %v697_v26  ;;  %v6377_v47 = vcombine.low %v759_v28, %v761_v29  ;;  %v751_v49 = vunpack.c.l.s8.bf16 %v464_v42  ;;  %v753_v50 = vunpack.c.l.s8.bf16 %v465_v43  ;;  %v459_v31 = vld [vmem:[%s11415_s1 + $0xc8] sm:$0xff]  ;;  %v490_v32 = vld [vmem:[%s11415_s1 + $0x1c0] sm:$0xff]  ;;  %v456_v42 = vld [vmem:[%s11415_s1 + $0xb0] sm:$0xff] }
  0x13   :  { %3820 = vmatpush1.bf16.msra.mxu0 %v6325_v3  ;;  %v6310_v48 = vcombine.high %v691_v37, %v693_v38  ;;  %v6374_v51 = vcombine.high %v755_v40, %v757_v41  ;;  %v815_v52 = vunpack.c.l.s8.bf16 %v496_v44  ;;  %v817_v53 = vunpack.c.l.s8.bf16 %v497_v45  ;;  %v491_v33 = vld [vmem:[%s11415_s1 + $0x1c8] sm:$0xff]  ;;  %v457_v43 = vld [vmem:[%s11415_s1 + $0xb8] sm:$0xff]  ;;  %v488_v44 = vld [vmem:[%s11415_s1 + $0x1b0] sm:$0xff] }
  0x14   :  { %3933 = vmatpush1.bf16.msra.mxu1 %v6389_v5  ;;  %3821 = vmatprep.subr.bf16.mxu0 %v6322_v8  ;;  %v6309_v59 = vcombine.low %v691_v37, %v693_v38  ;;  %v6373_v63 = vcombine.low %v755_v40, %v757_v41  ;;  %v6370_v3 = vcombine.high %v751_v49, %v753_v50  ;;  %v747_v5 = vunpack.c.l.s8.bf16 %v462_v54  ;;  %v489_v45 = vld [vmem:[%s11415_s1 + $0x1b8] sm:$0xff]  ;;  %v454_v54 = vld [vmem:[%s11415_s1 + $0xa0] sm:$0xff] }
  0x15   :  { %3934 = vmatprep.subr.bf16.mxu1 %v6386_v12  ;;  %v749_v8 = vunpack.c.l.s8.bf16 %v463_v55  ;;  %v6434_v9 = vcombine.high %v815_v52, %v817_v53  ;;  %v811_v10 = vunpack.c.l.s8.bf16 %v494_v56  ;;  %v813_v12 = vunpack.c.l.s8.bf16 %v495_v57  ;;  %v455_v55 = vld [vmem:[%s11415_s1 + $0xa8] sm:$0xff]  ;;  %v486_v56 = vld [vmem:[%s11415_s1 + $0x1a0] sm:$0xff] }
  0x16   :  { %v7309_v19 = vpack.c.bf16 %v44_v60, %v27_v58  ;;  %v7311_v20 = vpack.c.bf16 %v46_v62, %v29_v61  ;;  %v743_v24 = vunpack.c.l.s8.bf16 %v460_v14  ;;  %v745_v26 = vunpack.c.l.s8.bf16 %v461_v15  ;;  %v487_v57 = vld [vmem:[%s11415_s1 + $0x1a8] sm:$0xff] }
  0x17   :  { %3822 = vmatpush1.bf16.msra.mxu0 %v6321_v21  ;;  %v6369_v21 = vcombine.low %v751_v49, %v753_v50  ;;  %v807_v28 = vunpack.c.l.s8.bf16 %v492_v16  ;;  %v809_v29 = vunpack.c.l.s8.bf16 %v493_v17  ;;  %v739_v37 = vunpack.c.l.s8.bf16 %v458_v30 }
  0x18   :  { %3935 = vmatpush1.bf16.msra.mxu1 %v6385_v22  ;;  %3823 = vmatprep.subr.bf16.mxu0 %v6318_v23  ;;  %11551 = vst [vmem:[#allocation3_spill] sm:$0xff] %v7311_v20  ;;  %v6433_v22 = vcombine.low %v815_v52, %v817_v53  ;;  %v6366_v23 = vcombine.high %v747_v5, %v749_v8  ;;  %v741_v38 = vunpack.c.l.s8.bf16 %v459_v31  ;;  %v803_v40 = vunpack.c.l.s8.bf16 %v490_v32 }
  0x19   :  { %3936 = vmatprep.subr.bf16.mxu1 %v6382_v27  ;;  %v6430_v27 = vcombine.high %v811_v10, %v813_v12  ;;  %3845 = vmatprep.mubr.bf16.mxu0 %v7309_v19  ;;  %v805_v41 = vunpack.c.l.s8.bf16 %v491_v33  ;;  %v735_v49 = vunpack.c.l.s8.bf16 %v456_v42  ;;  %v737_v50 = vunpack.c.l.s8.bf16 %v457_v43 }
  0x1a   :  { %3958 = vmatprep.mubr.bf16.mxu1 %v7311_v20  ;;  %v799_v52 = vunpack.c.l.s8.bf16 %v488_v44  ;;  %v801_v53 = vunpack.c.l.s8.bf16 %v489_v45  ;;  %v6357_v58 = vcombine.low %v739_v37, %v741_v38  ;;  %v731_v61 = vunpack.c.l.s8.bf16 %v454_v54 }
  0x1b   :  { %3824 = vmatpush1.bf16.msra.mxu0 %v6317_v34  ;;  %v6365_v34 = vcombine.low %v747_v5, %v749_v8  ;;  %v6354_v60 = vcombine.high %v735_v49, %v737_v50  ;;  %v733_v62 = vunpack.c.l.s8.bf16 %v455_v55  ;;  %v797_v5 = vunpack.c.l.s8.bf16 %v487_v57  ;;  %v452_v8 = vld [vmem:[%s11415_s1 + $0x90] sm:$0xff]  ;;  %v26_v55 = vld [vmem:[%s11416_s0] sm:$0xff] }
  0x1c   :  { %3937 = vmatpush1.bf16.msra.mxu1 %v6381_v35  ;;  %3825 = vmatprep.subr.bf16.mxu0 %v6314_v36  ;;  %v6429_v35 = vcombine.low %v811_v10, %v813_v12  ;;  %v6362_v36 = vcombine.high %v743_v24, %v745_v26  ;;  %v484_v10 = vld [vmem:[%s11415_s1 + $0x190] sm:$0xff]  ;;  %v485_v12 = vld [vmem:[%s11415_s1 + $0x198] sm:$0xff]  ;;  %v6353_v14 = vcombine.low %v735_v49, %v737_v50  ;;  %v727_v17 = vunpack.c.l.s8.bf16 %v452_v8  ;;  %v510_v50 = vld [vmem:[%s11415_s1 + $0x260] sm:$0xff] }
  0x1d   :  { %3938 = vmatprep.subr.bf16.mxu1 %v6378_v39  ;;  %v6426_v39 = vcombine.high %v807_v28, %v809_v29  ;;  %v6417_v15 = vcombine.low %v799_v52, %v801_v53  ;;  %v6350_v16 = vcombine.high %v731_v61, %v733_v62  ;;  %v6349_v30 = vcombine.low %v731_v61, %v733_v62  ;;  %v61_v8 = vld [vmem:[%s11416_s0 + $0x118] sm:$0xff] }
  0x1e   :  { %v843_v61 = vunpack.c.l.s8.bf16 %v510_v50  ;;  %v95_v50 = vld [vmem:[%s11416_s0 + $0x228] sm:$0xff] }
  0x1f   :  { %3826 = vmatpush1.bf16.msra.mxu0 %v6313_v46  ;;  %v6361_v46 = vcombine.low %v743_v24, %v745_v26  ;;  %v793_v24 = vunpack.c.l.s8.bf16 %v485_v12  ;;  %v450_v26 = vld [vmem:[%s11415_s1 + $0x80] sm:$0xff] }
  0x20   :  { %3939 = vmatpush1.bf16.msra.mxu1 %v6377_v47  ;;  %3827 = vmatprep.subr.bf16.mxu0 %v6310_v48  ;;  %v6425_v47 = vcombine.low %v807_v28, %v809_v29  ;;  %v6358_v48 = vcombine.high %v739_v37, %v741_v38  ;;  %v482_v28 = vld [vmem:[%s11415_s1 + $0x180] sm:$0xff]  ;;  %v483_v29 = vld [vmem:[%s11415_s1 + $0x188] sm:$0xff]  ;;  %v723_v33 = vunpack.c.l.s8.bf16 %v450_v26  ;;  %v512_v38 = vld [vmem:[%s11415_s1 + $0x270] sm:$0xff] }
  0x21   :  { %3940 = vmatprep.subr.bf16.mxu1 %v6374_v51  ;;  %v6422_v51 = vcombine.high %v803_v40, %v805_v41  ;;  %v789_v37 = vunpack.c.l.s8.bf16 %v483_v29  ;;  %v847_v45 = vunpack.c.l.s8.bf16 %v512_v38 }
  0x23   :  { %3828 = vmatpush1.bf16.msra.mxu0 %v6309_v59  ;;  %v6421_v59 = vcombine.low %v803_v40, %v805_v41  ;;  %v544_v40 = vld [vmem:[%s11415_s1 + $0x370] sm:$0xff]  ;;  %v545_v41 = vld [vmem:[%s11415_s1 + $0x378] sm:$0xff] }
  0x24   :  { %3941 = vmatpush1.bf16.msra.mxu1 %v6373_v63  ;;  %3829 = vmatprep.subr.bf16.mxu0 %v6370_v3  ;;  %v6418_v63 = vcombine.high %v799_v52, %v801_v53  ;;  %v795_v3 = vunpack.c.l.s8.bf16 %v486_v56  ;;  %v913_v49 = vunpack.c.l.s8.bf16 %v545_v41  ;;  %v542_v52 = vld [vmem:[%s11415_s1 + $0x360] sm:$0xff]  ;;  %v543_v53 = vld [vmem:[%s11415_s1 + $0x368] sm:$0xff] }
  0x25   :  { %3942 = vmatprep.subr.bf16.mxu1 %v6434_v9  ;;  %v453_v9 = vld [vmem:[%s11415_s1 + $0x98] sm:$0xff]  ;;  %v43_v56 = vld [vmem:[%s11416_s0 + $0x88] sm:$0xff] }
  0x26   :  { %v6413_v31 = vcombine.low %v795_v3, %v797_v5  ;;  %v7420_v12 = vpack.c.bf16 %v43_v56, %v26_v55  ;;  %v536_v55 = vld [vmem:[%s11415_s1 + $0x330] sm:$0xff]  ;;  %v537_v56 = vld [vmem:[%s11415_s1 + $0x338] sm:$0xff] }
  0x27   :  { %3830 = vmatpush2.bf16.msra.mxu0 %v6369_v21  ;;  %v729_v21 = vunpack.c.l.s8.bf16 %v453_v9  ;;  %v508_v9 = vld [vmem:[%s11415_s1 + $0x250] sm:$0xff] }
  0x28   :  { %3943 = vmatpush2.bf16.msra.mxu1 %v6433_v22  ;;  %3831 = vmatprep.subr.bf16.mxu0 %v6366_v23  ;;  %v6414_v22 = vcombine.high %v795_v3, %v797_v5  ;;  %v791_v23 = vunpack.c.l.s8.bf16 %v484_v10  ;;  %v907_v3 = vunpack.c.l.s8.bf16 %v542_v52  ;;  %v909_v5 = vunpack.c.l.s8.bf16 %v543_v53  ;;  %v509_v10 = vld [vmem:[%s11415_s1 + $0x258] sm:$0xff] }
  0x29   :  { %3944 = vmatprep.subr.bf16.mxu1 %v6430_v27  ;;  %v451_v27 = vld [vmem:[%s11415_s1 + $0x88] sm:$0xff]  ;;  %v6346_v32 = vcombine.high %v727_v17, %v729_v21  ;;  %v6345_v42 = vcombine.low %v727_v17, %v729_v21  ;;  %v505_v52 = vld [vmem:[%s11415_s1 + $0x238] sm:$0xff] }
  0x2a   :  { %v6409_v43 = vcombine.low %v791_v23, %v793_v24  ;;  %v6526_v29 = vcombine.high %v907_v3, %v909_v5  ;;  %v6525_v41 = vcombine.low %v907_v3, %v909_v5  ;;  %v833_v3 = vunpack.c.l.s8.bf16 %v505_v52 }
  0x2b   :  { %3832 = vmatpush2.bf16.msra.mxu0 %v6365_v34  ;;  %v725_v34 = vunpack.c.l.s8.bf16 %v451_v27  ;;  %v839_v27 = vunpack.c.l.s8.bf16 %v508_v9  ;;  %v895_v9 = vunpack.c.l.s8.bf16 %v536_v55 }
  0x2c   :  { %3945 = vmatpush2.bf16.msra.mxu1 %v6429_v35  ;;  %3833 = vmatprep.subr.bf16.mxu0 %v6362_v36  ;;  %v6410_v35 = vcombine.high %v791_v23, %v793_v24  ;;  %v787_v36 = vunpack.c.l.s8.bf16 %v482_v28  ;;  %v80_v23 = vld [vmem:[%s11416_s0 + $0x1b0] sm:$0xff]  ;;  %v841_v28 = vunpack.c.l.s8.bf16 %v509_v10  ;;  %v897_v10 = vunpack.c.l.s8.bf16 %v537_v56 }
  0x2d   :  { %3946 = vmatprep.subr.bf16.mxu1 %v6426_v39  ;;  %v513_v39 = vld [vmem:[%s11415_s1 + $0x278] sm:$0xff]  ;;  %v6342_v44 = vcombine.high %v723_v33, %v725_v34  ;;  %v6341_v54 = vcombine.low %v723_v33, %v725_v34  ;;  %v506_v33 = vld [vmem:[%s11415_s1 + $0x240] sm:$0xff]  ;;  %v507_v34 = vld [vmem:[%s11415_s1 + $0x248] sm:$0xff] }
  0x2e   :  { %v6405_v57 = vcombine.low %v787_v36, %v789_v37 }
  0x2f   :  { %3834 = vmatpush2.bf16.msra.mxu0 %v6361_v46  ;;  %v849_v46 = vunpack.c.l.s8.bf16 %v513_v39  ;;  %v60_v39 = vld [vmem:[%s11416_s0 + $0x110] sm:$0xff] }
  0x30   :  { %3947 = vmatpush2.bf16.msra.mxu1 %v6425_v47  ;;  %3835 = vmatprep.subr.bf16.mxu0 %v6358_v48  ;;  %v6406_v47 = vcombine.high %v787_v36, %v789_v37  ;;  %v911_v48 = vunpack.c.l.s8.bf16 %v544_v40  ;;  %v538_v36 = vld [vmem:[%s11415_s1 + $0x340] sm:$0xff]  ;;  %v539_v37 = vld [vmem:[%s11415_s1 + $0x348] sm:$0xff]  ;;  %v77_v40 = vld [vmem:[%s11416_s0 + $0x198] sm:$0xff] }
  0x31   :  { %3948 = vmatprep.subr.bf16.mxu1 %v6422_v51  ;;  %v511_v51 = vld [vmem:[%s11415_s1 + $0x268] sm:$0xff]  ;;  %v6465_v21 = vcombine.low %v847_v45, %v849_v46  ;;  %v7480_v53 = vpack.c.bf16 %v77_v40, %v60_v39  ;;  %v500_v39 = vld [vmem:[%s11415_s1 + $0x210] sm:$0xff]  ;;  %v501_v40 = vld [vmem:[%s11415_s1 + $0x218] sm:$0xff] }
  0x32   :  { %v845_v62 = vunpack.c.l.s8.bf16 %v511_v51  ;;  %v6529_v24 = vcombine.low %v911_v48, %v913_v49  ;;  %v504_v51 = vld [vmem:[%s11415_s1 + $0x230] sm:$0xff]  ;;  %v825_v52 = vunpack.c.l.s8.bf16 %v501_v40  ;;  %v182_v40 = vld [vmem:[%s11416_s0 + $0x4e0] sm:$0xff] }
  0x33   :  { %3836 = vmatpush2.bf16.msra.mxu0 %v6357_v58  ;;  %v28_v58 = vld [vmem:[%s11416_s0 + $0x10] sm:$0xff] }
  0x34   :  { %3949 = vmatpush2.bf16.msra.mxu1 %v6421_v59  ;;  %3837 = vmatprep.subr.bf16.mxu0 %v6354_v60  ;;  %v45_v59 = vld [vmem:[%s11416_s0 + $0x98] sm:$0xff]  ;;  %v6466_v60 = vcombine.high %v847_v45, %v849_v46  ;;  %v6462_v26 = vcombine.high %v843_v61, %v845_v62  ;;  %v6461_v38 = vcombine.low %v843_v61, %v845_v62  ;;  %v835_v45 = vunpack.c.l.s8.bf16 %v506_v33 }
  0x35   :  { %3950 = vmatprep.subr.bf16.mxu1 %v6418_v63  ;;  %v6530_v63 = vcombine.high %v911_v48, %v913_v49  ;;  %v7431_v17 = vpack.c.bf16 %v45_v59, %v28_v58  ;;  %v837_v46 = vunpack.c.l.s8.bf16 %v507_v34  ;;  %v899_v48 = vunpack.c.l.s8.bf16 %v538_v36  ;;  %v97_v59 = vld [vmem:[%s11416_s0 + $0x238] sm:$0xff] }
  0x36   :  { %v901_v49 = vunpack.c.l.s8.bf16 %v539_v37  ;;  %v6457_v58 = vcombine.low %v839_v27, %v841_v28  ;;  %v6514_v34 = vcombine.high %v895_v9, %v897_v10 }
  0x37   :  { %3838 = vmatpush2.bf16.msra.mxu0 %v6353_v14  ;;  %v78_v14 = vld [vmem:[%s11416_s0 + $0x1a0] sm:$0xff]  ;;  %11552 = vst [vmem:[#allocation4_spill] sm:$0xff] %v7431_v17  ;;  %v6454_v62 = vcombine.high %v835_v45, %v837_v46 }
  0x38   :  { %3951 = vmatpush2.bf16.msra.mxu1 %v6417_v15  ;;  %3839 = vmatprep.subr.bf16.mxu0 %v6350_v16  ;;  %v540_v15 = vld [vmem:[%s11415_s1 + $0x350] sm:$0xff]  ;;  %v541_v16 = vld [vmem:[%s11415_s1 + $0x358] sm:$0xff]  ;;  %v6518_v5 = vcombine.high %v899_v48, %v901_v49 }
  0x39   :  { %3952 = vmatprep.subr.bf16.mxu1 %v6414_v22  ;;  %v63_v22 = vld [vmem:[%s11416_s0 + $0x128] sm:$0xff] }
  0x3b   :  { %3840 = vmatpush2.bf16.msra.mxu0 %v6349_v30  ;;  %v7439_v30 = vpack.c.bf16 %v78_v14, %v61_v8  ;;  %v502_v14 = vld [vmem:[%s11415_s1 + $0x220] sm:$0xff] }
  0x3c   :  { %3953 = vmatpush2.bf16.msra.mxu1 %v6413_v31  ;;  %3841 = vmatprep.subr.bf16.mxu0 %v6346_v32  ;;  %v903_v31 = vunpack.c.l.s8.bf16 %v540_v15  ;;  %v905_v32 = vunpack.c.l.s8.bf16 %v541_v16  ;;  %v503_v15 = vld [vmem:[%s11415_s1 + $0x228] sm:$0xff] }
  0x3d   :  { %3954 = vmatprep.subr.bf16.mxu1 %v6410_v35  ;;  %v7448_v35 = vpack.c.bf16 %v80_v23, %v63_v22  ;;  %v535_v22 = vld [vmem:[%s11415_s1 + $0x328] sm:$0xff]  ;;  %v6453_v23 = vcombine.low %v835_v45, %v837_v46  ;;  %v829_v33 = vunpack.c.l.s8.bf16 %v503_v15 }
  0x3e   :  { %v6521_v61 = vcombine.low %v903_v31, %v905_v32  ;;  %v893_v37 = vunpack.c.l.s8.bf16 %v535_v22  ;;  %v147_v15 = vld [vmem:[%s11416_s0 + $0x3c8] sm:$0xff] }
  0x3f   :  { %3842 = vmatpush2.bf16.msra.mxu0 %v6345_v42  ;;  %11553 = vst [vmem:[#allocation5_spill] sm:$0xff] %v7448_v35  ;;  %v62_v42 = vld [vmem:[%s11416_s0 + $0x120] sm:$0xff] }
  0x40   :  { %3955 = vmatpush2.bf16.msra.mxu1 %v6409_v43  ;;  %3843 = vmatprep.subr.bf16.mxu0 %v6342_v44  ;;  %v79_v43 = vld [vmem:[%s11416_s0 + $0x1a8] sm:$0xff]  ;;  %v6458_v44 = vcombine.high %v839_v27, %v841_v28  ;;  %v6517_v27 = vcombine.low %v899_v48, %v901_v49  ;;  %v96_v28 = vld [vmem:[%s11416_s0 + $0x230] sm:$0xff]  ;;  %v6513_v49 = vcombine.low %v895_v9, %v897_v10  ;;  %v145_v9 = vld [vmem:[%s11416_s0 + $0x3b8] sm:$0xff] }
  0x41   :  { %3956 = vmatprep.subr.bf16.mxu1 %v6406_v47  ;;  %v6522_v47 = vcombine.high %v903_v31, %v905_v32  ;;  %v827_v32 = vunpack.c.l.s8.bf16 %v502_v14  ;;  %v148_v48 = vld [vmem:[%s11416_s0 + $0x3d0] sm:$0xff]  ;;  %v130_v14 = vld [vmem:[%s11416_s0 + $0x340] sm:$0xff] }
  0x43   :  { %3844 = vmatpush2.bf16.msra.mxu0 %v6341_v54  ;;  %v112_v54 = vld [vmem:[%s11416_s0 + $0x2b0] sm:$0xff] }
  0x44   :  { %3957 = vmatpush2.bf16.msra.mxu1 %v6405_v57  ;;  %4039 = vmatprep.subr.bf16.mxu0 %v6466_v60  ;;  %v7491_v57 = vpack.c.bf16 %v79_v43, %v62_v42  ;;  %v114_v60 = vld [vmem:[%s11416_s0 + $0x2c0] sm:$0xff]  ;;  %v7499_v8 = vpack.c.bf16 %v112_v54, %v95_v50  ;;  %v532_v43 = vld [vmem:[%s11415_s1 + $0x310] sm:$0xff]  ;;  %v6446_v50 = vcombine.high %v827_v32, %v829_v33 }
  0x45   :  { %4152 = vmatprep.subr.bf16.mxu1 %v6530_v63  ;;  %v831_v63 = vunpack.c.l.s8.bf16 %v504_v51  ;;  %v7508_v16 = vpack.c.bf16 %v114_v60, %v97_v59  ;;  %v146_v42 = vld [vmem:[%s11416_s0 + $0x3c0] sm:$0xff]  ;;  %v823_v51 = vunpack.c.l.s8.bf16 %v500_v39  ;;  %v887_v56 = vunpack.c.l.s8.bf16 %v532_v43  ;;  %v499_v60 = vld [vmem:[%s11415_s1 + $0x208] sm:$0xff]  ;;  %v165_v39 = vld [vmem:[%s11416_s0 + $0x458] sm:$0xff] }
  0x46   :  { %3846 = vmatmul.mubr.bf16.vlgmr.msra.gmra.mxu0 %v7420_v12  ;;  %11554 = vst [vmem:[#allocation6_spill] sm:$0xff] %v7491_v57  ;;  %v498_v59 = vld [vmem:[%s11415_s1 + $0x200] sm:$0xff] }
  0x47   :  { %3959 = vmatmul.mubr.bf16.vlgmr.msra.gmra.mxu1 %v7431_v17  ;;  %4040 = vmatpush1.bf16.msra.mxu0 %v6465_v21  ;;  %11555 = vst [vmem:[#allocation7_spill] sm:$0xff] %v7508_v16  ;;  %v534_v21 = vld [vmem:[%s11415_s1 + $0x320] sm:$0xff]  ;;  %v6450_v31 = vcombine.high %v831_v63, %v833_v3  ;;  %v6449_v46 = vcombine.low %v831_v63, %v833_v3  ;;  %v531_v63 = vld [vmem:[%s11415_s1 + $0x308] sm:$0xff]  ;;  %v819_v22 = vunpack.c.l.s8.bf16 %v498_v59 }
  0x48   :  { %4153 = vmatpush1.bf16.msra.mxu1 %v6529_v24  ;;  %4041 = vmatprep.subr.bf16.mxu0 %v6462_v26  ;;  %v94_v24 = vld [vmem:[%s11416_s0 + $0x220] sm:$0xff]  ;;  %v111_v26 = vld [vmem:[%s11416_s0 + $0x2a8] sm:$0xff]  ;;  %v891_v36 = vunpack.c.l.s8.bf16 %v534_v21  ;;  %v6445_v3 = vcombine.low %v827_v32, %v829_v33  ;;  %v6442_v21 = vcombine.high %v823_v51, %v825_v52  ;;  %v180_v33 = vld [vmem:[%s11416_s0 + $0x4d0] sm:$0xff] }
  0x49   :  { %4154 = vmatprep.subr.bf16.mxu1 %v6526_v29  ;;  %3855 = vmatprep.mubr.bf16.mxu0 %v7439_v30  ;;  %v113_v29 = vld [vmem:[%s11416_s0 + $0x2b8] sm:$0xff] }
  0x4a   :  { %3968 = vmatprep.mubr.bf16.mxu1 %v7448_v35  ;;  %v7551_v45 = vpack.c.bf16 %v113_v29, %v96_v28  ;;  %v6510_v54 = vcombine.high %v891_v36, %v893_v37  ;;  %v6509_v10 = vcombine.low %v891_v36, %v893_v37  ;;  %v163_v28 = vld [vmem:[%s11416_s0 + $0x448] sm:$0xff]  ;;  %v528_v29 = vld [vmem:[%s11415_s1 + $0x2f0] sm:$0xff]  ;;  %v561_v36 = vld [vmem:[%s11415_s1 + $0x3f8] sm:$0xff]  ;;  %v7611_v37 = vpack.c.bf16 %v147_v15, %v130_v14 }
  0x4b   :  { %4042 = vmatpush1.bf16.msra.mxu0 %v6461_v38  ;;  %v129_v38 = vld [vmem:[%s11416_s0 + $0x338] sm:$0xff] }
  0x4c   :  { %4155 = vmatpush1.bf16.msra.mxu1 %v6525_v41  ;;  %4043 = vmatprep.subr.bf16.mxu0 %v6458_v44  ;;  %v7540_v41 = vpack.c.bf16 %v111_v26, %v94_v24  ;;  %v533_v44 = vld [vmem:[%s11415_s1 + $0x318] sm:$0xff]  ;;  %11556 = vst [vmem:[#allocation8_spill] sm:$0xff] %v7551_v45  ;;  %v7559_v55 = vpack.c.bf16 %v146_v42, %v129_v38  ;;  %11558 = vst [vmem:[#allocation10_spill] sm:$0xff] %v7611_v37 }
  0x4d   :  { %4156 = vmatprep.subr.bf16.mxu1 %v6522_v47  ;;  %v131_v47 = vld [vmem:[%s11416_s0 + $0x348] sm:$0xff]  ;;  %v6441_v38 = vcombine.low %v823_v51, %v825_v52  ;;  %v526_v51 = vld [vmem:[%s11415_s1 + $0x2e0] sm:$0xff] }
  0x4e   :  { %3856 = vmatmul.mubr.bf16.gmra.mxu0 %v7480_v53  ;;  %v527_v52 = vld [vmem:[%s11415_s1 + $0x2e8] sm:$0xff] }
  0x4f   :  { %3969 = vmatmul.mubr.bf16.gmra.mxu1 %v7491_v57  ;;  %4044 = vmatpush1.bf16.msra.mxu0 %v6457_v58  ;;  %v889_v58 = vunpack.c.l.s8.bf16 %v533_v44  ;;  %v879_v44 = vunpack.c.l.s8.bf16 %v528_v29  ;;  %v877_v14 = vunpack.c.l.s8.bf16 %v527_v52  ;;  %v556_v29 = vld [vmem:[%s11415_s1 + $0x3d0] sm:$0xff] }
  0x50   :  { %4157 = vmatpush1.bf16.msra.mxu1 %v6521_v61  ;;  %4045 = vmatprep.subr.bf16.mxu0 %v6454_v62  ;;  %v7568_v61 = vpack.c.bf16 %v148_v48, %v131_v47  ;;  %v530_v62 = vld [vmem:[%s11415_s1 + $0x300] sm:$0xff]  ;;  %v7619_v48 = vpack.c.bf16 %v180_v33, %v163_v28  ;;  %v935_v52 = vunpack.c.l.s8.bf16 %v556_v29  ;;  %v248_v29 = vld [vmem:[%s11416_s0 + $0x6f0] sm:$0xff] }
  0x51   :  { %4158 = vmatprep.subr.bf16.mxu1 %v6518_v5  ;;  %3865 = vmatprep.mubr.bf16.mxu0 %v7499_v8  ;;  %v128_v5 = vld [vmem:[%s11416_s0 + $0x330] sm:$0xff]  ;;  %v6506_v24 = vcombine.high %v887_v56, %v889_v58  ;;  %v883_v26 = vunpack.c.l.s8.bf16 %v530_v62  ;;  %v6505_v42 = vcombine.low %v887_v56, %v889_v58  ;;  %v558_v56 = vld [vmem:[%s11415_s1 + $0x3e0] sm:$0xff]  ;;  %v559_v58 = vld [vmem:[%s11415_s1 + $0x3e8] sm:$0xff] }
  0x52   :  { %3978 = vmatprep.mubr.bf16.mxu1 %v7508_v16  ;;  %11557 = vst [vmem:[#allocation9_spill] sm:$0xff] %v7568_v61  ;;  %v7600_v32 = vpack.c.bf16 %v145_v9, %v128_v5  ;;  %v179_v62 = vld [vmem:[%s11416_s0 + $0x4c8] sm:$0xff]  ;;  %v181_v5 = vld [vmem:[%s11416_s0 + $0x4d8] sm:$0xff]  ;;  %v214_v28 = vld [vmem:[%s11416_s0 + $0x5e0] sm:$0xff] }
  0x53   :  { %4046 = vmatpush1.bf16.msra.mxu0 %v6453_v23  ;;  %v821_v23 = vunpack.c.l.s8.bf16 %v499_v60  ;;  %v162_v60 = vld [vmem:[%s11416_s0 + $0x440] sm:$0xff] }
  0x54   :  { %4159 = vmatpush1.bf16.msra.mxu1 %v6517_v27  ;;  %4047 = vmatprep.subr.bf16.mxu0 %v6450_v31  ;;  %v885_v27 = vunpack.c.l.s8.bf16 %v531_v63  ;;  %v529_v31 = vld [vmem:[%s11415_s1 + $0x2f8] sm:$0xff] }
  0x55   :  { %4160 = vmatprep.subr.bf16.mxu1 %v6514_v34  ;;  %v560_v34 = vld [vmem:[%s11415_s1 + $0x3f0] sm:$0xff]  ;;  %v6438_v43 = vcombine.high %v819_v22, %v821_v23  ;;  %v6437_v59 = vcombine.low %v819_v22, %v821_v23  ;;  %v941_v22 = vunpack.c.l.s8.bf16 %v559_v58  ;;  %v197_v23 = vld [vmem:[%s11416_s0 + $0x558] sm:$0xff]  ;;  %v555_v58 = vld [vmem:[%s11415_s1 + $0x3c8] sm:$0xff] }
  0x56   :  { %3866 = vmatmul.mubr.bf16.gmra.mxu0 %v7540_v41  ;;  %v6502_v47 = vcombine.high %v883_v26, %v885_v27  ;;  %v6501_v63 = vcombine.low %v883_v26, %v885_v27  ;;  %v525_v26 = vld [vmem:[%s11415_s1 + $0x2d8] sm:$0xff]  ;;  %v7660_v27 = vpack.c.bf16 %v179_v62, %v162_v60  ;;  %v196_v60 = vld [vmem:[%s11416_s0 + $0x550] sm:$0xff] }
  0x57   :  { %3979 = vmatmul.mubr.bf16.gmra.mxu1 %v7551_v45  ;;  %4048 = vmatpush1.bf16.msra.mxu0 %v6449_v46  ;;  %v881_v46 = vunpack.c.l.s8.bf16 %v529_v31  ;;  %v557_v31 = vld [vmem:[%s11415_s1 + $0x3d8] sm:$0xff] }
  0x58   :  { %4161 = vmatpush1.bf16.msra.mxu1 %v6513_v49  ;;  %4049 = vmatprep.subr.bf16.mxu0 %v6446_v50  ;;  %v943_v49 = vunpack.c.l.s8.bf16 %v560_v34  ;;  %v945_v50 = vunpack.c.l.s8.bf16 %v561_v36  ;;  %v199_v36 = vld [vmem:[%s11416_s0 + $0x568] sm:$0xff]  ;;  %v213_v62 = vld [vmem:[%s11416_s0 + $0x5d8] sm:$0xff] }
  0x59   :  { %4162 = vmatprep.subr.bf16.mxu1 %v6510_v54  ;;  %3875 = vmatprep.mubr.bf16.mxu0 %v7559_v55  ;;  %v7628_v54 = vpack.c.bf16 %v182_v40, %v165_v39  ;;  %v6498_v9 = vcombine.high %v879_v44, %v881_v46  ;;  %v6497_v34 = vcombine.low %v879_v44, %v881_v46  ;;  %v937_v44 = vunpack.c.l.s8.bf16 %v557_v31  ;;  %v522_v46 = vld [vmem:[%s11415_s1 + $0x2c0] sm:$0xff]  ;;  %v552_v31 = vld [vmem:[%s11415_s1 + $0x3b0] sm:$0xff] }
  0x5a   :  { %3988 = vmatprep.mubr.bf16.mxu1 %v7568_v61  ;;  %v6562_v15 = vcombine.high %v943_v49, %v945_v50  ;;  %v6561_v39 = vcombine.low %v943_v49, %v945_v50  ;;  %v554_v50 = vld [vmem:[%s11415_s1 + $0x3c0] sm:$0xff] }
  0x5b   :  { %4050 = vmatpush1.bf16.msra.mxu0 %v6445_v3  ;;  %11559 = vst [vmem:[#allocation11_spill] sm:$0xff] %v7628_v54  ;;  %v164_v3 = vld [vmem:[%s11416_s0 + $0x450] sm:$0xff] }
  0x5c   :  { %4163 = vmatpush1.bf16.msra.mxu1 %v6509_v10  ;;  %4051 = vmatprep.subr.bf16.mxu0 %v6442_v21  ;;  %v875_v10 = vunpack.c.l.s8.bf16 %v526_v51  ;;  %v939_v21 = vunpack.c.l.s8.bf16 %v558_v56  ;;  %v7671_v33 = vpack.c.bf16 %v181_v5, %v164_v3  ;;  %v7679_v51 = vpack.c.bf16 %v214_v28, %v197_v23  ;;  %v523_v56 = vld [vmem:[%s11415_s1 + $0x2c8] sm:$0xff]  ;;  %v198_v3 = vld [vmem:[%s11416_s0 + $0x560] sm:$0xff] }
  0x5d   :  { %4164 = vmatprep.subr.bf16.mxu1 %v6506_v24  ;;  %v524_v24 = vld [vmem:[%s11415_s1 + $0x2d0] sm:$0xff]  ;;  %v215_v5 = vld [vmem:[%s11416_s0 + $0x5e8] sm:$0xff]  ;;  %v931_v23 = vunpack.c.l.s8.bf16 %v554_v50  ;;  %v7720_v28 = vpack.c.bf16 %v213_v62, %v196_v60  ;;  %v927_v60 = vunpack.c.l.s8.bf16 %v552_v31 }
  0x5e   :  { %3876 = vmatmul.mubr.bf16.gmra.mxu0 %v7600_v32  ;;  %11560 = vst [vmem:[#allocation12_spill] sm:$0xff] %v7671_v33  ;;  %v6494_v40 = vcombine.high %v875_v10, %v877_v14  ;;  %v519_v62 = vld [vmem:[%s11415_s1 + $0x2a8] sm:$0xff] }
  0x5f   :  { %3989 = vmatmul.mubr.bf16.gmra.mxu1 %v7611_v37  ;;  %4052 = vmatpush1.bf16.msra.mxu0 %v6441_v38  ;;  %v216_v38 = vld [vmem:[%s11416_s0 + $0x5f0] sm:$0xff] }
  0x60   :  { %4165 = vmatpush1.bf16.msra.mxu1 %v6505_v42  ;;  %4053 = vmatprep.subr.bf16.mxu0 %v6438_v43  ;;  %v871_v42 = vunpack.c.l.s8.bf16 %v524_v24  ;;  %v873_v43 = vunpack.c.l.s8.bf16 %v525_v26  ;;  %v7688_v49 = vpack.c.bf16 %v216_v38, %v199_v36  ;;  %v933_v24 = vunpack.c.l.s8.bf16 %v555_v58  ;;  %v521_v26 = vld [vmem:[%s11415_s1 + $0x2b8] sm:$0xff] }
  0x61   :  { %4166 = vmatprep.subr.bf16.mxu1 %v6502_v47  ;;  %3885 = vmatprep.mubr.bf16.mxu0 %v7619_v48  ;;  %v6558_v47 = vcombine.high %v939_v21, %v941_v22  ;;  %v7731_v36 = vpack.c.bf16 %v215_v5, %v198_v3  ;;  %v865_v50 = vunpack.c.l.s8.bf16 %v521_v26  ;;  %v230_v5 = vld [vmem:[%s11416_s0 + $0x660] sm:$0xff]  ;;  %v861_v26 = vunpack.c.l.s8.bf16 %v519_v62  ;;  %v267_v62 = vld [vmem:[%s11416_s0 + $0x788] sm:$0xff] }
  0x62   :  { %3998 = vmatprep.mubr.bf16.mxu1 %v7628_v54  ;;  %11561 = vst [vmem:[#allocation13_spill] sm:$0xff] %v7688_v49  ;;  %v6489_v38 = vcombine.low %v871_v42, %v873_v43  ;;  %v6550_v58 = vcombine.high %v931_v23, %v933_v24 }
  0x63   :  { %4054 = vmatpush1.bf16.msra.mxu0 %v6437_v59  ;;  %v6493_v59 = vcombine.low %v875_v10, %v877_v14  ;;  %v867_v10 = vunpack.c.l.s8.bf16 %v522_v46  ;;  %v869_v14 = vunpack.c.l.s8.bf16 %v523_v56  ;;  %11562 = vst [vmem:[#allocation14_spill] sm:$0xff] %v7731_v36 }
  0x64   :  { %4167 = vmatpush1.bf16.msra.mxu1 %v6501_v63  ;;  %4055 = vmatprep.subr.bf16.mxu0 %v6498_v9  ;;  %v6557_v63 = vcombine.low %v939_v21, %v941_v22  ;;  %v6490_v9 = vcombine.high %v871_v42, %v873_v43  ;;  %v231_v21 = vld [vmem:[%s11416_s0 + $0x668] sm:$0xff]  ;;  %v520_v22 = vld [vmem:[%s11415_s1 + $0x2b0] sm:$0xff]  ;;  %v518_v43 = vld [vmem:[%s11415_s1 + $0x2a0] sm:$0xff] }
  0x65   :  { %4168 = vmatprep.subr.bf16.mxu1 %v6562_v15  ;;  %v6554_v15 = vcombine.high %v935_v52, %v937_v44  ;;  %v6486_v46 = vcombine.high %v867_v10, %v869_v14  ;;  %v863_v56 = vunpack.c.l.s8.bf16 %v520_v22  ;;  %v6485_v3 = vcombine.low %v867_v10, %v869_v14  ;;  %v249_v22 = vld [vmem:[%s11416_s0 + $0x6f8] sm:$0xff] }
  0x66   :  { %3886 = vmatmul.mubr.bf16.gmra.mxu0 %v7660_v27  ;;  %v859_v14 = vunpack.c.l.s8.bf16 %v518_v43 }
  0x67   :  { %3999 = vmatmul.mubr.bf16.gmra.mxu1 %v7671_v33  ;;  %4056 = vmatpush2.bf16.msra.mxu0 %v6497_v34  ;;  %v553_v34 = vld [vmem:[%s11415_s1 + $0x3b8] sm:$0xff]  ;;  %v6482_v10 = vcombine.high %v863_v56, %v865_v50  ;;  %v6481_v43 = vcombine.low %v863_v56, %v865_v50  ;;  %v514_v50 = vld [vmem:[%s11415_s1 + $0x280] sm:$0xff] }
  0x68   :  { %4169 = vmatpush2.bf16.msra.mxu1 %v6561_v39  ;;  %4057 = vmatprep.subr.bf16.mxu0 %v6494_v40  ;;  %v233_v39 = vld [vmem:[%s11416_s0 + $0x678] sm:$0xff]  ;;  %v250_v40 = vld [vmem:[%s11416_s0 + $0x700] sm:$0xff]  ;;  %v929_v42 = vunpack.c.l.s8.bf16 %v553_v34 }
  0x69   :  { %4170 = vmatprep.subr.bf16.mxu1 %v6558_v47  ;;  %3895 = vmatprep.mubr.bf16.mxu0 %v7679_v51  ;;  %v6553_v47 = vcombine.low %v935_v52, %v937_v44  ;;  %v7748_v52 = vpack.c.bf16 %v250_v40, %v233_v39  ;;  %v550_v44 = vld [vmem:[%s11415_s1 + $0x3a0] sm:$0xff] }
  0x6a   :  { %4008 = vmatprep.mubr.bf16.mxu1 %v7688_v49  ;;  %v923_v31 = vunpack.c.l.s8.bf16 %v550_v44  ;;  %v282_v40 = vld [vmem:[%s11416_s0 + $0x800] sm:$0xff]  ;;  %v284_v44 = vld [vmem:[%s11416_s0 + $0x810] sm:$0xff] }
  0x6b   :  { %4058 = vmatpush2.bf16.msra.mxu0 %v6493_v59  ;;  %v7739_v59 = vpack.c.bf16 %v248_v29, %v231_v21  ;;  %11563 = vst [vmem:[#allocation15_spill] sm:$0xff] %v7748_v52  ;;  %v232_v21 = vld [vmem:[%s11416_s0 + $0x670] sm:$0xff]  ;;  %v6546_v29 = vcombine.high %v927_v60, %v929_v42 }
  0x6c   :  { %4171 = vmatpush2.bf16.msra.mxu1 %v6557_v63  ;;  %4059 = vmatprep.subr.bf16.mxu0 %v6490_v9  ;;  %v551_v63 = vld [vmem:[%s11415_s1 + $0x3a8] sm:$0xff] }
  0x6d   :  { %4172 = vmatprep.subr.bf16.mxu1 %v6554_v15  ;;  %v247_v9 = vld [vmem:[%s11416_s0 + $0x6e8] sm:$0xff]  ;;  %v6549_v15 = vcombine.low %v931_v23, %v933_v24  ;;  %v925_v34 = vunpack.c.l.s8.bf16 %v551_v63  ;;  %v265_v23 = vld [vmem:[%s11416_s0 + $0x778] sm:$0xff]  ;;  %v516_v24 = vld [vmem:[%s11415_s1 + $0x290] sm:$0xff]  ;;  %v6545_v63 = vcombine.low %v927_v60, %v929_v42  ;;  %v7808_v60 = vpack.c.bf16 %v284_v44, %v267_v62 }
  0x6e   :  { %3896 = vmatmul.mubr.bf16.gmra.mxu0 %v7720_v28  ;;  %v7780_v39 = vpack.c.bf16 %v247_v9, %v230_v5  ;;  %v6478_v5 = vcombine.high %v859_v14, %v861_v26  ;;  %v855_v9 = vunpack.c.l.s8.bf16 %v516_v24  ;;  %v546_v42 = vld [vmem:[%s11415_s1 + $0x380] sm:$0xff]  ;;  %v577_v44 = vld [vmem:[%s11415_s1 + $0x478] sm:$0xff] }
  0x6f   :  { %4009 = vmatmul.mubr.bf16.gmra.mxu1 %v7731_v36  ;;  %4060 = vmatpush2.bf16.msra.mxu0 %v6489_v38  ;;  %v517_v38 = vld [vmem:[%s11415_s1 + $0x298] sm:$0xff]  ;;  %v6542_v13 = vcombine.high %v923_v31, %v925_v34  ;;  %11566 = vst [vmem:[#allocation18_spill] sm:$0xff] %v7808_v60  ;;  %v6541_v24 = vcombine.low %v923_v31, %v925_v34  ;;  %v31_v31 = vld [vmem:[%s11416_s0 + $0x28] sm:$0xff]  ;;  %v576_v34 = vld [vmem:[%s11415_s1 + $0x470] sm:$0xff] }
  0x70   :  { %4173 = vmatpush2.bf16.msra.mxu1 %v6553_v47  ;;  %4061 = vmatprep.subr.bf16.mxu0 %v6486_v46  ;;  %v548_v47 = vld [vmem:[%s11415_s1 + $0x390] sm:$0xff]  ;;  %v549_v46 = vld [vmem:[%s11415_s1 + $0x398] sm:$0xff]  ;;  %v857_v11 = vunpack.c.l.s8.bf16 %v517_v38  ;;  %v266_v38 = vld [vmem:[%s11416_s0 + $0x780] sm:$0xff]  ;;  %v975_v6 = vunpack.c.l.s8.bf16 %v576_v34 }
  0x71   :  { %4174 = vmatprep.subr.bf16.mxu1 %v6550_v58  ;;  %3905 = vmatprep.mubr.bf16.mxu0 %v7739_v59  ;;  %v7791_v58 = vpack.c.bf16 %v249_v22, %v232_v21  ;;  %v919_v21 = vunpack.c.l.s8.bf16 %v548_v47  ;;  %v921_v56 = vunpack.c.l.s8.bf16 %v549_v46  ;;  %v515_v22 = vld [vmem:[%s11415_s1 + $0x288] sm:$0xff] }
  0x72   :  { %4018 = vmatprep.mubr.bf16.mxu1 %v7748_v52  ;;  %v853_v47 = vunpack.c.l.s8.bf16 %v515_v22 }
  0x73   :  { %4062 = vmatpush2.bf16.msra.mxu0 %v6485_v3  ;;  %11564 = vst [vmem:[#allocation16_spill] sm:$0xff] %v7791_v58  ;;  %v7799_v3 = vpack.c.bf16 %v282_v40, %v265_v23  ;;  %v281_v23 = vld [vmem:[%s11416_s0 + $0x7f8] sm:$0xff]  ;;  %v283_v40 = vld [vmem:[%s11416_s0 + $0x808] sm:$0xff]  ;;  %v6538_v46 = vcombine.high %v919_v21, %v921_v56 }
  0x74   :  { %4175 = vmatpush2.bf16.msra.mxu1 %v6549_v15  ;;  %4063 = vmatprep.subr.bf16.mxu0 %v6482_v10  ;;  %v547_v15 = vld [vmem:[%s11415_s1 + $0x388] sm:$0xff]  ;;  %v6477_v10 = vcombine.low %v859_v14, %v861_v26  ;;  %v6474_v14 = vcombine.high %v855_v9, %v857_v11  ;;  %v851_v26 = vunpack.c.l.s8.bf16 %v514_v50  ;;  %v609_v50 = vld [vmem:[%s11415_s1 + $0x578] sm:$0xff]  ;;  %v7851_v22 = vpack.c.bf16 %v283_v40, %v266_v38 }
  0x75   :  { %4176 = vmatprep.subr.bf16.mxu1 %v6546_v29  ;;  %11565 = vst [vmem:[#allocation17_spill] sm:$0xff] %v7799_v3  ;;  %v264_v29 = vld [vmem:[%s11416_s0 + $0x770] sm:$0xff]  ;;  %v917_v62 = vunpack.c.l.s8.bf16 %v547_v15  ;;  %v33_v15 = vld [vmem:[%s11416_s0 + $0x38] sm:$0xff]  ;;  %v575_v40 = vld [vmem:[%s11415_s1 + $0x468] sm:$0xff] }
  0x76   :  { %3906 = vmatmul.mubr.bf16.gmra.mxu0 %v7780_v39  ;;  %11568 = vst [vmem:[#allocation20_spill] sm:$0xff] %v7851_v22  ;;  %v6470_v4 = vcombine.high %v851_v26, %v853_v47 }
  0x77   :  { %4019 = vmatmul.mubr.bf16.gmra.mxu1 %v7791_v58  ;;  %4064 = vmatpush2.bf16.msra.mxu0 %v6481_v43  ;;  %v915_v43 = vunpack.c.l.s8.bf16 %v546_v42  ;;  %v6473_v42 = vcombine.low %v855_v9, %v857_v11  ;;  %v1041_v11 = vunpack.c.l.s8.bf16 %v609_v50  ;;  %v574_v9 = vld [vmem:[%s11415_s1 + $0x460] sm:$0xff] }
  0x78   :  { %4177 = vmatpush2.bf16.msra.mxu1 %v6545_v63  ;;  %4065 = vmatprep.subr.bf16.mxu0 %v6478_v5  ;;  %v48_v63 = vld [vmem:[%s11416_s0 + $0xb0] sm:$0xff] }
  0x79   :  { %4178 = vmatprep.subr.bf16.mxu1 %v6542_v13  ;;  %3915 = vmatprep.mubr.bf16.mxu0 %v7799_v3  ;;  %v7840_v13 = vpack.c.bf16 %v281_v23, %v264_v29  ;;  %v608_v5 = vld [vmem:[%s11415_s1 + $0x570] sm:$0xff]  ;;  %v50_v29 = vld [vmem:[%s11416_s0 + $0xc0] sm:$0xff]  ;;  %v6537_v23 = vcombine.low %v919_v21, %v921_v56  ;;  %v6534_v58 = vcombine.high %v915_v43, %v917_v62 }
  0x7a   :  { %4028 = vmatprep.mubr.bf16.mxu1 %v7808_v60  ;;  %v977_v60 = vunpack.c.l.s8.bf16 %v577_v44  ;;  %v1039_v38 = vunpack.c.l.s8.bf16 %v608_v5  ;;  %v7868_v21 = vpack.c.bf16 %v50_v29, %v33_v15  ;;  %v606_v56 = vld [vmem:[%s11415_s1 + $0x560] sm:$0xff]  ;;  %v6533_v34 = vcombine.low %v915_v43, %v917_v62  ;;  %v32_v44 = vld [vmem:[%s11416_s0 + $0x30] sm:$0xff]  ;;  %v573_v62 = vld [vmem:[%s11415_s1 + $0x458] sm:$0xff] }
  0x7b   :  { %11567 = vst [vmem:[#allocation19_spill] sm:$0xff] %v7840_v13  ;;  %4066 = vmatpush2.bf16.msra.mxu0 %v6477_v10  ;;  %v7859_v10 = vpack.c.bf16 %v48_v63, %v31_v31  ;;  %v47_v31 = vld [vmem:[%s11416_s0 + $0xa8] sm:$0xff]  ;;  %v49_v63 = vld [vmem:[%s11416_s0 + $0xb8] sm:$0xff]  ;;  %v973_v5 = vunpack.c.l.s8.bf16 %v575_v40  ;;  %v572_v43 = vld [vmem:[%s11415_s1 + $0x450] sm:$0xff]  ;;  %v969_v52 = vunpack.c.l.s8.bf16 %v573_v62 }
  0x7c   :  { %4179 = vmatpush2.bf16.msra.mxu1 %v6541_v24  ;;  %4067 = vmatprep.subr.bf16.mxu0 %v6474_v14  ;;  %11570 = vst [vmem:[#allocation22_spill] sm:$0xff] %v7868_v21  ;;  %v607_v24 = vld [vmem:[%s11415_s1 + $0x568] sm:$0xff]  ;;  %v6469_v14 = vcombine.low %v851_v26, %v853_v47  ;;  %v6594_v26 = vcombine.high %v975_v6, %v977_v60  ;;  %v971_v47 = vunpack.c.l.s8.bf16 %v574_v9  ;;  %v82_v29 = vld [vmem:[%s11416_s0 + $0x1c0] sm:$0xff]  ;;  %v605_v9 = vld [vmem:[%s11415_s1 + $0x558] sm:$0xff] }
  0x7d   :  { %4180 = vmatprep.subr.bf16.mxu1 %v6538_v46  ;;  %11569 = vst [vmem:[#allocation21_spill] sm:$0xff] %v7859_v10  ;;  %v30_v46 = vld [vmem:[%s11416_s0 + $0x20] sm:$0xff]  ;;  %v6658_v50 = vcombine.high %v1039_v38, %v1041_v11  ;;  %v1037_v15 = vunpack.c.l.s8.bf16 %v607_v24  ;;  %v7911_v40 = vpack.c.bf16 %v49_v63, %v32_v44  ;;  %v67_v24 = vld [vmem:[%s11416_s0 + $0x148] sm:$0xff] }
  0x7e   :  { %3916 = vmatmul.mubr.bf16.gmra.mxu0 %v7840_v13  ;;  %v571_v63 = vld [vmem:[%s11415_s1 + $0x448] sm:$0xff]  ;;  %v66_v62 = vld [vmem:[%s11416_s0 + $0x140] sm:$0xff] }
  0x7f   :  { %4029 = vmatmul.mubr.bf16.gmra.mxu1 %v7851_v22  ;;  %4068 = vmatpush2.bf16.msra.mxu0 %v6473_v42  ;;  %v1035_v42 = vunpack.c.l.s8.bf16 %v606_v56  ;;  %11572 = vst [vmem:[#allocation24_spill] sm:$0xff] %v7911_v40  ;;  %v6593_v56 = vcombine.low %v975_v6, %v977_v60  ;;  %v967_v22 = vunpack.c.l.s8.bf16 %v572_v43  ;;  %v1033_v6 = vunpack.c.l.s8.bf16 %v605_v9  ;;  %v570_v60 = vld [vmem:[%s11415_s1 + $0x440] sm:$0xff] }
  0x80   :  { %4181 = vmatpush2.bf16.msra.mxu1 %v6537_v23  ;;  %4069 = vmatprep.subr.bf16.mxu0 %v6470_v4  ;;  %v65_v4 = vld [vmem:[%s11416_s0 + $0x138] sm:$0xff]  ;;  %v604_v23 = vld [vmem:[%s11415_s1 + $0x550] sm:$0xff] }
  0x81   :  { %4182 = vmatprep.subr.bf16.mxu1 %v6534_v58  ;;  %4071 = vmatprep.mubr.bf16.mxu0 %v7859_v10  ;;  %v7900_v58 = vpack.c.bf16 %v47_v31, %v30_v46  ;;  %v84_v46 = vld [vmem:[%s11416_s0 + $0x1d0] sm:$0xff]  ;;  %v6657_v31 = vcombine.low %v1039_v38, %v1041_v11  ;;  %v6654_v36 = vcombine.high %v1035_v42, %v1037_v15  ;;  %v1031_v44 = vunpack.c.l.s8.bf16 %v604_v23  ;;  %v602_v11 = vld [vmem:[%s11415_s1 + $0x540] sm:$0xff] }
  0x82   :  { %4184 = vmatprep.mubr.bf16.mxu1 %v7868_v21  ;;  %v6590_v21 = vcombine.high %v971_v47, %v973_v5  ;;  %v7928_v38 = vpack.c.bf16 %v84_v46, %v67_v24  ;;  %v6653_v43 = vcombine.low %v1035_v42, %v1037_v15  ;;  %v965_v23 = vunpack.c.l.s8.bf16 %v571_v63  ;;  %v568_v42 = vld [vmem:[%s11415_s1 + $0x430] sm:$0xff]  ;;  %v569_v15 = vld [vmem:[%s11415_s1 + $0x438] sm:$0xff] }
  0x83   :  { %11571 = vst [vmem:[#allocation23_spill] sm:$0xff] %v7900_v58  ;;  %4070 = vmatpush2.bf16.msra.mxu0 %v6469_v14  ;;  %v7919_v14 = vpack.c.bf16 %v82_v29, %v65_v4  ;;  %v81_v4 = vld [vmem:[%s11416_s0 + $0x1b8] sm:$0xff]  ;;  %v83_v29 = vld [vmem:[%s11416_s0 + $0x1c8] sm:$0xff]  ;;  %v6650_v9 = vcombine.high %v1031_v44, %v1033_v6  ;;  %v116_v46 = vld [vmem:[%s11416_s0 + $0x2d0] sm:$0xff]  ;;  %v961_v49 = vunpack.c.l.s8.bf16 %v569_v15 }
  0x84   :  { %4183 = vmatpush2.bf16.msra.mxu1 %v6533_v34  ;;  %4265 = vmatprep.subr.bf16.mxu0 %v6594_v26  ;;  %11574 = vst [vmem:[#allocation26_spill] sm:$0xff] %v7928_v38  ;;  %v603_v34 = vld [vmem:[%s11415_s1 + $0x548] sm:$0xff]  ;;  %v6589_v26 = vcombine.low %v971_v47, %v973_v5  ;;  %v6586_v47 = vcombine.high %v967_v22, %v969_v52  ;;  %v963_v5 = vunpack.c.l.s8.bf16 %v570_v60  ;;  %v601_v60 = vld [vmem:[%s11415_s1 + $0x538] sm:$0xff]  ;;  %v100_v15 = vld [vmem:[%s11416_s0 + $0x250] sm:$0xff] }
  0x85   :  { %4378 = vmatprep.subr.bf16.mxu1 %v6658_v50  ;;  %11573 = vst [vmem:[#allocation25_spill] sm:$0xff] %v7919_v14  ;;  %v64_v50 = vld [vmem:[%s11416_s0 + $0x130] sm:$0xff]  ;;  %v1029_v24 = vunpack.c.l.s8.bf16 %v603_v34  ;;  %v7971_v63 = vpack.c.bf16 %v83_v29, %v66_v62  ;;  %v101_v34 = vld [vmem:[%s11416_s0 + $0x258] sm:$0xff]  ;;  %v567_v29 = vld [vmem:[%s11415_s1 + $0x428] sm:$0xff] }
  0x86   :  { %4072 = vmatmul.mubr.bf16.vlgmr.msra.gmra.mxu0 %v7900_v58 }
  0x87   :  { %4185 = vmatmul.mubr.bf16.vlgmr.msra.gmra.mxu1 %v7911_v40  ;;  %4266 = vmatpush1.bf16.msra.mxu0 %v6593_v56  ;;  %v1027_v56 = vunpack.c.l.s8.bf16 %v602_v11  ;;  %11576 = vst [vmem:[#allocation28_spill] sm:$0xff] %v7971_v63  ;;  %v6585_v11 = vcombine.low %v967_v22, %v969_v52  ;;  %v959_v40 = vunpack.c.l.s8.bf16 %v568_v42  ;;  %v1025_v52 = vunpack.c.l.s8.bf16 %v601_v60  ;;  %v566_v22 = vld [vmem:[%s11415_s1 + $0x420] sm:$0xff] }
  0x88   :  { %4379 = vmatpush1.bf16.msra.mxu1 %v6657_v31  ;;  %4267 = vmatprep.subr.bf16.mxu0 %v6590_v21  ;;  %v99_v21 = vld [vmem:[%s11416_s0 + $0x248] sm:$0xff]  ;;  %v600_v31 = vld [vmem:[%s11415_s1 + $0x530] sm:$0xff] }
  0x89   :  { %4380 = vmatprep.subr.bf16.mxu1 %v6654_v36  ;;  %4081 = vmatprep.mubr.bf16.mxu0 %v7919_v14  ;;  %v7960_v36 = vpack.c.bf16 %v81_v4, %v64_v50  ;;  %v118_v50 = vld [vmem:[%s11416_s0 + $0x2e0] sm:$0xff]  ;;  %v6649_v4 = vcombine.low %v1031_v44, %v1033_v6  ;;  %v6646_v33 = vcombine.high %v1027_v56, %v1029_v24  ;;  %v1023_v62 = vunpack.c.l.s8.bf16 %v600_v31 }
  0x8a   :  { %4194 = vmatprep.mubr.bf16.mxu1 %v7928_v38  ;;  %v6582_v38 = vcombine.high %v963_v5, %v965_v23  ;;  %v7988_v44 = vpack.c.bf16 %v118_v50, %v101_v34  ;;  %v598_v6 = vld [vmem:[%s11415_s1 + $0x520] sm:$0xff]  ;;  %v6645_v42 = vcombine.low %v1027_v56, %v1029_v24  ;;  %v957_v31 = vunpack.c.l.s8.bf16 %v567_v29  ;;  %v564_v56 = vld [vmem:[%s11415_s1 + $0x410] sm:$0xff]  ;;  %v565_v24 = vld [vmem:[%s11415_s1 + $0x418] sm:$0xff] }
  0x8b   :  { %11575 = vst [vmem:[#allocation27_spill] sm:$0xff] %v7960_v36  ;;  %4268 = vmatpush1.bf16.msra.mxu0 %v6589_v26  ;;  %v7979_v26 = vpack.c.bf16 %v116_v46, %v99_v21  ;;  %v115_v21 = vld [vmem:[%s11416_s0 + $0x2c8] sm:$0xff]  ;;  %v117_v46 = vld [vmem:[%s11416_s0 + $0x2d8] sm:$0xff]  ;;  %v6642_v60 = vcombine.high %v1023_v62, %v1025_v52  ;;  %v150_v50 = vld [vmem:[%s11416_s0 + $0x3e0] sm:$0xff]  ;;  %v953_v54 = vunpack.c.l.s8.bf16 %v565_v24 }
  0x8c   :  { %4381 = vmatpush1.bf16.msra.mxu1 %v6653_v43  ;;  %4269 = vmatprep.subr.bf16.mxu0 %v6586_v47  ;;  %11578 = vst [vmem:[#allocation30_spill] sm:$0xff] %v7988_v44  ;;  %v599_v43 = vld [vmem:[%s11415_s1 + $0x528] sm:$0xff]  ;;  %v6581_v47 = vcombine.low %v963_v5, %v965_v23  ;;  %v6578_v5 = vcombine.high %v959_v40, %v961_v49  ;;  %v955_v23 = vunpack.c.l.s8.bf16 %v566_v22  ;;  %v597_v22 = vld [vmem:[%s11415_s1 + $0x518] sm:$0xff] }
  0x8d   :  { %4382 = vmatprep.subr.bf16.mxu1 %v6650_v9  ;;  %11577 = vst [vmem:[#allocation29_spill] sm:$0xff] %v7979_v26  ;;  %v98_v9 = vld [vmem:[%s11416_s0 + $0x240] sm:$0xff]  ;;  %v1021_v34 = vunpack.c.l.s8.bf16 %v599_v43  ;;  %v8031_v29 = vpack.c.bf16 %v117_v46, %v100_v15  ;;  %v135_v43 = vld [vmem:[%s11416_s0 + $0x368] sm:$0xff]  ;;  %v1017_v46 = vunpack.c.l.s8.bf16 %v597_v22  ;;  %v149_v24 = vld [vmem:[%s11416_s0 + $0x3d8] sm:$0xff] }
  0x8e   :  { %4082 = vmatmul.mubr.bf16.gmra.mxu0 %v7960_v36 }
  0x8f   :  { %4195 = vmatmul.mubr.bf16.gmra.mxu1 %v7971_v63  ;;  %4270 = vmatpush1.bf16.msra.mxu0 %v6585_v11  ;;  %v1019_v11 = vunpack.c.l.s8.bf16 %v598_v6  ;;  %11580 = vst [vmem:[#allocation32_spill] sm:$0xff] %v8031_v29  ;;  %v6577_v6 = vcombine.low %v959_v40, %v961_v49  ;;  %v951_v63 = vunpack.c.l.s8.bf16 %v564_v56  ;;  %v132_v56 = vld [vmem:[%s11416_s0 + $0x350] sm:$0xff] }
  0x90   :  { %4383 = vmatpush1.bf16.msra.mxu1 %v6649_v4  ;;  %4271 = vmatprep.subr.bf16.mxu0 %v6582_v38  ;;  %v133_v38 = vld [vmem:[%s11416_s0 + $0x358] sm:$0xff]  ;;  %v596_v4 = vld [vmem:[%s11415_s1 + $0x510] sm:$0xff] }
  0x91   :  { %4384 = vmatprep.subr.bf16.mxu1 %v6646_v33  ;;  %4091 = vmatprep.mubr.bf16.mxu0 %v7979_v26  ;;  %v8020_v33 = vpack.c.bf16 %v115_v21, %v98_v9  ;;  %v152_v9 = vld [vmem:[%s11416_s0 + $0x3f0] sm:$0xff]  ;;  %v6641_v21 = vcombine.low %v1023_v62, %v1025_v52  ;;  %v6638_v49 = vcombine.high %v1019_v11, %v1021_v34  ;;  %v1015_v15 = vunpack.c.l.s8.bf16 %v596_v4  ;;  %v594_v62 = vld [vmem:[%s11415_s1 + $0x500] sm:$0xff]  ;;  %v595_v52 = vld [vmem:[%s11415_s1 + $0x508] sm:$0xff] }
  0x92   :  { %4204 = vmatprep.mubr.bf16.mxu1 %v7988_v44  ;;  %v6574_v44 = vcombine.high %v955_v23, %v957_v31  ;;  %v8044_v40 = vpack.c.bf16 %v150_v50, %v133_v38  ;;  %v6637_v38 = vcombine.low %v1019_v11, %v1021_v34  ;;  %v134_v4 = vld [vmem:[%s11416_s0 + $0x360] sm:$0xff]  ;;  %v1011_v34 = vunpack.c.l.s8.bf16 %v594_v62 }
  0x93   :  { %11579 = vst [vmem:[#allocation31_spill] sm:$0xff] %v8020_v33  ;;  %4272 = vmatpush1.bf16.msra.mxu0 %v6581_v47  ;;  %v8042_v47 = vld [vmem:[%s11415_s1 + $0x400] sm:$0xff]  ;;  %v1013_v22 = vunpack.c.l.s8.bf16 %v595_v52  ;;  %v6569_v52 = vcombine.low %v951_v63, %v953_v54 }
  0x94   :  { %4385 = vmatpush1.bf16.msra.mxu1 %v6645_v42  ;;  %4273 = vmatprep.subr.bf16.mxu0 %v6578_v5  ;;  %11581 = vst [vmem:[#allocation33_spill] sm:$0xff] %v8044_v40  ;;  %v563_v42 = vld [vmem:[%s11415_s1 + $0x408] sm:$0xff]  ;;  %v8056_v5 = vpack.c.bf16 %v152_v9, %v135_v43  ;;  %v947_v50 = vunpack.c.l.s8.bf16 %v8042_v47  ;;  %v592_v43 = vld [vmem:[%s11415_s1 + $0x4f0] sm:$0xff]  ;;  %v593_v9 = vld [vmem:[%s11415_s1 + $0x4f8] sm:$0xff] }
  0x95   :  { %4386 = vmatprep.subr.bf16.mxu1 %v6642_v60  ;;  %v6573_v60 = vcombine.low %v955_v23, %v957_v31  ;;  %v151_v23 = vld [vmem:[%s11416_s0 + $0x3e8] sm:$0xff]  ;;  %v6570_v31 = vcombine.high %v951_v63, %v953_v54  ;;  %v949_v11 = vunpack.c.l.s8.bf16 %v563_v42  ;;  %v184_v47 = vld [vmem:[%s11416_s0 + $0x4f0] sm:$0xff]  ;;  %v625_v42 = vld [vmem:[%s11415_s1 + $0x5f8] sm:$0xff]  ;;  %v6630_v37 = vcombine.high %v1011_v34, %v1013_v22 }
  0x96   :  { %4092 = vmatmul.mubr.bf16.gmra.mxu0 %v8020_v33  ;;  %11582 = vst [vmem:[#allocation34_spill] sm:$0xff] %v8056_v5  ;;  %v8094_v62 = vpack.c.bf16 %v151_v23, %v134_v4  ;;  %v1009_v61 = vunpack.c.l.s8.bf16 %v593_v9  ;;  %v1073_v54 = vunpack.c.l.s8.bf16 %v625_v42  ;;  %v590_v63 = vld [vmem:[%s11415_s1 + $0x4e0] sm:$0xff]  ;;  %v6629_v9 = vcombine.low %v1011_v34, %v1013_v22  ;;  %v589_v34 = vld [vmem:[%s11415_s1 + $0x4d8] sm:$0xff] }
  0x97   :  { %4205 = vmatmul.mubr.bf16.gmra.mxu1 %v8031_v29  ;;  %4274 = vmatpush1.bf16.msra.mxu0 %v6577_v6  ;;  %v6634_v6 = vcombine.high %v1015_v15, %v1017_v46  ;;  %v6633_v29 = vcombine.low %v1015_v15, %v1017_v46  ;;  %v591_v15 = vld [vmem:[%s11415_s1 + $0x4e8] sm:$0xff]  ;;  %v11586_v46 = vunpack.c.h.s8.bf16 %v7145_v1  ;;  %v6565_v1 = vcombine.low %v947_v50, %v949_v11  ;;  %v218_v22 = vld [vmem:[%s11416_s0 + $0x600] sm:$0xff] }
  0x98   :  { %4387 = vmatpush1.bf16.msra.mxu1 %v6641_v21  ;;  %4275 = vmatprep.subr.bf16.mxu0 %v6574_v44  ;;  %v167_v44 = vld [vmem:[%s11416_s0 + $0x468] sm:$0xff]  ;;  %v8083_v21 = vpack.c.bf16 %v149_v24, %v132_v56  ;;  %11584 = vst [vmem:[#allocation36_spill] sm:$0xff] %v8094_v62  ;;  %v169_v56 = vld [vmem:[%s11416_s0 + $0x478] sm:$0xff]  ;;  %v186_v24 = vld [vmem:[%s11416_s0 + $0x500] sm:$0xff]  ;;  %v1005_v42 = vunpack.c.l.s8.bf16 %v591_v15 }
  0x99   :  { %4388 = vmatprep.subr.bf16.mxu1 %v6638_v49  ;;  %4101 = vmatprep.mubr.bf16.mxu0 %v8044_v40  ;;  %v624_v49 = vld [vmem:[%s11415_s1 + $0x5f0] sm:$0xff]  ;;  %v1007_v40 = vunpack.c.l.s8.bf16 %v592_v43  ;;  %v183_v43 = vld [vmem:[%s11416_s0 + $0x4e8] sm:$0xff]  ;;  %v621_v15 = vld [vmem:[%s11415_s1 + $0x5d8] sm:$0xff] }
  0x9a   :  { %4214 = vmatprep.mubr.bf16.mxu1 %v8056_v5  ;;  %11583 = vst [vmem:[#allocation35_spill] sm:$0xff] %v8083_v21  ;;  %v6566_v5 = vcombine.high %v947_v50, %v949_v11  ;;  %v1071_v4 = vunpack.c.l.s8.bf16 %v624_v49  ;;  %v185_v49 = vld [vmem:[%s11416_s0 + $0x4f8] sm:$0xff]  ;;  %v1003_v11 = vunpack.c.l.s8.bf16 %v590_v63  ;;  %v620_v63 = vld [vmem:[%s11415_s1 + $0x5d0] sm:$0xff] }
  0x9b   :  { %4276 = vmatpush1.bf16.msra.mxu0 %v6573_v60  ;;  %v8102_v60 = vpack.c.bf16 %v184_v47, %v167_v44  ;;  %v623_v44 = vld [vmem:[%s11415_s1 + $0x5e8] sm:$0xff]  ;;  %v168_v47 = vld [vmem:[%s11416_s0 + $0x470] sm:$0xff]  ;;  %v6626_v50 = vcombine.high %v1007_v40, %v1009_v61 }
  0x9c   :  { %4389 = vmatpush1.bf16.msra.mxu1 %v6637_v38  ;;  %4277 = vmatprep.subr.bf16.mxu0 %v6570_v31  ;;  %v11587_v38 = vunpack.c.h.s8.bf16 %v7140_v0  ;;  %v8117_v31 = vpack.c.bf16 %v186_v24, %v169_v56  ;;  %v166_v0 = vld [vmem:[%s11416_s0 + $0x460] sm:$0xff]  ;;  %v1069_v24 = vunpack.c.l.s8.bf16 %v623_v44  ;;  %v220_v44 = vld [vmem:[%s11416_s0 + $0x610] sm:$0xff] }
  0x9d   :  { %4390 = vmatprep.subr.bf16.mxu1 %v6634_v6  ;;  %11585 = vst [vmem:[#allocation37_spill] sm:$0xff] %v8102_v60  ;;  %v622_v6 = vld [vmem:[%s11415_s1 + $0x5e0] sm:$0xff] }
  0x9e   :  { %v8114_v23 = vcombine.high %v11587_v38, %v11586_v46  ;;  %4102 = vmatmul.mubr.bf16.gmra.mxu0 %v8083_v21  ;;  %11588 = vst [vmem:[#allocation38_spill] sm:$0xff] %v8117_v31  ;;  %v1067_v56 = vunpack.c.l.s8.bf16 %v622_v6  ;;  %v8160_v46 = vpack.c.bf16 %v185_v49, %v168_v47  ;;  %v6625_v38 = vcombine.low %v1007_v40, %v1009_v61  ;;  %v203_v6 = vld [vmem:[%s11416_s0 + $0x588] sm:$0xff]  ;;  %v586_v40 = vld [vmem:[%s11415_s1 + $0x4c0] sm:$0xff] }
  0x9f   :  { %4215 = vmatmul.mubr.bf16.gmra.mxu1 %v8094_v62  ;;  %4278 = vmatpush1.bf16.msra.mxu0 %v6569_v52  ;;  %v6690_v52 = vcombine.high %v1071_v4, %v1073_v54  ;;  %v1001_v62 = vunpack.c.l.s8.bf16 %v589_v34  ;;  %v1063_v47 = vunpack.c.l.s8.bf16 %v620_v63  ;;  %v1065_v61 = vunpack.c.l.s8.bf16 %v621_v15  ;;  %v587_v49 = vld [vmem:[%s11415_s1 + $0x4c8] sm:$0xff]  ;;  %v202_v34 = vld [vmem:[%s11416_s0 + $0x580] sm:$0xff] }
  0xa0   :  { %4391 = vmatpush1.bf16.msra.mxu1 %v6633_v29  ;;  %4279 = vmatprep.subr.bf16.mxu0 %v6566_v5  ;;  %v201_v29 = vld [vmem:[%s11416_s0 + $0x578] sm:$0xff]  ;;  %v588_v5 = vld [vmem:[%s11415_s1 + $0x4d0] sm:$0xff]  ;;  %11590 = vst [vmem:[#allocation40_spill] sm:$0xff] %v8160_v46  ;;  %v997_v63 = vunpack.c.l.s8.bf16 %v587_v49 }
  0xa1   :  { %4392 = vmatprep.subr.bf16.mxu1 %v6630_v37  ;;  %4111 = vmatprep.mubr.bf16.mxu0 %v8102_v60  ;;  %v8149_v37 = vpack.c.bf16 %v183_v43, %v166_v0  ;;  %v6689_v0 = vcombine.low %v1071_v4, %v1073_v54  ;;  %v6622_v43 = vcombine.high %v1003_v11, %v1005_v42  ;;  %v618_v54 = vld [vmem:[%s11415_s1 + $0x5c0] sm:$0xff] }
  0xa2   :  { %4224 = vmatprep.mubr.bf16.mxu1 %v8117_v31  ;;  %v999_v31 = vunpack.c.l.s8.bf16 %v588_v5  ;;  %v6686_v60 = vcombine.high %v1067_v56, %v1069_v24  ;;  %v8177_v4 = vpack.c.bf16 %v220_v44, %v203_v6  ;;  %v6685_v5 = vcombine.low %v1067_v56, %v1069_v24  ;;  %v235_v56 = vld [vmem:[%s11416_s0 + $0x688] sm:$0xff]  ;;  %v584_v24 = vld [vmem:[%s11415_s1 + $0x4b0] sm:$0xff]  ;;  %v585_v44 = vld [vmem:[%s11415_s1 + $0x4b8] sm:$0xff] }
  0xa3   :  { %11589 = vst [vmem:[#allocation39_spill] sm:$0xff] %v8149_v37  ;;  %4280 = vmatpush1.bf16.msra.mxu0 %v6565_v1  ;;  %v8168_v1 = vpack.c.bf16 %v218_v22, %v201_v29  ;;  %v217_v29 = vld [vmem:[%s11416_s0 + $0x5f8] sm:$0xff]  ;;  %v219_v22 = vld [vmem:[%s11416_s0 + $0x608] sm:$0xff]  ;;  %v6682_v15 = vcombine.high %v1063_v47, %v1065_v61 }
  0xa4   :  { %4393 = vmatpush1.bf16.msra.mxu1 %v6629_v9  ;;  %4281 = vmatprep.subr.bf16.mxu0 %v6626_v50  ;;  %11592 = vst [vmem:[#allocation42_spill] sm:$0xff] %v8177_v4  ;;  %v619_v9 = vld [vmem:[%s11415_s1 + $0x5c8] sm:$0xff]  ;;  %v6621_v50 = vcombine.low %v1003_v11, %v1005_v42  ;;  %v6618_v11 = vcombine.high %v999_v31, %v1001_v62  ;;  %v995_v42 = vunpack.c.l.s8.bf16 %v586_v40  ;;  %v617_v40 = vld [vmem:[%s11415_s1 + $0x5b8] sm:$0xff] }
  0xa5   :  { %4394 = vmatprep.subr.bf16.mxu1 %v6690_v52  ;;  %11591 = vst [vmem:[#allocation41_spill] sm:$0xff] %v8168_v1  ;;  %v200_v52 = vld [vmem:[%s11416_s0 + $0x570] sm:$0xff]  ;;  %v1061_v6 = vunpack.c.l.s8.bf16 %v619_v9  ;;  %v8220_v49 = vpack.c.bf16 %v219_v22, %v202_v34  ;;  %v237_v9 = vld [vmem:[%s11416_s0 + $0x698] sm:$0xff]  ;;  %v583_v22 = vld [vmem:[%s11415_s1 + $0x4a8] sm:$0xff] }
  0xa6   :  { %4112 = vmatmul.mubr.bf16.gmra.mxu0 %v8149_v37 }
  0xa7   :  { %4225 = vmatmul.mubr.bf16.gmra.mxu1 %v8160_v46  ;;  %4282 = vmatpush2.bf16.msra.mxu0 %v6625_v38  ;;  %v1059_v38 = vunpack.c.l.s8.bf16 %v618_v54  ;;  %11594 = vst [vmem:[#allocation44_spill] sm:$0xff] %v8220_v49  ;;  %v6617_v54 = vcombine.low %v999_v31, %v1001_v62  ;;  %v991_v46 = vunpack.c.l.s8.bf16 %v584_v24  ;;  %v1057_v62 = vunpack.c.l.s8.bf16 %v617_v40  ;;  %v582_v31 = vld [vmem:[%s11415_s1 + $0x4a0] sm:$0xff] }
  0xa8   :  { %4395 = vmatpush2.bf16.msra.mxu1 %v6689_v0  ;;  %4283 = vmatprep.subr.bf16.mxu0 %v6622_v43  ;;  %v252_v0 = vld [vmem:[%s11416_s0 + $0x710] sm:$0xff] }
  0xa9   :  { %4396 = vmatprep.subr.bf16.mxu1 %v6686_v60  ;;  %4121 = vmatprep.mubr.bf16.mxu0 %v8168_v1  ;;  %v8209_v60 = vpack.c.bf16 %v217_v29, %v200_v52  ;;  %v616_v43 = vld [vmem:[%s11415_s1 + $0x5b0] sm:$0xff]  ;;  %v254_v52 = vld [vmem:[%s11416_s0 + $0x720] sm:$0xff]  ;;  %v6681_v29 = vcombine.low %v1063_v47, %v1065_v61  ;;  %v993_v1 = vunpack.c.l.s8.bf16 %v585_v44  ;;  %v6678_v37 = vcombine.high %v1059_v38, %v1061_v6 }
  0xaa   :  { %4234 = vmatprep.mubr.bf16.mxu1 %v8177_v4  ;;  %v6614_v4 = vcombine.high %v995_v42, %v997_v63  ;;  %v1055_v34 = vunpack.c.l.s8.bf16 %v616_v43  ;;  %v8237_v47 = vpack.c.bf16 %v254_v52, %v237_v9  ;;  %v614_v61 = vld [vmem:[%s11415_s1 + $0x5a0] sm:$0xff]  ;;  %v6677_v24 = vcombine.low %v1059_v38, %v1061_v6  ;;  %v236_v44 = vld [vmem:[%s11416_s0 + $0x690] sm:$0xff]  ;;  %v581_v6 = vld [vmem:[%s11415_s1 + $0x498] sm:$0xff] }
  0xab   :  { %11593 = vst [vmem:[#allocation43_spill] sm:$0xff] %v8209_v60  ;;  %4284 = vmatpush2.bf16.msra.mxu0 %v6621_v50  ;;  %v8228_v50 = vpack.c.bf16 %v252_v0, %v235_v56  ;;  %v251_v56 = vld [vmem:[%s11416_s0 + $0x708] sm:$0xff]  ;;  %v253_v0 = vld [vmem:[%s11416_s0 + $0x718] sm:$0xff]  ;;  %v989_v43 = vunpack.c.l.s8.bf16 %v583_v22  ;;  %v580_v38 = vld [vmem:[%s11415_s1 + $0x490] sm:$0xff] }
  0xac   :  { %4397 = vmatpush2.bf16.msra.mxu1 %v6685_v5  ;;  %4285 = vmatprep.subr.bf16.mxu0 %v6618_v11  ;;  %11596 = vst [vmem:[#allocation46_spill] sm:$0xff] %v8237_v47  ;;  %v615_v5 = vld [vmem:[%s11415_s1 + $0x5a8] sm:$0xff]  ;;  %v6613_v11 = vcombine.low %v995_v42, %v997_v63  ;;  %v6610_v42 = vcombine.high %v991_v46, %v993_v1  ;;  %v987_v63 = vunpack.c.l.s8.bf16 %v582_v31  ;;  %v286_v52 = vld [vmem:[%s11416_s0 + $0x820] sm:$0xff]  ;;  %v613_v31 = vld [vmem:[%s11415_s1 + $0x598] sm:$0xff] }
  0xad   :  { %4398 = vmatprep.subr.bf16.mxu1 %v6682_v15  ;;  %11595 = vst [vmem:[#allocation45_spill] sm:$0xff] %v8228_v50  ;;  %v234_v15 = vld [vmem:[%s11416_s0 + $0x680] sm:$0xff]  ;;  %v6674_v40 = vcombine.high %v1055_v34, %v1057_v62  ;;  %v1053_v9 = vunpack.c.l.s8.bf16 %v615_v5  ;;  %v8280_v22 = vpack.c.bf16 %v253_v0, %v236_v44  ;;  %v271_v5 = vld [vmem:[%s11416_s0 + $0x7a8] sm:$0xff] }
  0xae   :  { %4122 = vmatmul.mubr.bf16.gmra.mxu0 %v8209_v60  ;;  %v579_v0 = vld [vmem:[%s11415_s1 + $0x488] sm:$0xff] }
  0xaf   :  { %4235 = vmatmul.mubr.bf16.gmra.mxu1 %v8220_v49  ;;  %4286 = vmatpush2.bf16.msra.mxu0 %v6617_v54  ;;  %v1051_v54 = vunpack.c.l.s8.bf16 %v614_v61  ;;  %11598 = vst [vmem:[#allocation48_spill] sm:$0xff] %v8280_v22  ;;  %v6609_v61 = vcombine.low %v991_v46, %v993_v1  ;;  %v983_v49 = vunpack.c.l.s8.bf16 %v580_v38  ;;  %v1049_v46 = vunpack.c.l.s8.bf16 %v613_v31  ;;  %v578_v1 = vld [vmem:[%s11415_s1 + $0x480] sm:$0xff] }
  0xb0   :  { %4399 = vmatpush2.bf16.msra.mxu1 %v6681_v29  ;;  %4287 = vmatprep.subr.bf16.mxu0 %v6614_v4  ;;  %v269_v4 = vld [vmem:[%s11416_s0 + $0x798] sm:$0xff]  ;;  %v612_v29 = vld [vmem:[%s11415_s1 + $0x590] sm:$0xff] }
  0xb1   :  { %4400 = vmatprep.subr.bf16.mxu1 %v6678_v37  ;;  %4131 = vmatprep.mubr.bf16.mxu0 %v8228_v50  ;;  %v8269_v37 = vpack.c.bf16 %v251_v56, %v234_v15  ;;  %v288_v15 = vld [vmem:[%s11416_s0 + $0x830] sm:$0xff]  ;;  %v6673_v56 = vcombine.low %v1055_v34, %v1057_v62  ;;  %v985_v50 = vunpack.c.l.s8.bf16 %v581_v6  ;;  %v6670_v60 = vcombine.high %v1051_v54, %v1053_v9  ;;  %v610_v62 = vld [vmem:[%s11415_s1 + $0x580] sm:$0xff] }
  0xb2   :  { %4244 = vmatprep.mubr.bf16.mxu1 %v8237_v47  ;;  %v6606_v47 = vcombine.high %v987_v63, %v989_v43  ;;  %v1047_v44 = vunpack.c.l.s8.bf16 %v612_v29  ;;  %v8297_v34 = vpack.c.bf16 %v288_v15, %v271_v5  ;;  %v6669_v38 = vcombine.low %v1051_v54, %v1053_v9  ;;  %v270_v6 = vld [vmem:[%s11416_s0 + $0x7a0] sm:$0xff]  ;;  %v640_v54 = vld [vmem:[%s11415_s1 + $0x670] sm:$0xff]  ;;  %v641_v9 = vld [vmem:[%s11415_s1 + $0x678] sm:$0xff] }
  0xb3   :  { %11597 = vst [vmem:[#allocation47_spill] sm:$0xff] %v8269_v37  ;;  %4288 = vmatpush2.bf16.msra.mxu0 %v6613_v11  ;;  %v8288_v11 = vpack.c.bf16 %v286_v52, %v269_v4  ;;  %v285_v4 = vld [vmem:[%s11416_s0 + $0x818] sm:$0xff]  ;;  %v287_v52 = vld [vmem:[%s11416_s0 + $0x828] sm:$0xff]  ;;  %v981_v29 = vunpack.c.l.s8.bf16 %v579_v0  ;;  %v52_v15 = vld [vmem:[%s11416_s0 + $0xd0] sm:$0xff] }
  0xb4   :  { %4401 = vmatpush2.bf16.msra.mxu1 %v6677_v24  ;;  %4289 = vmatprep.subr.bf16.mxu0 %v6610_v42  ;;  %11600 = vst [vmem:[#allocation50_spill] sm:$0xff] %v8297_v34  ;;  %v611_v24 = vld [vmem:[%s11415_s1 + $0x588] sm:$0xff]  ;;  %v6605_v42 = vcombine.low %v987_v63, %v989_v43  ;;  %v6602_v63 = vcombine.high %v983_v49, %v985_v50  ;;  %v979_v43 = vunpack.c.l.s8.bf16 %v578_v1  ;;  %v673_v1 = vld [vmem:[%s11415_s1 + $0x778] sm:$0xff] }
  0xb5   :  { %4402 = vmatprep.subr.bf16.mxu1 %v6674_v40  ;;  %11599 = vst [vmem:[#allocation49_spill] sm:$0xff] %v8288_v11  ;;  %v268_v40 = vld [vmem:[%s11416_s0 + $0x790] sm:$0xff]  ;;  %v6666_v31 = vcombine.high %v1047_v44, %v1049_v46  ;;  %v1045_v5 = vunpack.c.l.s8.bf16 %v611_v24  ;;  %v8340_v0 = vpack.c.bf16 %v287_v52, %v270_v6  ;;  %v37_v24 = vld [vmem:[%s11416_s0 + $0x58] sm:$0xff]  ;;  %v1169_v52 = vunpack.c.l.s8.bf16 %v673_v1 }
  0xb6   :  { %4132 = vmatmul.mubr.bf16.gmra.mxu0 %v8269_v37 }
  0xb7   :  { %4245 = vmatmul.mubr.bf16.gmra.mxu1 %v8280_v22  ;;  %4290 = vmatpush2.bf16.msra.mxu0 %v6609_v61  ;;  %v1043_v61 = vunpack.c.l.s8.bf16 %v610_v62  ;;  %11602 = vst [vmem:[#allocation52_spill] sm:$0xff] %v8340_v0  ;;  %v6601_v62 = vcombine.low %v983_v49, %v985_v50  ;;  %v1103_v22 = vunpack.c.l.s8.bf16 %v640_v54  ;;  %v34_v54 = vld [vmem:[%s11416_s0 + $0x40] sm:$0xff] }
  0xb8   :  { %4403 = vmatpush2.bf16.msra.mxu1 %v6673_v56  ;;  %4291 = vmatprep.subr.bf16.mxu0 %v6606_v47  ;;  %v35_v47 = vld [vmem:[%s11416_s0 + $0x48] sm:$0xff]  ;;  %v672_v56 = vld [vmem:[%s11415_s1 + $0x770] sm:$0xff] }
  0xb9   :  { %4404 = vmatprep.subr.bf16.mxu1 %v6670_v60  ;;  %4141 = vmatprep.mubr.bf16.mxu0 %v8288_v11  ;;  %v8329_v60 = vpack.c.bf16 %v285_v4, %v268_v40  ;;  %v54_v40 = vld [vmem:[%s11416_s0 + $0xe0] sm:$0xff]  ;;  %v6665_v4 = vcombine.low %v1047_v44, %v1049_v46  ;;  %v1105_v11 = vunpack.c.l.s8.bf16 %v641_v9  ;;  %v6662_v49 = vcombine.high %v1043_v61, %v1045_v5  ;;  %v671_v46 = vld [vmem:[%s11415_s1 + $0x768] sm:$0xff] }
  0xba   :  { %4254 = vmatprep.mubr.bf16.mxu1 %v8297_v34  ;;  %v6598_v34 = vcombine.high %v979_v43, %v981_v29  ;;  %v8353_v50 = vpack.c.bf16 %v52_v15, %v35_v47  ;;  %v1167_v6 = vunpack.c.l.s8.bf16 %v672_v56  ;;  %v670_v44 = vld [vmem:[%s11415_s1 + $0x760] sm:$0xff]  ;;  %v6661_v47 = vcombine.low %v1043_v61, %v1045_v5  ;;  %v51_v9 = vld [vmem:[%s11416_s0 + $0xc8] sm:$0xff]  ;;  %v36_v56 = vld [vmem:[%s11416_s0 + $0x50] sm:$0xff] }
  0xbb   :  { %11601 = vst [vmem:[#allocation51_spill] sm:$0xff] %v8329_v60  ;;  %4292 = vmatpush2.bf16.msra.mxu0 %v6605_v42  ;;  %v8351_v42 = vld [vmem:[%s11415_s1 + $0x660] sm:$0xff]  ;;  %v1163_v5 = vunpack.c.l.s8.bf16 %v670_v44  ;;  %v1165_v1 = vunpack.c.l.s8.bf16 %v671_v46  ;;  %v6721_v46 = vcombine.low %v1103_v22, %v1105_v11 }
  0xbc   :  { %4405 = vmatpush2.bf16.msra.mxu1 %v6669_v38  ;;  %4293 = vmatprep.subr.bf16.mxu0 %v6602_v63  ;;  %11603 = vst [vmem:[#allocation53_spill] sm:$0xff] %v8353_v50  ;;  %v639_v38 = vld [vmem:[%s11415_s1 + $0x668] sm:$0xff]  ;;  %v8365_v63 = vpack.c.bf16 %v54_v40, %v37_v24  ;;  %v1099_v15 = vunpack.c.l.s8.bf16 %v8351_v42  ;;  %v636_v24 = vld [vmem:[%s11415_s1 + $0x650] sm:$0xff]  ;;  %v637_v40 = vld [vmem:[%s11415_s1 + $0x658] sm:$0xff] }
  0xbd   :  { %4406 = vmatprep.subr.bf16.mxu1 %v6666_v31  ;;  %v6597_v31 = vcombine.low %v979_v43, %v981_v29  ;;  %v53_v43 = vld [vmem:[%s11416_s0 + $0xd8] sm:$0xff]  ;;  %v6722_v29 = vcombine.high %v1103_v22, %v1105_v11  ;;  %v1101_v61 = vunpack.c.l.s8.bf16 %v639_v38  ;;  %v86_v42 = vld [vmem:[%s11416_s0 + $0x1e0] sm:$0xff]  ;;  %v1097_v37 = vunpack.c.l.s8.bf16 %v637_v40 }
  0xbe   :  { %4142 = vmatmul.mubr.bf16.gmra.mxu0 %v8329_v60  ;;  %11604 = vst [vmem:[#allocation54_spill] sm:$0xff] %v8365_v63  ;;  %v669_v38 = vld [vmem:[%s11415_s1 + $0x758] sm:$0xff]  ;;  %v8403_v44 = vpack.c.bf16 %v53_v43, %v36_v56  ;;  %v1095_v60 = vunpack.c.l.s8.bf16 %v636_v24  ;;  %v634_v11 = vld [vmem:[%s11415_s1 + $0x640] sm:$0xff]  ;;  %v6781_v40 = vcombine.low %v1163_v5, %v1165_v1 }
  0xbf   :  { %4255 = vmatmul.mubr.bf16.gmra.mxu1 %v8340_v0  ;;  %4294 = vmatpush2.bf16.msra.mxu0 %v6601_v62  ;;  %v6786_v62 = vcombine.high %v1167_v6, %v1169_v52  ;;  %v6785_v0 = vcombine.low %v1167_v6, %v1169_v52  ;;  %v1161_v22 = vunpack.c.l.s8.bf16 %v669_v38  ;;  %v635_v6 = vld [vmem:[%s11415_s1 + $0x648] sm:$0xff]  ;;  %v11608_v52 = vunpack.c.h.s8.bf16 %v7159_v7  ;;  %v85_v24 = vld [vmem:[%s11416_s0 + $0x1d8] sm:$0xff] }
  0xc0   :  { %4407 = vmatpush2.bf16.msra.mxu1 %v6665_v4  ;;  %4295 = vmatprep.subr.bf16.mxu0 %v6598_v34  ;;  %v69_v34 = vld [vmem:[%s11416_s0 + $0x158] sm:$0xff]  ;;  %v8392_v4 = vpack.c.bf16 %v51_v9, %v34_v54  ;;  %11606 = vst [vmem:[#allocation56_spill] sm:$0xff] %v8403_v44  ;;  %v71_v54 = vld [vmem:[%s11416_s0 + $0x168] sm:$0xff]  ;;  %v88_v9 = vld [vmem:[%s11416_s0 + $0x1f0] sm:$0xff]  ;;  %v6717_v7 = vcombine.low %v1099_v15, %v1101_v61  ;;  %v1093_v38 = vunpack.c.l.s8.bf16 %v635_v6 }
  0xc1   :  { %4408 = vmatprep.subr.bf16.mxu1 %v6662_v49  ;;  %4297 = vmatprep.mubr.bf16.mxu0 %v8353_v50  ;;  %v668_v49 = vld [vmem:[%s11415_s1 + $0x750] sm:$0xff]  ;;  %v6782_v50 = vcombine.high %v1163_v5, %v1165_v1  ;;  %v633_v5 = vld [vmem:[%s11415_s1 + $0x638] sm:$0xff] }
  0xc2   :  { %4410 = vmatprep.mubr.bf16.mxu1 %v8365_v63  ;;  %11605 = vst [vmem:[#allocation55_spill] sm:$0xff] %v8392_v4  ;;  %v6718_v63 = vcombine.high %v1099_v15, %v1101_v61  ;;  %v1159_v56 = vunpack.c.l.s8.bf16 %v668_v49  ;;  %v87_v49 = vld [vmem:[%s11416_s0 + $0x1e8] sm:$0xff]  ;;  %v6714_v15 = vcombine.high %v1095_v60, %v1097_v37  ;;  %v1091_v61 = vunpack.c.l.s8.bf16 %v634_v11  ;;  %v120_v1 = vld [vmem:[%s11416_s0 + $0x2f0] sm:$0xff]  ;;  %v665_v6 = vld [vmem:[%s11415_s1 + $0x738] sm:$0xff] }
  0xc3   :  { %4296 = vmatpush2.bf16.msra.mxu0 %v6597_v31  ;;  %v8411_v31 = vpack.c.bf16 %v86_v42, %v69_v34  ;;  %v667_v34 = vld [vmem:[%s11415_s1 + $0x748] sm:$0xff]  ;;  %v70_v42 = vld [vmem:[%s11416_s0 + $0x160] sm:$0xff]  ;;  %v664_v11 = vld [vmem:[%s11415_s1 + $0x730] sm:$0xff] }
  0xc4   :  { %4409 = vmatpush2.bf16.msra.mxu1 %v6661_v47  ;;  %4491 = vmatprep.subr.bf16.mxu0 %v6722_v29  ;;  %v11609_v47 = vunpack.c.h.s8.bf16 %v7150_v2  ;;  %v8426_v29 = vpack.c.bf16 %v88_v9, %v71_v54  ;;  %v68_v2 = vld [vmem:[%s11416_s0 + $0x150] sm:$0xff]  ;;  %v1157_v9 = vunpack.c.l.s8.bf16 %v667_v34  ;;  %v122_v34 = vld [vmem:[%s11416_s0 + $0x300] sm:$0xff] }
  0xc5   :  { %4604 = vmatprep.subr.bf16.mxu1 %v6786_v62  ;;  %11607 = vst [vmem:[#allocation57_spill] sm:$0xff] %v8411_v31  ;;  %v666_v62 = vld [vmem:[%s11415_s1 + $0x740] sm:$0xff] }
  0xc6   :  { %v8423_v43 = vcombine.high %v11609_v47, %v11608_v52  ;;  %4298 = vmatmul.mubr.bf16.vlgmr.msra.gmra.mxu0 %v8392_v4  ;;  %11610 = vst [vmem:[#allocation58_spill] sm:$0xff] %v8426_v29  ;;  %v1155_v54 = vunpack.c.l.s8.bf16 %v666_v62  ;;  %v8469_v52 = vpack.c.bf16 %v87_v49, %v70_v42  ;;  %v6713_v47 = vcombine.low %v1095_v60, %v1097_v37  ;;  %v105_v62 = vld [vmem:[%s11416_s0 + $0x278] sm:$0xff]  ;;  %v630_v60 = vld [vmem:[%s11415_s1 + $0x620] sm:$0xff]  ;;  %v631_v49 = vld [vmem:[%s11415_s1 + $0x628] sm:$0xff] }
  0xc7   :  { %4411 = vmatmul.mubr.bf16.vlgmr.msra.gmra.mxu1 %v8403_v44  ;;  %4492 = vmatpush1.bf16.msra.mxu0 %v6721_v46  ;;  %v6778_v46 = vcombine.high %v1159_v56, %v1161_v22  ;;  %v1089_v44 = vunpack.c.l.s8.bf16 %v633_v5  ;;  %v1151_v42 = vunpack.c.l.s8.bf16 %v664_v11  ;;  %v1153_v37 = vunpack.c.l.s8.bf16 %v665_v6  ;;  %v104_v5 = vld [vmem:[%s11416_s0 + $0x270] sm:$0xff] }
  0xc8   :  { %4605 = vmatpush1.bf16.msra.mxu1 %v6785_v0  ;;  %4493 = vmatprep.subr.bf16.mxu0 %v6718_v63  ;;  %v103_v0 = vld [vmem:[%s11416_s0 + $0x268] sm:$0xff]  ;;  %v632_v63 = vld [vmem:[%s11415_s1 + $0x630] sm:$0xff]  ;;  %11612 = vst [vmem:[#allocation60_spill] sm:$0xff] %v8469_v52  ;;  %v1085_v11 = vunpack.c.l.s8.bf16 %v631_v49 }
  0xc9   :  { %4606 = vmatprep.subr.bf16.mxu1 %v6782_v50  ;;  %4307 = vmatprep.mubr.bf16.mxu0 %v8411_v31  ;;  %v8458_v50 = vpack.c.bf16 %v85_v24, %v68_v2  ;;  %v6777_v2 = vcombine.low %v1159_v56, %v1161_v22  ;;  %v6710_v24 = vcombine.high %v1091_v61, %v1093_v38  ;;  %v662_v22 = vld [vmem:[%s11415_s1 + $0x720] sm:$0xff] }
  0xca   :  { %4420 = vmatprep.mubr.bf16.mxu1 %v8426_v29  ;;  %v1087_v29 = vunpack.c.l.s8.bf16 %v632_v63  ;;  %v6774_v31 = vcombine.high %v1155_v54, %v1157_v9  ;;  %v8486_v56 = vpack.c.bf16 %v122_v34, %v105_v62  ;;  %v6773_v63 = vcombine.low %v1155_v54, %v1157_v9  ;;  %v137_v54 = vld [vmem:[%s11416_s0 + $0x378] sm:$0xff]  ;;  %v628_v9 = vld [vmem:[%s11415_s1 + $0x610] sm:$0xff] }
  0xcb   :  { %11611 = vst [vmem:[#allocation59_spill] sm:$0xff] %v8458_v50  ;;  %4494 = vmatpush1.bf16.msra.mxu0 %v6717_v7  ;;  %v8477_v7 = vpack.c.bf16 %v120_v1, %v103_v0  ;;  %v119_v0 = vld [vmem:[%s11416_s0 + $0x2e8] sm:$0xff]  ;;  %v121_v1 = vld [vmem:[%s11416_s0 + $0x2f8] sm:$0xff]  ;;  %v6770_v6 = vcombine.high %v1151_v42, %v1153_v37 }
  0xcc   :  { %4607 = vmatpush1.bf16.msra.mxu1 %v6781_v40  ;;  %4495 = vmatprep.subr.bf16.mxu0 %v6714_v15  ;;  %11614 = vst [vmem:[#allocation62_spill] sm:$0xff] %v8486_v56  ;;  %v663_v40 = vld [vmem:[%s11415_s1 + $0x728] sm:$0xff]  ;;  %v6709_v15 = vcombine.low %v1091_v61, %v1093_v38  ;;  %v6706_v61 = vcombine.high %v1087_v29, %v1089_v44  ;;  %v1083_v38 = vunpack.c.l.s8.bf16 %v630_v60  ;;  %v629_v34 = vld [vmem:[%s11415_s1 + $0x618] sm:$0xff] }
  0xcd   :  { %4608 = vmatprep.subr.bf16.mxu1 %v6778_v46  ;;  %11613 = vst [vmem:[#allocation61_spill] sm:$0xff] %v8477_v7  ;;  %v102_v46 = vld [vmem:[%s11416_s0 + $0x260] sm:$0xff]  ;;  %v1149_v62 = vunpack.c.l.s8.bf16 %v663_v40  ;;  %v661_v60 = vld [vmem:[%s11415_s1 + $0x718] sm:$0xff]  ;;  %v8529_v49 = vpack.c.bf16 %v121_v1, %v104_v5  ;;  %v139_v40 = vld [vmem:[%s11416_s0 + $0x388] sm:$0xff] }
  0xce   :  { %4308 = vmatmul.mubr.bf16.gmra.mxu0 %v8458_v50  ;;  %v627_v1 = vld [vmem:[%s11415_s1 + $0x608] sm:$0xff] }
  0xcf   :  { %4421 = vmatmul.mubr.bf16.gmra.mxu1 %v8469_v52  ;;  %4496 = vmatpush1.bf16.msra.mxu0 %v6713_v47  ;;  %v1147_v47 = vunpack.c.l.s8.bf16 %v662_v22  ;;  %11616 = vst [vmem:[#allocation64_spill] sm:$0xff] %v8529_v49  ;;  %v6705_v22 = vcombine.low %v1087_v29, %v1089_v44  ;;  %v1079_v52 = vunpack.c.l.s8.bf16 %v628_v9  ;;  %v1145_v44 = vunpack.c.l.s8.bf16 %v661_v60  ;;  %v626_v29 = vld [vmem:[%s11415_s1 + $0x600] sm:$0xff] }
  0xd0   :  { %4609 = vmatpush1.bf16.msra.mxu1 %v6777_v2  ;;  %4497 = vmatprep.subr.bf16.mxu0 %v6710_v24  ;;  %v154_v2 = vld [vmem:[%s11416_s0 + $0x400] sm:$0xff]  ;;  %v660_v24 = vld [vmem:[%s11415_s1 + $0x710] sm:$0xff] }
  0xd1   :  { %4610 = vmatprep.subr.bf16.mxu1 %v6774_v31  ;;  %4317 = vmatprep.mubr.bf16.mxu0 %v8477_v7  ;;  %v8518_v31 = vpack.c.bf16 %v119_v0, %v102_v46  ;;  %v156_v46 = vld [vmem:[%s11416_s0 + $0x410] sm:$0xff]  ;;  %v6769_v0 = vcombine.low %v1151_v42, %v1153_v37  ;;  %v1081_v7 = vunpack.c.l.s8.bf16 %v629_v34  ;;  %v6766_v50 = vcombine.high %v1147_v47, %v1149_v62  ;;  %v658_v37 = vld [vmem:[%s11415_s1 + $0x700] sm:$0xff] }
  0xd2   :  { %4430 = vmatprep.mubr.bf16.mxu1 %v8486_v56  ;;  %v6702_v56 = vcombine.high %v1083_v38, %v1085_v11  ;;  %v1143_v5 = vunpack.c.l.s8.bf16 %v660_v24  ;;  %v8546_v42 = vpack.c.bf16 %v156_v46, %v139_v40  ;;  %v6765_v9 = vcombine.low %v1147_v47, %v1149_v62  ;;  %v138_v34 = vld [vmem:[%s11416_s0 + $0x380] sm:$0xff]  ;;  %v656_v47 = vld [vmem:[%s11415_s1 + $0x6f0] sm:$0xff]  ;;  %v657_v62 = vld [vmem:[%s11415_s1 + $0x6f8] sm:$0xff] }
  0xd3   :  { %11615 = vst [vmem:[#allocation63_spill] sm:$0xff] %v8518_v31  ;;  %4498 = vmatpush1.bf16.msra.mxu0 %v6709_v15  ;;  %v8537_v15 = vpack.c.bf16 %v154_v2, %v137_v54  ;;  %v153_v54 = vld [vmem:[%s11416_s0 + $0x3f8] sm:$0xff]  ;;  %v155_v2 = vld [vmem:[%s11416_s0 + $0x408] sm:$0xff]  ;;  %v1077_v24 = vunpack.c.l.s8.bf16 %v627_v1  ;;  %v188_v46 = vld [vmem:[%s11416_s0 + $0x510] sm:$0xff] }
  0xd4   :  { %4611 = vmatpush1.bf16.msra.mxu1 %v6773_v63  ;;  %4499 = vmatprep.subr.bf16.mxu0 %v6706_v61  ;;  %11618 = vst [vmem:[#allocation66_spill] sm:$0xff] %v8546_v42  ;;  %v659_v63 = vld [vmem:[%s11415_s1 + $0x708] sm:$0xff]  ;;  %v6701_v61 = vcombine.low %v1083_v38, %v1085_v11  ;;  %v6698_v38 = vcombine.high %v1079_v52, %v1081_v7  ;;  %v1075_v11 = vunpack.c.l.s8.bf16 %v626_v29  ;;  %v689_v29 = vld [vmem:[%s11415_s1 + $0x7f8] sm:$0xff] }
  0xd5   :  { %4612 = vmatprep.subr.bf16.mxu1 %v6770_v6  ;;  %11617 = vst [vmem:[#allocation65_spill] sm:$0xff] %v8537_v15  ;;  %v136_v6 = vld [vmem:[%s11416_s0 + $0x370] sm:$0xff]  ;;  %v6762_v60 = vcombine.high %v1143_v5, %v1145_v44  ;;  %v1141_v40 = vunpack.c.l.s8.bf16 %v659_v63  ;;  %v8589_v1 = vpack.c.bf16 %v155_v2, %v138_v34  ;;  %v173_v63 = vld [vmem:[%s11416_s0 + $0x498] sm:$0xff]  ;;  %v655_v2 = vld [vmem:[%s11415_s1 + $0x6e8] sm:$0xff] }
  0xd6   :  { %4318 = vmatmul.mubr.bf16.gmra.mxu0 %v8518_v31 }
  0xd7   :  { %4431 = vmatmul.mubr.bf16.gmra.mxu1 %v8529_v49  ;;  %4500 = vmatpush1.bf16.msra.mxu0 %v6705_v22  ;;  %v1139_v22 = vunpack.c.l.s8.bf16 %v658_v37  ;;  %11620 = vst [vmem:[#allocation68_spill] sm:$0xff] %v8589_v1  ;;  %v6697_v37 = vcombine.low %v1079_v52, %v1081_v7  ;;  %v1135_v49 = vunpack.c.l.s8.bf16 %v656_v47  ;;  %v1201_v52 = vunpack.c.l.s8.bf16 %v689_v29  ;;  %v654_v7 = vld [vmem:[%s11415_s1 + $0x6e0] sm:$0xff] }
  0xd8   :  { %4613 = vmatpush1.bf16.msra.mxu1 %v6769_v0  ;;  %4501 = vmatprep.subr.bf16.mxu0 %v6702_v56  ;;  %v171_v56 = vld [vmem:[%s11416_s0 + $0x488] sm:$0xff]  ;;  %v688_v0 = vld [vmem:[%s11415_s1 + $0x7f0] sm:$0xff] }
  0xd9   :  { %4614 = vmatprep.subr.bf16.mxu1 %v6766_v50  ;;  %4327 = vmatprep.mubr.bf16.mxu0 %v8537_v15  ;;  %v8578_v50 = vpack.c.bf16 %v153_v54, %v136_v6  ;;  %v190_v6 = vld [vmem:[%s11416_s0 + $0x520] sm:$0xff]  ;;  %v6761_v54 = vcombine.low %v1143_v5, %v1145_v44  ;;  %v1137_v15 = vunpack.c.l.s8.bf16 %v657_v62  ;;  %v6758_v31 = vcombine.high %v1139_v22, %v1141_v40  ;;  %v172_v62 = vld [vmem:[%s11416_s0 + $0x490] sm:$0xff] }
  0xda   :  { %4440 = vmatprep.mubr.bf16.mxu1 %v8546_v42  ;;  %v6694_v42 = vcombine.high %v1075_v11, %v1077_v24  ;;  %v1199_v34 = vunpack.c.l.s8.bf16 %v688_v0  ;;  %v8606_v5 = vpack.c.bf16 %v190_v6, %v173_v63  ;;  %v686_v44 = vld [vmem:[%s11415_s1 + $0x7e0] sm:$0xff]  ;;  %v6757_v47 = vcombine.low %v1139_v22, %v1141_v40  ;;  %v652_v22 = vld [vmem:[%s11415_s1 + $0x6d0] sm:$0xff]  ;;  %v653_v40 = vld [vmem:[%s11415_s1 + $0x6d8] sm:$0xff] }
  0xdb   :  { %11619 = vst [vmem:[#allocation67_spill] sm:$0xff] %v8578_v50  ;;  %4502 = vmatpush1.bf16.msra.mxu0 %v6701_v61  ;;  %v8597_v61 = vpack.c.bf16 %v188_v46, %v171_v56  ;;  %v187_v56 = vld [vmem:[%s11416_s0 + $0x508] sm:$0xff]  ;;  %v189_v46 = vld [vmem:[%s11416_s0 + $0x518] sm:$0xff]  ;;  %v1133_v0 = vunpack.c.l.s8.bf16 %v655_v2  ;;  %v222_v6 = vld [vmem:[%s11416_s0 + $0x620] sm:$0xff] }
  0xdc   :  { %4615 = vmatpush1.bf16.msra.mxu1 %v6765_v9  ;;  %4503 = vmatprep.subr.bf16.mxu0 %v6698_v38  ;;  %11622 = vst [vmem:[#allocation70_spill] sm:$0xff] %v8606_v5  ;;  %v687_v9 = vld [vmem:[%s11415_s1 + $0x7e8] sm:$0xff]  ;;  %v6693_v38 = vcombine.low %v1075_v11, %v1077_v24  ;;  %v6754_v11 = vcombine.high %v1135_v49, %v1137_v15  ;;  %v1131_v24 = vunpack.c.l.s8.bf16 %v654_v7  ;;  %v685_v7 = vld [vmem:[%s11415_s1 + $0x7d8] sm:$0xff] }
  0xdd   :  { %4616 = vmatprep.subr.bf16.mxu1 %v6762_v60  ;;  %11621 = vst [vmem:[#allocation69_spill] sm:$0xff] %v8597_v61  ;;  %v170_v60 = vld [vmem:[%s11416_s0 + $0x480] sm:$0xff]  ;;  %v6818_v29 = vcombine.high %v1199_v34, %v1201_v52  ;;  %v1197_v63 = vunpack.c.l.s8.bf16 %v687_v9  ;;  %v8649_v2 = vpack.c.bf16 %v189_v46, %v172_v62  ;;  %v207_v9 = vld [vmem:[%s11416_s0 + $0x5a8] sm:$0xff] }
  0xde   :  { %4328 = vmatmul.mubr.bf16.gmra.mxu0 %v8578_v50  ;;  %v651_v46 = vld [vmem:[%s11415_s1 + $0x6c8] sm:$0xff] }
  0xdf   :  { %4441 = vmatmul.mubr.bf16.gmra.mxu1 %v8589_v1  ;;  %4504 = vmatpush1.bf16.msra.mxu0 %v6697_v37  ;;  %v1195_v37 = vunpack.c.l.s8.bf16 %v686_v44  ;;  %11624 = vst [vmem:[#allocation72_spill] sm:$0xff] %v8649_v2  ;;  %v6753_v44 = vcombine.low %v1135_v49, %v1137_v15  ;;  %v1127_v1 = vunpack.c.l.s8.bf16 %v652_v22  ;;  %v1193_v49 = vunpack.c.l.s8.bf16 %v685_v7  ;;  %v650_v15 = vld [vmem:[%s11415_s1 + $0x6c0] sm:$0xff] }
  0xe0   :  { %4617 = vmatpush1.bf16.msra.mxu1 %v6761_v54  ;;  %4505 = vmatprep.subr.bf16.mxu0 %v6694_v42  ;;  %v205_v42 = vld [vmem:[%s11416_s0 + $0x598] sm:$0xff]  ;;  %v684_v54 = vld [vmem:[%s11415_s1 + $0x7d0] sm:$0xff] }
  0xe1   :  { %4618 = vmatprep.subr.bf16.mxu1 %v6758_v31  ;;  %4337 = vmatprep.mubr.bf16.mxu0 %v8597_v61  ;;  %v8638_v31 = vpack.c.bf16 %v187_v56, %v170_v60  ;;  %v224_v60 = vld [vmem:[%s11416_s0 + $0x630] sm:$0xff]  ;;  %v6817_v56 = vcombine.low %v1199_v34, %v1201_v52  ;;  %v1129_v61 = vunpack.c.l.s8.bf16 %v653_v40  ;;  %v6814_v50 = vcombine.high %v1195_v37, %v1197_v63  ;;  %v682_v52 = vld [vmem:[%s11415_s1 + $0x7c0] sm:$0xff] }
  0xe2   :  { %4450 = vmatprep.mubr.bf16.mxu1 %v8606_v5  ;;  %v6750_v5 = vcombine.high %v1131_v24, %v1133_v0  ;;  %v1191_v62 = vunpack.c.l.s8.bf16 %v684_v54  ;;  %v8666_v34 = vpack.c.bf16 %v224_v60, %v207_v9  ;;  %v6813_v22 = vcombine.low %v1195_v37, %v1197_v63  ;;  %v206_v40 = vld [vmem:[%s11416_s0 + $0x5a0] sm:$0xff]  ;;  %v648_v37 = vld [vmem:[%s11415_s1 + $0x6b0] sm:$0xff]  ;;  %v649_v63 = vld [vmem:[%s11415_s1 + $0x6b8] sm:$0xff] }
  0xe3   :  { %11623 = vst [vmem:[#allocation71_spill] sm:$0xff] %v8638_v31  ;;  %4506 = vmatpush1.bf16.msra.mxu0 %v6693_v38  ;;  %v8657_v38 = vpack.c.bf16 %v222_v6, %v205_v42  ;;  %v221_v42 = vld [vmem:[%s11416_s0 + $0x618] sm:$0xff]  ;;  %v223_v6 = vld [vmem:[%s11416_s0 + $0x628] sm:$0xff]  ;;  %v1125_v54 = vunpack.c.l.s8.bf16 %v651_v46  ;;  %v256_v60 = vld [vmem:[%s11416_s0 + $0x730] sm:$0xff] }
  0xe4   :  { %4619 = vmatpush1.bf16.msra.mxu1 %v6757_v47  ;;  %4507 = vmatprep.subr.bf16.mxu0 %v6754_v11  ;;  %11626 = vst [vmem:[#allocation74_spill] sm:$0xff] %v8666_v34  ;;  %v683_v47 = vld [vmem:[%s11415_s1 + $0x7c8] sm:$0xff]  ;;  %v6749_v11 = vcombine.low %v1131_v24, %v1133_v0  ;;  %v6746_v24 = vcombine.high %v1127_v1, %v1129_v61  ;;  %v1123_v0 = vunpack.c.l.s8.bf16 %v650_v15  ;;  %v681_v15 = vld [vmem:[%s11415_s1 + $0x7b8] sm:$0xff] }
  0xe5   :  { %4620 = vmatprep.subr.bf16.mxu1 %v6818_v29  ;;  %11625 = vst [vmem:[#allocation73_spill] sm:$0xff] %v8657_v38  ;;  %v204_v29 = vld [vmem:[%s11416_s0 + $0x590] sm:$0xff]  ;;  %v6810_v7 = vcombine.high %v1191_v62, %v1193_v49  ;;  %v1189_v9 = vunpack.c.l.s8.bf16 %v683_v47  ;;  %v8709_v46 = vpack.c.bf16 %v223_v6, %v206_v40  ;;  %v241_v47 = vld [vmem:[%s11416_s0 + $0x6b8] sm:$0xff]  ;;  %v647_v6 = vld [vmem:[%s11415_s1 + $0x6a8] sm:$0xff] }
  0xe6   :  { %4338 = vmatmul.mubr.bf16.gmra.mxu0 %v8638_v31 }
  0xe7   :  { %4451 = vmatmul.mubr.bf16.gmra.mxu1 %v8649_v2  ;;  %4508 = vmatpush2.bf16.msra.mxu0 %v6753_v44  ;;  %v1187_v44 = vunpack.c.l.s8.bf16 %v682_v52  ;;  %11628 = vst [vmem:[#allocation76_spill] sm:$0xff] %v8709_v46  ;;  %v6745_v52 = vcombine.low %v1127_v1, %v1129_v61  ;;  %v1119_v2 = vunpack.c.l.s8.bf16 %v648_v37  ;;  %v1185_v1 = vunpack.c.l.s8.bf16 %v681_v15  ;;  %v646_v61 = vld [vmem:[%s11415_s1 + $0x6a0] sm:$0xff] }
  0xe8   :  { %4621 = vmatpush2.bf16.msra.mxu1 %v6817_v56  ;;  %4509 = vmatprep.subr.bf16.mxu0 %v6750_v5  ;;  %v239_v5 = vld [vmem:[%s11416_s0 + $0x6a8] sm:$0xff]  ;;  %v680_v56 = vld [vmem:[%s11415_s1 + $0x7b0] sm:$0xff] }
  0xe9   :  { %4622 = vmatprep.subr.bf16.mxu1 %v6814_v50  ;;  %4347 = vmatprep.mubr.bf16.mxu0 %v8657_v38  ;;  %v8698_v50 = vpack.c.bf16 %v221_v42, %v204_v29  ;;  %v258_v29 = vld [vmem:[%s11416_s0 + $0x740] sm:$0xff]  ;;  %v6809_v42 = vcombine.low %v1191_v62, %v1193_v49  ;;  %v1121_v38 = vunpack.c.l.s8.bf16 %v649_v63  ;;  %v6806_v31 = vcombine.high %v1187_v44, %v1189_v9  ;;  %v240_v63 = vld [vmem:[%s11416_s0 + $0x6b0] sm:$0xff] }
  0xea   :  { %4460 = vmatprep.mubr.bf16.mxu1 %v8666_v34  ;;  %v6742_v34 = vcombine.high %v1123_v0, %v1125_v54  ;;  %v1183_v40 = vunpack.c.l.s8.bf16 %v680_v56  ;;  %v8726_v62 = vpack.c.bf16 %v258_v29, %v241_v47  ;;  %v678_v49 = vld [vmem:[%s11415_s1 + $0x7a0] sm:$0xff]  ;;  %v6805_v37 = vcombine.low %v1187_v44, %v1189_v9  ;;  %v644_v44 = vld [vmem:[%s11415_s1 + $0x690] sm:$0xff]  ;;  %v645_v9 = vld [vmem:[%s11415_s1 + $0x698] sm:$0xff] }
  0xeb   :  { %11627 = vst [vmem:[#allocation75_spill] sm:$0xff] %v8698_v50  ;;  %4510 = vmatpush2.bf16.msra.mxu0 %v6749_v11  ;;  %v8717_v11 = vpack.c.bf16 %v256_v60, %v239_v5  ;;  %v255_v5 = vld [vmem:[%s11416_s0 + $0x728] sm:$0xff]  ;;  %v257_v60 = vld [vmem:[%s11416_s0 + $0x738] sm:$0xff]  ;;  %v1117_v56 = vunpack.c.l.s8.bf16 %v647_v6  ;;  %v290_v29 = vld [vmem:[%s11416_s0 + $0x840] sm:$0xff] }
  0xec   :  { %4623 = vmatpush2.bf16.msra.mxu1 %v6813_v22  ;;  %4511 = vmatprep.subr.bf16.mxu0 %v6746_v24  ;;  %11630 = vst [vmem:[#allocation78_spill] sm:$0xff] %v8726_v62  ;;  %v679_v22 = vld [vmem:[%s11415_s1 + $0x7a8] sm:$0xff]  ;;  %v6741_v24 = vcombine.low %v1123_v0, %v1125_v54  ;;  %v6738_v0 = vcombine.high %v1119_v2, %v1121_v38  ;;  %v1115_v54 = vunpack.c.l.s8.bf16 %v646_v61  ;;  %v677_v61 = vld [vmem:[%s11415_s1 + $0x798] sm:$0xff] }
  0xed   :  { %4624 = vmatprep.subr.bf16.mxu1 %v6810_v7  ;;  %11629 = vst [vmem:[#allocation77_spill] sm:$0xff] %v8717_v11  ;;  %v238_v7 = vld [vmem:[%s11416_s0 + $0x6a0] sm:$0xff]  ;;  %v6802_v15 = vcombine.high %v1183_v40, %v1185_v1  ;;  %v1181_v47 = vunpack.c.l.s8.bf16 %v679_v22  ;;  %v8769_v6 = vpack.c.bf16 %v257_v60, %v240_v63  ;;  %v275_v22 = vld [vmem:[%s11416_s0 + $0x7c8] sm:$0xff] }
  0xee   :  { %4348 = vmatmul.mubr.bf16.gmra.mxu0 %v8698_v50  ;;  %v643_v60 = vld [vmem:[%s11415_s1 + $0x688] sm:$0xff] }
  0xef   :  { %4461 = vmatmul.mubr.bf16.gmra.mxu1 %v8709_v46  ;;  %4512 = vmatpush2.bf16.msra.mxu0 %v6745_v52  ;;  %v1179_v52 = vunpack.c.l.s8.bf16 %v678_v49  ;;  %11632 = vst [vmem:[#allocation80_spill] sm:$0xff] %v8769_v6  ;;  %v6737_v49 = vcombine.low %v1119_v2, %v1121_v38  ;;  %v1111_v46 = vunpack.c.l.s8.bf16 %v644_v44  ;;  %v1177_v2 = vunpack.c.l.s8.bf16 %v677_v61  ;;  %v642_v38 = vld [vmem:[%s11415_s1 + $0x680] sm:$0xff] }
  0xf0   :  { %4625 = vmatpush2.bf16.msra.mxu1 %v6809_v42  ;;  %4513 = vmatprep.subr.bf16.mxu0 %v6742_v34  ;;  %v273_v34 = vld [vmem:[%s11416_s0 + $0x7b8] sm:$0xff]  ;;  %v676_v42 = vld [vmem:[%s11415_s1 + $0x790] sm:$0xff] }
  0xf1   :  { %4626 = vmatprep.subr.bf16.mxu1 %v6806_v31  ;;  %4357 = vmatprep.mubr.bf16.mxu0 %v8717_v11  ;;  %v8758_v31 = vpack.c.bf16 %v255_v5, %v238_v7  ;;  %v292_v7 = vld [vmem:[%s11416_s0 + $0x850] sm:$0xff]  ;;  %v6801_v5 = vcombine.low %v1183_v40, %v1185_v1  ;;  %v1113_v11 = vunpack.c.l.s8.bf16 %v645_v9  ;;  %v6798_v50 = vcombine.high %v1179_v52, %v1181_v47  ;;  %v674_v1 = vld [vmem:[%s11415_s1 + $0x780] sm:$0xff] }
  0xf2   :  { %4470 = vmatprep.mubr.bf16.mxu1 %v8726_v62  ;;  %v6734_v62 = vcombine.high %v1115_v54, %v1117_v56  ;;  %v1175_v63 = vunpack.c.l.s8.bf16 %v676_v42  ;;  %v8786_v40 = vpack.c.bf16 %v292_v7, %v275_v22  ;;  %v6797_v44 = vcombine.low %v1179_v52, %v1181_v47  ;;  %v274_v9 = vld [vmem:[%s11416_s0 + $0x7c0] sm:$0xff]  ;;  %v39_v47 = vld [vmem:[%s11416_s0 + $0x68] sm:$0xff] }
  0xf3   :  { %11631 = vst [vmem:[#allocation79_spill] sm:$0xff] %v8758_v31  ;;  %4514 = vmatpush2.bf16.msra.mxu0 %v6741_v24  ;;  %v8777_v24 = vpack.c.bf16 %v290_v29, %v273_v34  ;;  %v289_v34 = vld [vmem:[%s11416_s0 + $0x838] sm:$0xff]  ;;  %v291_v29 = vld [vmem:[%s11416_s0 + $0x848] sm:$0xff]  ;;  %v1109_v42 = vunpack.c.l.s8.bf16 %v643_v60  ;;  %v58_v60 = vld [vmem:[%s11416_s0 + $0x100] sm:$0xff] }
  0xf4   :  { %4627 = vmatpush2.bf16.msra.mxu1 %v6805_v37  ;;  %4515 = vmatprep.subr.bf16.mxu0 %v6738_v0  ;;  %11634 = vst [vmem:[#allocation82_spill] sm:$0xff] %v8786_v40  ;;  %v675_v37 = vld [vmem:[%s11415_s1 + $0x788] sm:$0xff]  ;;  %v6733_v0 = vcombine.low %v1115_v54, %v1117_v56  ;;  %v6730_v54 = vcombine.high %v1111_v46, %v1113_v11  ;;  %v1107_v56 = vunpack.c.l.s8.bf16 %v642_v38  ;;  %v41_v38 = vld [vmem:[%s11416_s0 + $0x78] sm:$0xff] }
  0xf5   :  { %4628 = vmatprep.subr.bf16.mxu1 %v6802_v15  ;;  %11633 = vst [vmem:[#allocation81_spill] sm:$0xff] %v8777_v24  ;;  %v272_v15 = vld [vmem:[%s11416_s0 + $0x7b0] sm:$0xff]  ;;  %v6794_v61 = vcombine.high %v1175_v63, %v1177_v2  ;;  %v1173_v22 = vunpack.c.l.s8.bf16 %v675_v37  ;;  %v8820_v7 = vpack.c.bf16 %v291_v29, %v274_v9  ;;  %v57_v9 = vld [vmem:[%s11416_s0 + $0xf8] sm:$0xff] }
  0xf6   :  { %4358 = vmatmul.mubr.bf16.gmra.mxu0 %v8758_v31  ;;  %v8812_v52 = vpack.c.bf16 %v289_v34, %v272_v15  ;;  %v6726_v37 = vcombine.high %v1107_v56, %v1109_v42 }
  0xf7   :  { %4471 = vmatmul.mubr.bf16.gmra.mxu1 %v8769_v6  ;;  %4516 = vmatpush2.bf16.msra.mxu0 %v6737_v49  ;;  %v1171_v49 = vunpack.c.l.s8.bf16 %v674_v1  ;;  %11636 = vst [vmem:[#allocation84_spill] sm:$0xff] %v8820_v7  ;;  %v6793_v1 = vcombine.low %v1175_v63, %v1177_v2  ;;  %v55_v63 = vld [vmem:[%s11416_s0 + $0xe8] sm:$0xff] }
  0xf8   :  { %4629 = vmatpush2.bf16.msra.mxu1 %v6801_v5  ;;  %4517 = vmatprep.subr.bf16.mxu0 %v6734_v62  ;;  %v690_v62 = vld [vmem:[%s11415_s1 + $0x800] sm:$0x55]  ;;  %11635 = vst [vmem:[#allocation83_spill] sm:$0xff] %v8812_v52  ;;  %v6729_v5 = vcombine.low %v1111_v46, %v1113_v11  ;;  %v8831_v46 = vpack.c.bf16 %v58_v60, %v41_v38 }
  0xf9   :  { %4630 = vmatprep.subr.bf16.mxu1 %v6798_v50  ;;  %4367 = vmatprep.mubr.bf16.mxu0 %v8777_v24  ;;  %v56_v50 = vld [vmem:[%s11416_s0 + $0xf0] sm:$0xff]  ;;  %v1203_v15 = vunpack.c.l.s8.bf16 %v690_v62  ;;  %v6790_v34 = vcombine.high %v1171_v49, %v1173_v22  ;;  %v6725_v11 = vcombine.low %v1107_v56, %v1109_v42  ;;  %v6789_v2 = vcombine.low %v1171_v49, %v1173_v22  ;;  %v6845_v56 = vld [vmem:[%s11415_s1 + $0x60] sm:$0xff]  ;;  %v73_v22 = vld [vmem:[%s11416_s0 + $0x178] sm:$0xff] }
  0xfa   :  { %4480 = vmatprep.mubr.bf16.mxu1 %v8786_v40  ;;  %v8828_v40 = vpack.c.bf16 %v56_v50, %v39_v47  ;;  %11638 = vst [vmem:[#allocation86_spill] sm:$0xff] %v8831_v46  ;;  %v716_v42 = vunpack.c.h.s8.bf16 %v6845_v56  ;;  %v90_v62 = vld [vmem:[%s11416_s0 + $0x200] sm:$0xff]  ;;  %v75_v50 = vld [vmem:[%s11416_s0 + $0x188] sm:$0xff] }
  0xfb   :  { %4518 = vmatpush2.bf16.msra.mxu0 %v6733_v0  ;;  %v38_v0 = vld [vmem:[%s11416_s0 + $0x60] sm:$0xff]  ;;  %v6822_v29 = vcombine.high %v1203_v15, %v1203_v15 }
  0xfc   :  { %4631 = vmatpush2.bf16.msra.mxu1 %v6797_v44  ;;  %4519 = vmatprep.subr.bf16.mxu0 %v6730_v54  ;;  %11637 = vst [vmem:[#allocation85_spill] sm:$0xff] %v8828_v40  ;;  %v40_v44 = vld [vmem:[%s11416_s0 + $0x70] sm:$0xff]  ;;  %v6821_v54 = vcombine.low %v1203_v15, %v1203_v15  ;;  %v8860_v47 = vpack.c.bf16 %v55_v63, %v38_v0 }
  0xfd   :  { %4632 = vmatprep.subr.bf16.mxu1 %v6794_v61  ;;  %v6846_v61 = vld [vmem:[%s11415_s1 + $0x68] sm:$0xff]  ;;  %v8868_v38 = vpack.c.bf16 %v57_v9, %v40_v44  ;;  %v89_v9 = vld [vmem:[%s11416_s0 + $0x1f8] sm:$0xff] }
  0xfe   :  { %4368 = vmatmul.mubr.bf16.gmra.mxu0 %v8812_v52  ;;  %v718_v49 = vunpack.c.h.s8.bf16 %v6846_v61  ;;  %11639 = vst [vmem:[#allocation87_spill] sm:$0xff] %v8860_v47  ;;  %v3802_v60 = vsel %vm3800_vm0, %v6821_v54, 0 }
  0xff   :  { %4481 = vmatmul.mubr.bf16.gmra.mxu1 %v8820_v7  ;;  %4520 = vmatpush2.bf16.msra.mxu0 %v6729_v5  ;;  %v92_v5 = vld [vmem:[%s11416_s0 + $0x210] sm:$0xff]  ;;  %11640 = vst [vmem:[#allocation88_spill] sm:$0xff] %v8868_v38 }
 0x100   :  { %4633 = vmatpush2.bf16.msra.mxu1 %v6793_v1  ;;  %4521 = vmatprep.subr.bf16.mxu0 %v6726_v37  ;;  %v8872_v1 = vpack.c.bf16 %v90_v62, %v73_v22  ;;  %v6336_v37 = vcombine.high %v716_v42, %v718_v49  ;;  %v8875_v15 = vpack.c.bf16 %v92_v5, %v75_v50  ;;  %v91_v22 = vld [vmem:[%s11416_s0 + $0x208] sm:$0xff]  ;;  %v124_v50 = vld [vmem:[%s11416_s0 + $0x310] sm:$0xff] }
 0x101   :  { %4634 = vmatprep.subr.bf16.mxu1 %v6790_v34  ;;  %4523 = vmatprep.mubr.bf16.mxu0 %v8828_v40  ;;  %v6847_v34 = vld [vmem:[%s11415_s1 + $0x50] sm:$0xff]  ;;  %v6335_v61 = vcombine.low %v716_v42, %v718_v49  ;;  %v107_v62 = vld [vmem:[%s11416_s0 + $0x288] sm:$0xff]  ;;  %v6849_v42 = vld [vmem:[%s11415_s1 + $0x40] sm:$0xff] }
 0x102   :  { %4636 = vmatprep.mubr.bf16.mxu1 %v8831_v46  ;;  %11641 = vst [vmem:[#allocation89_spill] sm:$0xff] %v8872_v1  ;;  %11642 = vst [vmem:[#allocation90_spill] sm:$0xff] %v8875_v15  ;;  %v712_v0 = vunpack.c.h.s8.bf16 %v6847_v34  ;;  %v708_v49 = vunpack.c.h.s8.bf16 %v6849_v42  ;;  %v8927_v46 = vpack.c.bf16 %v124_v50, %v107_v62  ;;  %v123_v62 = vld [vmem:[%s11416_s0 + $0x308] sm:$0xff] }
 0x103   :  { %4522 = vmatpush2.bf16.msra.mxu0 %v6725_v11  ;;  %v6848_v11 = vld [vmem:[%s11415_s1 + $0x58] sm:$0xff] }
 0x104   :  { %4635 = vmatpush2.bf16.msra.mxu1 %v6789_v2  ;;  %6825 = vmatprep.subr.msk.bf16.mxu0 %vm3800_vm0, %v6822_v29  ;;  %v714_v63 = vunpack.c.h.s8.bf16 %v6848_v11  ;;  %v74_v29 = vld [vmem:[%s11416_s0 + $0x180] sm:$0xff]  ;;  %v109_v11 = vld [vmem:[%s11416_s0 + $0x298] sm:$0xff]  ;;  %11645 = vst [vmem:[#allocation93_spill] sm:$0xff] %v8927_v46 }
 0x105   :  { %4830 = vmatprep.subr.bf16.mxu1 %v8114_v23  ;;  %v72_v23 = vld [vmem:[%s11416_s0 + $0x170] sm:$0xff] }
 0x106   :  { %v3847_v2 = vpop.f32.mrf.mxu0  ;;  %4524 = vmatmul.mubr.bf16.vlgmr.msra.gmra.mxu0 %v8860_v47  ;;  %v6331_v6 = vcombine.low %v712_v0, %v714_v63 }
 0x107   :  { %v3960_v44 = vpop.f32.mrf.mxu1  ;;  %4637 = vmatmul.mubr.bf16.vlgmr.msra.gmra.mxu1 %v8868_v38  ;;  %4732 = vmatpush1.bf16.msra.mxu0 %v3802_v60  ;;  %v6850_v60 = vld [vmem:[%s11415_s1 + $0x48] sm:$0xff]  ;;  %v8925_v38 = vpack.c.bf16 %v91_v22, %v74_v29 }
 0x108   :  { %v8894_v54 = vadd.f32 %v3960_v44, %v3847_v2  ;;  %4831 = vmatpush1.bf16.msra.mxu1 %v7184_v18  ;;  %v3849_v56 = vpop.f32.mrf.mxu0  ;;  %4533 = vmatprep.mubr.bf16.mxu0 %v8872_v1  ;;  %v6332_v18 = vcombine.high %v712_v0, %v714_v63  ;;  %v710_v34 = vunpack.c.h.s8.bf16 %v6850_v60  ;;  %v106_v63 = vld [vmem:[%s11416_s0 + $0x280] sm:$0xff] }
 0x109   :  { %v3962_v5 = vpop.f32.mrf.mxu1  ;;  %4832 = vmatprep.subr.bf16.mxu1 %v6336_v37  ;;  %4646 = vmatprep.mubr.bf16.mxu1 %v8875_v15  ;;  %v126_v37 = vld [vmem:[%s11416_s0 + $0x320] sm:$0xff]  ;;  %v8922_v15 = vpack.c.bf16 %v89_v9, %v72_v23  ;;  %11644 = vst [vmem:[#allocation92_spill] sm:$0xff] %v8925_v38  ;;  %v6851_v23 = vld [vmem:[%s11415_s1 + $0x30] sm:$0xff]  ;;  %v6852_v9 = vld [vmem:[%s11415_s1 + $0x38] sm:$0xff] }
 0x10a   :  { %v8920_v2 = vadd.f32 %v3962_v5, %v3849_v56  ;;  %v3851_v44 = vpop.f32.mrf.mxu0  ;;  %4943 = vmatprep.subr.bf16.mxu0 %v8423_v43  ;;  %v8931_v1 = vpack.c.bf16 %v126_v37, %v109_v11  ;;  %v6328_v56 = vcombine.high %v708_v49, %v710_v34  ;;  %v704_v43 = vunpack.c.h.s8.bf16 %v6851_v23  ;;  %v141_v11 = vld [vmem:[%s11416_s0 + $0x398] sm:$0xff]  ;;  %v158_v37 = vld [vmem:[%s11416_s0 + $0x420] sm:$0xff] }
 0x10b   :  { %11643 = vst [vmem:[#allocation91_spill] sm:$0xff] %v8922_v15  ;;  %v3964_v42 = vpop.f32.mrf.mxu1  ;;  %v706_v29 = vunpack.c.h.s8.bf16 %v6852_v9  ;;  %v6327_v5 = vcombine.low %v708_v49, %v710_v34  ;;  %v6854_v34 = vld [vmem:[%s11415_s1 + $0x28] sm:$0xff] }
 0x10c   :  { %v8929_v60 = vadd.f32 %v3964_v42, %v3851_v44  ;;  %4833 = vmatpush1.bf16.msra.mxu1 %v6335_v61  ;;  %v3853_v7 = vpop.f32.mrf.mxu0  ;;  %11646 = vst [vmem:[#allocation94_spill] sm:$0xff] %v8931_v1  ;;  %v702_v23 = vunpack.c.h.s8.bf16 %v6854_v34  ;;  %v143_v9 = vld [vmem:[%s11416_s0 + $0x3a8] sm:$0xff] }
 0x10d   :  { %v3966_v47 = vpop.f32.mrf.mxu1  ;;  %4834 = vmatprep.subr.bf16.mxu1 %v6332_v18  ;;  %v125_v18 = vld [vmem:[%s11416_s0 + $0x318] sm:$0xff]  ;;  %v6324_v42 = vcombine.high %v704_v43, %v706_v29  ;;  %v6323_v40 = vcombine.low %v704_v43, %v706_v29  ;;  %v140_v29 = vld [vmem:[%s11416_s0 + $0x390] sm:$0xff] }
 0x10e   :  { %v8939_v22 = vadd.f32 %v3966_v47, %v3853_v7  ;;  %v3857_v61 = vpop.f32.mrf.mxu0  ;;  %4534 = vmatmul.mubr.bf16.gmra.mxu0 %v8922_v15  ;;  %v108_v7 = vld [vmem:[%s11416_s0 + $0x290] sm:$0xff] }
 0x10f   :  { %v3970_v0 = vpop.f32.mrf.mxu1  ;;  %4647 = vmatmul.mubr.bf16.gmra.mxu1 %v8925_v38  ;;  %4543 = vmatprep.mubr.bf16.mxu0 %v8927_v46  ;;  %v8983_v46 = vpack.c.bf16 %v158_v37, %v141_v11 }
 0x110   :  { %v8953_v47 = vadd.f32 %v3970_v0, %v3857_v61  ;;  %4835 = vmatpush1.bf16.msra.mxu1 %v6331_v6  ;;  %v3859_v50 = vpop.f32.mrf.mxu0  ;;  %4656 = vmatprep.mubr.bf16.mxu1 %v8931_v1  ;;  %v6853_v6 = vld [vmem:[%s11415_s1 + $0x20] sm:$0xff]  ;;  %v160_v61 = vld [vmem:[%s11416_s0 + $0x430] sm:$0xff]  ;;  %v8979_v1 = vpack.c.bf16 %v123_v62, %v106_v63 }
 0x111   :  { %v3972_v44 = vpop.f32.mrf.mxu1  ;;  %4836 = vmatprep.subr.bf16.mxu1 %v6328_v56  ;;  %v700_v49 = vunpack.c.h.s8.bf16 %v6853_v6  ;;  %v8981_v6 = vpack.c.bf16 %v125_v18, %v108_v7  ;;  %11649 = vst [vmem:[#allocation97_spill] sm:$0xff] %v8983_v46  ;;  %v8987_v52 = vpack.c.bf16 %v160_v61, %v143_v9  ;;  %v6855_v63 = vld [vmem:[%s11415_s1 + $0x10] sm:$0xff]  ;;  %v6856_v7 = vld [vmem:[%s11415_s1 + $0x18] sm:$0xff]  ;;  %v175_v9 = vld [vmem:[%s11416_s0 + $0x4a8] sm:$0xff] }
 0x112   :  { %v8977_v56 = vadd.f32 %v3972_v44, %v3859_v50  ;;  %v3861_v0 = vpop.f32.mrf.mxu0  ;;  %11647 = vst [vmem:[#allocation95_spill] sm:$0xff] %v8979_v1  ;;  %v696_v62 = vunpack.c.h.s8.bf16 %v6855_v63  ;;  %v698_v50 = vunpack.c.h.s8.bf16 %v6856_v7  ;;  %v157_v18 = vld [vmem:[%s11416_s0 + $0x418] sm:$0xff]  ;;  %v192_v61 = vld [vmem:[%s11416_s0 + $0x530] sm:$0xff] }
 0x113   :  { %v3974_v38 = vpop.f32.mrf.mxu1  ;;  %11648 = vst [vmem:[#allocation96_spill] sm:$0xff] %v8981_v6  ;;  %11650 = vst [vmem:[#allocation98_spill] sm:$0xff] %v8987_v52  ;;  %v6320_v31 = vcombine.high %v700_v49, %v702_v23  ;;  %v6319_v44 = vcombine.low %v700_v49, %v702_v23  ;;  %v6858_v23 = vld [vmem:[%s11415_s1 + $0x8] sm:$0xff]  ;;  %v177_v7 = vld [vmem:[%s11416_s0 + $0x4b8] sm:$0xff] }
 0x114   :  { %v8985_v15 = vadd.f32 %v3974_v38, %v3861_v0  ;;  %4837 = vmatpush1.bf16.msra.mxu1 %v6327_v5  ;;  %v3863_v34 = vpop.f32.mrf.mxu0  ;;  %v694_v63 = vunpack.c.h.s8.bf16 %v6858_v23  ;;  %v6315_v4 = vcombine.low %v696_v62, %v698_v50 }
 0x115   :  { %v3976_v24 = vpop.f32.mrf.mxu1  ;;  %4838 = vmatprep.subr.bf16.mxu1 %v6324_v42  ;;  %v159_v42 = vld [vmem:[%s11416_s0 + $0x428] sm:$0xff] }
 0x116   :  { %v8995_v38 = vadd.f32 %v3976_v24, %v3863_v34  ;;  %v3867_v5 = vpop.f32.mrf.mxu0  ;;  %4544 = vmatmul.mubr.bf16.gmra.mxu0 %v8979_v1  ;;  %v142_v24 = vld [vmem:[%s11416_s0 + $0x3a0] sm:$0xff]  ;;  %v6316_v34 = vcombine.high %v696_v62, %v698_v50 }
 0x117   :  { %v3980_v43 = vpop.f32.mrf.mxu1  ;;  %4657 = vmatmul.mubr.bf16.gmra.mxu1 %v8981_v6  ;;  %4553 = vmatprep.mubr.bf16.mxu0 %v8983_v46  ;;  %v9039_v46 = vpack.c.bf16 %v192_v61, %v175_v9  ;;  %v174_v50 = vld [vmem:[%s11416_s0 + $0x4a0] sm:$0xff] }
 0x118   :  { %v9009_v11 = vadd.f32 %v3980_v43, %v3867_v5  ;;  %4839 = vmatpush1.bf16.msra.mxu1 %v6323_v40  ;;  %v3869_v37 = vpop.f32.mrf.mxu0  ;;  %4666 = vmatprep.mubr.bf16.mxu1 %v8987_v52  ;;  %v6857_v40 = vld [vmem:[%s11415_s1] sm:$0xff]  ;;  %v9035_v52 = vpack.c.bf16 %v157_v18, %v140_v29  ;;  %v6859_v29 = vld [vmem:[%s11415_s1 + $0xf0] sm:$0xff] }
 0x119   :  { %v3982_v0 = vpop.f32.mrf.mxu1  ;;  %4840 = vmatprep.subr.bf16.mxu1 %v6320_v31  ;;  %v692_v49 = vunpack.c.h.s8.bf16 %v6857_v40  ;;  %v194_v5 = vld [vmem:[%s11416_s0 + $0x540] sm:$0xff]  ;;  %v9037_v40 = vpack.c.bf16 %v159_v42, %v142_v24  ;;  %11653 = vst [vmem:[#allocation101_spill] sm:$0xff] %v9039_v46  ;;  %v752_v18 = vunpack.c.h.s8.bf16 %v6859_v29  ;;  %v6860_v24 = vld [vmem:[%s11415_s1 + $0xf8] sm:$0xff]  ;;  %v191_v42 = vld [vmem:[%s11416_s0 + $0x528] sm:$0xff] }
 0x11a   :  { %v9033_v31 = vadd.f32 %v3982_v0, %v3869_v37  ;;  %v3871_v43 = vpop.f32.mrf.mxu0  ;;  %11651 = vst [vmem:[#allocation99_spill] sm:$0xff] %v9035_v52  ;;  %v9043_v21 = vpack.c.bf16 %v194_v5, %v177_v7  ;;  %v754_v37 = vunpack.c.h.s8.bf16 %v6860_v24  ;;  %v209_v7 = vld [vmem:[%s11416_s0 + $0x5b8] sm:$0xff]  ;;  %v226_v5 = vld [vmem:[%s11416_s0 + $0x640] sm:$0xff]  ;;  %v211_v24 = vld [vmem:[%s11416_s0 + $0x5c8] sm:$0xff] }
 0x11b   :  { %v3984_v6 = vpop.f32.mrf.mxu1  ;;  %11652 = vst [vmem:[#allocation100_spill] sm:$0xff] %v9037_v40  ;;  %v6312_v45 = vcombine.high %v692_v49, %v694_v63  ;;  %v6311_v0 = vcombine.low %v692_v49, %v694_v63  ;;  %v6862_v63 = vld [vmem:[%s11415_s1 + $0xe8] sm:$0xff] }
 0x11c   :  { %v9041_v1 = vadd.f32 %v3984_v6, %v3871_v43  ;;  %4841 = vmatpush1.bf16.msra.mxu1 %v6319_v44  ;;  %v3873_v23 = vpop.f32.mrf.mxu0  ;;  %11654 = vst [vmem:[#allocation102_spill] sm:$0xff] %v9043_v21  ;;  %v750_v29 = vunpack.c.h.s8.bf16 %v6862_v63  ;;  %v6371_v26 = vcombine.low %v752_v18, %v754_v37 }
 0x11d   :  { %v3986_v33 = vpop.f32.mrf.mxu1  ;;  %4842 = vmatprep.subr.bf16.mxu1 %v6316_v34  ;;  %v193_v34 = vld [vmem:[%s11416_s0 + $0x538] sm:$0xff] }
 0x11e   :  { %v9051_v6 = vadd.f32 %v3986_v33, %v3873_v23  ;;  %v3877_v44 = vpop.f32.mrf.mxu0  ;;  %4554 = vmatmul.mubr.bf16.gmra.mxu0 %v9035_v52  ;;  %v176_v33 = vld [vmem:[%s11416_s0 + $0x4b0] sm:$0xff]  ;;  %v6372_v23 = vcombine.high %v752_v18, %v754_v37 }
 0x11f   :  { %v3990_v62 = vpop.f32.mrf.mxu1  ;;  %4667 = vmatmul.mubr.bf16.gmra.mxu1 %v9037_v40  ;;  %4563 = vmatprep.mubr.bf16.mxu0 %v9039_v46  ;;  %v9095_v46 = vpack.c.bf16 %v226_v5, %v209_v7  ;;  %v208_v37 = vld [vmem:[%s11416_s0 + $0x5b0] sm:$0xff] }
 0x120   :  { %v9065_v9 = vadd.f32 %v3990_v62, %v3877_v44  ;;  %4843 = vmatpush1.bf16.msra.mxu1 %v6315_v4  ;;  %v3879_v61 = vpop.f32.mrf.mxu0  ;;  %4676 = vmatprep.mubr.bf16.mxu1 %v9043_v21  ;;  %v6861_v4 = vld [vmem:[%s11415_s1 + $0xe0] sm:$0xff]  ;;  %v228_v44 = vld [vmem:[%s11416_s0 + $0x650] sm:$0xff]  ;;  %v9091_v21 = vpack.c.bf16 %v191_v42, %v174_v50 }
 0x121   :  { %v3992_v43 = vpop.f32.mrf.mxu1  ;;  %4844 = vmatprep.subr.bf16.mxu1 %v6312_v45  ;;  %v748_v49 = vunpack.c.h.s8.bf16 %v6861_v4  ;;  %v9093_v4 = vpack.c.bf16 %v193_v34, %v176_v33  ;;  %11657 = vst [vmem:[#allocation105_spill] sm:$0xff] %v9095_v46  ;;  %v9099_v16 = vpack.c.bf16 %v228_v44, %v211_v24  ;;  %v6863_v50 = vld [vmem:[%s11415_s1 + $0xd0] sm:$0xff]  ;;  %v6864_v33 = vld [vmem:[%s11415_s1 + $0xd8] sm:$0xff]  ;;  %v243_v24 = vld [vmem:[%s11416_s0 + $0x6c8] sm:$0xff] }
 0x122   :  { %v9089_v45 = vadd.f32 %v3992_v43, %v3879_v61  ;;  %v3881_v62 = vpop.f32.mrf.mxu0  ;;  %11655 = vst [vmem:[#allocation103_spill] sm:$0xff] %v9091_v21  ;;  %v744_v42 = vunpack.c.h.s8.bf16 %v6863_v50  ;;  %v746_v61 = vunpack.c.h.s8.bf16 %v6864_v33  ;;  %v225_v34 = vld [vmem:[%s11416_s0 + $0x638] sm:$0xff]  ;;  %v260_v44 = vld [vmem:[%s11416_s0 + $0x750] sm:$0xff] }
 0x123   :  { %v3994_v40 = vpop.f32.mrf.mxu1  ;;  %11656 = vst [vmem:[#allocation104_spill] sm:$0xff] %v9093_v4  ;;  %11658 = vst [vmem:[#allocation106_spill] sm:$0xff] %v9099_v16  ;;  %v6368_v57 = vcombine.high %v748_v49, %v750_v29  ;;  %v6367_v43 = vcombine.low %v748_v49, %v750_v29  ;;  %v6866_v29 = vld [vmem:[%s11415_s1 + $0xc8] sm:$0xff]  ;;  %v245_v33 = vld [vmem:[%s11416_s0 + $0x6d8] sm:$0xff] }
 0x124   :  { %v9097_v52 = vadd.f32 %v3994_v40, %v3881_v62  ;;  %4845 = vmatpush1.bf16.msra.mxu1 %v6311_v0  ;;  %v3883_v63 = vpop.f32.mrf.mxu0  ;;  %v742_v50 = vunpack.c.h.s8.bf16 %v6866_v29  ;;  %v6363_v14 = vcombine.low %v744_v42, %v746_v61 }
 0x125   :  { %v3996_v36 = vpop.f32.mrf.mxu1  ;;  %4846 = vmatprep.subr.bf16.mxu1 %v6372_v23  ;;  %v227_v23 = vld [vmem:[%s11416_s0 + $0x648] sm:$0xff] }
 0x126   :  { %v9107_v40 = vadd.f32 %v3996_v36, %v3883_v63  ;;  %v3887_v0 = vpop.f32.mrf.mxu0  ;;  %4564 = vmatmul.mubr.bf16.gmra.mxu0 %v9091_v21  ;;  %v210_v36 = vld [vmem:[%s11416_s0 + $0x5c0] sm:$0xff]  ;;  %v6364_v63 = vcombine.high %v744_v42, %v746_v61 }
 0x127   :  { %v4000_v18 = vpop.f32.mrf.mxu1  ;;  %4677 = vmatmul.mubr.bf16.gmra.mxu1 %v9093_v4  ;;  %4573 = vmatprep.mubr.bf16.mxu0 %v9095_v46  ;;  %v9151_v46 = vpack.c.bf16 %v260_v44, %v243_v24  ;;  %v242_v61 = vld [vmem:[%s11416_s0 + $0x6c0] sm:$0xff] }
 0x128   :  { %v9121_v7 = vadd.f32 %v4000_v18, %v3887_v0  ;;  %4847 = vmatpush2.bf16.msra.mxu1 %v6371_v26  ;;  %v3889_v5 = vpop.f32.mrf.mxu0  ;;  %4686 = vmatprep.mubr.bf16.mxu1 %v9099_v16  ;;  %v6865_v26 = vld [vmem:[%s11415_s1 + $0xc0] sm:$0xff]  ;;  %v9147_v16 = vpack.c.bf16 %v225_v34, %v208_v37  ;;  %v6867_v37 = vld [vmem:[%s11415_s1 + $0xb0] sm:$0xff] }
 0x129   :  { %v4002_v62 = vpop.f32.mrf.mxu1  ;;  %4848 = vmatprep.subr.bf16.mxu1 %v6368_v57  ;;  %v740_v49 = vunpack.c.h.s8.bf16 %v6865_v26  ;;  %v262_v0 = vld [vmem:[%s11416_s0 + $0x760] sm:$0xff]  ;;  %v9149_v26 = vpack.c.bf16 %v227_v23, %v210_v36  ;;  %11661 = vst [vmem:[#allocation109_spill] sm:$0xff] %v9151_v46  ;;  %v736_v34 = vunpack.c.h.s8.bf16 %v6867_v37  ;;  %v6868_v36 = vld [vmem:[%s11415_s1 + $0xb8] sm:$0xff]  ;;  %v259_v23 = vld [vmem:[%s11416_s0 + $0x748] sm:$0xff] }
 0x12a   :  { %v9145_v57 = vadd.f32 %v4002_v62, %v3889_v5  ;;  %v3891_v18 = vpop.f32.mrf.mxu0  ;;  %11659 = vst [vmem:[#allocation107_spill] sm:$0xff] %v9147_v16  ;;  %v9155_v35 = vpack.c.bf16 %v262_v0, %v245_v33  ;;  %v738_v5 = vunpack.c.h.s8.bf16 %v6868_v36  ;;  %v277_v33 = vld [vmem:[%s11416_s0 + $0x7d8] sm:$0xff]  ;;  %v294_v0 = vld [vmem:[%s11416_s0 + $0x860] sm:$0xff]  ;;  %v279_v36 = vld [vmem:[%s11416_s0 + $0x7e8] sm:$0xff] }
 0x12b   :  { %v4004_v4 = vpop.f32.mrf.mxu1  ;;  %11660 = vst [vmem:[#allocation108_spill] sm:$0xff] %v9149_v26  ;;  %v6360_v17 = vcombine.high %v740_v49, %v742_v50  ;;  %v6359_v62 = vcombine.low %v740_v49, %v742_v50  ;;  %v6870_v50 = vld [vmem:[%s11415_s1 + $0xa8] sm:$0xff] }
 0x12c   :  { %v9153_v21 = vadd.f32 %v4004_v4, %v3891_v18  ;;  %4849 = vmatpush2.bf16.msra.mxu1 %v6367_v43  ;;  %v3893_v29 = vpop.f32.mrf.mxu0  ;;  %11662 = vst [vmem:[#allocation110_spill] sm:$0xff] %v9155_v35  ;;  %v734_v37 = vunpack.c.h.s8.bf16 %v6870_v50  ;;  %v6355_v10 = vcombine.low %v736_v34, %v738_v5 }
 0x12d   :  { %v4006_v58 = vpop.f32.mrf.mxu1  ;;  %4850 = vmatprep.subr.bf16.mxu1 %v6364_v63  ;;  %v261_v63 = vld [vmem:[%s11416_s0 + $0x758] sm:$0xff] }
 0x12e   :  { %v9163_v4 = vadd.f32 %v4006_v58, %v3893_v29  ;;  %v3897_v43 = vpop.f32.mrf.mxu0  ;;  %4574 = vmatmul.mubr.bf16.gmra.mxu0 %v9147_v16  ;;  %v244_v58 = vld [vmem:[%s11416_s0 + $0x6d0] sm:$0xff]  ;;  %v6356_v29 = vcombine.high %v736_v34, %v738_v5 }
 0x12f   :  { %v4010_v42 = vpop.f32.mrf.mxu1  ;;  %4687 = vmatmul.mubr.bf16.gmra.mxu1 %v9149_v26  ;;  %4583 = vmatprep.mubr.bf16.mxu0 %v9151_v46  ;;  %v9207_v46 = vpack.c.bf16 %v294_v0, %v277_v33  ;;  %v276_v5 = vld [vmem:[%s11416_s0 + $0x7d0] sm:$0xff] }
 0x130   :  { %v9177_v24 = vadd.f32 %v4010_v42, %v3897_v43  ;;  %4851 = vmatpush2.bf16.msra.mxu1 %v6363_v14  ;;  %v3899_v44 = vpop.f32.mrf.mxu0  ;;  %4696 = vmatprep.mubr.bf16.mxu1 %v9155_v35  ;;  %v6869_v14 = vld [vmem:[%s11415_s1 + $0xa0] sm:$0xff]  ;;  %v296_v43 = vld [vmem:[%s11416_s0 + $0x870] sm:$0xff]  ;;  %v9203_v35 = vpack.c.bf16 %v259_v23, %v242_v61 }
 0x131   :  { %v4012_v18 = vpop.f32.mrf.mxu1  ;;  %4852 = vmatprep.subr.bf16.mxu1 %v6360_v17  ;;  %v732_v49 = vunpack.c.h.s8.bf16 %v6869_v14  ;;  %v9205_v14 = vpack.c.bf16 %v261_v63, %v244_v58  ;;  %11665 = vst [vmem:[#allocation113_spill] sm:$0xff] %v9207_v46  ;;  %v9211_v20 = vpack.c.bf16 %v296_v43, %v279_v36  ;;  %v6871_v61 = vld [vmem:[%s11415_s1 + $0x90] sm:$0xff]  ;;  %v6872_v58 = vld [vmem:[%s11415_s1 + $0x98] sm:$0xff] }
 0x132   :  { %v9201_v17 = vadd.f32 %v4012_v18, %v3899_v44  ;;  %v3901_v42 = vpop.f32.mrf.mxu0  ;;  %11663 = vst [vmem:[#allocation111_spill] sm:$0xff] %v9203_v35  ;;  %v728_v23 = vunpack.c.h.s8.bf16 %v6871_v61  ;;  %v730_v44 = vunpack.c.h.s8.bf16 %v6872_v58  ;;  %v293_v63 = vld [vmem:[%s11416_s0 + $0x858] sm:$0xff]  ;;  %v278_v18 = vld [vmem:[%s11416_s0 + $0x7e0] sm:$0xff] }
 0x133   :  { %v4014_v26 = vpop.f32.mrf.mxu1  ;;  %11664 = vst [vmem:[#allocation112_spill] sm:$0xff] %v9205_v14  ;;  %11666 = vst [vmem:[#allocation114_spill] sm:$0xff] %v9211_v20  ;;  %v6352_v3 = vcombine.high %v732_v49, %v734_v37  ;;  %v6351_v0 = vcombine.low %v732_v49, %v734_v37  ;;  %v6874_v49 = vld [vmem:[%s11415_s1 + $0x88] sm:$0xff]  ;;  %v9247_v58 = vpack.c.bf16 %v293_v63, %v276_v5  ;;  %v6876_v5 = vld [vmem:[%s11415_s1 + $0x278] sm:$0xff] }
 0x134   :  { %v9209_v16 = vadd.f32 %v4014_v26, %v3901_v42  ;;  %4853 = vmatpush2.bf16.msra.mxu1 %v6359_v62  ;;  %v3903_v50 = vpop.f32.mrf.mxu0  ;;  %v6348_v43 = vcombine.high %v728_v23, %v730_v44  ;;  %v6873_v42 = vld [vmem:[%s11415_s1 + $0x80] sm:$0xff]  ;;  %v726_v37 = vunpack.c.h.s8.bf16 %v6874_v49  ;;  %v6875_v49 = vld [vmem:[%s11415_s1 + $0x270] sm:$0xff]  ;;  %v850_v63 = vunpack.c.h.s8.bf16 %v6876_v5 }
 0x135   :  { %v4016_v13 = vpop.f32.mrf.mxu1  ;;  %4854 = vmatprep.subr.bf16.mxu1 %v6356_v29  ;;  %v295_v29 = vld [vmem:[%s11416_s0 + $0x868] sm:$0xff]  ;;  %11667 = vst [vmem:[#allocation115_spill] sm:$0xff] %v9247_v58 }
 0x136   :  { %v9219_v26 = vadd.f32 %v4016_v13, %v3903_v50  ;;  %v3907_v62 = vpop.f32.mrf.mxu0  ;;  %4584 = vmatmul.mubr.bf16.gmra.mxu0 %v9203_v35  ;;  %v6880_v35 = vld [vmem:[%s11415_s1 + $0x268] sm:$0xff] }
 0x137   :  { %v4020_v34 = vpop.f32.mrf.mxu1  ;;  %4697 = vmatmul.mubr.bf16.gmra.mxu1 %v9205_v14  ;;  %4593 = vmatprep.mubr.bf16.mxu0 %v9207_v46  ;;  %v6347_v14 = vcombine.low %v728_v23, %v730_v44  ;;  %v11537_v23 = vmov 0   ;;  %v42_v44 = vld [vmem:[%s11416_s0 + $0x80] sm:$0xff] }
 0x138   :  { %v9230_v33 = vadd.f32 %v4020_v34, %v3907_v62  ;;  %4855 = vmatpush2.bf16.msra.mxu1 %v6355_v10  ;;  %v3909_v13 = vpop.f32.mrf.mxu0  ;;  %4706 = vmatprep.mubr.bf16.mxu1 %v9211_v20  ;;  %v724_v10 = vunpack.c.h.s8.bf16 %v6873_v42  ;;  %v9249_v34 = vpack.c.bf16 %v295_v29, %v278_v18 }
 0x139   :  { %v4022_v36 = vpop.f32.mrf.mxu1  ;;  %4856 = vmatprep.subr.bf16.mxu1 %v6352_v3 }
 0x13a   :  { %v9245_v50 = vadd.f32 %v4022_v36, %v3909_v13  ;;  %v3911_v61 = vpop.f32.mrf.mxu0  ;;  %11668 = vst [vmem:[#allocation116_spill] sm:$0xff] %v9249_v34  ;;  %v6344_v42 = vcombine.high %v724_v10, %v726_v37  ;;  %v848_v13 = vunpack.c.h.s8.bf16 %v6875_v49  ;;  %v59_v36 = vld [vmem:[%s11416_s0 + $0x108] sm:$0xff]  ;;  %v6343_v5 = vcombine.low %v724_v10, %v726_v37 }
 0x13b   :  { %v4024_v62 = vpop.f32.mrf.mxu1 }
 0x13c   :  { %v9251_v3 = vadd.f32 %v4024_v62, %v3911_v61  ;;  %4857 = vmatpush2.bf16.msra.mxu1 %v6351_v0  ;;  %v3913_v20 = vpop.f32.mrf.mxu0 }
 0x13d   :  { %v4026_v46 = vpop.f32.mrf.mxu1  ;;  %4858 = vmatprep.subr.bf16.mxu1 %v6348_v43  ;;  %v6878_v43 = vld [vmem:[%s11415_s1 + $0x168] sm:$0xff] }
 0x13e   :  { %11669 = vst [vmem:[#allocation117_spill] sm:$0xff] %v9251_v3  ;;  %v9259_v18 = vadd.f32 %v4026_v46, %v3913_v20  ;;  %v3917_v29 = vpop.f32.mrf.mxu0  ;;  %4594 = vmatmul.mubr.bf16.gmra.mxu0 %v9247_v58  ;;  %v6877_v20 = vld [vmem:[%s11415_s1 + $0x160] sm:$0xff]  ;;  %v782_v61 = vunpack.c.h.s8.bf16 %v6878_v43  ;;  %v846_v43 = vunpack.c.h.s8.bf16 %v6880_v35  ;;  %v6882_v35 = vld [vmem:[%s11415_s1 + $0x158] sm:$0xff] }
 0x13f   :  { %v4030_v0 = vpop.f32.mrf.mxu1  ;;  %4707 = vmatmul.mubr.bf16.gmra.mxu1 %v9249_v34  ;;  %4749 = vmatprep.mubr.bf16.mxu0 %v11537_v23  ;;  %v780_v46 = vunpack.c.h.s8.bf16 %v6877_v20  ;;  %v6468_v34 = vcombine.high %v848_v13, %v850_v63  ;;  %v6879_v58 = vld [vmem:[%s11415_s1 + $0x260] sm:$0xff] }
 0x140   :  { %11670 = vst [vmem:[#allocation118_spill] sm:$0xff] %v9259_v18  ;;  %v9276_v62 = vadd.f32 %v4030_v0, %v3917_v29  ;;  %4859 = vmatpush2.bf16.msra.mxu1 %v6347_v14  ;;  %v3919_v49 = vpop.f32.mrf.mxu0  ;;  %4862 = vmatprep.mubr.bf16.mxu1 %v7309_v19  ;;  %v844_v20 = vunpack.c.h.s8.bf16 %v6879_v58  ;;  %v9287_v0 = vpack.c.bf16 %v59_v36, %v42_v44  ;;  %v6883_v44 = vld [vmem:[%s11415_s1 + $0x250] sm:$0xff] }
 0x141   :  { %v4032_v23 = vpop.f32.mrf.mxu1  ;;  %4860 = vmatprep.subr.bf16.mxu1 %v6344_v42  ;;  %v6467_v19 = vcombine.low %v848_v13, %v850_v63  ;;  %v6400_v37 = vcombine.high %v780_v46, %v782_v61  ;;  %v6881_v42 = vld [vmem:[%s11415_s1 + $0x150] sm:$0xff]  ;;  %v840_v13 = vunpack.c.h.s8.bf16 %v6883_v44  ;;  %v6884_v63 = vld [vmem:[%s11415_s1 + $0x258] sm:$0xff]  ;;  %v6399_v44 = vcombine.low %v780_v46, %v782_v61 }
 0x142   :  { %11671 = vst [vmem:[#allocation119_spill] sm:$0xff] %v9276_v62  ;;  %v9285_v29 = vadd.f32 %v4032_v23, %v3919_v49  ;;  %v3921_v14 = vpop.f32.mrf.mxu0  ;;  %11673 = vst [vmem:[#allocation121_spill] sm:$0xff] %v9287_v0  ;;  %v776_v62 = vunpack.c.h.s8.bf16 %v6881_v42  ;;  %v778_v23 = vunpack.c.h.s8.bf16 %v6882_v35  ;;  %v842_v36 = vunpack.c.h.s8.bf16 %v6884_v63  ;;  %v76_v63 = vld [vmem:[%s11416_s0 + $0x190] sm:$0xff] }
 0x143   :  { %v4034_v10 = vpop.f32.mrf.mxu1  ;;  %v6463_v46 = vcombine.low %v844_v20, %v846_v43 }
 0x144   :  { %11672 = vst [vmem:[#allocation120_spill] sm:$0xff] %v9285_v29  ;;  %v9292_v58 = vadd.f32 %v4034_v10, %v3921_v14  ;;  %4861 = vmatpush2.bf16.msra.mxu1 %v6343_v5  ;;  %v3923_v18 = vpop.f32.mrf.mxu0  ;;  %v6464_v14 = vcombine.high %v844_v20, %v846_v43  ;;  %v6396_v61 = vcombine.high %v776_v62, %v778_v23  ;;  %v11677_v29 = vmov 0  }
 0x145   :  { %v4036_v49 = vpop.f32.mrf.mxu1  ;;  %5056 = vmatprep.subr.bf16.mxu1 %v6468_v34  ;;  %v93_v34 = vld [vmem:[%s11416_s0 + $0x218] sm:$0xff] }
 0x146   :  { %11674 = vst [vmem:[#allocation122_spill] sm:$0xff] %v9292_v58  ;;  %v9303_v5 = vadd.f32 %v4036_v49, %v3923_v18  ;;  %v4073_v10 = vpop.f32.mrf.mxu0  ;;  %6826 = vmatmul.mubr.msk.bf16.vlgmr.msra.gmra.mxu0 %vm3775_vm1, %v9287_v0  ;;  %v6885_v18 = vld [vmem:[%s11415_s1 + $0x140] sm:$0xff] }
 0x147   :  { %v4074_v42 = vadd.f32 %v4073_v10, %v8894_v54  ;;  %v4186_v35 = vpop.f32.mrf.mxu1  ;;  %4863 = vmatmul.mubr.bf16.vlgmr.msra.gmra.mxu1 %v7420_v12  ;;  %4944 = vmatpush1.bf16.msra.mxu0 %v7199_v25  ;;  %v772_v49 = vunpack.c.h.s8.bf16 %v6885_v18  ;;  %v6886_v12 = vld [vmem:[%s11415_s1 + $0x148] sm:$0xff]  ;;  %v6460_v10 = vcombine.high %v840_v13, %v842_v36  ;;  %v6887_v18 = vld [vmem:[%s11415_s1 + $0x240] sm:$0xff] }
 0x148   :  { %11675 = vst [vmem:[#allocation123_spill] sm:$0xff] %v9303_v5  ;;  %v774_v54 = vunpack.c.h.s8.bf16 %v6886_v12  ;;  %5057 = vmatpush1.bf16.msra.mxu1 %v6467_v19  ;;  %v4075_v25 = vpop.f32.mrf.mxu0  ;;  %4945 = vmatprep.subr.bf16.mxu0 %v6400_v37  ;;  %v836_v3 = vunpack.c.h.s8.bf16 %v6887_v18  ;;  %v6888_v19 = vld [vmem:[%s11415_s1 + $0x248] sm:$0xff]  ;;  %v9333_v37 = vpack.c.bf16 %v93_v34, %v76_v63  ;;  %v6459_v12 = vcombine.low %v840_v13, %v842_v36 }
 0x149   :  { %v9322_v0 = vadd.f32 %v4186_v35, %v4074_v42  ;;  %v4076_v5 = vadd.f32 %v4075_v25, %v8920_v2  ;;  %v4188_v58 = vpop.f32.mrf.mxu1  ;;  %5058 = vmatprep.subr.bf16.mxu1 %v6464_v14  ;;  %4759 = vmatprep.mubr.bf16.mxu0 %v11677_v29  ;;  %v838_v20 = vunpack.c.h.s8.bf16 %v6888_v19  ;;  %v6395_v2 = vcombine.low %v776_v62, %v778_v23  ;;  %v6889_v19 = vld [vmem:[%s11415_s1 + $0x130] sm:$0xff]  ;;  %v6892_v23 = vld [vmem:[%s11415_s1 + $0x238] sm:$0xff] }
 0x14a   :  { %v4077_v43 = vpop.f32.mrf.mxu0  ;;  %4872 = vmatprep.mubr.bf16.mxu1 %v7439_v30  ;;  %v6392_v25 = vcombine.high %v772_v49, %v774_v54  ;;  %v6890_v30 = vld [vmem:[%s11415_s1 + $0x138] sm:$0xff]  ;;  %v834_v13 = vunpack.c.h.s8.bf16 %v6892_v23 }
 0x14b   :  { %11676 = vst [vmem:[#allocation124_spill] sm:$0xff] %v9322_v0  ;;  %v9335_v42 = vadd.f32 %v4188_v58, %v4076_v5  ;;  %v4078_v14 = vadd.f32 %v4077_v43, %v8929_v60  ;;  %v4190_v35 = vpop.f32.mrf.mxu1  ;;  %4946 = vmatpush1.bf16.msra.mxu0 %v6399_v44  ;;  %v768_v0 = vunpack.c.h.s8.bf16 %v6889_v19  ;;  %v770_v62 = vunpack.c.h.s8.bf16 %v6890_v30  ;;  %v6891_v60 = vld [vmem:[%s11415_s1 + $0x230] sm:$0xff] }
 0x14c   :  { %5059 = vmatpush1.bf16.msra.mxu1 %v6463_v46  ;;  %v4079_v18 = vpop.f32.mrf.mxu0  ;;  %4947 = vmatprep.subr.bf16.mxu0 %v6396_v61  ;;  %v832_v58 = vunpack.c.h.s8.bf16 %v6891_v60  ;;  %v6456_v63 = vcombine.high %v836_v3, %v838_v20  ;;  %v6391_v46 = vcombine.low %v772_v49, %v774_v54  ;;  %v6893_v49 = vld [vmem:[%s11415_s1 + $0x120] sm:$0xff] }
 0x14d   :  { %v9350_v36 = vadd.f32 %v4190_v35, %v4078_v14  ;;  %v4080_v5 = vadd.f32 %v4079_v18, %v8939_v22  ;;  %v4192_v44 = vpop.f32.mrf.mxu1  ;;  %5060 = vmatprep.subr.bf16.mxu1 %v6460_v10  ;;  %v110_v22 = vld [vmem:[%s11416_s0 + $0x2a0] sm:$0xff]  ;;  %v127_v10 = vld [vmem:[%s11416_s0 + $0x328] sm:$0xff]  ;;  %v764_v54 = vunpack.c.h.s8.bf16 %v6893_v49  ;;  %v6388_v35 = vcombine.high %v768_v0, %v770_v62 }
 0x14e   :  { %v4083_v34 = vpop.f32.mrf.mxu0  ;;  %6827 = vmatmul.mubr.msk.bf16.gmra.mxu0 %vm3775_vm1, %v9333_v37  ;;  %v6452_v18 = vcombine.high %v832_v58, %v834_v13 }
 0x14f   :  { %v9355_v61 = vadd.f32 %v4192_v44, %v4080_v5  ;;  %v4084_v43 = vadd.f32 %v4083_v34, %v8953_v47  ;;  %v4196_v19 = vpop.f32.mrf.mxu1  ;;  %4873 = vmatmul.mubr.bf16.gmra.mxu1 %v7480_v53  ;;  %4948 = vmatpush1.bf16.msra.mxu0 %v6395_v2  ;;  %v6894_v47 = vld [vmem:[%s11415_s1 + $0x128] sm:$0xff]  ;;  %v6455_v2 = vcombine.low %v836_v3, %v838_v20  ;;  %v6895_v5 = vld [vmem:[%s11415_s1 + $0x220] sm:$0xff] }
 0x150   :  { %v766_v14 = vunpack.c.h.s8.bf16 %v6894_v47  ;;  %5061 = vmatpush1.bf16.msra.mxu1 %v6459_v12  ;;  %v4085_v53 = vpop.f32.mrf.mxu0  ;;  %4949 = vmatprep.subr.bf16.mxu0 %v6392_v25  ;;  %v828_v44 = vunpack.c.h.s8.bf16 %v6895_v5  ;;  %v6896_v12 = vld [vmem:[%s11415_s1 + $0x228] sm:$0xff]  ;;  %v9382_v25 = vpack.c.bf16 %v127_v10, %v110_v22 }
 0x151   :  { %v9371_v30 = vadd.f32 %v4196_v19, %v4084_v43  ;;  %v4086_v60 = vadd.f32 %v4085_v53, %v8977_v56  ;;  %v4198_v23 = vpop.f32.mrf.mxu1  ;;  %5062 = vmatprep.subr.bf16.mxu1 %v6456_v63  ;;  %4769 = vmatprep.mubr.bf16.mxu0 %v11677_v29  ;;  %v830_v3 = vunpack.c.h.s8.bf16 %v6896_v12  ;;  %v6387_v56 = vcombine.low %v768_v0, %v770_v62  ;;  %v6897_v53 = vld [vmem:[%s11415_s1 + $0x110] sm:$0xff] }
 0x152   :  { %v4087_v20 = vpop.f32.mrf.mxu0  ;;  %4882 = vmatprep.mubr.bf16.mxu1 %v7499_v8  ;;  %11678 = vst [vmem:[#allocation125_spill] sm:$0xff] %v9382_v25  ;;  %v6451_v19 = vcombine.low %v832_v58, %v834_v13  ;;  %v6384_v49 = vcombine.high %v764_v54, %v766_v14  ;;  %v760_v5 = vunpack.c.h.s8.bf16 %v6897_v53  ;;  %v6898_v8 = vld [vmem:[%s11415_s1 + $0x118] sm:$0xff] }
 0x153   :  { %v9384_v34 = vadd.f32 %v4198_v23, %v4086_v60  ;;  %v4088_v63 = vadd.f32 %v4087_v20, %v8985_v15  ;;  %v4200_v43 = vpop.f32.mrf.mxu1  ;;  %4950 = vmatpush1.bf16.msra.mxu0 %v6391_v46  ;;  %v762_v0 = vunpack.c.h.s8.bf16 %v6898_v8  ;;  %v6899_v15 = vld [vmem:[%s11415_s1 + $0x210] sm:$0xff]  ;;  %v6900_v58 = vld [vmem:[%s11415_s1 + $0x218] sm:$0xff]  ;;  %v6383_v60 = vcombine.low %v764_v54, %v766_v14  ;;  %v6901_v54 = vld [vmem:[%s11415_s1 + $0x100] sm:$0xff] }
 0x154   :  { %5063 = vmatpush1.bf16.msra.mxu1 %v6455_v2  ;;  %v4089_v47 = vpop.f32.mrf.mxu0  ;;  %4951 = vmatprep.subr.bf16.mxu0 %v6388_v35  ;;  %v824_v62 = vunpack.c.h.s8.bf16 %v6899_v15  ;;  %v826_v13 = vunpack.c.h.s8.bf16 %v6900_v58  ;;  %v6448_v2 = vcombine.high %v828_v44, %v830_v3  ;;  %v756_v14 = vunpack.c.h.s8.bf16 %v6901_v54  ;;  %v6903_v58 = vld [vmem:[%s11415_s1 + $0x200] sm:$0xff] }
 0x155   :  { %v9399_v46 = vadd.f32 %v4200_v43, %v4088_v63  ;;  %v4090_v22 = vadd.f32 %v4089_v47, %v8995_v38  ;;  %v4202_v10 = vpop.f32.mrf.mxu1  ;;  %5064 = vmatprep.subr.bf16.mxu1 %v6452_v18  ;;  %v144_v38 = vld [vmem:[%s11416_s0 + $0x3b0] sm:$0xff]  ;;  %v161_v18 = vld [vmem:[%s11416_s0 + $0x438] sm:$0xff]  ;;  %v6380_v43 = vcombine.high %v760_v5, %v762_v0 }
 0x156   :  { %v4093_v35 = vpop.f32.mrf.mxu0  ;;  %6828 = vmatmul.mubr.msk.bf16.gmra.mxu0 %vm3775_vm1, %v9382_v25  ;;  %v6444_v47 = vcombine.high %v824_v62, %v826_v13 }
 0x157   :  { %v9404_v23 = vadd.f32 %v4202_v10, %v4090_v22  ;;  %v4094_v12 = vadd.f32 %v4093_v35, %v9009_v11  ;;  %v4206_v20 = vpop.f32.mrf.mxu1  ;;  %4883 = vmatmul.mubr.bf16.gmra.mxu1 %v7540_v41  ;;  %4952 = vmatpush1.bf16.msra.mxu0 %v6387_v56  ;;  %v6902_v11 = vld [vmem:[%s11415_s1 + $0x108] sm:$0xff]  ;;  %v6447_v56 = vcombine.low %v828_v44, %v830_v3  ;;  %v820_v22 = vunpack.c.h.s8.bf16 %v6903_v58 }
 0x158   :  { %v758_v63 = vunpack.c.h.s8.bf16 %v6902_v11  ;;  %5065 = vmatpush1.bf16.msra.mxu1 %v6451_v19  ;;  %v4095_v41 = vpop.f32.mrf.mxu0  ;;  %4953 = vmatprep.subr.bf16.mxu0 %v6384_v49  ;;  %v6904_v19 = vld [vmem:[%s11415_s1 + $0x208] sm:$0xff]  ;;  %v9431_v49 = vpack.c.bf16 %v161_v18, %v144_v38  ;;  %v6905_v11 = vld [vmem:[%s11415_s1 + $0x1f0] sm:$0xff] }
 0x159   :  { %v9420_v53 = vadd.f32 %v4206_v20, %v4094_v12  ;;  %v4096_v8 = vadd.f32 %v4095_v41, %v9033_v31  ;;  %v4208_v15 = vpop.f32.mrf.mxu1  ;;  %5066 = vmatprep.subr.bf16.mxu1 %v6448_v2  ;;  %4779 = vmatprep.mubr.bf16.mxu0 %v11677_v29  ;;  %v822_v44 = vunpack.c.h.s8.bf16 %v6904_v19  ;;  %v6379_v31 = vcombine.low %v760_v5, %v762_v0 }
 0x15a   :  { %v4097_v3 = vpop.f32.mrf.mxu0  ;;  %4892 = vmatprep.mubr.bf16.mxu1 %v7559_v55  ;;  %11679 = vst [vmem:[#allocation126_spill] sm:$0xff] %v9431_v49  ;;  %v6443_v12 = vcombine.low %v824_v62, %v826_v13  ;;  %v6376_v20 = vcombine.high %v756_v14, %v758_v63  ;;  %v816_v41 = vunpack.c.h.s8.bf16 %v6905_v11  ;;  %v6906_v55 = vld [vmem:[%s11415_s1 + $0x1f8] sm:$0xff] }
 0x15b   :  { %v9433_v10 = vadd.f32 %v4208_v15, %v4096_v8  ;;  %v4098_v2 = vadd.f32 %v4097_v3, %v9041_v1  ;;  %v4210_v35 = vpop.f32.mrf.mxu1  ;;  %4954 = vmatpush1.bf16.msra.mxu0 %v6383_v60  ;;  %v818_v5 = vunpack.c.h.s8.bf16 %v6906_v55  ;;  %v6907_v1 = vld [vmem:[%s11415_s1 + $0x2f0] sm:$0xff]  ;;  %v6908_v62 = vld [vmem:[%s11415_s1 + $0x2f8] sm:$0xff]  ;;  %v6375_v8 = vcombine.low %v756_v14, %v758_v63  ;;  %v6909_v14 = vld [vmem:[%s11415_s1 + $0x1e0] sm:$0xff] }
 0x15c   :  { %5067 = vmatpush1.bf16.msra.mxu1 %v6447_v56  ;;  %v4099_v54 = vpop.f32.mrf.mxu0  ;;  %4955 = vmatprep.subr.bf16.mxu0 %v6380_v43  ;;  %v880_v0 = vunpack.c.h.s8.bf16 %v6907_v1  ;;  %v882_v13 = vunpack.c.h.s8.bf16 %v6908_v62  ;;  %v6440_v56 = vcombine.high %v820_v22, %v822_v44  ;;  %v812_v63 = vunpack.c.h.s8.bf16 %v6909_v14  ;;  %v6911_v1 = vld [vmem:[%s11415_s1 + $0x2e0] sm:$0xff]  ;;  %v6913_v14 = vld [vmem:[%s11415_s1 + $0x1d0] sm:$0xff] }
 0x15d   :  { %v9448_v60 = vadd.f32 %v4210_v35, %v4098_v2  ;;  %v4100_v38 = vadd.f32 %v4099_v54, %v9051_v6  ;;  %v4212_v18 = vpop.f32.mrf.mxu1  ;;  %5068 = vmatprep.subr.bf16.mxu1 %v6444_v47  ;;  %v178_v6 = vld [vmem:[%s11416_s0 + $0x4c0] sm:$0xff]  ;;  %v195_v47 = vld [vmem:[%s11416_s0 + $0x548] sm:$0xff]  ;;  %v6436_v2 = vcombine.high %v816_v41, %v818_v5  ;;  %v876_v62 = vunpack.c.h.s8.bf16 %v6911_v1 }
 0x15e   :  { %v4103_v43 = vpop.f32.mrf.mxu0  ;;  %6829 = vmatmul.mubr.msk.bf16.gmra.mxu0 %vm3775_vm1, %v9431_v49  ;;  %v6500_v35 = vcombine.high %v880_v0, %v882_v13 }
 0x15f   :  { %v9453_v15 = vadd.f32 %v4212_v18, %v4100_v38  ;;  %v4104_v58 = vadd.f32 %v4103_v43, %v9065_v9  ;;  %v4216_v19 = vpop.f32.mrf.mxu1  ;;  %4893 = vmatmul.mubr.bf16.gmra.mxu1 %v7600_v32  ;;  %4956 = vmatpush1.bf16.msra.mxu0 %v6379_v31  ;;  %v6910_v9 = vld [vmem:[%s11415_s1 + $0x1e8] sm:$0xff]  ;;  %v6439_v31 = vcombine.low %v820_v22, %v822_v44 }
 0x160   :  { %v814_v3 = vunpack.c.h.s8.bf16 %v6910_v9  ;;  %5069 = vmatpush1.bf16.msra.mxu1 %v6443_v12  ;;  %v4105_v32 = vpop.f32.mrf.mxu0  ;;  %4957 = vmatprep.subr.bf16.mxu0 %v6376_v20  ;;  %v6912_v12 = vld [vmem:[%s11415_s1 + $0x2e8] sm:$0xff]  ;;  %v9480_v20 = vpack.c.bf16 %v195_v47, %v178_v6  ;;  %v6499_v43 = vcombine.low %v880_v0, %v882_v13  ;;  %v808_v9 = vunpack.c.h.s8.bf16 %v6913_v14  ;;  %v6916_v0 = vld [vmem:[%s11415_s1 + $0x2d8] sm:$0xff] }
 0x161   :  { %v9469_v54 = vadd.f32 %v4216_v19, %v4104_v58  ;;  %v4106_v11 = vadd.f32 %v4105_v32, %v9089_v45  ;;  %v4218_v55 = vpop.f32.mrf.mxu1  ;;  %5070 = vmatprep.subr.bf16.mxu1 %v6440_v56  ;;  %4789 = vmatprep.mubr.bf16.mxu0 %v11677_v29  ;;  %v878_v22 = vunpack.c.h.s8.bf16 %v6912_v12  ;;  %v6435_v45 = vcombine.low %v816_v41, %v818_v5 }
 0x162   :  { %v4107_v44 = vpop.f32.mrf.mxu0  ;;  %4902 = vmatprep.mubr.bf16.mxu1 %v7619_v48  ;;  %11680 = vst [vmem:[#allocation127_spill] sm:$0xff] %v9480_v20  ;;  %v6432_v58 = vcombine.high %v812_v63, %v814_v3  ;;  %v6914_v48 = vld [vmem:[%s11415_s1 + $0x1d8] sm:$0xff]  ;;  %v874_v13 = vunpack.c.h.s8.bf16 %v6916_v0 }
 0x163   :  { %v9482_v38 = vadd.f32 %v4218_v55, %v4106_v11  ;;  %v4108_v18 = vadd.f32 %v4107_v44, %v9097_v52  ;;  %v4220_v56 = vpop.f32.mrf.mxu1  ;;  %4958 = vmatpush1.bf16.msra.mxu0 %v6375_v8  ;;  %v810_v41 = vunpack.c.h.s8.bf16 %v6914_v48  ;;  %v6915_v52 = vld [vmem:[%s11415_s1 + $0x2d0] sm:$0xff]  ;;  %v6496_v32 = vcombine.high %v876_v62, %v878_v22  ;;  %v6919_v48 = vld [vmem:[%s11415_s1 + $0x2c0] sm:$0xff] }
 0x164   :  { %5071 = vmatpush1.bf16.msra.mxu1 %v6439_v31  ;;  %v4109_v19 = vpop.f32.mrf.mxu0  ;;  %4959 = vmatprep.subr.bf16.mxu0 %v6436_v2  ;;  %v872_v5 = vunpack.c.h.s8.bf16 %v6915_v52  ;;  %v6431_v2 = vcombine.low %v812_v63, %v814_v3  ;;  %v6917_v63 = vld [vmem:[%s11415_s1 + $0x1c0] sm:$0xff]  ;;  %v6495_v44 = vcombine.low %v876_v62, %v878_v22  ;;  %v868_v52 = vunpack.c.h.s8.bf16 %v6919_v48 }
 0x165   :  { %v9497_v8 = vadd.f32 %v4220_v56, %v4108_v18  ;;  %v4110_v6 = vadd.f32 %v4109_v19, %v9107_v40  ;;  %v4222_v47 = vpop.f32.mrf.mxu1  ;;  %5072 = vmatprep.subr.bf16.mxu1 %v6500_v35  ;;  %v212_v40 = vld [vmem:[%s11416_s0 + $0x5d0] sm:$0xff]  ;;  %v229_v35 = vld [vmem:[%s11416_s0 + $0x658] sm:$0xff]  ;;  %v804_v3 = vunpack.c.h.s8.bf16 %v6917_v63 }
 0x166   :  { %v4113_v31 = vpop.f32.mrf.mxu0  ;;  %6830 = vmatmul.mubr.msk.bf16.gmra.mxu0 %vm3775_vm1, %v9480_v20  ;;  %v6492_v18 = vcombine.high %v872_v5, %v874_v13 }
 0x167   :  { %v9502_v11 = vadd.f32 %v4222_v47, %v4110_v6  ;;  %v4114_v55 = vadd.f32 %v4113_v31, %v9121_v7  ;;  %v4226_v1 = vpop.f32.mrf.mxu1  ;;  %4903 = vmatmul.mubr.bf16.gmra.mxu1 %v7660_v27  ;;  %4960 = vmatpush2.bf16.msra.mxu0 %v6435_v45  ;;  %v6918_v7 = vld [vmem:[%s11415_s1 + $0x1c8] sm:$0xff]  ;;  %v6428_v45 = vcombine.high %v808_v9, %v810_v41 }
 0x168   :  { %v806_v12 = vunpack.c.h.s8.bf16 %v6918_v7  ;;  %5073 = vmatpush2.bf16.msra.mxu1 %v6499_v43  ;;  %v4115_v27 = vpop.f32.mrf.mxu0  ;;  %4961 = vmatprep.subr.bf16.mxu0 %v6432_v58  ;;  %v6920_v43 = vld [vmem:[%s11415_s1 + $0x2c8] sm:$0xff]  ;;  %v9529_v58 = vpack.c.bf16 %v229_v35, %v212_v40 }
 0x169   :  { %v9518_v56 = vadd.f32 %v4226_v1, %v4114_v55  ;;  %v4116_v19 = vadd.f32 %v4115_v27, %v9145_v57  ;;  %v4228_v14 = vpop.f32.mrf.mxu1  ;;  %5074 = vmatprep.subr.bf16.mxu1 %v6496_v32  ;;  %4799 = vmatprep.mubr.bf16.mxu0 %v11677_v29  ;;  %v870_v62 = vunpack.c.h.s8.bf16 %v6920_v43  ;;  %v6427_v57 = vcombine.low %v808_v9, %v810_v41  ;;  %v6921_v1 = vld [vmem:[%s11415_s1 + $0x1b0] sm:$0xff] }
 0x16a   :  { %v4117_v22 = vpop.f32.mrf.mxu0  ;;  %4912 = vmatprep.mubr.bf16.mxu1 %v7679_v51  ;;  %11681 = vst [vmem:[#allocation128_spill] sm:$0xff] %v9529_v58  ;;  %v6491_v32 = vcombine.low %v872_v5, %v874_v13  ;;  %v6424_v31 = vcombine.high %v804_v3, %v806_v12  ;;  %v800_v63 = vunpack.c.h.s8.bf16 %v6921_v1  ;;  %v6922_v51 = vld [vmem:[%s11415_s1 + $0x1b8] sm:$0xff]  ;;  %v6927_v1 = vld [vmem:[%s11415_s1 + $0x2a0] sm:$0xff] }
 0x16b   :  { %v9531_v0 = vadd.f32 %v4228_v14, %v4116_v19  ;;  %v4118_v6 = vadd.f32 %v4117_v22, %v9153_v21  ;;  %v4230_v47 = vpop.f32.mrf.mxu1  ;;  %4962 = vmatpush2.bf16.msra.mxu0 %v6431_v2  ;;  %v802_v9 = vunpack.c.h.s8.bf16 %v6922_v51  ;;  %v6923_v21 = vld [vmem:[%s11415_s1 + $0x2b0] sm:$0xff]  ;;  %v6924_v5 = vld [vmem:[%s11415_s1 + $0x2b8] sm:$0xff]  ;;  %v6488_v7 = vcombine.high %v868_v52, %v870_v62 }
 0x16c   :  { %5075 = vmatpush2.bf16.msra.mxu1 %v6495_v44  ;;  %v4119_v55 = vpop.f32.mrf.mxu0  ;;  %4963 = vmatprep.subr.bf16.mxu0 %v6428_v45  ;;  %v864_v41 = vunpack.c.h.s8.bf16 %v6923_v21  ;;  %v866_v13 = vunpack.c.h.s8.bf16 %v6924_v5  ;;  %v6423_v44 = vcombine.low %v804_v3, %v806_v12  ;;  %v6925_v3 = vld [vmem:[%s11415_s1 + $0x1a0] sm:$0xff]  ;;  %v6487_v43 = vcombine.low %v868_v52, %v870_v62 }
 0x16d   :  { %v9546_v2 = vadd.f32 %v4230_v47, %v4118_v6  ;;  %v4120_v40 = vadd.f32 %v4119_v55, %v9163_v4  ;;  %v4232_v35 = vpop.f32.mrf.mxu1  ;;  %5076 = vmatprep.subr.bf16.mxu1 %v6492_v18  ;;  %v246_v4 = vld [vmem:[%s11416_s0 + $0x6e0] sm:$0xff]  ;;  %v263_v18 = vld [vmem:[%s11416_s0 + $0x768] sm:$0xff]  ;;  %v796_v12 = vunpack.c.h.s8.bf16 %v6925_v3  ;;  %v6420_v22 = vcombine.high %v800_v63, %v802_v9 }
 0x16e   :  { %v4123_v27 = vpop.f32.mrf.mxu0  ;;  %6831 = vmatmul.mubr.msk.bf16.gmra.mxu0 %vm3775_vm1, %v9529_v58  ;;  %v860_v51 = vunpack.c.h.s8.bf16 %v6927_v1  ;;  %v11752_v58 = vld [vmem:[#allocation79_spill] sm:$0xff] }
 0x16f   :  { %v9551_v45 = vadd.f32 %v4232_v35, %v4120_v40  ;;  %v4124_v19 = vadd.f32 %v4123_v27, %v9177_v24  ;;  %v4236_v14 = vpop.f32.mrf.mxu1  ;;  %4913 = vmatmul.mubr.bf16.gmra.mxu1 %v7720_v28  ;;  %4964 = vmatpush2.bf16.msra.mxu0 %v6427_v57  ;;  %v6926_v24 = vld [vmem:[%s11415_s1 + $0x1a8] sm:$0xff]  ;;  %v6484_v57 = vcombine.high %v864_v41, %v866_v13 }
 0x170   :  { %v798_v48 = vunpack.c.h.s8.bf16 %v6926_v24  ;;  %5077 = vmatpush2.bf16.msra.mxu1 %v6491_v32  ;;  %v4125_v28 = vpop.f32.mrf.mxu0  ;;  %4965 = vmatprep.subr.bf16.mxu0 %v6424_v31  ;;  %v6928_v32 = vld [vmem:[%s11415_s1 + $0x2a8] sm:$0xff]  ;;  %v9578_v31 = vpack.c.bf16 %v263_v18, %v246_v4  ;;  %v6483_v35 = vcombine.low %v864_v41, %v866_v13  ;;  %v6932_v41 = vld [vmem:[%s11415_s1 + $0x298] sm:$0xff] }
 0x171   :  { %v9567_v6 = vadd.f32 %v4236_v14, %v4124_v19  ;;  %v4126_v47 = vadd.f32 %v4125_v28, %v9201_v17  ;;  %v4238_v55 = vpop.f32.mrf.mxu1  ;;  %5078 = vmatprep.subr.bf16.mxu1 %v6488_v7  ;;  %4809 = vmatprep.mubr.bf16.mxu0 %v11677_v29  ;;  %v862_v52 = vunpack.c.h.s8.bf16 %v6928_v32  ;;  %v6419_v17 = vcombine.low %v800_v63, %v802_v9  ;;  %v6929_v19 = vld [vmem:[%s11415_s1 + $0x190] sm:$0xff] }
 0x172   :  { %v4127_v62 = vpop.f32.mrf.mxu0  ;;  %4922 = vmatprep.mubr.bf16.mxu1 %v7739_v59  ;;  %11682 = vst [vmem:[#allocation129_spill] sm:$0xff] %v9578_v31  ;;  %v6416_v7 = vcombine.high %v796_v12, %v798_v48  ;;  %v792_v14 = vunpack.c.h.s8.bf16 %v6929_v19  ;;  %v6930_v59 = vld [vmem:[%s11415_s1 + $0x198] sm:$0xff]  ;;  %v858_v13 = vunpack.c.h.s8.bf16 %v6932_v41  ;;  %v6415_v28 = vcombine.low %v796_v12, %v798_v48  ;;  %v6933_v12 = vld [vmem:[%s11415_s1 + $0x180] sm:$0xff] }
 0x173   :  { %v9580_v21 = vadd.f32 %v4238_v55, %v4126_v47  ;;  %v4128_v5 = vadd.f32 %v4127_v62, %v9209_v16  ;;  %v4240_v40 = vpop.f32.mrf.mxu1  ;;  %4966 = vmatpush2.bf16.msra.mxu0 %v6423_v44  ;;  %v794_v63 = vunpack.c.h.s8.bf16 %v6930_v59  ;;  %v6931_v16 = vld [vmem:[%s11415_s1 + $0x290] sm:$0xff]  ;;  %v6480_v3 = vcombine.high %v860_v51, %v862_v52 }
 0x174   :  { %5079 = vmatpush2.bf16.msra.mxu1 %v6487_v43  ;;  %v4129_v27 = vpop.f32.mrf.mxu0  ;;  %4967 = vmatprep.subr.bf16.mxu0 %v6420_v22  ;;  %v856_v9 = vunpack.c.h.s8.bf16 %v6931_v16  ;;  %v788_v48 = vunpack.c.h.s8.bf16 %v6933_v12  ;;  %v6479_v1 = vcombine.low %v860_v51, %v862_v52  ;;  %v11685_v41 = vld [vmem:[#allocation117_spill] sm:$0xff] }
 0x175   :  { %v9595_v44 = vadd.f32 %v4240_v40, %v4128_v5  ;;  %v4130_v4 = vadd.f32 %v4129_v27, %v9219_v26  ;;  %v4242_v18 = vpop.f32.mrf.mxu1  ;;  %5080 = vmatprep.subr.bf16.mxu1 %v6484_v57  ;;  %v280_v26 = vld [vmem:[%s11416_s0 + $0x7f0] sm:$0xff]  ;;  %v297_v57 = vld [vmem:[%s11416_s0 + $0x878] sm:$0xff]  ;;  %v6412_v32 = vcombine.high %v792_v14, %v794_v63  ;;  %v6935_v27 = vld [vmem:[%s11415_s1 + $0x280] sm:$0xff] }
 0x176   :  { %v4133_v24 = vpop.f32.mrf.mxu0  ;;  %6832 = vmatmul.mubr.msk.bf16.gmra.mxu0 %vm3775_vm1, %v9578_v31  ;;  %v6476_v62 = vcombine.high %v856_v9, %v858_v13  ;;  %v852_v19 = vunpack.c.h.s8.bf16 %v6935_v27  ;;  %v9627_v59 = vpack.c.bf16 %v297_v57, %v280_v26  ;;  %v6939_v26 = vld [vmem:[%s11415_s1 + $0x470] sm:$0xff]  ;;  %v11696_v31 = vld [vmem:[#allocation23_spill] sm:$0xff] }
 0x177   :  { %v9600_v43 = vadd.f32 %v4242_v18, %v4130_v4  ;;  %v4134_v22 = vadd.f32 %v4133_v24, %v9230_v33  ;;  %v4246_v47 = vpop.f32.mrf.mxu1  ;;  %4923 = vmatmul.mubr.bf16.gmra.mxu1 %v7780_v39  ;;  %4968 = vmatpush2.bf16.msra.mxu0 %v6419_v17  ;;  %v6934_v33 = vld [vmem:[%s11415_s1 + $0x188] sm:$0xff] }
 0x178   :  { %v790_v55 = vunpack.c.h.s8.bf16 %v6934_v33  ;;  %5081 = vmatpush2.bf16.msra.mxu1 %v6483_v35  ;;  %v4135_v39 = vpop.f32.mrf.mxu0  ;;  %4969 = vmatprep.subr.bf16.mxu0 %v6416_v7  ;;  %v6936_v35 = vld [vmem:[%s11415_s1 + $0x288] sm:$0xff]  ;;  %v11683_v7 = vld [vmem:[#allocation17_spill] sm:$0xff]  ;;  %v11686_v33 = vld [vmem:[#allocation118_spill] sm:$0xff] }
 0x179   :  { %v9616_v17 = vadd.f32 %v4246_v47, %v4134_v22  ;;  %v4136_v5 = vadd.f32 %v4135_v39, %v9245_v50  ;;  %v4248_v40 = vpop.f32.mrf.mxu1  ;;  %5082 = vmatprep.subr.bf16.mxu1 %v6480_v3  ;;  %4819 = vmatprep.mubr.bf16.mxu0 %v11677_v29  ;;  %v854_v51 = vunpack.c.h.s8.bf16 %v6936_v35  ;;  %11684 = vst [vmem:[#allocation17_spill] sm:$0xff] %v9627_v59  ;;  %v6937_v47 = vld [vmem:[%s11415_s1 + $0x370] sm:$0xff]  ;;  %v11687_v35 = vld [vmem:[#allocation119_spill] sm:$0xff] }
 0x17a   :  { %v4137_v52 = vpop.f32.mrf.mxu0  ;;  %4932 = vmatprep.mubr.bf16.mxu1 %v11683_v7  ;;  %v6411_v50 = vcombine.low %v792_v14, %v794_v63  ;;  %v6475_v3 = vcombine.low %v856_v9, %v858_v13  ;;  %v6408_v24 = vcombine.high %v788_v48, %v790_v55  ;;  %v912_v12 = vunpack.c.h.s8.bf16 %v6937_v47  ;;  %v6938_v14 = vld [vmem:[%s11415_s1 + $0x378] sm:$0xff] }
 0x17b   :  { %v9629_v16 = vadd.f32 %v4248_v40, %v4136_v5  ;;  %v4138_v4 = vadd.f32 %v4137_v52, %v11685_v41  ;;  %v4250_v18 = vpop.f32.mrf.mxu1  ;;  %4970 = vmatpush2.bf16.msra.mxu0 %v6415_v28  ;;  %v914_v63 = vunpack.c.h.s8.bf16 %v6938_v14  ;;  %v976_v28 = vunpack.c.h.s8.bf16 %v6939_v26  ;;  %v6940_v9 = vld [vmem:[%s11415_s1 + $0x478] sm:$0xff]  ;;  %v11688_v41 = vld [vmem:[#allocation19_spill] sm:$0xff] }
 0x17c   :  { %5083 = vmatpush2.bf16.msra.mxu1 %v6479_v1  ;;  %v4139_v22 = vpop.f32.mrf.mxu0  ;;  %4971 = vmatprep.subr.bf16.mxu0 %v6412_v32  ;;  %v978_v13 = vunpack.c.h.s8.bf16 %v6940_v9  ;;  %v6472_v32 = vcombine.high %v852_v19, %v854_v51  ;;  %v6407_v40 = vcombine.low %v788_v48, %v790_v55  ;;  %v6471_v55 = vcombine.low %v852_v19, %v854_v51  ;;  %v11689_v9 = vld [vmem:[#allocation120_spill] sm:$0xff] }
 0x17d   :  { %v9644_v57 = vadd.f32 %v4250_v18, %v4138_v4  ;;  %v4140_v39 = vadd.f32 %v4139_v22, %v11686_v33  ;;  %v4252_v1 = vpop.f32.mrf.mxu1  ;;  %5084 = vmatprep.subr.bf16.mxu1 %v6476_v62  ;;  %v6941_v4 = vld [vmem:[%s11415_s1 + $0x360] sm:$0xff]  ;;  %v6942_v62 = vld [vmem:[%s11415_s1 + $0x368] sm:$0xff]  ;;  %v6532_v47 = vcombine.high %v912_v12, %v914_v63 }
 0x17e   :  { %v4143_v5 = vpop.f32.mrf.mxu0  ;;  %6833 = vmatmul.mubr.msk.bf16.gmra.mxu0 %vm3775_vm1, %v9627_v59  ;;  %v908_v18 = vunpack.c.h.s8.bf16 %v6941_v4  ;;  %v910_v22 = vunpack.c.h.s8.bf16 %v6942_v62  ;;  %v6596_v14 = vcombine.high %v976_v28, %v978_v13  ;;  %v6595_v4 = vcombine.low %v976_v28, %v978_v13  ;;  %v6948_v28 = vld [vmem:[%s11415_s1 + $0x458] sm:$0xff] }
 0x17f   :  { %v9649_v27 = vadd.f32 %v4252_v1, %v4140_v39  ;;  %v4144_v52 = vadd.f32 %v4143_v5, %v11687_v35  ;;  %v4256_v7 = vpop.f32.mrf.mxu1  ;;  %4933 = vmatmul.mubr.bf16.gmra.mxu1 %v11688_v41  ;;  %4972 = vmatpush2.bf16.msra.mxu0 %v6411_v50  ;;  %v11690_v39 = vld [vmem:[#allocation3_spill] sm:$0xff]  ;;  %v6531_v35 = vcombine.low %v912_v12, %v914_v63  ;;  %v6946_v12 = vld [vmem:[%s11415_s1 + $0x358] sm:$0xff]  ;;  %v970_v13 = vunpack.c.h.s8.bf16 %v6948_v28 }
 0x180   :  { %5085 = vmatpush2.bf16.msra.mxu1 %v6475_v3  ;;  %v4145_v48 = vpop.f32.mrf.mxu0  ;;  %4973 = vmatprep.subr.bf16.mxu0 %v6408_v24  ;;  %v6943_v1 = vld [vmem:[%s11415_s1 + $0x460] sm:$0xff]  ;;  %v6944_v3 = vld [vmem:[%s11415_s1 + $0x468] sm:$0xff]  ;;  %v11691_v24 = vld [vmem:[#allocation21_spill] sm:$0xff]  ;;  %v6528_v62 = vcombine.high %v908_v18, %v910_v22  ;;  %v906_v63 = vunpack.c.h.s8.bf16 %v6946_v12 }
 0x181   :  { %v9659_v26 = vadd.f32 %v4256_v7, %v4144_v52  ;;  %v4146_v50 = vadd.f32 %v4145_v48, %v11689_v9  ;;  %v4258_v33 = vpop.f32.mrf.mxu1  ;;  %5086 = vmatprep.subr.bf16.mxu1 %v6472_v32  ;;  %4975 = vmatprep.mubr.bf16.mxu0 %v11690_v39  ;;  %v972_v5 = vunpack.c.h.s8.bf16 %v6943_v1  ;;  %v974_v19 = vunpack.c.h.s8.bf16 %v6944_v3  ;;  %v11692_v7 = vld [vmem:[#allocation122_spill] sm:$0xff]  ;;  %v6945_v9 = vld [vmem:[%s11415_s1 + $0x350] sm:$0xff] }
 0x182   :  { %v4147_v51 = vpop.f32.mrf.mxu0  ;;  %5088 = vmatprep.mubr.bf16.mxu1 %v11691_v24  ;;  %v904_v39 = vunpack.c.h.s8.bf16 %v6945_v9  ;;  %v11694_v24 = vld [vmem:[#allocation4_spill] sm:$0xff] }
 0x183   :  { %v9670_v52 = vadd.f32 %v4258_v33, %v4146_v50  ;;  %v4148_v32 = vadd.f32 %v4147_v51, %v11692_v7  ;;  %v4260_v41 = vpop.f32.mrf.mxu1  ;;  %4974 = vmatpush2.bf16.msra.mxu0 %v6407_v40  ;;  %v6947_v50 = vld [vmem:[%s11415_s1 + $0x450] sm:$0xff]  ;;  %v6592_v3 = vcombine.high %v972_v5, %v974_v19  ;;  %v6527_v7 = vcombine.low %v908_v18, %v910_v22 }
 0x184   :  { %5087 = vmatpush2.bf16.msra.mxu1 %v6471_v55  ;;  %v4149_v48 = vpop.f32.mrf.mxu0  ;;  %5169 = vmatprep.subr.bf16.mxu0 %v6532_v47  ;;  %v968_v40 = vunpack.c.h.s8.bf16 %v6947_v50  ;;  %v11693_v47 = vld [vmem:[#allocation123_spill] sm:$0xff]  ;;  %v11695_v12 = vld [vmem:[#allocation124_spill] sm:$0xff]  ;;  %v6591_v22 = vcombine.low %v972_v5, %v974_v19  ;;  %v6524_v28 = vcombine.high %v904_v39, %v906_v63 }
 0x185   :  { %v9685_v55 = vadd.f32 %v4260_v41, %v4148_v32  ;;  %v4150_v33 = vadd.f32 %v4149_v48, %v11693_v47  ;;  %v4262_v1 = vpop.f32.mrf.mxu1  ;;  %5282 = vmatprep.subr.bf16.mxu1 %v6596_v14  ;;  %v6949_v32 = vld [vmem:[%s11415_s1 + $0x340] sm:$0xff]  ;;  %v6950_v14 = vld [vmem:[%s11415_s1 + $0x348] sm:$0xff] }
 0x186   :  { %v4299_v51 = vpop.f32.mrf.mxu0  ;;  %4976 = vmatmul.mubr.bf16.vlgmr.msra.gmra.mxu0 %v11694_v24  ;;  %v900_v41 = vunpack.c.h.s8.bf16 %v6949_v32  ;;  %v902_v48 = vunpack.c.h.s8.bf16 %v6950_v14  ;;  %v6588_v47 = vcombine.high %v968_v40, %v970_v13 }
 0x187   :  { %v9689_v9 = vadd.f32 %v4262_v1, %v4150_v33  ;;  %v4300_v50 = vadd.f32 %v4299_v51, %v11695_v12  ;;  %v4412_v59 = vpop.f32.mrf.mxu1  ;;  %5089 = vmatmul.mubr.bf16.vlgmr.msra.gmra.mxu1 %v11696_v31  ;;  %5170 = vmatpush1.bf16.msra.mxu0 %v6531_v35  ;;  %v11697_v1 = vld [vmem:[#allocation5_spill] sm:$0xff]  ;;  %v6951_v51 = vld [vmem:[%s11415_s1 + $0x440] sm:$0xff] }
 0x188   :  { %5283 = vmatpush1.bf16.msra.mxu1 %v6595_v4  ;;  %v4301_v18 = vpop.f32.mrf.mxu0  ;;  %5171 = vmatprep.subr.bf16.mxu0 %v6528_v62  ;;  %v964_v24 = vunpack.c.h.s8.bf16 %v6951_v51  ;;  %v6952_v4 = vld [vmem:[%s11415_s1 + $0x448] sm:$0xff]  ;;  %v11698_v62 = vld [vmem:[#allocation25_spill] sm:$0xff]  ;;  %v6520_v32 = vcombine.high %v900_v41, %v902_v48 }
 0x189   :  { %v9699_v33 = vadd.f32 %v4412_v59, %v4300_v50  ;;  %v4302_v31 = vadd.f32 %v4301_v18, %v9335_v42  ;;  %v4414_v35 = vpop.f32.mrf.mxu1  ;;  %5284 = vmatprep.subr.bf16.mxu1 %v6592_v3  ;;  %4985 = vmatprep.mubr.bf16.mxu0 %v11697_v1  ;;  %v966_v5 = vunpack.c.h.s8.bf16 %v6952_v4  ;;  %v6523_v59 = vcombine.low %v904_v39, %v906_v63  ;;  %v6953_v18 = vld [vmem:[%s11415_s1 + $0x330] sm:$0xff]  ;;  %v6954_v39 = vld [vmem:[%s11415_s1 + $0x338] sm:$0xff] }
 0x18a   :  { %v4303_v19 = vpop.f32.mrf.mxu0  ;;  %5098 = vmatprep.mubr.bf16.mxu1 %v11698_v62  ;;  %v6587_v50 = vcombine.low %v968_v40, %v970_v13  ;;  %v896_v1 = vunpack.c.h.s8.bf16 %v6953_v18  ;;  %v898_v63 = vunpack.c.h.s8.bf16 %v6954_v39  ;;  %v6956_v40 = vld [vmem:[%s11415_s1 + $0x438] sm:$0xff] }
 0x18b   :  { %v9710_v12 = vadd.f32 %v4414_v35, %v4302_v31  ;;  %v4304_v42 = vadd.f32 %v4303_v19, %v9350_v36  ;;  %v4416_v3 = vpop.f32.mrf.mxu1  ;;  %5172 = vmatpush1.bf16.msra.mxu0 %v6527_v7  ;;  %v6955_v36 = vld [vmem:[%s11415_s1 + $0x430] sm:$0xff]  ;;  %v962_v13 = vunpack.c.h.s8.bf16 %v6956_v40  ;;  %v6584_v35 = vcombine.high %v964_v24, %v966_v5  ;;  %v11699_v4 = vld [vmem:[#allocation6_spill] sm:$0xff] }
 0x18c   :  { %5285 = vmatpush1.bf16.msra.mxu1 %v6591_v22  ;;  %v4305_v14 = vpop.f32.mrf.mxu0  ;;  %5173 = vmatprep.subr.bf16.mxu0 %v6524_v28  ;;  %v960_v7 = vunpack.c.h.s8.bf16 %v6955_v36  ;;  %v6519_v19 = vcombine.low %v900_v41, %v902_v48  ;;  %v11700_v36 = vld [vmem:[#allocation27_spill] sm:$0xff]  ;;  %v6583_v48 = vcombine.low %v964_v24, %v966_v5 }
 0x18d   :  { %v9725_v22 = vadd.f32 %v4416_v3, %v4304_v42  ;;  %v4306_v28 = vadd.f32 %v4305_v14, %v9355_v61  ;;  %v4418_v31 = vpop.f32.mrf.mxu1  ;;  %5286 = vmatprep.subr.bf16.mxu1 %v6588_v47  ;;  %v6957_v42 = vld [vmem:[%s11415_s1 + $0x320] sm:$0xff]  ;;  %v6958_v47 = vld [vmem:[%s11415_s1 + $0x328] sm:$0xff]  ;;  %v6516_v14 = vcombine.high %v896_v1, %v898_v63 }
 0x18e   :  { %v4309_v51 = vpop.f32.mrf.mxu0  ;;  %4986 = vmatmul.mubr.bf16.gmra.mxu0 %v11699_v4  ;;  %v892_v61 = vunpack.c.h.s8.bf16 %v6957_v42  ;;  %v894_v3 = vunpack.c.h.s8.bf16 %v6958_v47 }
 0x18f   :  { %v9729_v62 = vadd.f32 %v4418_v31, %v4306_v28  ;;  %v4310_v18 = vadd.f32 %v4309_v51, %v9371_v30  ;;  %v4422_v39 = vpop.f32.mrf.mxu1  ;;  %5099 = vmatmul.mubr.bf16.gmra.mxu1 %v11700_v36  ;;  %5174 = vmatpush1.bf16.msra.mxu0 %v6523_v59  ;;  %v6580_v30 = vcombine.high %v960_v7, %v962_v13  ;;  %v11701_v31 = vld [vmem:[#allocation7_spill] sm:$0xff] }
 0x190   :  { %5287 = vmatpush1.bf16.msra.mxu1 %v6587_v50  ;;  %v4311_v41 = vpop.f32.mrf.mxu0  ;;  %5175 = vmatprep.subr.bf16.mxu0 %v6520_v32  ;;  %v6959_v51 = vld [vmem:[%s11415_s1 + $0x420] sm:$0xff]  ;;  %v6960_v50 = vld [vmem:[%s11415_s1 + $0x428] sm:$0xff]  ;;  %v11702_v32 = vld [vmem:[#allocation29_spill] sm:$0xff]  ;;  %v6579_v36 = vcombine.low %v960_v7, %v962_v13  ;;  %v6512_v42 = vcombine.high %v892_v61, %v894_v3 }
 0x191   :  { %v9739_v40 = vadd.f32 %v4422_v39, %v4310_v18  ;;  %v4312_v59 = vadd.f32 %v4311_v41, %v9384_v34  ;;  %v4424_v28 = vpop.f32.mrf.mxu1  ;;  %5288 = vmatprep.subr.bf16.mxu1 %v6584_v35  ;;  %4995 = vmatprep.mubr.bf16.mxu0 %v11701_v31  ;;  %v956_v4 = vunpack.c.h.s8.bf16 %v6959_v51  ;;  %v958_v24 = vunpack.c.h.s8.bf16 %v6960_v50  ;;  %v6961_v41 = vld [vmem:[%s11415_s1 + $0x310] sm:$0xff]  ;;  %v6964_v7 = vld [vmem:[%s11415_s1 + $0x418] sm:$0xff] }
 0x192   :  { %v4313_v5 = vpop.f32.mrf.mxu0  ;;  %5108 = vmatprep.mubr.bf16.mxu1 %v11702_v32  ;;  %v6515_v18 = vcombine.low %v896_v1, %v898_v63  ;;  %v888_v31 = vunpack.c.h.s8.bf16 %v6961_v41  ;;  %v6962_v1 = vld [vmem:[%s11415_s1 + $0x318] sm:$0xff]  ;;  %v954_v13 = vunpack.c.h.s8.bf16 %v6964_v7  ;;  %v11703_v50 = vld [vmem:[#allocation8_spill] sm:$0xff] }
 0x193   :  { %v9750_v39 = vadd.f32 %v4424_v28, %v4312_v59  ;;  %v4314_v34 = vadd.f32 %v4313_v5, %v9399_v46  ;;  %v4426_v35 = vpop.f32.mrf.mxu1  ;;  %5176 = vmatpush1.bf16.msra.mxu0 %v6519_v19  ;;  %v890_v63 = vunpack.c.h.s8.bf16 %v6962_v1  ;;  %v6963_v46 = vld [vmem:[%s11415_s1 + $0x410] sm:$0xff]  ;;  %v6576_v28 = vcombine.high %v956_v4, %v958_v24 }
 0x194   :  { %5289 = vmatpush1.bf16.msra.mxu1 %v6583_v48  ;;  %v4315_v47 = vpop.f32.mrf.mxu0  ;;  %5177 = vmatprep.subr.bf16.mxu0 %v6516_v14  ;;  %v952_v19 = vunpack.c.h.s8.bf16 %v6963_v46  ;;  %v6511_v5 = vcombine.low %v892_v61, %v894_v3  ;;  %v11704_v46 = vld [vmem:[#allocation31_spill] sm:$0xff]  ;;  %v6575_v3 = vcombine.low %v956_v4, %v958_v24 }
 0x195   :  { %v9765_v48 = vadd.f32 %v4426_v35, %v4314_v34  ;;  %v4316_v14 = vadd.f32 %v4315_v47, %v9404_v23  ;;  %v4428_v59 = vpop.f32.mrf.mxu1  ;;  %5290 = vmatprep.subr.bf16.mxu1 %v6580_v30  ;;  %v6965_v34 = vld [vmem:[%s11415_s1 + $0x300] sm:$0xff]  ;;  %v6966_v30 = vld [vmem:[%s11415_s1 + $0x308] sm:$0xff]  ;;  %v6508_v47 = vcombine.high %v888_v31, %v890_v63 }
 0x196   :  { %v4319_v51 = vpop.f32.mrf.mxu0  ;;  %4996 = vmatmul.mubr.bf16.gmra.mxu0 %v11703_v50  ;;  %v884_v23 = vunpack.c.h.s8.bf16 %v6965_v34  ;;  %v886_v35 = vunpack.c.h.s8.bf16 %v6966_v30 }
 0x197   :  { %v9769_v32 = vadd.f32 %v4428_v59, %v4316_v14  ;;  %v4320_v41 = vadd.f32 %v4319_v51, %v9420_v53  ;;  %v4432_v1 = vpop.f32.mrf.mxu1  ;;  %5109 = vmatmul.mubr.bf16.gmra.mxu1 %v11704_v46  ;;  %5178 = vmatpush1.bf16.msra.mxu0 %v6515_v18  ;;  %v6572_v53 = vcombine.high %v952_v19, %v954_v13  ;;  %v11705_v59 = vld [vmem:[#allocation9_spill] sm:$0xff]  ;;  %v6967_v51 = vld [vmem:[%s11415_s1 + $0x400] sm:$0xff] }
 0x198   :  { %5291 = vmatpush1.bf16.msra.mxu1 %v6579_v36  ;;  %v4321_v61 = vpop.f32.mrf.mxu0  ;;  %5179 = vmatprep.subr.bf16.mxu0 %v6512_v42  ;;  %v948_v50 = vunpack.c.h.s8.bf16 %v6967_v51  ;;  %v6968_v36 = vld [vmem:[%s11415_s1 + $0x408] sm:$0xff]  ;;  %v11706_v42 = vld [vmem:[#allocation33_spill] sm:$0xff]  ;;  %v6571_v46 = vcombine.low %v952_v19, %v954_v13  ;;  %v6504_v34 = vcombine.high %v884_v23, %v886_v35 }
 0x199   :  { %v9779_v7 = vadd.f32 %v4432_v1, %v4320_v41  ;;  %v4322_v18 = vadd.f32 %v4321_v61, %v9433_v10  ;;  %v4434_v14 = vpop.f32.mrf.mxu1  ;;  %5292 = vmatprep.subr.bf16.mxu1 %v6576_v28  ;;  %5005 = vmatprep.mubr.bf16.mxu0 %v11705_v59  ;;  %v950_v4 = vunpack.c.h.s8.bf16 %v6968_v36  ;;  %v6507_v41 = vcombine.low %v888_v31, %v890_v63  ;;  %v6969_v61 = vld [vmem:[%s11415_s1 + $0x3f0] sm:$0xff]  ;;  %v6970_v31 = vld [vmem:[%s11415_s1 + $0x3f8] sm:$0xff] }
 0x19a   :  { %v4323_v24 = vpop.f32.mrf.mxu0  ;;  %5118 = vmatprep.mubr.bf16.mxu1 %v11706_v42  ;;  %v944_v59 = vunpack.c.h.s8.bf16 %v6969_v61  ;;  %v946_v63 = vunpack.c.h.s8.bf16 %v6970_v31  ;;  %v6972_v19 = vld [vmem:[%s11415_s1 + $0x4f8] sm:$0xff] }
 0x19b   :  { %v9790_v1 = vadd.f32 %v4434_v14, %v4322_v18  ;;  %v4324_v10 = vadd.f32 %v4323_v24, %v9448_v60  ;;  %v4436_v28 = vpop.f32.mrf.mxu1  ;;  %5180 = vmatpush1.bf16.msra.mxu0 %v6511_v5  ;;  %v6971_v60 = vld [vmem:[%s11415_s1 + $0x4f0] sm:$0xff]  ;;  %v1010_v13 = vunpack.c.h.s8.bf16 %v6972_v19  ;;  %v6568_v14 = vcombine.high %v948_v50, %v950_v4  ;;  %v11707_v36 = vld [vmem:[#allocation10_spill] sm:$0xff] }
 0x19c   :  { %5293 = vmatpush1.bf16.msra.mxu1 %v6575_v3  ;;  %v4325_v30 = vpop.f32.mrf.mxu0  ;;  %5181 = vmatprep.subr.bf16.mxu0 %v6508_v47  ;;  %v1008_v5 = vunpack.c.h.s8.bf16 %v6971_v60  ;;  %v6503_v24 = vcombine.low %v884_v23, %v886_v35  ;;  %v11708_v60 = vld [vmem:[#allocation35_spill] sm:$0xff]  ;;  %v6567_v35 = vcombine.low %v948_v50, %v950_v4 }
 0x19d   :  { %v9805_v3 = vadd.f32 %v4436_v28, %v4324_v10  ;;  %v4326_v47 = vadd.f32 %v4325_v30, %v9453_v15  ;;  %v4438_v18 = vpop.f32.mrf.mxu1  ;;  %5294 = vmatprep.subr.bf16.mxu1 %v6572_v53  ;;  %v6973_v10 = vld [vmem:[%s11415_s1 + $0x3e0] sm:$0xff]  ;;  %v6974_v53 = vld [vmem:[%s11415_s1 + $0x3e8] sm:$0xff]  ;;  %v6564_v30 = vcombine.high %v944_v59, %v946_v63 }
 0x19e   :  { %v4329_v51 = vpop.f32.mrf.mxu0  ;;  %5006 = vmatmul.mubr.bf16.gmra.mxu0 %v11707_v36  ;;  %v940_v15 = vunpack.c.h.s8.bf16 %v6973_v10  ;;  %v942_v28 = vunpack.c.h.s8.bf16 %v6974_v53 }
 0x19f   :  { %v9809_v42 = vadd.f32 %v4438_v18, %v4326_v47  ;;  %v4330_v61 = vadd.f32 %v4329_v51, %v9469_v54  ;;  %v4442_v31 = vpop.f32.mrf.mxu1  ;;  %5119 = vmatmul.mubr.bf16.gmra.mxu1 %v11708_v60  ;;  %5182 = vmatpush1.bf16.msra.mxu0 %v6507_v41  ;;  %v6628_v54 = vcombine.high %v1008_v5, %v1010_v13  ;;  %v11709_v18 = vld [vmem:[#allocation11_spill] sm:$0xff] }
 0x1a0   :  { %5295 = vmatpush1.bf16.msra.mxu1 %v6571_v46  ;;  %v4331_v23 = vpop.f32.mrf.mxu0  ;;  %5183 = vmatprep.subr.bf16.mxu0 %v6504_v34  ;;  %v6975_v51 = vld [vmem:[%s11415_s1 + $0x4e0] sm:$0xff]  ;;  %v6976_v46 = vld [vmem:[%s11415_s1 + $0x4e8] sm:$0xff]  ;;  %v11710_v34 = vld [vmem:[#allocation37_spill] sm:$0xff]  ;;  %v6627_v60 = vcombine.low %v1008_v5, %v1010_v13  ;;  %v6560_v10 = vcombine.high %v940_v15, %v942_v28 }
 0x1a1   :  { %v9819_v19 = vadd.f32 %v4442_v31, %v4330_v61  ;;  %v4332_v41 = vadd.f32 %v4331_v23, %v9482_v38  ;;  %v4444_v47 = vpop.f32.mrf.mxu1  ;;  %5296 = vmatprep.subr.bf16.mxu1 %v6568_v14  ;;  %5015 = vmatprep.mubr.bf16.mxu0 %v11709_v18  ;;  %v1004_v36 = vunpack.c.h.s8.bf16 %v6975_v51  ;;  %v1006_v50 = vunpack.c.h.s8.bf16 %v6976_v46  ;;  %v6977_v23 = vld [vmem:[%s11415_s1 + $0x3d0] sm:$0xff]  ;;  %v6980_v5 = vld [vmem:[%s11415_s1 + $0x4d8] sm:$0xff] }
 0x1a2   :  { %v4333_v4 = vpop.f32.mrf.mxu0  ;;  %5128 = vmatprep.mubr.bf16.mxu1 %v11710_v34  ;;  %v6563_v61 = vcombine.low %v944_v59, %v946_v63  ;;  %v936_v18 = vunpack.c.h.s8.bf16 %v6977_v23  ;;  %v6978_v59 = vld [vmem:[%s11415_s1 + $0x3d8] sm:$0xff]  ;;  %v1002_v13 = vunpack.c.h.s8.bf16 %v6980_v5  ;;  %v11711_v46 = vld [vmem:[#allocation12_spill] sm:$0xff] }
 0x1a3   :  { %v9830_v31 = vadd.f32 %v4444_v47, %v4332_v41  ;;  %v4334_v38 = vadd.f32 %v4333_v4, %v9497_v8  ;;  %v4446_v14 = vpop.f32.mrf.mxu1  ;;  %5184 = vmatpush1.bf16.msra.mxu0 %v6503_v24  ;;  %v938_v63 = vunpack.c.h.s8.bf16 %v6978_v59  ;;  %v6979_v8 = vld [vmem:[%s11415_s1 + $0x4d0] sm:$0xff]  ;;  %v6624_v47 = vcombine.high %v1004_v36, %v1006_v50 }
 0x1a4   :  { %5297 = vmatpush1.bf16.msra.mxu1 %v6567_v35  ;;  %v4335_v53 = vpop.f32.mrf.mxu0  ;;  %5185 = vmatprep.subr.bf16.mxu0 %v6564_v30  ;;  %v1000_v24 = vunpack.c.h.s8.bf16 %v6979_v8  ;;  %v6559_v4 = vcombine.low %v940_v15, %v942_v28  ;;  %v11712_v8 = vld [vmem:[#allocation39_spill] sm:$0xff]  ;;  %v6623_v28 = vcombine.low %v1004_v36, %v1006_v50 }
 0x1a5   :  { %v9845_v35 = vadd.f32 %v4446_v14, %v4334_v38  ;;  %v4336_v30 = vadd.f32 %v4335_v53, %v9502_v11  ;;  %v4448_v41 = vpop.f32.mrf.mxu1  ;;  %5298 = vmatprep.subr.bf16.mxu1 %v6628_v54  ;;  %v6981_v38 = vld [vmem:[%s11415_s1 + $0x3c0] sm:$0xff]  ;;  %v6982_v54 = vld [vmem:[%s11415_s1 + $0x3c8] sm:$0xff]  ;;  %v6556_v53 = vcombine.high %v936_v18, %v938_v63 }
 0x1a6   :  { %v4339_v51 = vpop.f32.mrf.mxu0  ;;  %5016 = vmatmul.mubr.bf16.gmra.mxu0 %v11711_v46  ;;  %v932_v11 = vunpack.c.h.s8.bf16 %v6981_v38  ;;  %v934_v14 = vunpack.c.h.s8.bf16 %v6982_v54 }
 0x1a7   :  { %v9849_v34 = vadd.f32 %v4448_v41, %v4336_v30  ;;  %v4340_v23 = vadd.f32 %v4339_v51, %v9518_v56  ;;  %v4452_v59 = vpop.f32.mrf.mxu1  ;;  %5129 = vmatmul.mubr.bf16.gmra.mxu1 %v11712_v8  ;;  %5186 = vmatpush2.bf16.msra.mxu0 %v6563_v61  ;;  %v6620_v56 = vcombine.high %v1000_v24, %v1002_v13  ;;  %v11713_v41 = vld [vmem:[#allocation13_spill] sm:$0xff]  ;;  %v6983_v51 = vld [vmem:[%s11415_s1 + $0x4c0] sm:$0xff] }
 0x1a8   :  { %5299 = vmatpush2.bf16.msra.mxu1 %v6627_v60  ;;  %v4341_v15 = vpop.f32.mrf.mxu0  ;;  %5187 = vmatprep.subr.bf16.mxu0 %v6560_v10  ;;  %v996_v46 = vunpack.c.h.s8.bf16 %v6983_v51  ;;  %v6984_v60 = vld [vmem:[%s11415_s1 + $0x4c8] sm:$0xff]  ;;  %v11714_v10 = vld [vmem:[#allocation41_spill] sm:$0xff]  ;;  %v6619_v8 = vcombine.low %v1000_v24, %v1002_v13  ;;  %v6552_v38 = vcombine.high %v932_v11, %v934_v14 }
 0x1a9   :  { %v9859_v5 = vadd.f32 %v4452_v59, %v4340_v23  ;;  %v4342_v61 = vadd.f32 %v4341_v15, %v9531_v0  ;;  %v4454_v30 = vpop.f32.mrf.mxu1  ;;  %5300 = vmatprep.subr.bf16.mxu1 %v6624_v47  ;;  %5025 = vmatprep.mubr.bf16.mxu0 %v11713_v41  ;;  %v998_v36 = vunpack.c.h.s8.bf16 %v6984_v60  ;;  %v6555_v23 = vcombine.low %v936_v18, %v938_v63  ;;  %v6985_v15 = vld [vmem:[%s11415_s1 + $0x3b0] sm:$0xff]  ;;  %v6986_v18 = vld [vmem:[%s11415_s1 + $0x3b8] sm:$0xff] }
 0x1aa   :  { %v4343_v50 = vpop.f32.mrf.mxu0  ;;  %5138 = vmatprep.mubr.bf16.mxu1 %v11714_v10  ;;  %v928_v41 = vunpack.c.h.s8.bf16 %v6985_v15  ;;  %v930_v63 = vunpack.c.h.s8.bf16 %v6986_v18  ;;  %v6988_v24 = vld [vmem:[%s11415_s1 + $0x4b8] sm:$0xff] }
 0x1ab   :  { %v9870_v59 = vadd.f32 %v4454_v30, %v4342_v61  ;;  %v4344_v0 = vadd.f32 %v4343_v50, %v9546_v2  ;;  %v4456_v47 = vpop.f32.mrf.mxu1  ;;  %5188 = vmatpush2.bf16.msra.mxu0 %v6559_v4  ;;  %v6987_v2 = vld [vmem:[%s11415_s1 + $0x4b0] sm:$0xff]  ;;  %v994_v13 = vunpack.c.h.s8.bf16 %v6988_v24  ;;  %v6616_v30 = vcombine.high %v996_v46, %v998_v36  ;;  %v11715_v60 = vld [vmem:[#allocation14_spill] sm:$0xff] }
 0x1ac   :  { %5301 = vmatpush2.bf16.msra.mxu1 %v6623_v28  ;;  %v4345_v54 = vpop.f32.mrf.mxu0  ;;  %5189 = vmatprep.subr.bf16.mxu0 %v6556_v53  ;;  %v992_v4 = vunpack.c.h.s8.bf16 %v6987_v2  ;;  %v6551_v50 = vcombine.low %v932_v11, %v934_v14  ;;  %v11716_v2 = vld [vmem:[#allocation43_spill] sm:$0xff]  ;;  %v6615_v14 = vcombine.low %v996_v46, %v998_v36 }
 0x1ad   :  { %v9885_v28 = vadd.f32 %v4456_v47, %v4344_v0  ;;  %v4346_v53 = vadd.f32 %v4345_v54, %v9551_v45  ;;  %v4458_v61 = vpop.f32.mrf.mxu1  ;;  %5302 = vmatprep.subr.bf16.mxu1 %v6620_v56  ;;  %v6989_v0 = vld [vmem:[%s11415_s1 + $0x3a0] sm:$0xff]  ;;  %v6990_v56 = vld [vmem:[%s11415_s1 + $0x3a8] sm:$0xff]  ;;  %v6548_v54 = vcombine.high %v928_v41, %v930_v63 }
 0x1ae   :  { %v4349_v51 = vpop.f32.mrf.mxu0  ;;  %5026 = vmatmul.mubr.bf16.gmra.mxu0 %v11715_v60  ;;  %v924_v45 = vunpack.c.h.s8.bf16 %v6989_v0  ;;  %v926_v47 = vunpack.c.h.s8.bf16 %v6990_v56 }
 0x1af   :  { %v9889_v10 = vadd.f32 %v4458_v61, %v4346_v53  ;;  %v4350_v15 = vadd.f32 %v4349_v51, %v9567_v6  ;;  %v4462_v18 = vpop.f32.mrf.mxu1  ;;  %5139 = vmatmul.mubr.bf16.gmra.mxu1 %v11716_v2  ;;  %5190 = vmatpush2.bf16.msra.mxu0 %v6555_v23  ;;  %v6612_v6 = vcombine.high %v992_v4, %v994_v13  ;;  %v11717_v61 = vld [vmem:[#allocation15_spill] sm:$0xff] }
 0x1b0   :  { %5303 = vmatpush2.bf16.msra.mxu1 %v6619_v8  ;;  %v4351_v11 = vpop.f32.mrf.mxu0  ;;  %5191 = vmatprep.subr.bf16.mxu0 %v6552_v38  ;;  %v6991_v51 = vld [vmem:[%s11415_s1 + $0x4a0] sm:$0xff]  ;;  %v6992_v8 = vld [vmem:[%s11415_s1 + $0x4a8] sm:$0xff]  ;;  %v11718_v38 = vld [vmem:[#allocation45_spill] sm:$0xff]  ;;  %v6611_v2 = vcombine.low %v992_v4, %v994_v13  ;;  %v6544_v0 = vcombine.high %v924_v45, %v926_v47 }
 0x1b1   :  { %v9899_v24 = vadd.f32 %v4462_v18, %v4350_v15  ;;  %v4352_v23 = vadd.f32 %v4351_v11, %v9580_v21  ;;  %v4464_v53 = vpop.f32.mrf.mxu1  ;;  %5304 = vmatprep.subr.bf16.mxu1 %v6616_v30  ;;  %5035 = vmatprep.mubr.bf16.mxu0 %v11717_v61  ;;  %v988_v60 = vunpack.c.h.s8.bf16 %v6991_v51  ;;  %v990_v46 = vunpack.c.h.s8.bf16 %v6992_v8  ;;  %v6993_v11 = vld [vmem:[%s11415_s1 + $0x390] sm:$0xff]  ;;  %v6996_v4 = vld [vmem:[%s11415_s1 + $0x498] sm:$0xff] }
 0x1b2   :  { %v4353_v36 = vpop.f32.mrf.mxu0  ;;  %5148 = vmatprep.mubr.bf16.mxu1 %v11718_v38  ;;  %v6547_v15 = vcombine.low %v928_v41, %v930_v63  ;;  %v920_v61 = vunpack.c.h.s8.bf16 %v6993_v11  ;;  %v6994_v41 = vld [vmem:[%s11415_s1 + $0x398] sm:$0xff]  ;;  %v986_v13 = vunpack.c.h.s8.bf16 %v6996_v4  ;;  %v11719_v8 = vld [vmem:[#allocation16_spill] sm:$0xff] }
 0x1b3   :  { %v9910_v18 = vadd.f32 %v4464_v53, %v4352_v23  ;;  %v4354_v21 = vadd.f32 %v4353_v36, %v9595_v44  ;;  %v4466_v30 = vpop.f32.mrf.mxu1  ;;  %5192 = vmatpush2.bf16.msra.mxu0 %v6551_v50  ;;  %v922_v63 = vunpack.c.h.s8.bf16 %v6994_v41  ;;  %v6995_v44 = vld [vmem:[%s11415_s1 + $0x490] sm:$0xff]  ;;  %v6608_v53 = vcombine.high %v988_v60, %v990_v46 }
 0x1b4   :  { %5305 = vmatpush2.bf16.msra.mxu1 %v6615_v14  ;;  %v4355_v56 = vpop.f32.mrf.mxu0  ;;  %5193 = vmatprep.subr.bf16.mxu0 %v6548_v54  ;;  %v984_v50 = vunpack.c.h.s8.bf16 %v6995_v44  ;;  %v6543_v36 = vcombine.low %v924_v45, %v926_v47  ;;  %v11720_v44 = vld [vmem:[#allocation47_spill] sm:$0xff]  ;;  %v6607_v47 = vcombine.low %v988_v60, %v990_v46 }
 0x1b5   :  { %v9925_v14 = vadd.f32 %v4466_v30, %v4354_v21  ;;  %v4356_v54 = vadd.f32 %v4355_v56, %v9600_v43  ;;  %v4468_v23 = vpop.f32.mrf.mxu1  ;;  %5306 = vmatprep.subr.bf16.mxu1 %v6612_v6  ;;  %v6997_v21 = vld [vmem:[%s11415_s1 + $0x380] sm:$0xff]  ;;  %v6998_v6 = vld [vmem:[%s11415_s1 + $0x388] sm:$0xff]  ;;  %v6540_v56 = vcombine.high %v920_v61, %v922_v63 }
 0x1b6   :  { %v4359_v51 = vpop.f32.mrf.mxu0  ;;  %5036 = vmatmul.mubr.bf16.gmra.mxu0 %v11719_v8  ;;  %v916_v43 = vunpack.c.h.s8.bf16 %v6997_v21  ;;  %v918_v30 = vunpack.c.h.s8.bf16 %v6998_v6 }
 0x1b7   :  { %v9929_v38 = vadd.f32 %v4468_v23, %v4356_v54  ;;  %v4360_v11 = vadd.f32 %v4359_v51, %v9616_v17  ;;  %v4472_v41 = vpop.f32.mrf.mxu1  ;;  %5149 = vmatmul.mubr.bf16.gmra.mxu1 %v11720_v44  ;;  %5194 = vmatpush2.bf16.msra.mxu0 %v6547_v15  ;;  %v6604_v17 = vcombine.high %v984_v50, %v986_v13  ;;  %v11721_v23 = vld [vmem:[#allocation18_spill] sm:$0xff] }
 0x1b8   :  { %5307 = vmatpush2.bf16.msra.mxu1 %v6611_v2  ;;  %v4361_v45 = vpop.f32.mrf.mxu0  ;;  %5195 = vmatprep.subr.bf16.mxu0 %v6544_v0  ;;  %v6999_v51 = vld [vmem:[%s11415_s1 + $0x480] sm:$0xff]  ;;  %v7000_v2 = vld [vmem:[%s11415_s1 + $0x488] sm:$0xff]  ;;  %v11722_v0 = vld [vmem:[#allocation49_spill] sm:$0xff]  ;;  %v6603_v44 = vcombine.low %v984_v50, %v986_v13  ;;  %v6536_v21 = vcombine.high %v916_v43, %v918_v30 }
 0x1b9   :  { %v9939_v4 = vadd.f32 %v4472_v41, %v4360_v11  ;;  %v4362_v15 = vadd.f32 %v4361_v45, %v9629_v16  ;;  %v4474_v54 = vpop.f32.mrf.mxu1  ;;  %5308 = vmatprep.subr.bf16.mxu1 %v6608_v53  ;;  %5045 = vmatprep.mubr.bf16.mxu0 %v11721_v23  ;;  %v980_v8 = vunpack.c.h.s8.bf16 %v6999_v51  ;;  %v982_v60 = vunpack.c.h.s8.bf16 %v7000_v2  ;;  %v7001_v45 = vld [vmem:[%s11415_s1 + $0x570] sm:$0xff]  ;;  %v7004_v50 = vld [vmem:[%s11415_s1 + $0x678] sm:$0xff] }
 0x1ba   :  { %v4363_v46 = vpop.f32.mrf.mxu0  ;;  %5158 = vmatprep.mubr.bf16.mxu1 %v11722_v0  ;;  %v6539_v11 = vcombine.low %v920_v61, %v922_v63  ;;  %v1040_v23 = vunpack.c.h.s8.bf16 %v7001_v45  ;;  %v7002_v61 = vld [vmem:[%s11415_s1 + $0x578] sm:$0xff]  ;;  %v1106_v13 = vunpack.c.h.s8.bf16 %v7004_v50  ;;  %v11723_v2 = vld [vmem:[#allocation20_spill] sm:$0xff] }
 0x1bb   :  { %v9950_v41 = vadd.f32 %v4474_v54, %v4362_v15  ;;  %v4364_v16 = vadd.f32 %v4363_v46, %v9644_v57  ;;  %v4476_v53 = vpop.f32.mrf.mxu1  ;;  %5196 = vmatpush2.bf16.msra.mxu0 %v6543_v36  ;;  %v1042_v63 = vunpack.c.h.s8.bf16 %v7002_v61  ;;  %v7003_v57 = vld [vmem:[%s11415_s1 + $0x670] sm:$0xff]  ;;  %v6600_v54 = vcombine.high %v980_v8, %v982_v60 }
 0x1bc   :  { %5309 = vmatpush2.bf16.msra.mxu1 %v6607_v47  ;;  %v4365_v6 = vpop.f32.mrf.mxu0  ;;  %5197 = vmatprep.subr.bf16.mxu0 %v6540_v56  ;;  %v1104_v36 = vunpack.c.h.s8.bf16 %v7003_v57  ;;  %v6535_v46 = vcombine.low %v916_v43, %v918_v30  ;;  %v11724_v57 = vld [vmem:[#allocation51_spill] sm:$0xff]  ;;  %v6599_v30 = vcombine.low %v980_v8, %v982_v60 }
 0x1bd   :  { %v9965_v47 = vadd.f32 %v4476_v53, %v4364_v16  ;;  %v4366_v56 = vadd.f32 %v4365_v6, %v9649_v27  ;;  %v4478_v15 = vpop.f32.mrf.mxu1  ;;  %5310 = vmatprep.subr.bf16.mxu1 %v6604_v17  ;;  %v7005_v16 = vld [vmem:[%s11415_s1 + $0x560] sm:$0xff]  ;;  %v7006_v17 = vld [vmem:[%s11415_s1 + $0x568] sm:$0xff]  ;;  %v6660_v6 = vcombine.high %v1040_v23, %v1042_v63 }
 0x1be   :  { %v4369_v51 = vpop.f32.mrf.mxu0  ;;  %5046 = vmatmul.mubr.bf16.gmra.mxu0 %v11723_v2  ;;  %v1036_v27 = vunpack.c.h.s8.bf16 %v7005_v16  ;;  %v1038_v53 = vunpack.c.h.s8.bf16 %v7006_v17 }
 0x1bf   :  { %v9969_v0 = vadd.f32 %v4478_v15, %v4366_v56  ;;  %v4370_v45 = vadd.f32 %v4369_v51, %v9659_v26  ;;  %v4482_v61 = vpop.f32.mrf.mxu1  ;;  %5159 = vmatmul.mubr.bf16.gmra.mxu1 %v11724_v57  ;;  %5198 = vmatpush2.bf16.msra.mxu0 %v6539_v11  ;;  %v6724_v26 = vcombine.high %v1104_v36, %v1106_v13  ;;  %v11725_v15 = vld [vmem:[#allocation22_spill] sm:$0xff] }
 0x1c0   :  { %5311 = vmatpush2.bf16.msra.mxu1 %v6603_v44  ;;  %v4371_v43 = vpop.f32.mrf.mxu0  ;;  %5199 = vmatprep.subr.bf16.mxu0 %v6536_v21  ;;  %v7007_v51 = vld [vmem:[%s11415_s1 + $0x660] sm:$0xff]  ;;  %v7008_v44 = vld [vmem:[%s11415_s1 + $0x668] sm:$0xff]  ;;  %v11726_v21 = vld [vmem:[#allocation53_spill] sm:$0xff]  ;;  %v6723_v57 = vcombine.low %v1104_v36, %v1106_v13  ;;  %v6656_v16 = vcombine.high %v1036_v27, %v1038_v53 }
 0x1c1   :  { %v9979_v50 = vadd.f32 %v4482_v61, %v4370_v45  ;;  %v4372_v11 = vadd.f32 %v4371_v43, %v9670_v52  ;;  %v4484_v56 = vpop.f32.mrf.mxu1  ;;  %5312 = vmatprep.subr.bf16.mxu1 %v6600_v54  ;;  %5201 = vmatprep.mubr.bf16.mxu0 %v11725_v15  ;;  %v1100_v2 = vunpack.c.h.s8.bf16 %v7007_v51  ;;  %v1102_v8 = vunpack.c.h.s8.bf16 %v7008_v44  ;;  %v7009_v43 = vld [vmem:[%s11415_s1 + $0x550] sm:$0xff]  ;;  %v7012_v36 = vld [vmem:[%s11415_s1 + $0x658] sm:$0xff] }
 0x1c2   :  { %v4373_v60 = vpop.f32.mrf.mxu0  ;;  %5314 = vmatprep.mubr.bf16.mxu1 %v11726_v21  ;;  %v6659_v45 = vcombine.low %v1040_v23, %v1042_v63  ;;  %v1032_v15 = vunpack.c.h.s8.bf16 %v7009_v43  ;;  %v7010_v23 = vld [vmem:[%s11415_s1 + $0x558] sm:$0xff]  ;;  %v1098_v13 = vunpack.c.h.s8.bf16 %v7012_v36  ;;  %v11727_v44 = vld [vmem:[#allocation24_spill] sm:$0xff] }
 0x1c3   :  { %v9990_v61 = vadd.f32 %v4484_v56, %v4372_v11  ;;  %v4374_v52 = vadd.f32 %v4373_v60, %v9685_v55  ;;  %v4486_v54 = vpop.f32.mrf.mxu1  ;;  %5200 = vmatpush2.bf16.msra.mxu0 %v6535_v46  ;;  %v1034_v63 = vunpack.c.h.s8.bf16 %v7010_v23  ;;  %v7011_v55 = vld [vmem:[%s11415_s1 + $0x650] sm:$0xff]  ;;  %v6720_v56 = vcombine.high %v1100_v2, %v1102_v8 }
 0x1c4   :  { %5313 = vmatpush2.bf16.msra.mxu1 %v6599_v30  ;;  %v4375_v17 = vpop.f32.mrf.mxu0  ;;  %5395 = vmatprep.subr.bf16.mxu0 %v6660_v6  ;;  %v1096_v46 = vunpack.c.h.s8.bf16 %v7011_v55  ;;  %v6655_v60 = vcombine.low %v1036_v27, %v1038_v53  ;;  %v11728_v55 = vld [vmem:[#allocation55_spill] sm:$0xff]  ;;  %v6719_v53 = vcombine.low %v1100_v2, %v1102_v8 }
 0x1c5   :  { %v10005_v30 = vadd.f32 %v4486_v54, %v4374_v52  ;;  %v4376_v6 = vadd.f32 %v4375_v17, %v9689_v9  ;;  %v4488_v11 = vpop.f32.mrf.mxu1  ;;  %5508 = vmatprep.subr.bf16.mxu1 %v6724_v26  ;;  %v7013_v52 = vld [vmem:[%s11415_s1 + $0x540] sm:$0xff]  ;;  %v7014_v26 = vld [vmem:[%s11415_s1 + $0x548] sm:$0xff]  ;;  %v6652_v17 = vcombine.high %v1032_v15, %v1034_v63 }
 0x1c6   :  { %v4525_v51 = vpop.f32.mrf.mxu0  ;;  %5202 = vmatmul.mubr.bf16.vlgmr.msra.gmra.mxu0 %v11727_v44  ;;  %v1028_v9 = vunpack.c.h.s8.bf16 %v7013_v52  ;;  %v1030_v54 = vunpack.c.h.s8.bf16 %v7014_v26 }
 0x1c7   :  { %v10009_v21 = vadd.f32 %v4488_v11, %v4376_v6  ;;  %v4526_v43 = vadd.f32 %v4525_v51, %v9699_v33  ;;  %v4638_v23 = vpop.f32.mrf.mxu1  ;;  %5315 = vmatmul.mubr.bf16.vlgmr.msra.gmra.mxu1 %v11728_v55  ;;  %5396 = vmatpush1.bf16.msra.mxu0 %v6659_v45  ;;  %v6716_v33 = vcombine.high %v1096_v46, %v1098_v13  ;;  %v11729_v11 = vld [vmem:[#allocation26_spill] sm:$0xff] }
 0x1c8   :  { %5509 = vmatpush1.bf16.msra.mxu1 %v6723_v57  ;;  %v4527_v27 = vpop.f32.mrf.mxu0  ;;  %5397 = vmatprep.subr.bf16.mxu0 %v6656_v16  ;;  %v7015_v51 = vld [vmem:[%s11415_s1 + $0x640] sm:$0xff]  ;;  %v7016_v57 = vld [vmem:[%s11415_s1 + $0x648] sm:$0xff]  ;;  %v11730_v16 = vld [vmem:[#allocation57_spill] sm:$0xff]  ;;  %v6715_v55 = vcombine.low %v1096_v46, %v1098_v13  ;;  %v6648_v52 = vcombine.high %v1028_v9, %v1030_v54 }
 0x1c9   :  { %v10019_v36 = vadd.f32 %v4638_v23, %v4526_v43  ;;  %v4528_v45 = vadd.f32 %v4527_v27, %v9710_v12  ;;  %v4640_v6 = vpop.f32.mrf.mxu1  ;;  %5510 = vmatprep.subr.bf16.mxu1 %v6720_v56  ;;  %5211 = vmatprep.mubr.bf16.mxu0 %v11729_v11  ;;  %v1092_v44 = vunpack.c.h.s8.bf16 %v7015_v51  ;;  %v1094_v2 = vunpack.c.h.s8.bf16 %v7016_v57  ;;  %v7017_v27 = vld [vmem:[%s11415_s1 + $0x530] sm:$0xff]  ;;  %v7020_v46 = vld [vmem:[%s11415_s1 + $0x638] sm:$0xff] }
 0x1ca   :  { %v4529_v8 = vpop.f32.mrf.mxu0  ;;  %5324 = vmatprep.mubr.bf16.mxu1 %v11730_v16  ;;  %v6651_v43 = vcombine.low %v1032_v15, %v1034_v63  ;;  %v1024_v11 = vunpack.c.h.s8.bf16 %v7017_v27  ;;  %v7018_v15 = vld [vmem:[%s11415_s1 + $0x538] sm:$0xff]  ;;  %v1090_v13 = vunpack.c.h.s8.bf16 %v7020_v46  ;;  %v11731_v57 = vld [vmem:[#allocation28_spill] sm:$0xff] }
 0x1cb   :  { %v10030_v23 = vadd.f32 %v4640_v6, %v4528_v45  ;;  %v4530_v12 = vadd.f32 %v4529_v8, %v9725_v22  ;;  %v4642_v56 = vpop.f32.mrf.mxu1  ;;  %5398 = vmatpush1.bf16.msra.mxu0 %v6655_v60  ;;  %v1026_v63 = vunpack.c.h.s8.bf16 %v7018_v15  ;;  %v7019_v22 = vld [vmem:[%s11415_s1 + $0x630] sm:$0xff]  ;;  %v6712_v6 = vcombine.high %v1092_v44, %v1094_v2 }
 0x1cc   :  { %5511 = vmatpush1.bf16.msra.mxu1 %v6719_v53  ;;  %v4531_v26 = vpop.f32.mrf.mxu0  ;;  %5399 = vmatprep.subr.bf16.mxu0 %v6652_v17  ;;  %v1088_v60 = vunpack.c.h.s8.bf16 %v7019_v22  ;;  %v6647_v8 = vcombine.low %v1028_v9, %v1030_v54  ;;  %v11732_v22 = vld [vmem:[#allocation59_spill] sm:$0xff]  ;;  %v6711_v54 = vcombine.low %v1092_v44, %v1094_v2 }
 0x1cd   :  { %v10045_v53 = vadd.f32 %v4642_v56, %v4530_v12  ;;  %v4532_v17 = vadd.f32 %v4531_v26, %v9729_v62  ;;  %v4644_v45 = vpop.f32.mrf.mxu1  ;;  %5512 = vmatprep.subr.bf16.mxu1 %v6716_v33  ;;  %v7021_v12 = vld [vmem:[%s11415_s1 + $0x520] sm:$0xff]  ;;  %v7022_v33 = vld [vmem:[%s11415_s1 + $0x528] sm:$0xff]  ;;  %v6644_v26 = vcombine.high %v1024_v11, %v1026_v63 }
 0x1ce   :  { %v4535_v51 = vpop.f32.mrf.mxu0  ;;  %5212 = vmatmul.mubr.bf16.gmra.mxu0 %v11731_v57  ;;  %v1020_v62 = vunpack.c.h.s8.bf16 %v7021_v12  ;;  %v1022_v56 = vunpack.c.h.s8.bf16 %v7022_v33 }
 0x1cf   :  { %v10049_v16 = vadd.f32 %v4644_v45, %v4532_v17  ;;  %v4536_v27 = vadd.f32 %v4535_v51, %v9739_v40  ;;  %v4648_v15 = vpop.f32.mrf.mxu1  ;;  %5325 = vmatmul.mubr.bf16.gmra.mxu1 %v11732_v22  ;;  %5400 = vmatpush1.bf16.msra.mxu0 %v6651_v43  ;;  %v6708_v40 = vcombine.high %v1088_v60, %v1090_v13  ;;  %v11733_v45 = vld [vmem:[#allocation30_spill] sm:$0xff] }
 0x1d0   :  { %5513 = vmatpush1.bf16.msra.mxu1 %v6715_v55  ;;  %v4537_v9 = vpop.f32.mrf.mxu0  ;;  %5401 = vmatprep.subr.bf16.mxu0 %v6648_v52  ;;  %v7023_v51 = vld [vmem:[%s11415_s1 + $0x620] sm:$0xff]  ;;  %v7024_v55 = vld [vmem:[%s11415_s1 + $0x628] sm:$0xff]  ;;  %v11734_v52 = vld [vmem:[#allocation61_spill] sm:$0xff]  ;;  %v6707_v22 = vcombine.low %v1088_v60, %v1090_v13  ;;  %v6640_v12 = vcombine.high %v1020_v62, %v1022_v56 }
 0x1d1   :  { %v10059_v46 = vadd.f32 %v4648_v15, %v4536_v27  ;;  %v4538_v43 = vadd.f32 %v4537_v9, %v9750_v39  ;;  %v4650_v17 = vpop.f32.mrf.mxu1  ;;  %5514 = vmatprep.subr.bf16.mxu1 %v6712_v6  ;;  %5221 = vmatprep.mubr.bf16.mxu0 %v11733_v45  ;;  %v1084_v57 = vunpack.c.h.s8.bf16 %v7023_v51  ;;  %v1086_v44 = vunpack.c.h.s8.bf16 %v7024_v55  ;;  %v7025_v9 = vld [vmem:[%s11415_s1 + $0x510] sm:$0xff]  ;;  %v7028_v60 = vld [vmem:[%s11415_s1 + $0x618] sm:$0xff] }
 0x1d2   :  { %v4539_v2 = vpop.f32.mrf.mxu0  ;;  %5334 = vmatprep.mubr.bf16.mxu1 %v11734_v52  ;;  %v6643_v27 = vcombine.low %v1024_v11, %v1026_v63  ;;  %v1016_v45 = vunpack.c.h.s8.bf16 %v7025_v9  ;;  %v7026_v11 = vld [vmem:[%s11415_s1 + $0x518] sm:$0xff]  ;;  %v1082_v13 = vunpack.c.h.s8.bf16 %v7028_v60  ;;  %v11735_v55 = vld [vmem:[#allocation32_spill] sm:$0xff] }
 0x1d3   :  { %v10070_v15 = vadd.f32 %v4650_v17, %v4538_v43  ;;  %v4540_v39 = vadd.f32 %v4539_v2, %v9765_v48  ;;  %v4652_v6 = vpop.f32.mrf.mxu1  ;;  %5402 = vmatpush1.bf16.msra.mxu0 %v6647_v8  ;;  %v1018_v63 = vunpack.c.h.s8.bf16 %v7026_v11  ;;  %v7027_v48 = vld [vmem:[%s11415_s1 + $0x610] sm:$0xff]  ;;  %v6704_v17 = vcombine.high %v1084_v57, %v1086_v44 }
 0x1d4   :  { %5515 = vmatpush1.bf16.msra.mxu1 %v6711_v54  ;;  %v4541_v33 = vpop.f32.mrf.mxu0  ;;  %5403 = vmatprep.subr.bf16.mxu0 %v6644_v26  ;;  %v1080_v8 = vunpack.c.h.s8.bf16 %v7027_v48  ;;  %v6639_v2 = vcombine.low %v1020_v62, %v1022_v56  ;;  %v11736_v48 = vld [vmem:[#allocation63_spill] sm:$0xff]  ;;  %v6703_v56 = vcombine.low %v1084_v57, %v1086_v44 }
 0x1d5   :  { %v10085_v54 = vadd.f32 %v4652_v6, %v4540_v39  ;;  %v4542_v26 = vadd.f32 %v4541_v33, %v9769_v32  ;;  %v4654_v43 = vpop.f32.mrf.mxu1  ;;  %5516 = vmatprep.subr.bf16.mxu1 %v6708_v40  ;;  %v7029_v39 = vld [vmem:[%s11415_s1 + $0x500] sm:$0xff]  ;;  %v7030_v40 = vld [vmem:[%s11415_s1 + $0x508] sm:$0xff]  ;;  %v6636_v33 = vcombine.high %v1016_v45, %v1018_v63 }
 0x1d6   :  { %v4545_v51 = vpop.f32.mrf.mxu0  ;;  %5222 = vmatmul.mubr.bf16.gmra.mxu0 %v11735_v55  ;;  %v1012_v32 = vunpack.c.h.s8.bf16 %v7029_v39  ;;  %v1014_v6 = vunpack.c.h.s8.bf16 %v7030_v40 }
 0x1d7   :  { %v10089_v52 = vadd.f32 %v4654_v43, %v4542_v26  ;;  %v4546_v9 = vadd.f32 %v4545_v51, %v9779_v7  ;;  %v4658_v11 = vpop.f32.mrf.mxu1  ;;  %5335 = vmatmul.mubr.bf16.gmra.mxu1 %v11736_v48  ;;  %5404 = vmatpush1.bf16.msra.mxu0 %v6643_v27  ;;  %v6700_v7 = vcombine.high %v1080_v8, %v1082_v13  ;;  %v11737_v43 = vld [vmem:[#allocation34_spill] sm:$0xff] }
 0x1d8   :  { %5517 = vmatpush1.bf16.msra.mxu1 %v6707_v22  ;;  %v4547_v62 = vpop.f32.mrf.mxu0  ;;  %5405 = vmatprep.subr.bf16.mxu0 %v6640_v12  ;;  %v7031_v51 = vld [vmem:[%s11415_s1 + $0x600] sm:$0xff]  ;;  %v7032_v22 = vld [vmem:[%s11415_s1 + $0x608] sm:$0xff]  ;;  %v11738_v12 = vld [vmem:[#allocation65_spill] sm:$0xff]  ;;  %v6699_v48 = vcombine.low %v1080_v8, %v1082_v13  ;;  %v6632_v39 = vcombine.high %v1012_v32, %v1014_v6 }
 0x1d9   :  { %v10099_v60 = vadd.f32 %v4658_v11, %v4546_v9  ;;  %v4548_v27 = vadd.f32 %v4547_v62, %v9790_v1  ;;  %v4660_v26 = vpop.f32.mrf.mxu1  ;;  %5518 = vmatprep.subr.bf16.mxu1 %v6704_v17  ;;  %5231 = vmatprep.mubr.bf16.mxu0 %v11737_v43  ;;  %v1076_v55 = vunpack.c.h.s8.bf16 %v7031_v51  ;;  %v1078_v57 = vunpack.c.h.s8.bf16 %v7032_v22  ;;  %v7033_v62 = vld [vmem:[%s11415_s1 + $0x5f0] sm:$0xff]  ;;  %v7036_v8 = vld [vmem:[%s11415_s1 + $0x6f8] sm:$0xff] }
 0x1da   :  { %v4549_v44 = vpop.f32.mrf.mxu0  ;;  %5344 = vmatprep.mubr.bf16.mxu1 %v11738_v12  ;;  %v6635_v9 = vcombine.low %v1016_v45, %v1018_v63  ;;  %v1072_v43 = vunpack.c.h.s8.bf16 %v7033_v62  ;;  %v7034_v45 = vld [vmem:[%s11415_s1 + $0x5f8] sm:$0xff]  ;;  %v1138_v13 = vunpack.c.h.s8.bf16 %v7036_v8  ;;  %v11739_v22 = vld [vmem:[#allocation36_spill] sm:$0xff] }
 0x1db   :  { %v10110_v11 = vadd.f32 %v4660_v26, %v4548_v27  ;;  %v4550_v1 = vadd.f32 %v4549_v44, %v9805_v3  ;;  %v4662_v17 = vpop.f32.mrf.mxu1  ;;  %5406 = vmatpush1.bf16.msra.mxu0 %v6639_v2  ;;  %v1074_v63 = vunpack.c.h.s8.bf16 %v7034_v45  ;;  %v7035_v3 = vld [vmem:[%s11415_s1 + $0x6f0] sm:$0xff]  ;;  %v6696_v26 = vcombine.high %v1076_v55, %v1078_v57 }
 0x1dc   :  { %5519 = vmatpush1.bf16.msra.mxu1 %v6703_v56  ;;  %v4551_v40 = vpop.f32.mrf.mxu0  ;;  %5407 = vmatprep.subr.bf16.mxu0 %v6636_v33  ;;  %v1136_v2 = vunpack.c.h.s8.bf16 %v7035_v3  ;;  %v6631_v44 = vcombine.low %v1012_v32, %v1014_v6  ;;  %v11740_v3 = vld [vmem:[#allocation67_spill] sm:$0xff]  ;;  %v6695_v6 = vcombine.low %v1076_v55, %v1078_v57 }
 0x1dd   :  { %v10125_v56 = vadd.f32 %v4662_v17, %v4550_v1  ;;  %v4552_v33 = vadd.f32 %v4551_v40, %v9809_v42  ;;  %v4664_v27 = vpop.f32.mrf.mxu1  ;;  %5520 = vmatprep.subr.bf16.mxu1 %v6700_v7  ;;  %v7037_v1 = vld [vmem:[%s11415_s1 + $0x5e0] sm:$0xff]  ;;  %v7038_v7 = vld [vmem:[%s11415_s1 + $0x5e8] sm:$0xff]  ;;  %v6692_v40 = vcombine.high %v1072_v43, %v1074_v63 }
 0x1de   :  { %v4555_v51 = vpop.f32.mrf.mxu0  ;;  %5232 = vmatmul.mubr.bf16.gmra.mxu0 %v11739_v22  ;;  %v1068_v42 = vunpack.c.h.s8.bf16 %v7037_v1  ;;  %v1070_v17 = vunpack.c.h.s8.bf16 %v7038_v7 }
 0x1df   :  { %v10129_v12 = vadd.f32 %v4664_v27, %v4552_v33  ;;  %v4556_v62 = vadd.f32 %v4555_v51, %v9819_v19  ;;  %v4668_v45 = vpop.f32.mrf.mxu1  ;;  %5345 = vmatmul.mubr.bf16.gmra.mxu1 %v11740_v3  ;;  %5408 = vmatpush1.bf16.msra.mxu0 %v6635_v9  ;;  %v6756_v19 = vcombine.high %v1136_v2, %v1138_v13  ;;  %v11741_v27 = vld [vmem:[#allocation38_spill] sm:$0xff] }
 0x1e0   :  { %5521 = vmatpush1.bf16.msra.mxu1 %v6699_v48  ;;  %v4557_v32 = vpop.f32.mrf.mxu0  ;;  %5409 = vmatprep.subr.bf16.mxu0 %v6632_v39  ;;  %v7039_v51 = vld [vmem:[%s11415_s1 + $0x6e0] sm:$0xff]  ;;  %v7040_v48 = vld [vmem:[%s11415_s1 + $0x6e8] sm:$0xff]  ;;  %v11742_v39 = vld [vmem:[#allocation69_spill] sm:$0xff]  ;;  %v6755_v3 = vcombine.low %v1136_v2, %v1138_v13  ;;  %v6688_v1 = vcombine.high %v1068_v42, %v1070_v17 }
 0x1e1   :  { %v10139_v8 = vadd.f32 %v4668_v45, %v4556_v62  ;;  %v4558_v9 = vadd.f32 %v4557_v32, %v9830_v31  ;;  %v4670_v33 = vpop.f32.mrf.mxu1  ;;  %5522 = vmatprep.subr.bf16.mxu1 %v6696_v26  ;;  %5241 = vmatprep.mubr.bf16.mxu0 %v11741_v27  ;;  %v1132_v22 = vunpack.c.h.s8.bf16 %v7039_v51  ;;  %v1134_v55 = vunpack.c.h.s8.bf16 %v7040_v48  ;;  %v7041_v32 = vld [vmem:[%s11415_s1 + $0x5d0] sm:$0xff]  ;;  %v7044_v2 = vld [vmem:[%s11415_s1 + $0x6d8] sm:$0xff] }
 0x1e2   :  { %v4559_v57 = vpop.f32.mrf.mxu0  ;;  %5354 = vmatprep.mubr.bf16.mxu1 %v11742_v39  ;;  %v6691_v62 = vcombine.low %v1072_v43, %v1074_v63  ;;  %v1064_v27 = vunpack.c.h.s8.bf16 %v7041_v32  ;;  %v7042_v43 = vld [vmem:[%s11415_s1 + $0x5d8] sm:$0xff]  ;;  %v1130_v13 = vunpack.c.h.s8.bf16 %v7044_v2  ;;  %v11743_v48 = vld [vmem:[#allocation40_spill] sm:$0xff] }
 0x1e3   :  { %v10150_v45 = vadd.f32 %v4670_v33, %v4558_v9  ;;  %v4560_v31 = vadd.f32 %v4559_v57, %v9845_v35  ;;  %v4672_v26 = vpop.f32.mrf.mxu1  ;;  %5410 = vmatpush1.bf16.msra.mxu0 %v6631_v44  ;;  %v1066_v63 = vunpack.c.h.s8.bf16 %v7042_v43  ;;  %v7043_v35 = vld [vmem:[%s11415_s1 + $0x6d0] sm:$0xff]  ;;  %v6752_v33 = vcombine.high %v1132_v22, %v1134_v55 }
 0x1e4   :  { %5523 = vmatpush1.bf16.msra.mxu1 %v6695_v6  ;;  %v4561_v7 = vpop.f32.mrf.mxu0  ;;  %5411 = vmatprep.subr.bf16.mxu0 %v6692_v40  ;;  %v1128_v44 = vunpack.c.h.s8.bf16 %v7043_v35  ;;  %v6687_v57 = vcombine.low %v1068_v42, %v1070_v17  ;;  %v11744_v35 = vld [vmem:[#allocation71_spill] sm:$0xff]  ;;  %v6751_v17 = vcombine.low %v1132_v22, %v1134_v55 }
 0x1e5   :  { %v10165_v6 = vadd.f32 %v4672_v26, %v4560_v31  ;;  %v4562_v40 = vadd.f32 %v4561_v7, %v9849_v34  ;;  %v4674_v9 = vpop.f32.mrf.mxu1  ;;  %5524 = vmatprep.subr.bf16.mxu1 %v6756_v19  ;;  %v7045_v31 = vld [vmem:[%s11415_s1 + $0x5c0] sm:$0xff]  ;;  %v7046_v19 = vld [vmem:[%s11415_s1 + $0x5c8] sm:$0xff]  ;;  %v6684_v7 = vcombine.high %v1064_v27, %v1066_v63 }
 0x1e6   :  { %v4565_v51 = vpop.f32.mrf.mxu0  ;;  %5242 = vmatmul.mubr.bf16.gmra.mxu0 %v11743_v48  ;;  %v1060_v34 = vunpack.c.h.s8.bf16 %v7045_v31  ;;  %v1062_v26 = vunpack.c.h.s8.bf16 %v7046_v19 }
 0x1e7   :  { %v10169_v39 = vadd.f32 %v4674_v9, %v4562_v40  ;;  %v4566_v32 = vadd.f32 %v4565_v51, %v9859_v5  ;;  %v4678_v43 = vpop.f32.mrf.mxu1  ;;  %5355 = vmatmul.mubr.bf16.gmra.mxu1 %v11744_v35  ;;  %5412 = vmatpush2.bf16.msra.mxu0 %v6691_v62  ;;  %v6748_v5 = vcombine.high %v1128_v44, %v1130_v13  ;;  %v11745_v9 = vld [vmem:[#allocation42_spill] sm:$0xff] }
 0x1e8   :  { %5525 = vmatpush2.bf16.msra.mxu1 %v6755_v3  ;;  %v4567_v42 = vpop.f32.mrf.mxu0  ;;  %5413 = vmatprep.subr.bf16.mxu0 %v6688_v1  ;;  %v7047_v51 = vld [vmem:[%s11415_s1 + $0x6c0] sm:$0xff]  ;;  %v7048_v3 = vld [vmem:[%s11415_s1 + $0x6c8] sm:$0xff]  ;;  %v11746_v1 = vld [vmem:[#allocation73_spill] sm:$0xff]  ;;  %v6747_v35 = vcombine.low %v1128_v44, %v1130_v13  ;;  %v6680_v31 = vcombine.high %v1060_v34, %v1062_v26 }
 0x1e9   :  { %v10179_v2 = vadd.f32 %v4678_v43, %v4566_v32  ;;  %v4568_v62 = vadd.f32 %v4567_v42, %v9870_v59  ;;  %v4680_v40 = vpop.f32.mrf.mxu1  ;;  %5526 = vmatprep.subr.bf16.mxu1 %v6752_v33  ;;  %5251 = vmatprep.mubr.bf16.mxu0 %v11745_v9  ;;  %v1124_v48 = vunpack.c.h.s8.bf16 %v7047_v51  ;;  %v1126_v22 = vunpack.c.h.s8.bf16 %v7048_v3  ;;  %v7049_v42 = vld [vmem:[%s11415_s1 + $0x5b0] sm:$0xff]  ;;  %v7052_v44 = vld [vmem:[%s11415_s1 + $0x6b8] sm:$0xff] }
 0x1ea   :  { %v4569_v55 = vpop.f32.mrf.mxu0  ;;  %5364 = vmatprep.mubr.bf16.mxu1 %v11746_v1  ;;  %v6683_v32 = vcombine.low %v1064_v27, %v1066_v63  ;;  %v1056_v9 = vunpack.c.h.s8.bf16 %v7049_v42  ;;  %v7050_v27 = vld [vmem:[%s11415_s1 + $0x5b8] sm:$0xff]  ;;  %v1122_v13 = vunpack.c.h.s8.bf16 %v7052_v44  ;;  %v11747_v3 = vld [vmem:[#allocation44_spill] sm:$0xff] }
 0x1eb   :  { %v10190_v43 = vadd.f32 %v4680_v40, %v4568_v62  ;;  %v4570_v59 = vadd.f32 %v4569_v55, %v9885_v28  ;;  %v4682_v33 = vpop.f32.mrf.mxu1  ;;  %5414 = vmatpush2.bf16.msra.mxu0 %v6687_v57  ;;  %v1058_v63 = vunpack.c.h.s8.bf16 %v7050_v27  ;;  %v7051_v28 = vld [vmem:[%s11415_s1 + $0x6b0] sm:$0xff]  ;;  %v6744_v40 = vcombine.high %v1124_v48, %v1126_v22 }
 0x1ec   :  { %5527 = vmatpush2.bf16.msra.mxu1 %v6751_v17  ;;  %v4571_v19 = vpop.f32.mrf.mxu0  ;;  %5415 = vmatprep.subr.bf16.mxu0 %v6684_v7  ;;  %v1120_v57 = vunpack.c.h.s8.bf16 %v7051_v28  ;;  %v6679_v55 = vcombine.low %v1060_v34, %v1062_v26  ;;  %v11748_v28 = vld [vmem:[#allocation75_spill] sm:$0xff]  ;;  %v6743_v44 = vcombine.low %v1124_v48, %v1126_v22  ;;  %v11749_v22 = vld [vmem:[#allocation46_spill] sm:$0xff] }
 0x1ed   :  { %v10205_v17 = vadd.f32 %v4682_v33, %v4570_v59  ;;  %v4572_v7 = vadd.f32 %v4571_v19, %v9889_v10  ;;  %v4684_v62 = vpop.f32.mrf.mxu1  ;;  %5528 = vmatprep.subr.bf16.mxu1 %v6748_v5  ;;  %v6676_v10 = vcombine.high %v1056_v9, %v1058_v63  ;;  %v7053_v5 = vld [vmem:[%s11415_s1 + $0x5a0] sm:$0xff]  ;;  %v7054_v34 = vld [vmem:[%s11415_s1 + $0x5a8] sm:$0xff] }
 0x1ee   :  { %v4575_v51 = vpop.f32.mrf.mxu0  ;;  %5252 = vmatmul.mubr.bf16.gmra.mxu0 %v11747_v3  ;;  %v6740_v33 = vcombine.high %v1120_v57, %v1122_v13  ;;  %v1052_v19 = vunpack.c.h.s8.bf16 %v7053_v5  ;;  %v11750_v3 = vld [vmem:[#allocation77_spill] sm:$0xff] }
 0x1ef   :  { %v10209_v1 = vadd.f32 %v4684_v62, %v4572_v7  ;;  %v4576_v42 = vadd.f32 %v4575_v51, %v9899_v24  ;;  %v4688_v27 = vpop.f32.mrf.mxu1  ;;  %5365 = vmatmul.mubr.bf16.gmra.mxu1 %v11748_v28  ;;  %5416 = vmatpush2.bf16.msra.mxu0 %v6683_v32  ;;  %v1054_v24 = vunpack.c.h.s8.bf16 %v7054_v34  ;;  %v7056_v7 = vld [vmem:[%s11415_s1 + $0x6a8] sm:$0xff]  ;;  %v7057_v28 = vld [vmem:[%s11415_s1 + $0x590] sm:$0xff]  ;;  %v7058_v5 = vld [vmem:[%s11415_s1 + $0x598] sm:$0xff] }
 0x1f0   :  { %5529 = vmatpush2.bf16.msra.mxu1 %v6747_v35  ;;  %v4577_v59 = vpop.f32.mrf.mxu0  ;;  %5417 = vmatprep.subr.bf16.mxu0 %v6680_v31  ;;  %v7055_v35 = vld [vmem:[%s11415_s1 + $0x6a0] sm:$0xff]  ;;  %v1118_v62 = vunpack.c.h.s8.bf16 %v7056_v7  ;;  %v1050_v34 = vunpack.c.h.s8.bf16 %v7058_v5 }
 0x1f1   :  { %v10219_v26 = vadd.f32 %v4688_v27, %v4576_v42  ;;  %v4578_v32 = vadd.f32 %v4577_v59, %v9910_v18  ;;  %v4690_v48 = vpop.f32.mrf.mxu1  ;;  %5530 = vmatprep.subr.bf16.mxu1 %v6744_v40  ;;  %5261 = vmatprep.mubr.bf16.mxu0 %v11749_v22  ;;  %v1116_v31 = vunpack.c.h.s8.bf16 %v7055_v35  ;;  %v6675_v42 = vcombine.low %v1056_v9, %v1058_v63 }
 0x1f2   :  { %v4579_v51 = vpop.f32.mrf.mxu0  ;;  %5374 = vmatprep.mubr.bf16.mxu1 %v11750_v3  ;;  %v1048_v59 = vunpack.c.h.s8.bf16 %v7057_v28  ;;  %v6739_v9 = vcombine.low %v1120_v57, %v1122_v13  ;;  %v6672_v63 = vcombine.high %v1052_v19, %v1054_v24  ;;  %v11751_v57 = vld [vmem:[#allocation48_spill] sm:$0xff]  ;;  %v6671_v13 = vcombine.low %v1052_v19, %v1054_v24 }
 0x1f3   :  { %v10230_v27 = vadd.f32 %v4690_v48, %v4578_v32  ;;  %v4580_v18 = vadd.f32 %v4579_v51, %v9925_v14  ;;  %v4692_v40 = vpop.f32.mrf.mxu1  ;;  %5418 = vmatpush2.bf16.msra.mxu0 %v6679_v55  ;;  %v7059_v14 = vld [vmem:[%s11415_s1 + $0x690] sm:$0xff]  ;;  %v7060_v32 = vld [vmem:[%s11415_s1 + $0x698] sm:$0xff]  ;;  %v6735_v3 = vcombine.low %v1116_v31, %v1118_v62  ;;  %v7062_v19 = vld [vmem:[%s11415_s1 + $0x588] sm:$0xff] }
 0x1f4   :  { %5531 = vmatpush2.bf16.msra.mxu1 %v6743_v44  ;;  %v4581_v22 = vpop.f32.mrf.mxu0  ;;  %5419 = vmatprep.subr.bf16.mxu0 %v6676_v10  ;;  %v1112_v55 = vunpack.c.h.s8.bf16 %v7059_v14  ;;  %v1114_v48 = vunpack.c.h.s8.bf16 %v7060_v32  ;;  %v6736_v44 = vcombine.high %v1116_v31, %v1118_v62  ;;  %v1046_v24 = vunpack.c.h.s8.bf16 %v7062_v19  ;;  %v7065_v19 = vld [vmem:[%s11415_s1 + $0x770] sm:$0xff] }
 0x1f5   :  { %v10245_v35 = vadd.f32 %v4692_v40, %v4580_v18  ;;  %v4582_v7 = vadd.f32 %v4581_v22, %v9929_v38  ;;  %v4694_v51 = vpop.f32.mrf.mxu1  ;;  %5532 = vmatprep.subr.bf16.mxu1 %v6740_v33  ;;  %v6668_v18 = vcombine.high %v1048_v59, %v1050_v34  ;;  %v7061_v33 = vld [vmem:[%s11415_s1 + $0x580] sm:$0xff] }
 0x1f6   :  { %v4585_v10 = vpop.f32.mrf.mxu0  ;;  %5262 = vmatmul.mubr.bf16.gmra.mxu0 %v11751_v57  ;;  %v6732_v38 = vcombine.high %v1112_v55, %v1114_v48  ;;  %v1044_v22 = vunpack.c.h.s8.bf16 %v7061_v33 }
 0x1f7   :  { %v10249_v28 = vadd.f32 %v4694_v51, %v4582_v7  ;;  %v4586_v5 = vadd.f32 %v4585_v10, %v9939_v4  ;;  %v4698_v14 = vpop.f32.mrf.mxu1  ;;  %5375 = vmatmul.mubr.bf16.gmra.mxu1 %v11752_v58  ;;  %5420 = vmatpush2.bf16.msra.mxu0 %v6675_v42  ;;  %v7063_v58 = vld [vmem:[%s11415_s1 + $0x680] sm:$0xff]  ;;  %v5849_v7 = vlaneseq  ;;  %v11754_v10 = vld [vmem:[#allocation81_spill] sm:$0xff] }
 0x1f8   :  { %5533 = vmatpush2.bf16.msra.mxu1 %v6739_v9  ;;  %v4587_v40 = vpop.f32.mrf.mxu0  ;;  %5421 = vmatprep.subr.bf16.mxu0 %v6672_v63  ;;  %v1108_v4 = vunpack.c.h.s8.bf16 %v7063_v58  ;;  %v11753_v9 = vld [vmem:[#allocation50_spill] sm:$0xff]  ;;  %v7064_v63 = vld [vmem:[%s11415_s1 + $0x688] sm:$0xff]  ;;  %v6664_v33 = vcombine.high %v1044_v22, %v1046_v24  ;;  %v1168_v58 = vunpack.c.h.s8.bf16 %v7065_v19 }
 0x1f9   :  { %v10262_v31 = vadd.f32 %v4698_v14, %v4586_v5  ;;  %v4588_v62 = vadd.f32 %v4587_v40, %v9950_v41  ;;  %v4700_v42 = vpop.f32.mrf.mxu1  ;;  %5534 = vmatprep.subr.bf16.mxu1 %v6736_v44  ;;  %5271 = vmatprep.mubr.bf16.mxu0 %v11753_v9  ;;  %v1110_v32 = vunpack.c.h.s8.bf16 %v7064_v63  ;;  %v6667_v41 = vcombine.low %v1048_v59, %v1050_v34  ;;  %v11756_v9 = vld [vmem:[#allocation52_spill] sm:$0xff] }
 0x1fa   :  { %v4589_v51 = vpop.f32.mrf.mxu0  ;;  %5384 = vmatprep.mubr.bf16.mxu1 %v11754_v10  ;;  %v6731_v40 = vcombine.low %v1112_v55, %v1114_v48  ;;  %v6663_v63 = vcombine.low %v1044_v22, %v1046_v24  ;;  %v7069_v22 = vld [vmem:[%s11415_s1 + $0x768] sm:$0xff] }
 0x1fb   :  { %v10270_v57 = vadd.f32 %v4700_v42, %v4588_v62  ;;  %v4590_v5 = vadd.f32 %v4589_v51, %v9965_v47  ;;  %v4702_v14 = vpop.f32.mrf.mxu1  ;;  %5422 = vmatpush2.bf16.msra.mxu0 %v6671_v13  ;;  %v7066_v62 = vld [vmem:[%s11415_s1 + $0x778] sm:$0xff]  ;;  %v7067_v47 = vld [vmem:[%s11415_s1 + $0x800] sm:$0x55]  ;;  %v6728_v13 = vcombine.high %v1108_v4, %v1110_v32 }
 0x1fc   :  { %5535 = vmatpush2.bf16.msra.mxu1 %v6735_v3  ;;  %v4591_v44 = vpop.f32.mrf.mxu0  ;;  %5423 = vmatprep.subr.bf16.mxu0 %v6668_v18  ;;  %v1170_v42 = vunpack.c.h.s8.bf16 %v7066_v62  ;;  %v1204_v59 = vunpack.c.h.s8.bf16 %v7067_v47  ;;  %v10285_v3 = vshrl.u32 %v5849_v7, 7  ;;  %v11757_v62 = vld [vmem:[#allocation83_spill] sm:$0xff] }
 0x1fd   :  { %v10282_v34 = vadd.f32 %v4702_v14, %v4590_v5  ;;  %v4592_v55 = vadd.f32 %v4591_v44, %v9969_v0  ;;  %v4704_v48 = vpop.f32.mrf.mxu1  ;;  %5536 = vmatprep.subr.bf16.mxu1 %v6732_v38  ;;  %v6727_v5 = vcombine.low %v1108_v4, %v1110_v32  ;;  %v7068_v7 = vld [vmem:[%s11415_s1 + $0x760] sm:$0xff] }
 0x1fe   :  { %11755 = vst [vmem:[#allocation117_spill] sm:$0xff] %v10285_v3  ;;  %v4595_v18 = vpop.f32.mrf.mxu0  ;;  %5272 = vmatmul.mubr.bf16.gmra.mxu0 %v11756_v9  ;;  %v6788_v38 = vcombine.high %v1168_v58, %v1170_v42  ;;  %v6824_v14 = vcombine.high %v1204_v59, %v1204_v59  ;;  %v1164_v44 = vunpack.c.h.s8.bf16 %v7068_v7  ;;  %v11758_v32 = vld [vmem:[#allocation54_spill] sm:$0xff] }
 0x1ff   :  { %v10288_v51 = vadd.f32 %v4704_v48, %v4592_v55  ;;  %v4596_v10 = vadd.f32 %v4595_v18, %v9979_v50  ;;  %v4708_v19 = vpop.f32.mrf.mxu1  ;;  %5385 = vmatmul.mubr.bf16.gmra.mxu1 %v11757_v62  ;;  %5424 = vmatpush2.bf16.msra.mxu0 %v6667_v41  ;;  %v1166_v50 = vunpack.c.h.s8.bf16 %v7069_v22  ;;  %v11759_v55 = vld [vmem:[#allocation85_spill] sm:$0xff]  ;;  %v5847_v48 = vld [vmem:[%s11417_s2] sm:$0xf]  ;;  %v10308_v18 = vsub.s32 1, %v10285_v3 }
 0x200   :  { %5537 = vmatpush2.bf16.msra.mxu1 %v6731_v40  ;;  %v4597_v0 = vpop.f32.mrf.mxu0  ;;  %5425 = vmatprep.subr.bf16.mxu0 %v6664_v33  ;;  %v5851_v40 = vsub.s32 0, %v10285_v3  ;;  %v6823_v33 = vcombine.low %v1204_v59, %v1204_v59  ;;  %v5933_v59 = vld [vmem:[%s11418_s3] sm:$0xf]  ;;  %v11764_v3 = vld [vmem:[#allocation60_spill] sm:$0xff] }
 0x201   :  { %v10298_v24 = vadd.f32 %v4708_v19, %v4596_v10  ;;  %v4598_v41 = vadd.f32 %v4597_v0, %v9990_v61  ;;  %v4710_v4 = vpop.f32.mrf.mxu1  ;;  %5538 = vmatprep.subr.bf16.mxu1 %v6728_v13  ;;  %5427 = vmatprep.mubr.bf16.mxu0 %v11758_v32  ;;  %v6787_v10 = vcombine.low %v1168_v58, %v1170_v42  ;;  %v7070_v0 = vld [vmem:[%s11415_s1 + $0x750] sm:$0xff] }
 0x202   :  { %v4599_v47 = vpop.f32.mrf.mxu0  ;;  %5540 = vmatprep.mubr.bf16.mxu1 %v11759_v55  ;;  %v6784_v62 = vcombine.high %v1164_v44, %v1166_v50  ;;  %v1160_v7 = vunpack.c.h.s8.bf16 %v7070_v0  ;;  %v10325_v58 = vrot.slane %v5847_v48, %v5851_v40  ;;  %v3808_v42 = vsel %vm3800_vm0, %v6823_v33, 0  ;;  %v11760_v32 = vld [vmem:[#allocation56_spill] sm:$0xff]  ;;  %v7072_v0 = vld [vmem:[%s11415_s1 + $0x740] sm:$0xff] }
 0x203   :  { %v10310_v9 = vadd.f32 %v4710_v4, %v4598_v41  ;;  %v4600_v61 = vadd.f32 %v4599_v47, %v10005_v30  ;;  %v4712_v13 = vpop.f32.mrf.mxu1  ;;  %5426 = vmatpush2.bf16.msra.mxu0 %v6663_v63  ;;  %v7071_v30 = vld [vmem:[%s11415_s1 + $0x758] sm:$0xff]  ;;  %v10333_v47 = vrot.slane %v5847_v48, %v10308_v18  ;;  %v1156_v48 = vunpack.c.h.s8.bf16 %v7072_v0 }
 0x204   :  { %5539 = vmatpush2.bf16.msra.mxu1 %v6727_v5  ;;  %v4601_v19 = vpop.f32.mrf.mxu0  ;;  %5621 = vmatprep.subr.bf16.mxu0 %v6788_v38  ;;  %v1162_v22 = vunpack.c.h.s8.bf16 %v7071_v30  ;;  %v10329_v38 = vrot.slane %v5933_v59, %v5851_v40  ;;  %v7073_v30 = vld [vmem:[%s11415_s1 + $0x748] sm:$0xff] }
 0x205   :  { %v10322_v63 = vadd.f32 %v4712_v13, %v4600_v61  ;;  %v4602_v41 = vadd.f32 %v4601_v19, %v10009_v21  ;;  %v4714_v4 = vpop.f32.mrf.mxu1  ;;  %6834 = vmatprep.subr.msk.bf16.mxu1 %vm3800_vm0, %v6824_v14  ;;  %v11761_v13 = vld [vmem:[#allocation87_spill] sm:$0xff]  ;;  %v6783_v14 = vcombine.low %v1164_v44, %v1166_v50  ;;  %v10350_v44 = vrot.slane %v5933_v59, %v10308_v18 }
 0x206   :  { %v4751_v5 = vpop.f32.mrf.mxu0  ;;  %5428 = vmatmul.mubr.bf16.vlgmr.msra.gmra.mxu0 %v11760_v32  ;;  %v6780_v33 = vcombine.high %v1160_v7, %v1162_v22  ;;  %v6779_v59 = vcombine.low %v1160_v7, %v1162_v22 }
 0x207   :  { %v10335_v55 = vadd.f32 %v4714_v4, %v4602_v41  ;;  %v4752_v61 = vadd.f32 %v4751_v5, %v10019_v36  ;;  %v10338_v21 = vpop.f32.mrf.mxu1  ;;  %5541 = vmatmul.mubr.bf16.vlgmr.msra.gmra.mxu1 %v11761_v13  ;;  %5622 = vmatpush1.bf16.msra.mxu0 %v6787_v10  ;;  %v1158_v36 = vunpack.c.h.s8.bf16 %v7073_v30  ;;  %v6083_v10 = vld [vmem:[%s11419_s4] sm:$0xf] }
 0x208   :  { %v4753_v19 = vpop.f32.mrf.mxu0  ;;  %5749 = vmatpush1.bf16.msra.mxu1 %v3808_v42  ;;  %5623 = vmatprep.subr.bf16.mxu0 %v6784_v62  ;;  %v11762_v62 = vld [vmem:[#allocation58_spill] sm:$0xff]  ;;  %v11763_v42 = vld [vmem:[#allocation89_spill] sm:$0xff]  ;;  %v10378_v22 = vrot.slane %v6083_v10, %v10308_v18 }
 0x209   :  { %v5869_v41 = vmul.f32 %v10325_v58, %v4752_v61  ;;  %v4754_v4 = vadd.f32 %v4753_v19, %v10030_v23  ;;  %v10352_v50 = vpop.f32.mrf.mxu1  ;;  %5437 = vmatprep.mubr.bf16.mxu0 %v11762_v62  ;;  %5550 = vmatprep.mubr.bf16.mxu1 %v11763_v42  ;;  %v10364_v19 = vrot.slane %v6083_v10, %v5851_v40  ;;  %v7074_v62 = vld [vmem:[%s11415_s1 + $0x730] sm:$0xff] }
 0x20a   :  { %v4755_v5 = vpop.f32.mrf.mxu0  ;;  %v6776_v30 = vcombine.high %v1156_v48, %v1158_v36  ;;  %v1152_v42 = vunpack.c.h.s8.bf16 %v7074_v62  ;;  %v6775_v62 = vcombine.low %v1156_v48, %v1158_v36  ;;  %v11766_v36 = vld [vmem:[#allocation62_spill] sm:$0xff] }
 0x20b   :  { %v5955_v32 = vadd.f32 %v10329_v38, %v5869_v41  ;;  %v5870_v61 = vmul.f32 %v10333_v47, %v4754_v4  ;;  %v4756_v23 = vadd.f32 %v4755_v5, %v10045_v53  ;;  %v10362_v13 = vpop.f32.mrf.mxu1  ;;  %5624 = vmatpush1.bf16.msra.mxu0 %v6783_v14  ;;  %v7075_v41 = vld [vmem:[%s11415_s1 + $0x738] sm:$0xff] }
 0x20c   :  { %v4757_v0 = vpop.f32.mrf.mxu0  ;;  %5625 = vmatprep.subr.bf16.mxu0 %v6780_v33  ;;  %v1154_v4 = vunpack.c.h.s8.bf16 %v7075_v41  ;;  %v7076_v41 = vld [vmem:[%s11415_s1 + $0x720] sm:$0xff] }
 0x20d   :  { %v5956_v53 = vadd.f32 %v10350_v44, %v5870_v61  ;;  %v5873_v14 = vmul.f32 %v10325_v58, %v4756_v23  ;;  %v4758_v40 = vadd.f32 %v4757_v0, %v10049_v16  ;;  %v10375_v7 = vpop.f32.mrf.mxu1  ;;  %v6019_v33 = vmax.f32 %v5955_v32, 0.0  ;;  %v7077_v61 = vld [vmem:[%s11415_s1 + $0x728] sm:$0xff] }
 0x20e   :  { %v4761_v5 = vpop.f32.mrf.mxu0  ;;  %5438 = vmatmul.mubr.bf16.gmra.mxu0 %v11764_v3  ;;  %v1148_v20 = vunpack.c.h.s8.bf16 %v7076_v41  ;;  %v1150_v16 = vunpack.c.h.s8.bf16 %v7077_v61  ;;  %v11765_v3 = vld [vmem:[#allocation91_spill] sm:$0xff]  ;;  %v6772_v41 = vcombine.high %v1152_v42, %v1154_v4  ;;  %v6771_v25 = vcombine.low %v1152_v42, %v1154_v4  ;;  %v7078_v42 = vld [vmem:[%s11415_s1 + $0x710] sm:$0xff] }
 0x20f   :  { %v6020_v23 = vmax.f32 %v5956_v53, 0.0  ;;  %v5959_v0 = vadd.f32 %v10329_v38, %v5873_v14  ;;  %v5874_v18 = vmul.f32 %v10333_v47, %v4758_v40  ;;  %v4762_v10 = vadd.f32 %v4761_v5, %v10059_v46  ;;  %v10390_v32 = vpop.f32.mrf.mxu1  ;;  %5551 = vmatmul.mubr.bf16.gmra.mxu1 %v11765_v3  ;;  %5626 = vmatpush1.bf16.msra.mxu0 %v6779_v59  ;;  %v11768_v46 = vld [vmem:[#allocation93_spill] sm:$0xff] }
 0x210   :  { %v4763_v48 = vpop.f32.mrf.mxu0  ;;  %5627 = vmatprep.subr.bf16.mxu0 %v6776_v30  ;;  %5447 = vmatprep.mubr.bf16.mxu0 %v11766_v36  ;;  %v6105_v59 = vmul.f32 %v10364_v19, %v6019_v33  ;;  %v1144_v4 = vunpack.c.h.s8.bf16 %v7078_v42  ;;  %v7079_v33 = vld [vmem:[%s11415_s1 + $0x718] sm:$0xff] }
 0x211   :  { %v6023_v49 = vmax.f32 %v5959_v0, 0.0  ;;  %v5960_v61 = vadd.f32 %v10350_v44, %v5874_v18  ;;  %v5877_v53 = vmul.f32 %v10325_v58, %v4762_v10  ;;  %v4764_v14 = vadd.f32 %v4763_v48, %v10070_v15  ;;  %v10397_v40 = vpop.f32.mrf.mxu1  ;;  %5560 = vmatprep.mubr.bf16.mxu1 %v11768_v46 }
 0x212   :  { %11767 = vst [vmem:[#allocation118_spill] sm:$0xff] %v10397_v40  ;;  %v4765_v5 = vpop.f32.mrf.mxu0  ;;  %v6106_v30 = vmul.f32 %v10378_v22, %v6020_v23  ;;  %v6768_v10 = vcombine.high %v1148_v20, %v1150_v16  ;;  %v1146_v23 = vunpack.c.h.s8.bf16 %v7079_v33  ;;  %v6767_v40 = vcombine.low %v1148_v20, %v1150_v16  ;;  %v7080_v20 = vld [vmem:[%s11415_s1 + $0x700] sm:$0xff] }
 0x213   :  { %v6024_v3 = vmax.f32 %v5960_v61, 0.0  ;;  %v5963_v36 = vadd.f32 %v10329_v38, %v5877_v53  ;;  %v5878_v0 = vmul.f32 %v10333_v47, %v4764_v14  ;;  %v10404_v18 = vpop.f32.mrf.mxu1  ;;  %5628 = vmatpush1.bf16.msra.mxu0 %v6775_v62  ;;  %v4766_v15 = vadd.f32 %v4765_v5, %v10085_v54 }
 0x214   :  { %11769 = vst [vmem:[#allocation119_spill] sm:$0xff] %v10404_v18  ;;  %v4767_v48 = vpop.f32.mrf.mxu0  ;;  %5629 = vmatprep.subr.bf16.mxu0 %v6772_v41  ;;  %v10413_v61 = vadd.f32 %v6106_v30, %v6105_v59  ;;  %v6109_v53 = vmul.f32 %v10364_v19, %v6023_v49  ;;  %v11771_v18 = vld [vmem:[#allocation64_spill] sm:$0xff]  ;;  %v1140_v16 = vunpack.c.h.s8.bf16 %v7080_v20 }
 0x215   :  { %v5964_v62 = vadd.f32 %v10350_v44, %v5878_v0  ;;  %v4768_v54 = vadd.f32 %v4767_v48, %v10089_v52  ;;  %v10418_v14 = vpop.f32.mrf.mxu1  ;;  %v6110_v41 = vmul.f32 %v10378_v22, %v6024_v3  ;;  %v6027_v46 = vmax.f32 %v5963_v36, 0.0  ;;  %v11772_v0 = vld [vmem:[#allocation95_spill] sm:$0xff] }
 0x216   :  { %11770 = vst [vmem:[#allocation19_spill] sm:$0xff] %v10413_v61  ;;  %v5881_v5 = vmul.f32 %v10325_v58, %v4766_v15  ;;  %v4771_v42 = vpop.f32.mrf.mxu0  ;;  %5448 = vmatmul.mubr.bf16.gmra.mxu0 %v11771_v18  ;;  %v11774_v15 = vld [vmem:[#allocation66_spill] sm:$0xff]  ;;  %v6764_v18 = vcombine.high %v1144_v4, %v1146_v23 }
 0x217   :  { %v6028_v33 = vmax.f32 %v5964_v62, 0.0  ;;  %v5882_v59 = vmul.f32 %v10333_v47, %v4768_v54  ;;  %v4772_v49 = vadd.f32 %v4771_v42, %v10099_v60  ;;  %v10425_v30 = vpop.f32.mrf.mxu1  ;;  %5561 = vmatmul.mubr.bf16.gmra.mxu1 %v11772_v0  ;;  %5630 = vmatpush1.bf16.msra.mxu0 %v6771_v25  ;;  %v10428_v52 = vadd.f32 %v6110_v41, %v6109_v53  ;;  %v7081_v60 = vld [vmem:[%s11415_s1 + $0x708] sm:$0xff]  ;;  %v11775_v54 = vld [vmem:[#allocation97_spill] sm:$0xff] }
 0x218   :  { %v5967_v3 = vadd.f32 %v10329_v38, %v5881_v5  ;;  %v4773_v36 = vpop.f32.mrf.mxu0  ;;  %5631 = vmatprep.subr.bf16.mxu0 %v6768_v10  ;;  %5457 = vmatprep.mubr.bf16.mxu0 %v11774_v15  ;;  %v1142_v48 = vunpack.c.h.s8.bf16 %v7081_v60  ;;  %v6763_v0 = vcombine.low %v1144_v4, %v1146_v23  ;;  %v6113_v15 = vmul.f32 %v10364_v19, %v6027_v46  ;;  %v7083_v23 = vld [vmem:[%s11415_s1 + $0x7f8] sm:$0xff] }
 0x219   :  { %11773 = vst [vmem:[#allocation120_spill] sm:$0xff] %v10428_v52  ;;  %v5968_v25 = vadd.f32 %v10350_v44, %v5882_v59  ;;  %v5885_v53 = vmul.f32 %v10325_v58, %v4772_v49  ;;  %v4774_v62 = vadd.f32 %v4773_v36, %v10110_v11  ;;  %v10441_v10 = vpop.f32.mrf.mxu1  ;;  %5570 = vmatprep.mubr.bf16.mxu1 %v11775_v54  ;;  %v1202_v46 = vunpack.c.h.s8.bf16 %v7083_v23 }
 0x21a   :  { %v6114_v41 = vmul.f32 %v10378_v22, %v6028_v33  ;;  %v6031_v5 = vmax.f32 %v5967_v3, 0.0  ;;  %v4775_v42 = vpop.f32.mrf.mxu0  ;;  %v6760_v36 = vcombine.high %v1140_v16, %v1142_v48  ;;  %v7082_v33 = vld [vmem:[%s11415_s1 + $0x7f0] sm:$0xff] }
 0x21b   :  { %v6032_v20 = vmax.f32 %v5968_v25, 0.0  ;;  %v5971_v60 = vadd.f32 %v10329_v38, %v5885_v53  ;;  %v5886_v59 = vmul.f32 %v10333_v47, %v4774_v62  ;;  %v4776_v49 = vadd.f32 %v4775_v42, %v10125_v56  ;;  %v10449_v52 = vpop.f32.mrf.mxu1  ;;  %5632 = vmatpush1.bf16.msra.mxu0 %v6767_v40 }
 0x21c   :  { %v4777_v11 = vpop.f32.mrf.mxu0  ;;  %5633 = vmatprep.subr.bf16.mxu0 %v6764_v18  ;;  %v1200_v4 = vunpack.c.h.s8.bf16 %v7082_v33  ;;  %v10457_v3 = vadd.f32 %v6114_v41, %v6113_v15  ;;  %v6759_v53 = vcombine.low %v1140_v16, %v1142_v48  ;;  %v6117_v62 = vmul.f32 %v10364_v19, %v6031_v5  ;;  %v11777_v33 = vld [vmem:[#allocation68_spill] sm:$0xff]  ;;  %v7084_v41 = vld [vmem:[%s11415_s1 + $0x7e0] sm:$0xff] }
 0x21d   :  { %v5972_v56 = vadd.f32 %v10350_v44, %v5886_v59  ;;  %v5889_v25 = vmul.f32 %v10325_v58, %v4776_v49  ;;  %v4778_v40 = vadd.f32 %v4777_v11, %v10129_v12  ;;  %v10462_v18 = vpop.f32.mrf.mxu1  ;;  %v6035_v54 = vmax.f32 %v5971_v60, 0.0  ;;  %v11778_v16 = vld [vmem:[#allocation99_spill] sm:$0xff] }
 0x21e   :  { %11776 = vst [vmem:[#allocation3_spill] sm:$0xff] %v10457_v3  ;;  %v4781_v42 = vpop.f32.mrf.mxu0  ;;  %5458 = vmatmul.mubr.bf16.gmra.mxu0 %v11777_v33  ;;  %v1196_v15 = vunpack.c.h.s8.bf16 %v7084_v41  ;;  %v6118_v59 = vmul.f32 %v10378_v22, %v6032_v20  ;;  %v7085_v48 = vld [vmem:[%s11415_s1 + $0x7e8] sm:$0xff]  ;;  %v11779_v20 = vld [vmem:[#allocation70_spill] sm:$0xff]  ;;  %v11781_v3 = vld [vmem:[#allocation101_spill] sm:$0xff] }
 0x21f   :  { %v6036_v23 = vmax.f32 %v5972_v56, 0.0  ;;  %v5975_v49 = vadd.f32 %v10329_v38, %v5889_v25  ;;  %v5890_v12 = vmul.f32 %v10333_v47, %v4778_v40  ;;  %v10472_v11 = vpop.f32.mrf.mxu1  ;;  %5571 = vmatmul.mubr.bf16.gmra.mxu1 %v11778_v16  ;;  %5634 = vmatpush1.bf16.msra.mxu0 %v6763_v0  ;;  %v1198_v5 = vunpack.c.h.s8.bf16 %v7085_v48 }
 0x220   :  { %v4782_v60 = vadd.f32 %v4781_v42, %v10139_v8  ;;  %v4783_v33 = vpop.f32.mrf.mxu0  ;;  %5635 = vmatprep.subr.bf16.mxu0 %v6760_v36  ;;  %5467 = vmatprep.mubr.bf16.mxu0 %v11779_v20  ;;  %v6820_v56 = vcombine.high %v1200_v4, %v1202_v46  ;;  %v10480_v25 = vadd.f32 %v6118_v59, %v6117_v62 }
 0x221   :  { %v6122_v40 = vmul.f32 %v10378_v22, %v6036_v23  ;;  %v5976_v41 = vadd.f32 %v10350_v44, %v5890_v12  ;;  %v4784_v0 = vadd.f32 %v4783_v33, %v10150_v45  ;;  %v10485_v16 = vpop.f32.mrf.mxu1  ;;  %5580 = vmatprep.mubr.bf16.mxu1 %v11781_v3  ;;  %v6121_v48 = vmul.f32 %v10364_v19, %v6035_v54  ;;  %v7086_v3 = vld [vmem:[%s11415_s1 + $0x7d0] sm:$0xff] }
 0x222   :  { %11780 = vst [vmem:[#allocation21_spill] sm:$0xff] %v10480_v25  ;;  %v6039_v8 = vmax.f32 %v5975_v49, 0.0  ;;  %v5893_v36 = vmul.f32 %v10325_v58, %v4782_v60  ;;  %v4785_v42 = vpop.f32.mrf.mxu0  ;;  %v6819_v20 = vcombine.low %v1200_v4, %v1202_v46  ;;  %v6816_v45 = vcombine.high %v1196_v15, %v1198_v5  ;;  %v7087_v4 = vld [vmem:[%s11415_s1 + $0x7d8] sm:$0xff] }
 0x223   :  { %v6040_v61 = vmax.f32 %v5976_v41, 0.0  ;;  %v5894_v62 = vmul.f32 %v10333_v47, %v4784_v0  ;;  %v4786_v59 = vadd.f32 %v4785_v42, %v10165_v6  ;;  %v10492_v23 = vpop.f32.mrf.mxu1  ;;  %5636 = vmatpush1.bf16.msra.mxu0 %v6759_v53  ;;  %v1192_v54 = vunpack.c.h.s8.bf16 %v7086_v3  ;;  %v11783_v3 = vld [vmem:[#allocation72_spill] sm:$0xff] }
 0x224   :  { %v5979_v12 = vadd.f32 %v10329_v38, %v5893_v36  ;;  %v4787_v33 = vpop.f32.mrf.mxu0  ;;  %5637 = vmatprep.subr.bf16.mxu0 %v6820_v56  ;;  %v1194_v46 = vunpack.c.h.s8.bf16 %v7087_v4  ;;  %v10501_v49 = vadd.f32 %v6122_v40, %v6121_v48  ;;  %v6125_v0 = vmul.f32 %v10364_v19, %v6039_v8  ;;  %v11785_v8 = vld [vmem:[#allocation74_spill] sm:$0xff] }
 0x225   :  { %v5980_v6 = vadd.f32 %v10350_v44, %v5894_v62  ;;  %v5897_v53 = vmul.f32 %v10325_v58, %v4786_v59  ;;  %v4788_v60 = vadd.f32 %v4787_v33, %v10169_v39  ;;  %v10506_v41 = vpop.f32.mrf.mxu1  ;;  %v6126_v56 = vmul.f32 %v10378_v22, %v6040_v61  ;;  %v11784_v39 = vld [vmem:[#allocation103_spill] sm:$0xff] }
 0x226   :  { %11782 = vst [vmem:[#allocation122_spill] sm:$0xff] %v10501_v49  ;;  %v6043_v36 = vmax.f32 %v5979_v12, 0.0  ;;  %v4791_v42 = vpop.f32.mrf.mxu0  ;;  %5468 = vmatmul.mubr.bf16.gmra.mxu0 %v11783_v3  ;;  %v6815_v25 = vcombine.low %v1196_v15, %v1198_v5  ;;  %v6812_v12 = vcombine.high %v1192_v54, %v1194_v46  ;;  %v7088_v15 = vld [vmem:[%s11415_s1 + $0x7c0] sm:$0xff] }
 0x227   :  { %v6044_v4 = vmax.f32 %v5980_v6, 0.0  ;;  %v5983_v40 = vadd.f32 %v10329_v38, %v5897_v53  ;;  %v5898_v48 = vmul.f32 %v10333_v47, %v4788_v60  ;;  %v4792_v62 = vadd.f32 %v4791_v42, %v10179_v2  ;;  %v10514_v59 = vpop.f32.mrf.mxu1  ;;  %5581 = vmatmul.mubr.bf16.gmra.mxu1 %v11784_v39  ;;  %5638 = vmatpush2.bf16.msra.mxu0 %v6819_v20  ;;  %v11787_v20 = vld [vmem:[#allocation105_spill] sm:$0xff] }
 0x228   :  { %v4793_v61 = vpop.f32.mrf.mxu0  ;;  %5639 = vmatprep.subr.bf16.mxu0 %v6816_v45  ;;  %5477 = vmatprep.mubr.bf16.mxu0 %v11785_v8  ;;  %v1188_v5 = vunpack.c.h.s8.bf16 %v7088_v15  ;;  %v10521_v33 = vadd.f32 %v6126_v56, %v6125_v0  ;;  %v7089_v45 = vld [vmem:[%s11415_s1 + $0x7c8] sm:$0xff]  ;;  %v6129_v3 = vmul.f32 %v10364_v19, %v6043_v36  ;;  %v6811_v15 = vcombine.low %v1192_v54, %v1194_v46  ;;  %v7090_v36 = vld [vmem:[%s11415_s1 + $0x7b0] sm:$0xff] }
 0x229   :  { %v6130_v6 = vmul.f32 %v10378_v22, %v6044_v4  ;;  %v5984_v2 = vadd.f32 %v10350_v44, %v5898_v48  ;;  %v5901_v53 = vmul.f32 %v10325_v58, %v4792_v62  ;;  %v10526_v60 = vpop.f32.mrf.mxu1  ;;  %5590 = vmatprep.mubr.bf16.mxu1 %v11787_v20  ;;  %v1190_v42 = vunpack.c.h.s8.bf16 %v7089_v45 }
 0x22a   :  { %11786 = vst [vmem:[#allocation123_spill] sm:$0xff] %v10521_v33  ;;  %v6047_v39 = vmax.f32 %v5983_v40, 0.0  ;;  %v4794_v56 = vadd.f32 %v4793_v61, %v10190_v43  ;;  %v4795_v0 = vpop.f32.mrf.mxu0  ;;  %v1184_v40 = vunpack.c.h.s8.bf16 %v7090_v36  ;;  %v7091_v43 = vld [vmem:[%s11415_s1 + $0x7b8] sm:$0xff]  ;;  %v11789_v36 = vld [vmem:[#allocation76_spill] sm:$0xff] }
 0x22b   :  { %v6048_v4 = vmax.f32 %v5984_v2, 0.0  ;;  %v5987_v48 = vadd.f32 %v10329_v38, %v5901_v53  ;;  %v4796_v62 = vadd.f32 %v4795_v0, %v10205_v17  ;;  %v10536_v8 = vpop.f32.mrf.mxu1  ;;  %5640 = vmatpush2.bf16.msra.mxu0 %v6815_v25  ;;  %v1186_v61 = vunpack.c.h.s8.bf16 %v7091_v43 }
 0x22c   :  { %v5902_v20 = vmul.f32 %v10333_v47, %v4794_v56  ;;  %v4797_v33 = vpop.f32.mrf.mxu0  ;;  %5641 = vmatprep.subr.bf16.mxu0 %v6812_v12  ;;  %v10545_v2 = vadd.f32 %v6130_v6, %v6129_v3  ;;  %v6808_v46 = vcombine.high %v1188_v5, %v1190_v42  ;;  %v6133_v53 = vmul.f32 %v10364_v19, %v6047_v39 }
 0x22d   :  { %v5905_v17 = vmul.f32 %v10325_v58, %v4796_v62  ;;  %v4798_v25 = vadd.f32 %v4797_v33, %v10209_v1  ;;  %v10549_v54 = vpop.f32.mrf.mxu1  ;;  %v6134_v12 = vmul.f32 %v10378_v22, %v6048_v4  ;;  %v6051_v45 = vmax.f32 %v5987_v48, 0.0  ;;  %v11790_v33 = vld [vmem:[#allocation107_spill] sm:$0xff]  ;;  %v11791_v48 = vld [vmem:[#allocation78_spill] sm:$0xff] }
 0x22e   :  { %11788 = vst [vmem:[#allocation4_spill] sm:$0xff] %v10545_v2  ;;  %v5988_v56 = vadd.f32 %v10350_v44, %v5902_v20  ;;  %v4801_v0 = vpop.f32.mrf.mxu0  ;;  %5478 = vmatmul.mubr.bf16.gmra.mxu0 %v11789_v36  ;;  %v6807_v43 = vcombine.low %v1188_v5, %v1190_v42  ;;  %v6804_v20 = vcombine.high %v1184_v40, %v1186_v61  ;;  %v7092_v36 = vld [vmem:[%s11415_s1 + $0x7a0] sm:$0xff]  ;;  %v11793_v42 = vld [vmem:[#allocation109_spill] sm:$0xff] }
 0x22f   :  { %v5991_v6 = vadd.f32 %v10329_v38, %v5905_v17  ;;  %v5906_v3 = vmul.f32 %v10333_v47, %v4798_v25  ;;  %v4802_v62 = vadd.f32 %v4801_v0, %v10219_v26  ;;  %v10558_v1 = vpop.f32.mrf.mxu1  ;;  %5591 = vmatmul.mubr.bf16.gmra.mxu1 %v11790_v33  ;;  %5642 = vmatpush2.bf16.msra.mxu0 %v6811_v15  ;;  %v1180_v17 = vunpack.c.h.s8.bf16 %v7092_v36  ;;  %v7093_v15 = vld [vmem:[%s11415_s1 + $0x7a8] sm:$0xff] }
 0x230   :  { %v6052_v4 = vmax.f32 %v5988_v56, 0.0  ;;  %v4803_v39 = vpop.f32.mrf.mxu0  ;;  %5487 = vmatprep.mubr.bf16.mxu0 %v11791_v48  ;;  %v10565_v2 = vadd.f32 %v6134_v12, %v6133_v53  ;;  %5643 = vmatprep.subr.bf16.mxu0 %v6808_v46  ;;  %v1182_v56 = vunpack.c.h.s8.bf16 %v7093_v15  ;;  %v6137_v33 = vmul.f32 %v10364_v19, %v6051_v45  ;;  %v7095_v45 = vld [vmem:[%s11415_s1 + $0x798] sm:$0xff] }
 0x231   :  { %v5992_v26 = vadd.f32 %v10350_v44, %v5906_v3  ;;  %v5909_v25 = vmul.f32 %v10325_v58, %v4802_v62  ;;  %v4804_v0 = vadd.f32 %v4803_v39, %v10230_v27  ;;  %v10570_v5 = vpop.f32.mrf.mxu1  ;;  %5600 = vmatprep.mubr.bf16.mxu1 %v11793_v42  ;;  %v6055_v53 = vmax.f32 %v5991_v6, 0.0  ;;  %v7094_v27 = vld [vmem:[%s11415_s1 + $0x790] sm:$0xff] }
 0x232   :  { %11792 = vst [vmem:[#allocation124_spill] sm:$0xff] %v10565_v2  ;;  %v6138_v12 = vmul.f32 %v10378_v22, %v6052_v4  ;;  %v4805_v3 = vpop.f32.mrf.mxu0  ;;  %v1176_v62 = vunpack.c.h.s8.bf16 %v7094_v27  ;;  %v1178_v42 = vunpack.c.h.s8.bf16 %v7095_v45  ;;  %v6803_v15 = vcombine.low %v1184_v40, %v1186_v61 }
 0x233   :  { %v6056_v39 = vmax.f32 %v5992_v26, 0.0  ;;  %v5995_v46 = vadd.f32 %v10329_v38, %v5909_v25  ;;  %v5910_v48 = vmul.f32 %v10333_v47, %v4804_v0  ;;  %v10583_v36 = vpop.f32.mrf.mxu1  ;;  %v4806_v6 = vadd.f32 %v4805_v3, %v10245_v35  ;;  %5644 = vmatpush2.bf16.msra.mxu0 %v6807_v43  ;;  %v11796_v3 = vld [vmem:[#allocation80_spill] sm:$0xff] }
 0x234   :  { %11794 = vst [vmem:[#allocation23_spill] sm:$0xff] %v10583_v36  ;;  %v4807_v4 = vpop.f32.mrf.mxu0  ;;  %v10589_v2 = vadd.f32 %v6138_v12, %v6137_v33  ;;  %5645 = vmatprep.subr.bf16.mxu0 %v6804_v20  ;;  %v6800_v0 = vcombine.high %v1180_v17, %v1182_v56  ;;  %v6141_v36 = vmul.f32 %v10364_v19, %v6055_v53  ;;  %v11797_v20 = vld [vmem:[#allocation111_spill] sm:$0xff] }
 0x235   :  { %v5996_v26 = vadd.f32 %v10350_v44, %v5910_v48  ;;  %v4808_v25 = vadd.f32 %v4807_v4, %v10249_v28  ;;  %v10593_v27 = vpop.f32.mrf.mxu1  ;;  %v6142_v49 = vmul.f32 %v10378_v22, %v6056_v39  ;;  %v6059_v45 = vmax.f32 %v5995_v46, 0.0  ;;  %v11798_v48 = vld [vmem:[#allocation82_spill] sm:$0xff] }
 0x236   :  { %11795 = vst [vmem:[#allocation5_spill] sm:$0xff] %v10589_v2  ;;  %v5913_v35 = vmul.f32 %v10325_v58, %v4806_v6  ;;  %v4811_v43 = vpop.f32.mrf.mxu0  ;;  %5488 = vmatmul.mubr.bf16.gmra.mxu0 %v11796_v3  ;;  %v6799_v40 = vcombine.low %v1180_v17, %v1182_v56  ;;  %v6796_v39 = vcombine.high %v1176_v62, %v1178_v42  ;;  %v11799_v6 = vld [vmem:[#allocation113_spill] sm:$0xff]  ;;  %v7096_v17 = vld [vmem:[%s11415_s1 + $0x780] sm:$0xff] }
 0x237   :  { %v6060_v61 = vmax.f32 %v5996_v26, 0.0  ;;  %v5914_v33 = vmul.f32 %v10333_v47, %v4808_v25  ;;  %v4812_v28 = vadd.f32 %v4811_v43, %v10262_v31  ;;  %v10601_v12 = vpop.f32.mrf.mxu1  ;;  %5601 = vmatmul.mubr.bf16.gmra.mxu1 %v11797_v20  ;;  %5497 = vmatprep.mubr.bf16.mxu0 %v11798_v48  ;;  %v1172_v56 = vunpack.c.h.s8.bf16 %v7096_v17  ;;  %v7097_v31 = vld [vmem:[%s11415_s1 + $0x788] sm:$0xff] }
 0x238   :  { %v5999_v53 = vadd.f32 %v10329_v38, %v5913_v35  ;;  %5646 = vmatpush2.bf16.msra.mxu0 %v6803_v15  ;;  %v4813_v46 = vpop.f32.mrf.mxu0  ;;  %5610 = vmatprep.mubr.bf16.mxu1 %v11799_v6  ;;  %v1174_v4 = vunpack.c.h.s8.bf16 %v7097_v31  ;;  %v10613_v26 = vadd.f32 %v6142_v49, %v6141_v36  ;;  %v6145_v20 = vmul.f32 %v10364_v19, %v6059_v45 }
 0x239   :  { %v6146_v25 = vmul.f32 %v10378_v22, %v6060_v61  ;;  %v6000_v35 = vadd.f32 %v10350_v44, %v5914_v33  ;;  %v5917_v15 = vmul.f32 %v10325_v58, %v4812_v28  ;;  %v4814_v43 = vadd.f32 %v4813_v46, %v10270_v57  ;;  %v10619_v3 = vpop.f32.mrf.mxu1  ;;  %5647 = vmatprep.subr.bf16.mxu0 %v6800_v0 }
 0x23a   :  { %11800 = vst [vmem:[#allocation25_spill] sm:$0xff] %v10613_v26  ;;  %v6063_v48 = vmax.f32 %v5999_v53, 0.0  ;;  %v4815_v6 = vpop.f32.mrf.mxu0  ;;  %v6795_v28 = vcombine.low %v1176_v62, %v1178_v42 }
 0x23b   :  { %v6064_v17 = vmax.f32 %v6000_v35, 0.0  ;;  %v6003_v31 = vadd.f32 %v10329_v38, %v5917_v15  ;;  %v5918_v49 = vmul.f32 %v10333_v47, %v4814_v43  ;;  %v4816_v36 = vadd.f32 %v4815_v6, %v10282_v34  ;;  %v10625_v61 = vpop.f32.mrf.mxu1  ;;  %v11802_v6 = vld [vmem:[#allocation84_spill] sm:$0xff] }
 0x23c   :  { %5648 = vmatpush2.bf16.msra.mxu0 %v6799_v40  ;;  %v4817_v33 = vpop.f32.mrf.mxu0  ;;  %v10627_v57 = vadd.f32 %v6146_v25, %v6145_v20  ;;  %v6792_v35 = vcombine.high %v1172_v56, %v1174_v4  ;;  %v6149_v15 = vmul.f32 %v10364_v19, %v6063_v48 }
 0x23d   :  { %v6004_v0 = vadd.f32 %v10350_v44, %v5918_v49  ;;  %v5921_v45 = vmul.f32 %v10325_v58, %v4816_v36  ;;  %v4818_v53 = vadd.f32 %v4817_v33, %v10288_v51  ;;  %v10632_v46 = vpop.f32.mrf.mxu1  ;;  %5649 = vmatprep.subr.bf16.mxu0 %v6796_v39  ;;  %v6067_v34 = vmax.f32 %v6003_v31, 0.0  ;;  %v11803_v51 = vld [vmem:[#allocation115_spill] sm:$0xff]  ;;  %v11804_v49 = vld [vmem:[#allocation86_spill] sm:$0xff] }
 0x23e   :  { %11801 = vst [vmem:[#allocation6_spill] sm:$0xff] %v10627_v57  ;;  %v4821_v43 = vpop.f32.mrf.mxu0  ;;  %5498 = vmatmul.mubr.bf16.gmra.mxu0 %v11802_v6  ;;  %v6150_v62 = vmul.f32 %v10378_v22, %v6064_v17  ;;  %v6791_v31 = vcombine.low %v1172_v56, %v1174_v4 }
 0x23f   :  { %v6068_v42 = vmax.f32 %v6004_v0, 0.0  ;;  %v6007_v40 = vadd.f32 %v10329_v38, %v5921_v45  ;;  %v5922_v25 = vmul.f32 %v10333_v47, %v4818_v53  ;;  %v10639_v20 = vpop.f32.mrf.mxu1  ;;  %5611 = vmatmul.mubr.bf16.gmra.mxu1 %v11803_v51  ;;  %5653 = vmatprep.mubr.bf16.mxu0 %v11804_v49  ;;  %v4822_v39 = vadd.f32 %v4821_v43, %v10298_v24 }
 0x240   :  { %5650 = vmatpush2.bf16.msra.mxu0 %v6795_v28  ;;  %v4823_v48 = vpop.f32.mrf.mxu0  ;;  %5766 = vmatprep.mubr.bf16.mxu1 %v11677_v29  ;;  %v10645_v36 = vadd.f32 %v6150_v62, %v6149_v15  ;;  %v6153_v53 = vmul.f32 %v10364_v19, %v6067_v34 }
 0x241   :  { %v6154_v17 = vmul.f32 %v10378_v22, %v6068_v42  ;;  %v6008_v33 = vadd.f32 %v10350_v44, %v5922_v25  ;;  %v4824_v0 = vadd.f32 %v4823_v48, %v10310_v9  ;;  %v10650_v45 = vpop.f32.mrf.mxu1  ;;  %5651 = vmatprep.subr.bf16.mxu0 %v6792_v35  ;;  %v6071_v6 = vmax.f32 %v6007_v40, 0.0 }
 0x242   :  { %11805 = vst [vmem:[#allocation27_spill] sm:$0xff] %v10645_v36  ;;  %v5925_v24 = vmul.f32 %v10325_v58, %v4822_v39  ;;  %v4825_v28 = vpop.f32.mrf.mxu0 }
 0x243   :  { %v6072_v56 = vmax.f32 %v6008_v33, 0.0  ;;  %v5926_v4 = vmul.f32 %v10333_v47, %v4824_v0  ;;  %v4826_v15 = vadd.f32 %v4825_v28, %v10322_v63  ;;  %v10656_v43 = vpop.f32.mrf.mxu1  ;;  %v10659_v42 = vadd.f32 %v6154_v17, %v6153_v53  ;;  %v11807_v53 = vld [vmem:[#allocation88_spill] sm:$0xff]  ;;  %v11809_v28 = vld [vmem:[#allocation90_spill] sm:$0xff] }
 0x244   :  { %v6011_v62 = vadd.f32 %v10329_v38, %v5925_v24  ;;  %5652 = vmatpush2.bf16.msra.mxu0 %v6791_v31  ;;  %v4827_v9 = vpop.f32.mrf.mxu0  ;;  %v6157_v63 = vmul.f32 %v10364_v19, %v6071_v6 }
 0x245   :  { %11806 = vst [vmem:[#allocation7_spill] sm:$0xff] %v10659_v42  ;;  %v6012_v35 = vadd.f32 %v10350_v44, %v5926_v4  ;;  %v5929_v34 = vmul.f32 %v10325_v58, %v4826_v15  ;;  %v4828_v40 = vadd.f32 %v4827_v9, %v10335_v55  ;;  %v10664_v25 = vpop.f32.mrf.mxu1  ;;  %v6158_v51 = vmul.f32 %v10378_v22, %v6072_v56  ;;  %v11808_v58 = vld [vmem:[#allocation121_spill] sm:$0xff] }
 0x246   :  { %v6075_v49 = vmax.f32 %v6011_v62, 0.0  ;;  %v4977_v39 = vpop.f32.mrf.mxu0 }
 0x247   :  { %v6076_v48 = vmax.f32 %v6012_v35, 0.0  ;;  %v6015_v31 = vadd.f32 %v10329_v38, %v5929_v34  ;;  %v5930_v17 = vmul.f32 %v10333_v47, %v4828_v40  ;;  %v4978_v33 = vadd.f32 %v4977_v39, %v10338_v21  ;;  %v5090_v0 = vpop.f32.mrf.mxu1  ;;  %5654 = vmatmul.mubr.bf16.vlgmr.msra.gmra.mxu0 %v11807_v53  ;;  %6835 = vmatmul.mubr.msk.bf16.vlgmr.msra.gmra.mxu1 %vm3775_vm1, %v11808_v58  ;;  %v11814_v58 = vld [vmem:[#allocation94_spill] sm:$0xff] }
 0x248   :  { %v6161_v55 = vmul.f32 %v10364_v19, %v6075_v49  ;;  %v4979_v24 = vpop.f32.mrf.mxu0  ;;  %5663 = vmatprep.mubr.bf16.mxu0 %v11809_v28  ;;  %5776 = vmatprep.mubr.bf16.mxu1 %v11677_v29  ;;  %v10677_v6 = vadd.f32 %v6158_v51, %v6157_v63 }
 0x249   :  { %v6162_v38 = vmul.f32 %v10378_v22, %v6076_v48  ;;  %v6079_v47 = vmax.f32 %v6015_v31, 0.0  ;;  %v6016_v21 = vadd.f32 %v10350_v44, %v5930_v17  ;;  %v10681_v56 = vadd.f32 %v5090_v0, %v4978_v33  ;;  %v5092_v4 = vpop.f32.mrf.mxu1  ;;  %v11812_v0 = vld [vmem:[#allocation92_spill] sm:$0xff] }
 0x24a   :  { %11810 = vst [vmem:[#allocation29_spill] sm:$0xff] %v10677_v6  ;;  %v4980_v15 = vadd.f32 %v4979_v24, %v10352_v50  ;;  %v4981_v62 = vpop.f32.mrf.mxu0 }
 0x24b   :  { %v6080_v9 = vmax.f32 %v6016_v21, 0.0  ;;  %v4982_v35 = vadd.f32 %v4981_v62, %v10362_v13  ;;  %v5094_v34 = vpop.f32.mrf.mxu1  ;;  %v10685_v40 = vadd.f32 %v6162_v38, %v6161_v55  ;;  %v6165_v63 = vmul.f32 %v10364_v19, %v6079_v47  ;;  %v11816_v38 = vld [vmem:[#allocation119_spill] sm:$0xff] }
 0x24c   :  { %v10687_v49 = vadd.f32 %v5092_v4, %v4980_v15  ;;  %v4983_v51 = vpop.f32.mrf.mxu0 }
 0x24d   :  { %11811 = vst [vmem:[#allocation8_spill] sm:$0xff] %v10685_v40  ;;  %v10690_v39 = vadd.f32 %v5094_v34, %v4982_v35  ;;  %v4984_v44 = vadd.f32 %v4983_v51, %v10375_v7  ;;  %v5096_v48 = vpop.f32.mrf.mxu1  ;;  %v6166_v31 = vmul.f32 %v10378_v22, %v6080_v9  ;;  %v11815_v22 = vld [vmem:[#allocation118_spill] sm:$0xff] }
 0x24e   :  { %v4987_v50 = vpop.f32.mrf.mxu0 }
 0x24f   :  { %v10694_v17 = vadd.f32 %v5096_v48, %v4984_v44  ;;  %v4988_v13 = vadd.f32 %v4987_v50, %v10390_v32  ;;  %v5100_v33 = vpop.f32.mrf.mxu1  ;;  %5664 = vmatmul.mubr.bf16.gmra.mxu0 %v11812_v0  ;;  %6836 = vmatmul.mubr.msk.bf16.gmra.mxu1 %vm3775_vm1, %v9333_v37  ;;  %v10700_v53 = vadd.f32 %v6166_v31, %v6165_v63  ;;  %v11817_v63 = vld [vmem:[#allocation96_spill] sm:$0xff]  ;;  %v11818_v44 = vld [vmem:[#allocation125_spill] sm:$0xff]  ;;  %v11819_v31 = vld [vmem:[#allocation98_spill] sm:$0xff] }
 0x250   :  { %v4989_v19 = vpop.f32.mrf.mxu0  ;;  %5673 = vmatprep.mubr.bf16.mxu0 %v11814_v58  ;;  %5786 = vmatprep.mubr.bf16.mxu1 %v11677_v29 }
 0x251   :  { %11813 = vst [vmem:[#allocation31_spill] sm:$0xff] %v10700_v53  ;;  %v10704_v7 = vadd.f32 %v5100_v33, %v4988_v13  ;;  %v4990_v55 = vadd.f32 %v4989_v19, %v11815_v22  ;;  %v5102_v24 = vpop.f32.mrf.mxu1 }
 0x252   :  { %v4991_v28 = vpop.f32.mrf.mxu0 }
 0x253   :  { %v10707_v32 = vadd.f32 %v5102_v24, %v4990_v55  ;;  %v4992_v47 = vadd.f32 %v4991_v28, %v11816_v38  ;;  %v5104_v21 = vpop.f32.mrf.mxu1 }
 0x254   :  { %v4993_v4 = vpop.f32.mrf.mxu0 }
 0x255   :  { %v10710_v37 = vadd.f32 %v5104_v21, %v4992_v47  ;;  %v4994_v15 = vadd.f32 %v4993_v4, %v10418_v14  ;;  %v5106_v62 = vpop.f32.mrf.mxu1  ;;  %v11821_v4 = vld [vmem:[#allocation126_spill] sm:$0xff] }
 0x256   :  { %v4997_v9 = vpop.f32.mrf.mxu0 }
 0x257   :  { %v10713_v35 = vadd.f32 %v5106_v62, %v4994_v15  ;;  %v4998_v34 = vadd.f32 %v4997_v9, %v10425_v30  ;;  %v5110_v51 = vpop.f32.mrf.mxu1  ;;  %5674 = vmatmul.mubr.bf16.gmra.mxu0 %v11817_v63  ;;  %6837 = vmatmul.mubr.msk.bf16.gmra.mxu1 %vm3775_vm1, %v11818_v44 }
 0x258   :  { %v4999_v48 = vpop.f32.mrf.mxu0  ;;  %5683 = vmatprep.mubr.bf16.mxu0 %v11819_v31  ;;  %5796 = vmatprep.mubr.bf16.mxu1 %v11677_v29 }
 0x259   :  { %v10721_v50 = vadd.f32 %v5110_v51, %v4998_v34  ;;  %v5000_v14 = vadd.f32 %v4999_v48, %v10441_v10  ;;  %v5112_v13 = vpop.f32.mrf.mxu1  ;;  %v11820_v10 = vld [vmem:[#allocation100_spill] sm:$0xff] }
 0x25a   :  { %v5001_v33 = vpop.f32.mrf.mxu0 }
 0x25b   :  { %v10724_v0 = vadd.f32 %v5112_v13, %v5000_v14  ;;  %v5002_v30 = vadd.f32 %v5001_v33, %v10449_v52  ;;  %v5114_v19 = vpop.f32.mrf.mxu1  ;;  %v11822_v52 = vld [vmem:[#allocation102_spill] sm:$0xff] }
 0x25c   :  { %v5003_v58 = vpop.f32.mrf.mxu0 }
 0x25d   :  { %v10727_v22 = vadd.f32 %v5114_v19, %v5002_v30  ;;  %v5004_v55 = vadd.f32 %v5003_v58, %v10462_v18  ;;  %v5116_v24 = vpop.f32.mrf.mxu1  ;;  %v11824_v58 = vld [vmem:[#allocation127_spill] sm:$0xff] }
 0x25e   :  { %v5007_v28 = vpop.f32.mrf.mxu0 }
 0x25f   :  { %v10730_v38 = vadd.f32 %v5116_v24, %v5004_v55  ;;  %v5008_v47 = vadd.f32 %v5007_v28, %v10472_v11  ;;  %v5120_v21 = vpop.f32.mrf.mxu1  ;;  %5684 = vmatmul.mubr.bf16.gmra.mxu0 %v11820_v10  ;;  %6838 = vmatmul.mubr.msk.bf16.gmra.mxu1 %vm3775_vm1, %v11821_v4 }
 0x260   :  { %v5009_v15 = vpop.f32.mrf.mxu0  ;;  %5693 = vmatprep.mubr.bf16.mxu0 %v11822_v52  ;;  %5806 = vmatprep.mubr.bf16.mxu1 %v11677_v29 }
 0x261   :  { %v10738_v62 = vadd.f32 %v5120_v21, %v5008_v47  ;;  %v5010_v18 = vadd.f32 %v5009_v15, %v10485_v16  ;;  %v5122_v9 = vpop.f32.mrf.mxu1  ;;  %v11823_v16 = vld [vmem:[#allocation104_spill] sm:$0xff] }
 0x262   :  { %v5011_v34 = vpop.f32.mrf.mxu0 }
 0x263   :  { %v10741_v51 = vadd.f32 %v5122_v9, %v5010_v18  ;;  %v5012_v11 = vadd.f32 %v5011_v34, %v10492_v23  ;;  %v5124_v63 = vpop.f32.mrf.mxu1  ;;  %v11825_v23 = vld [vmem:[#allocation106_spill] sm:$0xff] }
 0x264   :  { %v5013_v44 = vpop.f32.mrf.mxu0 }
 0x265   :  { %v10744_v48 = vadd.f32 %v5124_v63, %v5012_v11  ;;  %v5014_v31 = vadd.f32 %v5013_v44, %v10506_v41  ;;  %v5126_v14 = vpop.f32.mrf.mxu1  ;;  %v11827_v44 = vld [vmem:[#allocation128_spill] sm:$0xff] }
 0x266   :  { %v5017_v13 = vpop.f32.mrf.mxu0 }
 0x267   :  { %v10747_v33 = vadd.f32 %v5126_v14, %v5014_v31  ;;  %v5018_v30 = vadd.f32 %v5017_v13, %v10514_v59  ;;  %v5130_v19 = vpop.f32.mrf.mxu1  ;;  %5694 = vmatmul.mubr.bf16.gmra.mxu0 %v11823_v16  ;;  %6839 = vmatmul.mubr.msk.bf16.gmra.mxu1 %vm3775_vm1, %v11824_v58 }
 0x268   :  { %v5019_v55 = vpop.f32.mrf.mxu0  ;;  %5703 = vmatprep.mubr.bf16.mxu0 %v11825_v23  ;;  %5816 = vmatprep.mubr.bf16.mxu1 %v11677_v29 }
 0x269   :  { %v10755_v24 = vadd.f32 %v5130_v19, %v5018_v30  ;;  %v5020_v41 = vadd.f32 %v5019_v55, %v10526_v60  ;;  %v5132_v28 = vpop.f32.mrf.mxu1  ;;  %v11826_v60 = vld [vmem:[#allocation108_spill] sm:$0xff] }
 0x26a   :  { %v5021_v47 = vpop.f32.mrf.mxu0 }
 0x26b   :  { %v10758_v21 = vadd.f32 %v5132_v28, %v5020_v41  ;;  %v5022_v59 = vadd.f32 %v5021_v47, %v10536_v8  ;;  %v5134_v10 = vpop.f32.mrf.mxu1  ;;  %v11828_v8 = vld [vmem:[#allocation110_spill] sm:$0xff] }
 0x26c   :  { %v5023_v4 = vpop.f32.mrf.mxu0 }
 0x26d   :  { %v10761_v15 = vadd.f32 %v5134_v10, %v5022_v59  ;;  %v5024_v52 = vadd.f32 %v5023_v4, %v10549_v54  ;;  %v5136_v18 = vpop.f32.mrf.mxu1 }
 0x26e   :  { %v5027_v9 = vpop.f32.mrf.mxu0 }
 0x26f   :  { %v10764_v34 = vadd.f32 %v5136_v18, %v5024_v52  ;;  %v5028_v11 = vadd.f32 %v5027_v9, %v10558_v1  ;;  %v5140_v63 = vpop.f32.mrf.mxu1  ;;  %5704 = vmatmul.mubr.bf16.gmra.mxu0 %v11826_v60  ;;  %6840 = vmatmul.mubr.msk.bf16.gmra.mxu1 %vm3775_vm1, %v11827_v44  ;;  %v11829_v1 = vld [vmem:[#allocation23_spill] sm:$0xff]  ;;  %v11831_v52 = vld [vmem:[#allocation129_spill] sm:$0xff]  ;;  %v11832_v9 = vld [vmem:[#allocation114_spill] sm:$0xff] }
 0x270   :  { %v5029_v31 = vpop.f32.mrf.mxu0  ;;  %5713 = vmatprep.mubr.bf16.mxu0 %v11828_v8  ;;  %5826 = vmatprep.mubr.bf16.mxu1 %v11677_v29 }
 0x271   :  { %v10772_v14 = vadd.f32 %v5140_v63, %v5028_v11  ;;  %v5030_v54 = vadd.f32 %v5029_v31, %v10570_v5  ;;  %v5142_v13 = vpop.f32.mrf.mxu1  ;;  %v11830_v5 = vld [vmem:[#allocation112_spill] sm:$0xff] }
 0x272   :  { %v5031_v30 = vpop.f32.mrf.mxu0 }
 0x273   :  { %v10775_v19 = vadd.f32 %v5142_v13, %v5030_v54  ;;  %v5032_v16 = vadd.f32 %v5031_v30, %v11829_v1  ;;  %v5144_v58 = vpop.f32.mrf.mxu1 }
 0x274   :  { %v5033_v55 = vpop.f32.mrf.mxu0 }
 0x275   :  { %v10778_v23 = vadd.f32 %v5144_v58, %v5032_v16  ;;  %v5034_v41 = vadd.f32 %v5033_v55, %v10593_v27  ;;  %v5146_v28 = vpop.f32.mrf.mxu1  ;;  %v11834_v55 = vld [vmem:[#allocation17_spill] sm:$0xff] }
 0x276   :  { %v5037_v47 = vpop.f32.mrf.mxu0 }
 0x277   :  { %v10781_v59 = vadd.f32 %v5146_v28, %v5034_v41  ;;  %v5038_v10 = vadd.f32 %v5037_v47, %v10601_v12  ;;  %v5150_v4 = vpop.f32.mrf.mxu1  ;;  %5714 = vmatmul.mubr.bf16.gmra.mxu0 %v11830_v5  ;;  %6841 = vmatmul.mubr.msk.bf16.gmra.mxu1 %vm3775_vm1, %v11831_v52 }
 0x278   :  { %v5039_v18 = vpop.f32.mrf.mxu0  ;;  %5723 = vmatprep.mubr.bf16.mxu0 %v11832_v9  ;;  %5836 = vmatprep.mubr.bf16.mxu1 %v11677_v29 }
 0x279   :  { %v10789_v11 = vadd.f32 %v5150_v4, %v5038_v10  ;;  %v5040_v27 = vadd.f32 %v5039_v18, %v10619_v3  ;;  %v5152_v63 = vpop.f32.mrf.mxu1  ;;  %v11833_v3 = vld [vmem:[#allocation116_spill] sm:$0xff] }
 0x27a   :  { %v5041_v60 = vpop.f32.mrf.mxu0 }
 0x27b   :  { %v10792_v44 = vadd.f32 %v5152_v63, %v5040_v27  ;;  %v5042_v12 = vadd.f32 %v5041_v60, %v10625_v61  ;;  %v5154_v31 = vpop.f32.mrf.mxu1 }
 0x27c   :  { %v5043_v8 = vpop.f32.mrf.mxu0 }
 0x27d   :  { %v10795_v54 = vadd.f32 %v5154_v31, %v5042_v12  ;;  %v5044_v13 = vadd.f32 %v5043_v8, %v10632_v46  ;;  %v5156_v30 = vpop.f32.mrf.mxu1 }
 0x27e   :  { %v5047_v1 = vpop.f32.mrf.mxu0 }
 0x27f   :  { %v10798_v16 = vadd.f32 %v5156_v30, %v5044_v13  ;;  %v5048_v29 = vadd.f32 %v5047_v1, %v10639_v20  ;;  %v5160_v58 = vpop.f32.mrf.mxu1  ;;  %5724 = vmatmul.mubr.bf16.gmra.mxu0 %v11833_v3  ;;  %6842 = vmatmul.mubr.msk.bf16.gmra.mxu1 %vm3775_vm1, %v11834_v55 }
 0x280   :  { %v5049_v41 = vpop.f32.mrf.mxu0 }
 0x281   :  { %v10804_v61 = vadd.f32 %v5160_v58, %v5048_v29  ;;  %v5050_v28 = vadd.f32 %v5049_v41, %v10650_v45  ;;  %v5162_v47 = vpop.f32.mrf.mxu1 }
 0x282   :  { %v5051_v10 = vpop.f32.mrf.mxu0 }
 0x283   :  { %v10807_v46 = vadd.f32 %v5162_v47, %v5050_v28  ;;  %v5052_v4 = vadd.f32 %v5051_v10, %v10656_v43  ;;  %v5164_v5 = vpop.f32.mrf.mxu1 }
 0x284   :  { %v5053_v52 = vpop.f32.mrf.mxu0 }
 0x285   :  { %v10810_v20 = vadd.f32 %v5164_v5, %v5052_v4  ;;  %v5054_v18 = vadd.f32 %v5053_v52, %v10664_v25  ;;  %v5166_v9 = vpop.f32.mrf.mxu1 }
 0x286   :  { %v5203_v27 = vpop.f32.mrf.mxu0 }
 0x287   :  { %v10813_v63 = vadd.f32 %v5166_v9, %v5054_v18  ;;  %v5204_v60 = vadd.f32 %v5203_v27, %v10681_v56  ;;  %v5316_v12 = vpop.f32.mrf.mxu1 }
 0x288   :  { %v5205_v45 = vpop.f32.mrf.mxu0 }
 0x289   :  { %v10816_v31 = vadd.f32 %v5316_v12, %v5204_v60  ;;  %v5206_v8 = vadd.f32 %v5205_v45, %v10687_v49  ;;  %v5318_v13 = vpop.f32.mrf.mxu1 }
 0x28a   :  { %v5207_v43 = vpop.f32.mrf.mxu0 }
 0x28b   :  { %v10819_v30 = vadd.f32 %v5318_v13, %v5206_v8  ;;  %v5208_v1 = vadd.f32 %v5207_v43, %v10690_v39  ;;  %v5320_v29 = vpop.f32.mrf.mxu1 }
 0x28c   :  { %v5209_v25 = vpop.f32.mrf.mxu0 }
 0x28d   :  { %v10822_v58 = vadd.f32 %v5320_v29, %v5208_v1  ;;  %v5210_v3 = vadd.f32 %v5209_v25, %v10694_v17  ;;  %v5322_v55 = vpop.f32.mrf.mxu1 }
 0x28e   :  { %v5213_v56 = vpop.f32.mrf.mxu0 }
 0x28f   :  { %v10825_v41 = vadd.f32 %v5322_v55, %v5210_v3  ;;  %v5214_v28 = vadd.f32 %v5213_v56, %v10704_v7  ;;  %v5326_v47 = vpop.f32.mrf.mxu1 }
 0x290   :  { %v5215_v49 = vpop.f32.mrf.mxu0 }
 0x291   :  { %v10828_v10 = vadd.f32 %v5326_v47, %v5214_v28  ;;  %v5216_v4 = vadd.f32 %v5215_v49, %v10707_v32  ;;  %v5328_v5 = vpop.f32.mrf.mxu1 }
 0x292   :  { %v5217_v39 = vpop.f32.mrf.mxu0 }
 0x293   :  { %v10831_v52 = vadd.f32 %v5328_v5, %v5216_v4  ;;  %v5218_v18 = vadd.f32 %v5217_v39, %v10710_v37  ;;  %v5330_v9 = vpop.f32.mrf.mxu1 }
 0x294   :  { %v5219_v17 = vpop.f32.mrf.mxu0 }
 0x295   :  { %v10834_v27 = vadd.f32 %v5330_v9, %v5218_v18  ;;  %v5220_v60 = vadd.f32 %v5219_v17, %v10713_v35  ;;  %v5332_v12 = vpop.f32.mrf.mxu1 }
 0x296   :  { %v5223_v7 = vpop.f32.mrf.mxu0 }
 0x297   :  { %v10837_v45 = vadd.f32 %v5332_v12, %v5220_v60  ;;  %v5224_v8 = vadd.f32 %v5223_v7, %v10721_v50  ;;  %v5336_v13 = vpop.f32.mrf.mxu1 }
 0x298   :  { %v5225_v32 = vpop.f32.mrf.mxu0 }
 0x299   :  { %v10840_v43 = vadd.f32 %v5336_v13, %v5224_v8  ;;  %v5226_v1 = vadd.f32 %v5225_v32, %v10724_v0  ;;  %v5338_v29 = vpop.f32.mrf.mxu1 }
 0x29a   :  { %v5227_v37 = vpop.f32.mrf.mxu0 }
 0x29b   :  { %v10843_v25 = vadd.f32 %v5338_v29, %v5226_v1  ;;  %v5228_v3 = vadd.f32 %v5227_v37, %v10727_v22  ;;  %v5340_v55 = vpop.f32.mrf.mxu1 }
 0x29c   :  { %v5229_v35 = vpop.f32.mrf.mxu0 }
 0x29d   :  { %v10846_v56 = vadd.f32 %v5340_v55, %v5228_v3  ;;  %v5230_v28 = vadd.f32 %v5229_v35, %v10730_v38  ;;  %v5342_v47 = vpop.f32.mrf.mxu1 }
 0x29e   :  { %v5233_v50 = vpop.f32.mrf.mxu0 }
 0x29f   :  { %v10849_v49 = vadd.f32 %v5342_v47, %v5230_v28  ;;  %v5234_v4 = vadd.f32 %v5233_v50, %v10738_v62  ;;  %v5346_v5 = vpop.f32.mrf.mxu1 }
 0x2a0   :  { %v5235_v0 = vpop.f32.mrf.mxu0 }
 0x2a1   :  { %v10852_v39 = vadd.f32 %v5346_v5, %v5234_v4  ;;  %v5236_v18 = vadd.f32 %v5235_v0, %v10741_v51  ;;  %v5348_v9 = vpop.f32.mrf.mxu1 }
 0x2a2   :  { %v5237_v22 = vpop.f32.mrf.mxu0 }
 0x2a3   :  { %v10855_v17 = vadd.f32 %v5348_v9, %v5236_v18  ;;  %v5238_v60 = vadd.f32 %v5237_v22, %v10744_v48  ;;  %v5350_v12 = vpop.f32.mrf.mxu1 }
 0x2a4   :  { %v5239_v38 = vpop.f32.mrf.mxu0 }
 0x2a5   :  { %v10858_v7 = vadd.f32 %v5350_v12, %v5238_v60  ;;  %v5240_v8 = vadd.f32 %v5239_v38, %v10747_v33  ;;  %v5352_v13 = vpop.f32.mrf.mxu1 }
 0x2a6   :  { %v5243_v62 = vpop.f32.mrf.mxu0 }
 0x2a7   :  { %v10861_v32 = vadd.f32 %v5352_v13, %v5240_v8  ;;  %v5244_v1 = vadd.f32 %v5243_v62, %v10755_v24  ;;  %v5356_v29 = vpop.f32.mrf.mxu1 }
 0x2a8   :  { %v5245_v51 = vpop.f32.mrf.mxu0 }
 0x2a9   :  { %v10864_v37 = vadd.f32 %v5356_v29, %v5244_v1  ;;  %v5246_v3 = vadd.f32 %v5245_v51, %v10758_v21  ;;  %v5358_v55 = vpop.f32.mrf.mxu1 }
 0x2aa   :  { %v5247_v48 = vpop.f32.mrf.mxu0 }
 0x2ab   :  { %v10867_v35 = vadd.f32 %v5358_v55, %v5246_v3  ;;  %v5248_v28 = vadd.f32 %v5247_v48, %v10761_v15  ;;  %v5360_v47 = vpop.f32.mrf.mxu1 }
 0x2ac   :  { %v5249_v33 = vpop.f32.mrf.mxu0 }
 0x2ad   :  { %v10870_v50 = vadd.f32 %v5360_v47, %v5248_v28  ;;  %v5250_v4 = vadd.f32 %v5249_v33, %v10764_v34  ;;  %v5362_v5 = vpop.f32.mrf.mxu1 }
 0x2ae   :  { %v5253_v24 = vpop.f32.mrf.mxu0 }
 0x2af   :  { %11835 = vst [vmem:[#allocation9_spill] sm:$0xff] %v10870_v50  ;;  %v10873_v0 = vadd.f32 %v5362_v5, %v5250_v4  ;;  %v5254_v18 = vadd.f32 %v5253_v24, %v10772_v14  ;;  %v5366_v9 = vpop.f32.mrf.mxu1 }
 0x2b0   :  { %v5255_v21 = vpop.f32.mrf.mxu0 }
 0x2b1   :  { %11836 = vst [vmem:[#allocation33_spill] sm:$0xff] %v10873_v0  ;;  %v10876_v22 = vadd.f32 %v5366_v9, %v5254_v18  ;;  %v5256_v60 = vadd.f32 %v5255_v21, %v10775_v19  ;;  %v5368_v12 = vpop.f32.mrf.mxu1 }
 0x2b2   :  { %v5257_v15 = vpop.f32.mrf.mxu0 }
 0x2b3   :  { %11837 = vst [vmem:[#allocation10_spill] sm:$0xff] %v10876_v22  ;;  %v10879_v38 = vadd.f32 %v5368_v12, %v5256_v60  ;;  %v5258_v8 = vadd.f32 %v5257_v15, %v10778_v23  ;;  %v5370_v13 = vpop.f32.mrf.mxu1 }
 0x2b4   :  { %v5259_v34 = vpop.f32.mrf.mxu0 }
 0x2b5   :  { %11838 = vst [vmem:[#allocation35_spill] sm:$0xff] %v10879_v38  ;;  %v10882_v62 = vadd.f32 %v5370_v13, %v5258_v8  ;;  %v5260_v1 = vadd.f32 %v5259_v34, %v10781_v59  ;;  %v5372_v29 = vpop.f32.mrf.mxu1 }
 0x2b6   :  { %v5263_v14 = vpop.f32.mrf.mxu0 }
 0x2b7   :  { %11839 = vst [vmem:[#allocation11_spill] sm:$0xff] %v10882_v62  ;;  %v10885_v51 = vadd.f32 %v5372_v29, %v5260_v1  ;;  %v5264_v3 = vadd.f32 %v5263_v14, %v10789_v11  ;;  %v5376_v55 = vpop.f32.mrf.mxu1 }
 0x2b8   :  { %v5265_v19 = vpop.f32.mrf.mxu0 }
 0x2b9   :  { %11840 = vst [vmem:[#allocation37_spill] sm:$0xff] %v10885_v51  ;;  %v10888_v48 = vadd.f32 %v5376_v55, %v5264_v3  ;;  %v5266_v28 = vadd.f32 %v5265_v19, %v10792_v44  ;;  %v5378_v47 = vpop.f32.mrf.mxu1 }
 0x2ba   :  { %v5267_v23 = vpop.f32.mrf.mxu0 }
 0x2bb   :  { %11841 = vst [vmem:[#allocation12_spill] sm:$0xff] %v10888_v48  ;;  %v10891_v33 = vadd.f32 %v5378_v47, %v5266_v28  ;;  %v5268_v4 = vadd.f32 %v5267_v23, %v10795_v54  ;;  %v5380_v5 = vpop.f32.mrf.mxu1 }
 0x2bc   :  { %v5269_v59 = vpop.f32.mrf.mxu0 }
 0x2bd   :  { %11842 = vst [vmem:[#allocation39_spill] sm:$0xff] %v10891_v33  ;;  %v10894_v24 = vadd.f32 %v5380_v5, %v5268_v4  ;;  %v5270_v18 = vadd.f32 %v5269_v59, %v10798_v16  ;;  %v5382_v9 = vpop.f32.mrf.mxu1 }
 0x2be   :  { %v5273_v11 = vpop.f32.mrf.mxu0 }
 0x2bf   :  { %11843 = vst [vmem:[#allocation13_spill] sm:$0xff] %v10894_v24  ;;  %v10897_v21 = vadd.f32 %v5382_v9, %v5270_v18  ;;  %v5274_v60 = vadd.f32 %v5273_v11, %v10804_v61  ;;  %v5386_v12 = vpop.f32.mrf.mxu1 }
 0x2c0   :  { %v5275_v44 = vpop.f32.mrf.mxu0 }
 0x2c1   :  { %11844 = vst [vmem:[#allocation41_spill] sm:$0xff] %v10897_v21  ;;  %v10900_v15 = vadd.f32 %v5386_v12, %v5274_v60  ;;  %v5276_v8 = vadd.f32 %v5275_v44, %v10807_v46  ;;  %v5388_v13 = vpop.f32.mrf.mxu1 }
 0x2c2   :  { %v5277_v54 = vpop.f32.mrf.mxu0 }
 0x2c3   :  { %11845 = vst [vmem:[#allocation14_spill] sm:$0xff] %v10900_v15  ;;  %v10903_v34 = vadd.f32 %v5388_v13, %v5276_v8  ;;  %v5278_v1 = vadd.f32 %v5277_v54, %v10810_v20  ;;  %v5390_v29 = vpop.f32.mrf.mxu1  ;;  %v11_v13 = vstv %s11420_s5 }
 0x2c4   :  { %v5279_v16 = vpop.f32.mrf.mxu0  ;;  %12 = vst [vmem:[#allocation2] sm:$0x1] %v11_v13 }
 0x2c5   :  { %11846 = vst [vmem:[#allocation43_spill] sm:$0xff] %v10903_v34  ;;  %v10906_v14 = vadd.f32 %v5390_v29, %v5278_v1  ;;  %v5280_v3 = vadd.f32 %v5279_v16, %v10813_v63  ;;  %v5392_v55 = vpop.f32.mrf.mxu1 }
 0x2c6   :  { %v10909_v61 = vpop.f32.mrf.mxu0 }
 0x2c7   :  { %11847 = vst [vmem:[#allocation15_spill] sm:$0xff] %v10906_v14  ;;  %v10911_v19 = vadd.f32 %v5392_v55, %v5280_v3  ;;  %v10913_v28 = vpop.f32.mrf.mxu1 }
 0x2c8   :  { %v10915_v46 = vpop.f32.mrf.mxu0 }
 0x2c9   :  { %11848 = vst [vmem:[#allocation45_spill] sm:$0xff] %v10911_v19  ;;  %v10917_v47 = vpop.f32.mrf.mxu1 }
 0x2ca   :  { %v10919_v23 = vpop.f32.mrf.mxu0 }
 0x2cb   :  { %v10921_v20 = vpop.f32.mrf.mxu1 }
 0x2cc   :  { %v10923_v4 = vpop.f32.mrf.mxu0 }
 0x2cd   :  { %v10925_v5 = vpop.f32.mrf.mxu1 }
 0x2ce   :  { %v10927_v63 = vpop.f32.mrf.mxu0 }
 0x2cf   :  { %v10929_v59 = vpop.f32.mrf.mxu1 }
 0x2d0   :  { %v10931_v18 = vpop.f32.mrf.mxu0 }
 0x2d1   :  { %v10933_v9 = vpop.f32.mrf.mxu1 }
 0x2d2   :  { %v10935_v11 = vpop.f32.mrf.mxu0 }
 0x2d3   :  { %v10937_v60 = vpop.f32.mrf.mxu1 }
 0x2d4   :  { %v10939_v12 = vpop.f32.mrf.mxu0 }
 0x2d5   :  { %v10941_v44 = vpop.f32.mrf.mxu1 }
 0x2d6   :  { %v10943_v8 = vpop.f32.mrf.mxu0 }
 0x2d7   :  { %v10948_v54 = vpop.f32.mrf.mxu1 }
 0x2d8   :  { %v10950_v1 = vpop.f32.mrf.mxu0 }
 0x2d9   :  { %v10952_v29 = vpop.f32.mrf.mxu1 }
 0x2da   :  { %v10954_v16 = vpop.f32.mrf.mxu0 }
 0x2db   :  { %v10956_v3 = vpop.f32.mrf.mxu1 }
 0x2dc   :  { %v10958_v55 = vpop.f32.mrf.mxu0 }
 0x2dd   :  { %v10960_v53 = vpop.f32.mrf.mxu1 }
 0x2de   :  { %v10962_v40 = vpop.f32.mrf.mxu0 }
 0x2df   :  { %v10964_v6 = vpop.f32.mrf.mxu1 }
 0x2e0   :  { %v10966_v42 = vpop.f32.mrf.mxu0 }
 0x2e1   :  { %v10968_v36 = vpop.f32.mrf.mxu1 }
 0x2e2   :  { %v10970_v13 = vpop.f32.mrf.mxu0 }
 0x2e3   :  { %v10972_v19 = vpop.f32.mrf.mxu1 }
 0x2e4   :  { %v10974_v57 = vpop.f32.mrf.mxu0 }
 0x2e5   :  { %v10976_v14 = vpop.f32.mrf.mxu1 }
 0x2e6   :  { %v10978_v26 = vpop.f32.mrf.mxu0 }
 0x2e7   :  { %v10980_v34 = vpop.f32.mrf.mxu1 }
 0x2e8   :  { %11849 = vst [vmem:[#allocation16_spill] sm:$0xff] %v10980_v34  ;;  %v10982_v2 = vpop.f32.mrf.mxu0 }
 0x2e9   :  { %v10984_v15 = vpop.f32.mrf.mxu1 }
 0x2ea   :  { %11850 = vst [vmem:[#allocation47_spill] sm:$0xff] %v10984_v15  ;;  %v10986_v21 = vpop.f32.mrf.mxu0 }
 0x2eb   :  { %11851 = vst [vmem:[#allocation18_spill] sm:$0xff] %v10986_v21  ;;  %v10988_v24 = vpop.f32.mrf.mxu1 }
 0x2ec   :  { %11852 = vst [vmem:[#allocation49_spill] sm:$0xff] %v10988_v24  ;;  %v10990_v33 = vpop.f32.mrf.mxu0 }
 0x2ed   :  { %11853 = vst [vmem:[#allocation20_spill] sm:$0xff] %v10990_v33  ;;  %v10992_v48 = vpop.f32.mrf.mxu1 }
 0x2ee   :  { %11854 = vst [vmem:[#allocation51_spill] sm:$0xff] %v10992_v48  ;;  %v10994_v51 = vpop.f32.mrf.mxu0 }
 0x2ef   :  { %11855 = vst [vmem:[#allocation22_spill] sm:$0xff] %v10994_v51  ;;  %v10996_v62 = vpop.f32.mrf.mxu1 }
 0x2f0   :  { %11856 = vst [vmem:[#allocation53_spill] sm:$0xff] %v10996_v62  ;;  %v10998_v38 = vpop.f32.mrf.mxu0 }
 0x2f1   :  { %11857 = vst [vmem:[#allocation24_spill] sm:$0xff] %v10998_v38  ;;  %v11000_v22 = vpop.f32.mrf.mxu1 }
 0x2f2   :  { %11858 = vst [vmem:[#allocation55_spill] sm:$0xff] %v11000_v22  ;;  %v11002_v0 = vpop.f32.mrf.mxu0 }
 0x2f3   :  { %11859 = vst [vmem:[#allocation26_spill] sm:$0xff] %v11002_v0  ;;  %v11004_v34 = vpop.f32.mrf.mxu1 }
 0x2f4   :  { %11860 = vst [vmem:[#allocation57_spill] sm:$0xff] %v11004_v34  ;;  %v11006_v15 = vpop.f32.mrf.mxu0 }
 0x2f5   :  { %11861 = vst [vmem:[#allocation28_spill] sm:$0xff] %v11006_v15  ;;  %v11008_v21 = vpop.f32.mrf.mxu1 }
 0x2f6   :  { %11862 = vst [vmem:[#allocation59_spill] sm:$0xff] %v11008_v21  ;;  %v11010_v24 = vpop.f32.mrf.mxu0 }
 0x2f7   :  { %11863 = vst [vmem:[#allocation30_spill] sm:$0xff] %v11010_v24  ;;  %v11012_v33 = vpop.f32.mrf.mxu1  ;;  %v11872_v24 = vld [vmem:[#allocation117_spill] sm:$0xff] }
 0x2f8   :  { %11864 = vst [vmem:[#allocation61_spill] sm:$0xff] %v11012_v33  ;;  %v11014_v48 = vpop.f32.mrf.mxu0  ;;  %v5859_v33 = vsub.s32 2, %v11872_v24 }
 0x2f9   :  { %v11016_v51 = vpop.f32.mrf.mxu1 }
 0x2fa   :  { %11865 = vst [vmem:[#allocation32_spill] sm:$0xff] %v11016_v51  ;;  %v11018_v62 = vpop.f32.mrf.mxu0  ;;  %v5863_v51 = vsub.s32 3, %v11872_v24 }
 0x2fb   :  { %11866 = vst [vmem:[#allocation63_spill] sm:$0xff] %v11018_v62  ;;  %v11020_v38 = vpop.f32.mrf.mxu1  ;;  %v5430_v62 = vadd.f32 %v10909_v61, %v10816_v31  ;;  %v7098_v31 = vld [vmem:[%s11417_s2] sm:$0xf] }
 0x2fc   :  { %11867 = vst [vmem:[#allocation34_spill] sm:$0xff] %v11020_v38  ;;  %v11022_v22 = vpop.f32.mrf.mxu0  ;;  %v11055_v61 = vrot.slane %v7098_v31, %v5859_v33 }
 0x2fd   :  { %v11024_v0 = vpop.f32.mrf.mxu1 }
 0x2fe   :  { %11868 = vst [vmem:[#allocation65_spill] sm:$0xff] %v11024_v0  ;;  %v11026_v34 = vpop.f32.mrf.mxu0  ;;  %v5432_v0 = vadd.f32 %v10915_v46, %v10819_v30  ;;  %v7099_v30 = vld [vmem:[%s11418_s3] sm:$0xf] }
 0x2ff   :  { %11869 = vst [vmem:[#allocation36_spill] sm:$0xff] %v11026_v34  ;;  %v11028_v15 = vpop.f32.mrf.mxu1  ;;  %v5434_v34 = vadd.f32 %v10919_v23, %v10822_v58  ;;  %v11060_v58 = vrot.slane %v7099_v30, %v5859_v33  ;;  %v11068_v23 = vrot.slane %v7098_v31, %v5863_v51  ;;  %v5452_v31 = vadd.f32 %v10950_v1, %v10843_v25 }
 0x300   :  { %11870 = vst [vmem:[#allocation67_spill] sm:$0xff] %v11028_v15  ;;  %v11030_v21 = vpop.f32.mrf.mxu0  ;;  %v5460_v25 = vadd.f32 %v10962_v40, %v10852_v39  ;;  %v5466_v40 = vadd.f32 %v10974_v57, %v10861_v32  ;;  %v5472_v57 = vadd.f32 %v10982_v2, %v10867_v35 }
 0x301   :  { %11871 = vst [vmem:[#allocation38_spill] sm:$0xff] %v11030_v21  ;;  %v11033_v50 = vpop.f32.mrf.mxu1  ;;  %v5436_v21 = vadd.f32 %v10923_v4, %v10825_v41  ;;  %v5442_v41 = vadd.f32 %v10931_v18, %v10831_v52  ;;  %v11070_v4 = vrot.slane %v7099_v30, %v5863_v51  ;;  %v7100_v52 = vld [vmem:[%s11419_s4] sm:$0xf] }
 0x302   :  { %11873 = vst [vmem:[#allocation69_spill] sm:$0xff] %v11033_v50  ;;  %v11038_v38 = vpop.f32.mrf.mxu0  ;;  %v5440_v50 = vadd.f32 %v10927_v63, %v10828_v10  ;;  %v5444_v10 = vadd.f32 %v10935_v11, %v10834_v27  ;;  %v5543_v63 = vadd.f32 %v10913_v28, %v5430_v62  ;;  %v11080_v18 = vrot.slane %v7100_v52, %v5859_v33 }
 0x303   :  { %v11044_v15 = vpop.f32.mrf.mxu1  ;;  %v5545_v27 = vadd.f32 %v10917_v47, %v5432_v0  ;;  %v5547_v11 = vadd.f32 %v10921_v20, %v5434_v34  ;;  %v11086_v30 = vrot.slane %v7100_v52, %v5863_v51  ;;  %v5456_v34 = vadd.f32 %v10958_v55, %v10849_v49 }
 0x304   :  { %11874 = vst [vmem:[#allocation40_spill] sm:$0xff] %v11044_v15  ;;  %v11050_v24 = vpop.f32.mrf.mxu0  ;;  %v5450_v15 = vadd.f32 %v10943_v8, %v10840_v43  ;;  %v5553_v43 = vadd.f32 %v10929_v59, %v5440_v50  ;;  %v5555_v8 = vadd.f32 %v10933_v9, %v5442_v41  ;;  %v5557_v0 = vadd.f32 %v10937_v60, %v5444_v10 }
 0x305   :  { %11875 = vst [vmem:[#allocation71_spill] sm:$0xff] %v11050_v24  ;;  %v11066_v46 = vpop.f32.mrf.mxu1  ;;  %v5446_v24 = vadd.f32 %v10939_v12, %v10837_v45  ;;  %v5549_v45 = vadd.f32 %v10925_v5, %v5436_v21  ;;  %v5454_v12 = vadd.f32 %v10954_v16, %v10846_v56  ;;  %v11105_v5 = vadd.f32 %v10952_v29, %v5452_v31 }
 0x306   :  { %v11102_v50 = vadd.f32 %v10948_v54, %v5450_v15  ;;  %v5462_v59 = vadd.f32 %v10966_v42, %v10855_v17  ;;  %v5464_v49 = vadd.f32 %v10970_v13, %v10858_v7  ;;  %v11118_v1 = vadd.f32 %v10960_v53, %v5456_v34 }
 0x307   :  { %v5655_v62 = vpop.f32.mrf.mxu0  ;;  %v5768_v28 = vpop.f32.mrf.mxu1  ;;  %v11099_v21 = vadd.f32 %v10941_v44, %v5446_v24  ;;  %v11114_v60 = vadd.f32 %v10956_v3, %v5454_v12  ;;  %v11121_v42 = vadd.f32 %v10964_v6, %v5460_v25  ;;  %v5470_v17 = vadd.f32 %v10978_v26, %v10864_v37  ;;  %v11876_v26 = vld [vmem:[#allocation9_spill] sm:$0xff]  ;;  %v11877_v37 = vld [vmem:[#allocation18_spill] sm:$0xff] }
 0x308   :  { %v5656_v33 = vadd.f32 %v5655_v62, %v5543_v63  ;;  %v11130_v53 = vadd.f32 %v10968_v36, %v5462_v59  ;;  %v11133_v6 = vadd.f32 %v10972_v19, %v5464_v49  ;;  %v11136_v13 = vadd.f32 %v10976_v14, %v5466_v40  ;;  %v11879_v36 = vld [vmem:[#allocation47_spill] sm:$0xff]  ;;  %v11880_v19 = vld [vmem:[#allocation33_spill] sm:$0xff]  ;;  %v11881_v62 = vld [vmem:[#allocation20_spill] sm:$0xff] }
 0x309   :  { %v5657_v51 = vpop.f32.mrf.mxu0  ;;  %v5770_v47 = vpop.f32.mrf.mxu1  ;;  %v5474_v2 = vadd.f32 %v11877_v37, %v11876_v26  ;;  %v11145_v31 = vadd.f32 %v11879_v36, %v5472_v57  ;;  %v5476_v14 = vadd.f32 %v11881_v62, %v11880_v19  ;;  %v11885_v57 = vld [vmem:[#allocation51_spill] sm:$0xff] }
 0x30a   :  { %v5769_v56 = vadd.f32 %v5768_v28, %v5656_v33  ;;  %v5658_v20 = vadd.f32 %v5657_v51, %v5545_v27  ;;  %v11878_v27 = vld [vmem:[#allocation16_spill] sm:$0xff] }
 0x30b   :  { %v5659_v39 = vpop.f32.mrf.mxu0  ;;  %v5772_v9 = vpop.f32.mrf.mxu1 }
 0x30c   :  { %v5871_v15 = vmul.f32 %v11055_v61, %v5769_v56  ;;  %v5771_v44 = vadd.f32 %v5770_v47, %v5658_v20  ;;  %v5660_v54 = vadd.f32 %v5659_v39, %v5547_v11  ;;  %v11142_v11 = vadd.f32 %v11878_v27, %v5470_v17  ;;  %v11883_v56 = vld [vmem:[#allocation10_spill] sm:$0xff] }
 0x30d   :  { %v5661_v7 = vpop.f32.mrf.mxu0  ;;  %v5774_v32 = vpop.f32.mrf.mxu1  ;;  %v11884_v20 = vld [vmem:[#allocation22_spill] sm:$0xff] }
 0x30e   :  { %v5957_v29 = vadd.f32 %v11060_v58, %v5871_v15  ;;  %v5872_v16 = vmul.f32 %v11068_v23, %v5771_v44  ;;  %v5773_v3 = vadd.f32 %v5772_v9, %v5660_v54  ;;  %v5662_v55 = vadd.f32 %v5661_v7, %v5549_v45 }
 0x30f   :  { %v5665_v35 = vpop.f32.mrf.mxu0  ;;  %v5778_v24 = vpop.f32.mrf.mxu1  ;;  %v5480_v59 = vadd.f32 %v11884_v20, %v11883_v56  ;;  %v11161_v7 = vadd.f32 %v11885_v57, %v5476_v14 }
 0x310   :  { %v6021_v41 = vmax.f32 %v5957_v29, 0.0  ;;  %v5875_v10 = vmul.f32 %v11055_v61, %v5773_v3  ;;  %v5775_v63 = vadd.f32 %v5774_v32, %v5662_v55  ;;  %v5666_v52 = vadd.f32 %v5665_v35, %v5553_v43  ;;  %v11882_v43 = vld [vmem:[#allocation49_spill] sm:$0xff]  ;;  %v11886_v3 = vld [vmem:[#allocation19_spill] sm:$0xff] }
 0x311   :  { %v5667_v28 = vpop.f32.mrf.mxu0  ;;  %v5780_v45 = vpop.f32.mrf.mxu1  ;;  %v5958_v12 = vadd.f32 %v11070_v4, %v5872_v16  ;;  %v11153_v47 = vadd.f32 %v11882_v43, %v5474_v2 }
 0x312   :  { %v5961_v33 = vadd.f32 %v11060_v58, %v5875_v10  ;;  %v5876_v34 = vmul.f32 %v11068_v23, %v5775_v63  ;;  %v5779_v25 = vadd.f32 %v5778_v24, %v5666_v52  ;;  %v5668_v51 = vadd.f32 %v5667_v28, %v5555_v8  ;;  %v11887_v24 = vld [vmem:[#allocation53_spill] sm:$0xff]  ;;  %v11888_v28 = vld [vmem:[#allocation35_spill] sm:$0xff] }
 0x313   :  { %v5669_v49 = vpop.f32.mrf.mxu0  ;;  %v5782_v40 = vpop.f32.mrf.mxu1  ;;  %v6022_v39 = vmax.f32 %v5958_v12, 0.0  ;;  %v6107_v9 = vmul.f32 %v11080_v18, %v6021_v41  ;;  %v11169_v41 = vadd.f32 %v11887_v24, %v5480_v59 }
 0x314   :  { %v6025_v15 = vmax.f32 %v5961_v33, 0.0  ;;  %v5962_v44 = vadd.f32 %v11070_v4, %v5876_v34  ;;  %v5879_v54 = vmul.f32 %v11055_v61, %v5779_v25  ;;  %v5781_v17 = vadd.f32 %v5780_v45, %v5668_v51  ;;  %v11889_v45 = vld [vmem:[#allocation24_spill] sm:$0xff] }
 0x315   :  { %v5670_v8 = vadd.f32 %v5669_v49, %v5557_v0  ;;  %v5671_v32 = vpop.f32.mrf.mxu0  ;;  %v5784_v29 = vpop.f32.mrf.mxu1  ;;  %v6108_v16 = vmul.f32 %v11086_v30, %v6022_v39  ;;  %v6170_v55 = vadd.f32 %v11886_v3, %v6107_v9  ;;  %v5482_v12 = vadd.f32 %v11889_v45, %v11888_v28  ;;  %v11890_v25 = vld [vmem:[#allocation120_spill] sm:$0xff]  ;;  %v11891_v49 = vld [vmem:[#allocation11_spill] sm:$0xff] }
 0x316   :  { %v6026_v26 = vmax.f32 %v5962_v44, 0.0  ;;  %v5965_v37 = vadd.f32 %v11060_v58, %v5879_v54  ;;  %v5880_v2 = vmul.f32 %v11068_v23, %v5781_v17  ;;  %v5672_v35 = vadd.f32 %v5671_v32, %v11099_v21 }
 0x317   :  { %v5783_v10 = vadd.f32 %v5782_v40, %v5670_v8  ;;  %v5675_v63 = vpop.f32.mrf.mxu0  ;;  %v5788_v52 = vpop.f32.mrf.mxu1  ;;  %v6171_v0 = vadd.f32 %v6170_v55, %v6108_v16  ;;  %v6111_v27 = vmul.f32 %v11080_v18, %v6025_v15  ;;  %v11892_v40 = vld [vmem:[#allocation26_spill] sm:$0xff]  ;;  %v11893_v16 = vld [vmem:[#allocation55_spill] sm:$0xff] }
 0x318   :  { %v6029_v36 = vmax.f32 %v5965_v37, 0.0  ;;  %v5785_v19 = vadd.f32 %v5784_v29, %v5672_v35  ;;  %v5676_v62 = vadd.f32 %v5675_v63, %v11102_v50  ;;  %v6112_v14 = vmul.f32 %v11086_v30, %v6026_v26 }
 0x319   :  { %v5883_v21 = vmul.f32 %v11055_v61, %v5783_v10  ;;  %6172 = vadd.xlane.f32.xlu0 %v6171_v0  ;;  %v5677_v33 = vpop.f32.mrf.mxu0  ;;  %v5790_v34 = vpop.f32.mrf.mxu1  ;;  %v6175_v51 = vadd.f32 %v11890_v25, %v6111_v27  ;;  %v5966_v43 = vadd.f32 %v11070_v4, %v5880_v2  ;;  %v5484_v39 = vadd.f32 %v11892_v40, %v11891_v49  ;;  %v11894_v2 = vld [vmem:[#allocation3_spill] sm:$0xff]  ;;  %v11895_v0 = vld [vmem:[#allocation57_spill] sm:$0xff] }
 0x31a   :  { %v5884_v56 = vmul.f32 %v11068_v23, %v5785_v19  ;;  %v5789_v20 = vadd.f32 %v5788_v52, %v5676_v62  ;;  %v5678_v59 = vadd.f32 %v5677_v33, %v11105_v5  ;;  %v6115_v50 = vmul.f32 %v11080_v18, %v6029_v36  ;;  %v11896_v33 = vld [vmem:[#allocation37_spill] sm:$0xff] }
 0x31b   :  { %v5969_v9 = vadd.f32 %v11060_v58, %v5883_v21  ;;  %v5679_v15 = vpop.f32.mrf.mxu0  ;;  %v5792_v44 = vpop.f32.mrf.mxu1  ;;  %v6176_v54 = vadd.f32 %v6175_v51, %v6112_v14  ;;  %v6030_v17 = vmax.f32 %v5966_v43, 0.0  ;;  %v11189_v5 = vadd.f32 %v11893_v16, %v5482_v12 }
 0x31c   :  { %v5970_v57 = vadd.f32 %v11070_v4, %v5884_v56  ;;  %v5887_v8 = vmul.f32 %v11055_v61, %v5789_v20  ;;  %v5791_v32 = vadd.f32 %v5790_v34, %v5678_v59  ;;  %v5680_v29 = vadd.f32 %v5679_v15, %v11114_v60  ;;  %v11897_v34 = vld [vmem:[#allocation28_spill] sm:$0xff]  ;;  %v11898_v20 = vld [vmem:[#allocation21_spill] sm:$0xff]  ;;  %v11900_v15 = vld [vmem:[#allocation30_spill] sm:$0xff] }
 0x31d   :  { %v6033_v3 = vmax.f32 %v5969_v9, 0.0  ;;  %6177 = vadd.xlane.f32.xlu0 %v6176_v54  ;;  %v5681_v55 = vpop.f32.mrf.mxu0  ;;  %v5794_v26 = vpop.f32.mrf.mxu1  ;;  %v6116_v37 = vmul.f32 %v11086_v30, %v6030_v17  ;;  %v6180_v35 = vadd.f32 %v11894_v2, %v6115_v50  ;;  %v11196_v27 = vadd.f32 %v11895_v0, %v5484_v39  ;;  %v11899_v9 = vld [vmem:[#allocation12_spill] sm:$0xff] }
 0x31e   :  { %v6034_v24 = vmax.f32 %v5970_v57, 0.0  ;;  %v5973_v10 = vadd.f32 %v11060_v58, %v5887_v8  ;;  %v5888_v63 = vmul.f32 %v11068_v23, %v5791_v32  ;;  %v5793_v52 = vadd.f32 %v5792_v44, %v5680_v29 }
 0x31f   :  { %v5682_v60 = vadd.f32 %v5681_v55, %v11118_v1  ;;  %v5685_v36 = vpop.f32.mrf.mxu0  ;;  %v5798_v19 = vpop.f32.mrf.mxu1  ;;  %v6181_v62 = vadd.f32 %v6180_v35, %v6116_v37  ;;  %v6119_v14 = vmul.f32 %v11080_v18, %v6033_v3  ;;  %v5486_v25 = vadd.f32 %v11897_v34, %v11896_v33  ;;  %v11901_v55 = vld [vmem:[#allocation59_spill] sm:$0xff] }
 0x320   :  { %v6037_v28 = vmax.f32 %v5973_v10, 0.0  ;;  %v5974_v45 = vadd.f32 %v11070_v4, %v5888_v63  ;;  %v5891_v12 = vmul.f32 %v11055_v61, %v5793_v52  ;;  %v5686_v21 = vadd.f32 %v5685_v36, %v11121_v42 }
 0x321   :  { %v5795_v51 = vadd.f32 %v5794_v26, %v5682_v60  ;;  %6182 = vadd.xlane.f32.xlu1 %v6181_v62  ;;  %v5687_v43 = vpop.f32.mrf.mxu0  ;;  %v5800_v56 = vpop.f32.mrf.mxu1  ;;  %v6120_v1 = vmul.f32 %v11086_v30, %v6034_v24  ;;  %v6185_v59 = vadd.f32 %v11898_v20, %v6119_v14  ;;  %v5490_v42 = vadd.f32 %v11900_v15, %v11899_v9  ;;  %v11902_v24 = vld [vmem:[#allocation122_spill] sm:$0xff]  ;;  %v11905_v20 = vld [vmem:[#allocation123_spill] sm:$0xff]  ;;  %v11906_v9 = vld [vmem:[#allocation13_spill] sm:$0xff] }
 0x322   :  { %v6038_v50 = vmax.f32 %v5974_v45, 0.0  ;;  %v5977_v49 = vadd.f32 %v11060_v58, %v5891_v12  ;;  %v5799_v40 = vadd.f32 %v5798_v19, %v5686_v21  ;;  %v5688_v39 = vadd.f32 %v5687_v43, %v11130_v53  ;;  %v11907_v15 = vld [vmem:[#allocation63_spill] sm:$0xff] }
 0x323   :  { %v5892_v44 = vmul.f32 %v11068_v23, %v5795_v51  ;;  %v5689_v54 = vpop.f32.mrf.mxu0  ;;  %v5802_v17 = vpop.f32.mrf.mxu1  ;;  %v6186_v57 = vadd.f32 %v6185_v59, %v6120_v1  ;;  %v6123_v8 = vmul.f32 %v11080_v18, %v6037_v28  ;;  %v11216_v26 = vadd.f32 %v11901_v55, %v5486_v25  ;;  %v11904_v25 = vld [vmem:[#allocation39_spill] sm:$0xff] }
 0x324   :  { %v6041_v32 = vmax.f32 %v5977_v49, 0.0  ;;  %v5895_v29 = vmul.f32 %v11055_v61, %v5799_v40  ;;  %v5801_v16 = vadd.f32 %v5800_v56, %v5688_v39  ;;  %v5690_v3 = vadd.f32 %v5689_v54, %v11133_v6  ;;  %v11903_v6 = vld [vmem:[#allocation61_spill] sm:$0xff] }
 0x325   :  { %v5978_v53 = vadd.f32 %v11070_v4, %v5892_v44  ;;  %6187 = vadd.xlane.f32.xlu1 %v6186_v57  ;;  %v5691_v37 = vpop.f32.mrf.mxu0  ;;  %v5804_v2 = vpop.f32.mrf.mxu1  ;;  %v6124_v35 = vmul.f32 %v11086_v30, %v6038_v50  ;;  %v6190_v10 = vadd.f32 %v11902_v24, %v6123_v8  ;;  %v11225_v36 = vadd.f32 %v11903_v6, %v5490_v42 }
 0x326   :  { %v5981_v63 = vadd.f32 %v11060_v58, %v5895_v29  ;;  %v5896_v52 = vmul.f32 %v11068_v23, %v5801_v16  ;;  %v5803_v0 = vadd.f32 %v5802_v17, %v5690_v3  ;;  %v5692_v60 = vadd.f32 %v5691_v37, %v11136_v13  ;;  %v11908_v16 = vld [vmem:[#allocation32_spill] sm:$0xff] }
 0x327   :  { %v6042_v19 = vmax.f32 %v5978_v53, 0.0  ;;  %v5695_v62 = vpop.f32.mrf.mxu0  ;;  %v5808_v14 = vpop.f32.mrf.mxu1  ;;  %v6191_v28 = vadd.f32 %v6190_v10, %v6124_v35  ;;  %v6127_v45 = vmul.f32 %v11080_v18, %v6041_v32  ;;  %v5492_v51 = vadd.f32 %v11014_v48, %v11904_v25 }
 0x328   :  { %v6045_v12 = vmax.f32 %v5981_v63, 0.0  ;;  %v5982_v21 = vadd.f32 %v11070_v4, %v5896_v52  ;;  %v5899_v33 = vmul.f32 %v11055_v61, %v5803_v0  ;;  %v5805_v34 = vadd.f32 %v5804_v2, %v5692_v60  ;;  %v11909_v2 = vld [vmem:[#allocation4_spill] sm:$0xff]  ;;  %v11910_v0 = vld [vmem:[#allocation34_spill] sm:$0xff] }
 0x329   :  { %v5696_v13 = vadd.f32 %v5695_v62, %v11142_v11  ;;  %6192 = vadd.xlane.f32.xlu0 %v6191_v28  ;;  %v5697_v43 = vpop.f32.mrf.mxu0  ;;  %v5810_v56 = vpop.f32.mrf.mxu1  ;;  %v6128_v1 = vmul.f32 %v11086_v30, %v6042_v19  ;;  %v6195_v59 = vadd.f32 %v11905_v20, %v6127_v45  ;;  %v5494_v42 = vadd.f32 %v11907_v15, %v11906_v9 }
 0x32a   :  { %v6046_v50 = vmax.f32 %v5982_v21, 0.0  ;;  %v5985_v49 = vadd.f32 %v11060_v58, %v5899_v33  ;;  %v5900_v40 = vmul.f32 %v11068_v23, %v5805_v34  ;;  %v5698_v39 = vadd.f32 %v5697_v43, %v11145_v31  ;;  %v11911_v33 = vld [vmem:[#allocation41_spill] sm:$0xff]  ;;  %v11912_v43 = vld [vmem:[#allocation124_spill] sm:$0xff] }
 0x32b   :  { %v5809_v48 = vadd.f32 %v5808_v14, %v5696_v13  ;;  %v5699_v44 = vpop.f32.mrf.mxu0  ;;  %v5812_v11 = vpop.f32.mrf.mxu1  ;;  %v6196_v54 = vadd.f32 %v6195_v59, %v6128_v1  ;;  %v6131_v17 = vmul.f32 %v11080_v18, %v6045_v12  ;;  %v11244_v3 = vadd.f32 %v11908_v16, %v5492_v51  ;;  %v11916_v16 = vld [vmem:[#allocation5_spill] sm:$0xff] }
 0x32c   :  { %v6049_v57 = vmax.f32 %v5985_v49, 0.0  ;;  %v5986_v8 = vadd.f32 %v11070_v4, %v5900_v40  ;;  %v5811_v32 = vadd.f32 %v5810_v56, %v5698_v39  ;;  %v5700_v29 = vadd.f32 %v5699_v44, %v11153_v47  ;;  %v11913_v49 = vld [vmem:[#allocation14_spill] sm:$0xff]  ;;  %v11914_v40 = vld [vmem:[#allocation36_spill] sm:$0xff] }
 0x32d   :  { %v5903_v31 = vmul.f32 %v11055_v61, %v5809_v48  ;;  %6197 = vadd.xlane.f32.xlu1 %v6196_v54  ;;  %v5701_v55 = vpop.f32.mrf.mxu0  ;;  %v5814_v53 = vpop.f32.mrf.mxu1  ;;  %v6132_v37 = vmul.f32 %v11086_v30, %v6046_v50  ;;  %v6200_v35 = vadd.f32 %v11909_v2, %v6131_v17  ;;  %v11252_v47 = vadd.f32 %v11910_v0, %v5494_v42  ;;  %v11915_v17 = vld [vmem:[#allocation65_spill] sm:$0xff] }
 0x32e   :  { %v6050_v24 = vmax.f32 %v5986_v8, 0.0  ;;  %v5904_v10 = vmul.f32 %v11068_v23, %v5811_v32  ;;  %v5813_v63 = vadd.f32 %v5812_v11, %v5700_v29  ;;  %v5702_v52 = vadd.f32 %v5701_v55, %v11161_v7 }
 0x32f   :  { %v5989_v60 = vadd.f32 %v11060_v58, %v5903_v31  ;;  %v5705_v6 = vpop.f32.mrf.mxu0  ;;  %v5818_v19 = vpop.f32.mrf.mxu1  ;;  %v6201_v62 = vadd.f32 %v6200_v35, %v6132_v37  ;;  %v6135_v14 = vmul.f32 %v11080_v18, %v6049_v57  ;;  %v5496_v7 = vadd.f32 %v11022_v22, %v11911_v33  ;;  %v11917_v35 = vld [vmem:[#allocation67_spill] sm:$0xff] }
 0x330   :  { %v5990_v28 = vadd.f32 %v11070_v4, %v5904_v10  ;;  %v5907_v45 = vmul.f32 %v11055_v61, %v5813_v63  ;;  %v5815_v12 = vadd.f32 %v5814_v53, %v5702_v52  ;;  %v5706_v21 = vadd.f32 %v5705_v6, %v11169_v41 }
 0x331   :  { %v6053_v34 = vmax.f32 %v5989_v60, 0.0  ;;  %6202 = vadd.xlane.f32.xlu0 %v6201_v62  ;;  %v5707_v25 = vpop.f32.mrf.mxu0  ;;  %v5820_v51 = vpop.f32.mrf.mxu1  ;;  %v6136_v13 = vmul.f32 %v11086_v30, %v6050_v24  ;;  %v6205_v56 = vadd.f32 %v11912_v43, %v6135_v14  ;;  %v5500_v41 = vadd.f32 %v11914_v40, %v11913_v49  ;;  %v11918_v14 = vld [vmem:[#allocation43_spill] sm:$0xff] }
 0x332   :  { %v6054_v1 = vmax.f32 %v5990_v28, 0.0  ;;  %v5993_v20 = vadd.f32 %v11060_v58, %v5907_v45  ;;  %v5908_v59 = vmul.f32 %v11068_v23, %v5815_v12  ;;  %v5819_v50 = vadd.f32 %v5818_v19, %v5706_v21  ;;  %v11919_v28 = vld [vmem:[#allocation38_spill] sm:$0xff] }
 0x333   :  { %v5708_v39 = vadd.f32 %v5707_v25, %v11189_v5  ;;  %v5709_v22 = vpop.f32.mrf.mxu0  ;;  %v5822_v9 = vpop.f32.mrf.mxu1  ;;  %v6206_v15 = vadd.f32 %v6205_v56, %v6136_v13  ;;  %v6139_v42 = vmul.f32 %v11080_v18, %v6053_v34  ;;  %v5609_v57 = vadd.f32 %v11915_v17, %v5496_v7  ;;  %v11920_v7 = vld [vmem:[#allocation25_spill] sm:$0xff] }
 0x334   :  { %v6057_v48 = vmax.f32 %v5993_v20, 0.0  ;;  %v5994_v44 = vadd.f32 %v11070_v4, %v5908_v59  ;;  %v5911_v11 = vmul.f32 %v11055_v61, %v5819_v50  ;;  %v5710_v54 = vadd.f32 %v5709_v22, %v11196_v27 }
 0x335   :  { %v5821_v8 = vadd.f32 %v5820_v51, %v5708_v39  ;;  %6207 = vadd.xlane.f32.xlu1 %v6206_v15  ;;  %v5711_v32 = vpop.f32.mrf.mxu0  ;;  %v5824_v29 = vpop.f32.mrf.mxu1  ;;  %v6140_v5 = vmul.f32 %v11086_v30, %v6054_v1  ;;  %v6210_v31 = vadd.f32 %v11916_v16, %v6139_v42  ;;  %v5613_v24 = vadd.f32 %v11917_v35, %v5500_v41 }
 0x336   :  { %v6058_v55 = vmax.f32 %v5994_v44, 0.0  ;;  %v5997_v53 = vadd.f32 %v11060_v58, %v5911_v11  ;;  %v5823_v37 = vadd.f32 %v5822_v9, %v5710_v54  ;;  %v5712_v2 = vadd.f32 %v5711_v32, %v11216_v26  ;;  %v11922_v9 = vld [vmem:[#allocation69_spill] sm:$0xff]  ;;  %v11923_v44 = vld [vmem:[#allocation6_spill] sm:$0xff] }
 0x337   :  { %v5912_v27 = vmul.f32 %v11068_v23, %v5821_v8  ;;  %v5715_v10 = vpop.f32.mrf.mxu0  ;;  %v5828_v63 = vpop.f32.mrf.mxu1  ;;  %v6211_v52 = vadd.f32 %v6210_v31, %v6140_v5  ;;  %v6143_v0 = vmul.f32 %v11080_v18, %v6057_v48  ;;  %v5502_v45 = vadd.f32 %v11919_v28, %v11918_v14 }
 0x338   :  { %v6061_v60 = vmax.f32 %v5997_v53, 0.0  ;;  %v5915_v6 = vmul.f32 %v11055_v61, %v5823_v37  ;;  %v5825_v19 = vadd.f32 %v5824_v29, %v5712_v2  ;;  %v5716_v62 = vadd.f32 %v5715_v10, %v11225_v36  ;;  %v11921_v36 = vld [vmem:[#allocation15_spill] sm:$0xff]  ;;  %v11924_v29 = vld [vmem:[#allocation40_spill] sm:$0xff]  ;;  %v11925_v10 = vld [vmem:[#allocation45_spill] sm:$0xff] }
 0x339   :  { %v5998_v26 = vadd.f32 %v11070_v4, %v5912_v27  ;;  %6212 = vadd.xlane.f32.xlu0 %v6211_v52  ;;  %v5717_v12 = vpop.f32.mrf.mxu0  ;;  %v5830_v21 = vpop.f32.mrf.mxu1  ;;  %v6144_v33 = vmul.f32 %v11086_v30, %v6058_v55  ;;  %v6215_v34 = vadd.f32 %v11920_v7, %v6143_v0  ;;  %v5504_v56 = vadd.f32 %v11038_v38, %v11921_v36 }
 0x33a   :  { %v6001_v25 = vadd.f32 %v11060_v58, %v5915_v6  ;;  %v5916_v51 = vmul.f32 %v11068_v23, %v5825_v19  ;;  %v5829_v13 = vadd.f32 %v5828_v63, %v5716_v62  ;;  %v5718_v43 = vadd.f32 %v5717_v12, %v11244_v3  ;;  %v11926_v63 = vld [vmem:[#allocation71_spill] sm:$0xff] }
 0x33b   :  { %v6062_v1 = vmax.f32 %v5998_v26, 0.0  ;;  %v5719_v20 = vpop.f32.mrf.mxu0  ;;  %v5832_v59 = vpop.f32.mrf.mxu1  ;;  %v6216_v50 = vadd.f32 %v6215_v34, %v6144_v33  ;;  %v6147_v49 = vmul.f32 %v11080_v18, %v6061_v60  ;;  %v5615_v15 = vadd.f32 %v11922_v9, %v5502_v45  ;;  %v11927_v19 = vld [vmem:[#allocation27_spill] sm:$0xff] }
 0x33c   :  { %v6065_v40 = vmax.f32 %v6001_v25, 0.0  ;;  %v6002_v41 = vadd.f32 %v11070_v4, %v5916_v51  ;;  %v5919_v39 = vmul.f32 %v11055_v61, %v5829_v13  ;;  %v5831_v22 = vadd.f32 %v5830_v21, %v5718_v43 }
 0x33d   :  { %v5720_v42 = vadd.f32 %v5719_v20, %v11252_v47  ;;  %6217 = vadd.xlane.f32.xlu1 %v6216_v50  ;;  %v5721_v3 = vpop.f32.mrf.mxu0  ;;  %v5834_v48 = vpop.f32.mrf.mxu1  ;;  %v6148_v38 = vmul.f32 %v11086_v30, %v6062_v1  ;;  %v6220_v11 = vadd.f32 %v11923_v44, %v6147_v49  ;;  %v5617_v5 = vadd.f32 %v11924_v29, %v5504_v56  ;;  %v11928_v20 = vld [vmem:[#allocation7_spill] sm:$0xff]  ;;  %v11929_v44 = vld [vmem:[#allocation29_spill] sm:$0xff] }
 0x33e   :  { %v6066_v54 = vmax.f32 %v6002_v41, 0.0  ;;  %v6005_v17 = vadd.f32 %v11060_v58, %v5919_v39  ;;  %v5920_v8 = vmul.f32 %v11068_v23, %v5831_v22  ;;  %v5722_v32 = vadd.f32 %v5721_v3, %v5609_v57 }
 0x33f   :  { %v5833_v16 = vadd.f32 %v5832_v59, %v5720_v42  ;;  %v5725_v31 = vpop.f32.mrf.mxu0  ;;  %v5838_v55 = vpop.f32.mrf.mxu1  ;;  %v6221_v53 = vadd.f32 %v6220_v11, %v6148_v38  ;;  %v6151_v47 = vmul.f32 %v11080_v18, %v6065_v40  ;;  %v5506_v52 = vadd.f32 %v11926_v63, %v11925_v10 }
 0x340   :  { %v6069_v37 = vmax.f32 %v6005_v17, 0.0  ;;  %v6006_v2 = vadd.f32 %v11070_v4, %v5920_v8  ;;  %v5835_v35 = vadd.f32 %v5834_v48, %v5722_v32  ;;  %v5726_v27 = vadd.f32 %v5725_v31, %v5613_v24  ;;  %v11930_v31 = vld [vmem:[#allocation8_spill] sm:$0xff] }
 0x341   :  { %v5923_v0 = vmul.f32 %v11055_v61, %v5833_v16  ;;  %6222 = vadd.xlane.f32.xlu0 %v6221_v53  ;;  %v5727_v57 = vpop.f32.mrf.mxu0  ;;  %v5840_v60 = vpop.f32.mrf.mxu1  ;;  %v6152_v6 = vmul.f32 %v11086_v30, %v6066_v54  ;;  %v6225_v62 = vadd.f32 %v11927_v19, %v6151_v47  ;;  %v5619_v43 = vadd.f32 %v11066_v46, %v5506_v52 }
 0x342   :  { %v6070_v14 = vmax.f32 %v6006_v2, 0.0  ;;  %v5924_v28 = vmul.f32 %v11068_v23, %v5835_v35  ;;  %v5839_v45 = vadd.f32 %v5838_v55, %v5726_v27  ;;  %v5728_v26 = vadd.f32 %v5727_v57, %v5615_v15  ;;  %v11931_v2 = vld [vmem:[#allocation31_spill] sm:$0xff] }
 0x343   :  { %v6009_v12 = vadd.f32 %v11060_v58, %v5923_v0  ;;  %v5729_v24 = vpop.f32.mrf.mxu0  ;;  %v6226_v21 = vadd.f32 %v6225_v62, %v6152_v6  ;;  %v6155_v33 = vmul.f32 %v11080_v18, %v6069_v37  ;;  %v5842_v13 = vpop.f32.mrf.mxu1 }
 0x344   :  { %v6010_v7 = vadd.f32 %v11070_v4, %v5924_v28  ;;  %v5927_v34 = vmul.f32 %v11055_v61, %v5839_v45  ;;  %v5841_v25 = vadd.f32 %v5840_v60, %v5728_v26  ;;  %v5730_v51 = vadd.f32 %v5729_v24, %v5617_v5 }
 0x345   :  { %v6073_v36 = vmax.f32 %v6009_v12, 0.0  ;;  %6227 = vadd.xlane.f32.xlu1 %v6226_v21  ;;  %v5731_v56 = vpop.f32.mrf.mxu0  ;;  %v6156_v1 = vmul.f32 %v11086_v30, %v6070_v14  ;;  %v6230_v59 = vadd.f32 %v11928_v20, %v6155_v33  ;;  %v5844_v3 = vpop.f32.mrf.mxu1 }
 0x346   :  { %v6074_v50 = vmax.f32 %v6010_v7, 0.0  ;;  %v6013_v49 = vadd.f32 %v11060_v58, %v5927_v34  ;;  %v5928_v40 = vmul.f32 %v11068_v23, %v5841_v25  ;;  %v5843_v41 = vadd.f32 %v5842_v13, %v5730_v51 }
 0x347   :  { %v5732_v39 = vadd.f32 %v5731_v56, %v5619_v43  ;;  %v6231_v22 = vadd.f32 %v6230_v59, %v6156_v1  ;;  %v6159_v9 = vmul.f32 %v11080_v18, %v6073_v36 }
 0x348   :  { %v6077_v15 = vmax.f32 %v6013_v49, 0.0  ;;  %v6014_v46 = vadd.f32 %v11070_v4, %v5928_v40  ;;  %v5931_v42 = vmul.f32 %v11055_v61, %v5843_v41  ;;  %v6160_v48 = vmul.f32 %v11086_v30, %v6074_v50 }
 0x349   :  { %v5845_v38 = vadd.f32 %v5844_v3, %v5732_v39  ;;  %6232 = vadd.xlane.f32.xlu0 %v6231_v22  ;;  %v6235_v11 = vadd.f32 %v11929_v44, %v6159_v9 }
 0x34a   :  { %v6078_v54 = vmax.f32 %v6014_v46, 0.0  ;;  %v6017_v17 = vadd.f32 %v11060_v58, %v5931_v42  ;;  %v6163_v8 = vmul.f32 %v11080_v18, %v6077_v15 }
 0x34b   :  { %v5932_v32 = vmul.f32 %v11068_v23, %v5845_v38  ;;  %v6236_v29 = vadd.f32 %v6235_v11, %v6160_v48  ;;  %v11333_v23 = vld [vmem:[#allocation2] ss:$0 sm:$0xff] }
 0x34c   :  { %v6081_v5 = vmax.f32 %v6017_v17, 0.0  ;;  %v6164_v16 = vmul.f32 %v11086_v30, %v6078_v54  ;;  %v6240_v61 = vadd.f32 %v11930_v31, %v6163_v8 }
 0x34d   :  { %v6018_v55 = vadd.f32 %v11070_v4, %v5932_v32  ;;  %6237 = vadd.xlane.f32.xlu1 %v6236_v29 }
 0x34e   :  { %v6241_v53 = vadd.f32 %v6240_v61, %v6164_v16  ;;  %v6167_v47 = vmul.f32 %v11080_v18, %v6081_v5 }
 0x34f   :  { %v6082_v37 = vmax.f32 %v6018_v55, 0.0 }
 0x350   :  { %6242 = vadd.xlane.f32.xlu0 %v6241_v53  ;;  %v6245_v58 = vadd.f32 %v11931_v2, %v6167_v47 }
 0x351   :  { %v6168_v35 = vmul.f32 %v11086_v30, %v6082_v37 }
 0x353   :  { %v6246_v27 = vadd.f32 %v6245_v58, %v6168_v35 }
 0x355   :  { %6247 = vadd.xlane.f32.xlu1 %v6246_v27 }
 0x3a2   :  { %v6173_v10 = vpop.xlane.xlu0 %6172 }
 0x3a3   :  { %v6256_v63 = vadd.f32 %v11333_v23, %v6173_v10 }
 0x3a5   :  { %v6272_v52 = vmax.f32 %v6256_v63, 0.0 }
 0x3a6   :  { %v6178_v4 = vpop.xlane.xlu0 %6177 }
 0x3a7   :  { %6289 = vst.msk [vmem:[%s11421_s6] sm:$0xff] %vm6288_vm2, %v6272_v52  ;;  %v6257_v18 = vadd.f32 %v11333_v23, %v6178_v4 }
 0x3a9   :  { %v6273_v0 = vmax.f32 %v6257_v18, 0.0 }
 0x3aa   :  { %v6183_v57 = vpop.xlane.xlu1 %6182 }
 0x3ab   :  { %6290 = vst.msk [vmem:[%s11421_s6 + $0x8] sm:$0xff] %vm6288_vm2, %v6273_v0  ;;  %v6258_v30 = vadd.f32 %v11333_v23, %v6183_v57 }
 0x3ad   :  { %v6274_v60 = vmax.f32 %v6258_v30, 0.0 }
 0x3ae   :  { %v6188_v6 = vpop.xlane.xlu1 %6187 }
 0x3af   :  { %6291 = vst.msk [vmem:[%s11421_s6 + $0x10] sm:$0xff] %vm6288_vm2, %v6274_v60  ;;  %v6259_v19 = vadd.f32 %v11333_v23, %v6188_v6 }
 0x3b1   :  { %v6275_v62 = vmax.f32 %v6259_v19, 0.0 }
 0x3b2   :  { %v6193_v14 = vpop.xlane.xlu0 %6192 }
 0x3b3   :  { %6292 = vst.msk [vmem:[%s11421_s6 + $0x18] sm:$0xff] %vm6288_vm2, %v6275_v62  ;;  %v6260_v28 = vadd.f32 %v11333_v23, %v6193_v14 }
 0x3b5   :  { %v6276_v45 = vmax.f32 %v6260_v28, 0.0 }
 0x3b6   :  { %v6198_v26 = vpop.xlane.xlu1 %6197 }
 0x3b7   :  { %6293 = vst.msk [vmem:[%s11421_s6 + $0x20] sm:$0xff] %vm6288_vm2, %v6276_v45  ;;  %v6261_v12 = vadd.f32 %v11333_v23, %v6198_v26 }
 0x3b9   :  { %v6277_v24 = vmax.f32 %v6261_v12, 0.0 }
 0x3ba   :  { %v6203_v21 = vpop.xlane.xlu0 %6202 }
 0x3bb   :  { %6294 = vst.msk [vmem:[%s11421_s6 + $0x28] sm:$0xff] %vm6288_vm2, %v6277_v24  ;;  %v6262_v33 = vadd.f32 %v11333_v23, %v6203_v21 }
 0x3bd   :  { %v6278_v7 = vmax.f32 %v6262_v33, 0.0 }
 0x3be   :  { %v6208_v34 = vpop.xlane.xlu1 %6207 }
 0x3bf   :  { %6295 = vst.msk [vmem:[%s11421_s6 + $0x30] sm:$0xff] %vm6288_vm2, %v6278_v7  ;;  %v6263_v25 = vadd.f32 %v11333_v23, %v6208_v34 }
 0x3c1   :  { %v6279_v51 = vmax.f32 %v6263_v25, 0.0 }
 0x3c2   :  { %v6213_v13 = vpop.xlane.xlu0 %6212 }
 0x3c3   :  { %6296 = vst.msk [vmem:[%s11421_s6 + $0x38] sm:$0xff] %vm6288_vm2, %v6279_v51  ;;  %v6264_v43 = vadd.f32 %v11333_v23, %v6213_v13 }
 0x3c5   :  { %v6280_v36 = vmax.f32 %v6264_v43, 0.0 }
 0x3c6   :  { %v6218_v56 = vpop.xlane.xlu1 %6217 }
 0x3c7   :  { %6297 = vst.msk [vmem:[%s11421_s6 + $0x40] sm:$0xff] %vm6288_vm2, %v6280_v36  ;;  %v6265_v1 = vadd.f32 %v11333_v23, %v6218_v56 }
 0x3c9   :  { %v6281_v20 = vmax.f32 %v6265_v1, 0.0 }
 0x3ca   :  { %v6223_v59 = vpop.xlane.xlu0 %6222 }
 0x3cb   :  { %6298 = vst.msk [vmem:[%s11421_s6 + $0x48] sm:$0xff] %vm6288_vm2, %v6281_v20  ;;  %v6266_v50 = vadd.f32 %v11333_v23, %v6223_v59 }
 0x3cd   :  { %v6282_v49 = vmax.f32 %v6266_v50, 0.0 }
 0x3ce   :  { %v6228_v40 = vpop.xlane.xlu1 %6227 }
 0x3cf   :  { %6299 = vst.msk [vmem:[%s11421_s6 + $0x50] sm:$0xff] %vm6288_vm2, %v6282_v49  ;;  %v6267_v41 = vadd.f32 %v11333_v23, %v6228_v40 }
 0x3d1   :  { %v6283_v39 = vmax.f32 %v6267_v41, 0.0 }
 0x3d2   :  { %v6233_v22 = vpop.xlane.xlu0 %6232 }
 0x3d3   :  { %6300 = vst.msk [vmem:[%s11421_s6 + $0x58] sm:$0xff] %vm6288_vm2, %v6283_v39  ;;  %v6268_v9 = vadd.f32 %v11333_v23, %v6233_v22 }
 0x3d5   :  { %v6284_v15 = vmax.f32 %v6268_v9, 0.0 }
 0x3d6   :  { %v6238_v46 = vpop.xlane.xlu1 %6237 }
 0x3d7   :  { %6301 = vst.msk [vmem:[%s11421_s6 + $0x60] sm:$0xff] %vm6288_vm2, %v6284_v15  ;;  %v6269_v42 = vadd.f32 %v11333_v23, %v6238_v46 }
 0x3d9   :  { %v6285_v3 = vmax.f32 %v6269_v42, 0.0  ;;  %v6243_v48 = vpop.xlane.xlu0 %6242 }
 0x3da   :  { %v6270_v38 = vadd.f32 %v11333_v23, %v6243_v48 }
 0x3db   :  { %6302 = vst.msk [vmem:[%s11421_s6 + $0x68] sm:$0xff] %vm6288_vm2, %v6285_v3 }
 0x3dc   :  { %v6286_v44 = vmax.f32 %v6270_v38, 0.0 }
 0x3de   :  { %6303 = vst.msk [vmem:[%s11421_s6 + $0x70] sm:$0xff] %vm6288_vm2, %v6286_v44  ;;  %v6248_v11 = vpop.xlane.xlu1 %6247 }
 0x3df   :  { %v6271_v54 = vadd.f32 %v11333_v23, %v6248_v11 }
 0x3e1   :  { %v6287_v17 = vmax.f32 %v6271_v54, 0.0 }
 0x3e3   :  { %6304 = vst.msk [vmem:[%s11421_s6 + $0x78] sm:$0xff] %vm6288_vm2, %v6287_v17 }

</bundles_post_ra>
